<compile_context>
chip_gen: v7x
topology: tpu7x:2x2x1
jax: 0.10.0
libtpu: 0.0.40
codegen_flags: <defaults>
</compile_context>

<pallas_src>
import functools

import jax
import jax.numpy as jnp
from jax.experimental import pallas as pl
from jax.experimental.pallas import tpu as pltpu

TM = 128                      # row tile (sublane axis) for feedforward matmuls
MXU_DTYPE = jnp.bfloat16      # MXU input dtype (f32 accumulate). jnp.float32 for exact f32.


# ----------------------------- Pallas kernels ------------------------------

def _mm_bias_act_kernel(x_ref, w_ref, b_ref, o_ref, *, act, alpha):
    """(TM, K) @ (K, N) on the MXU, f32 accumulate, + bias, optional LeakyReLU."""
    acc = jnp.dot(x_ref[...].astype(w_ref.dtype), w_ref[...],
                  preferred_element_type=jnp.float32)
    acc = acc + b_ref[...].astype(jnp.float32)
    if act == "leaky":
        acc = jnp.where(acc >= 0.0, acc, alpha * acc)
    o_ref[...] = acc.astype(o_ref.dtype)


def matmul_bias_act(x, w, b, act=None, alpha=0.2):
    """(M, K) @ (K, N) + b with optional LeakyReLU, tiled over M."""
    M, K = x.shape
    K2, N = w.shape
    assert K == K2
    Mp = ((M + TM - 1) // TM) * TM
    xp = x if Mp == M else jnp.pad(x, ((0, Mp - M), (0, 0)))   # no-op for these shapes
    kernel = functools.partial(_mm_bias_act_kernel, act=act, alpha=alpha)
    out = pl.pallas_call(
        kernel,
        out_shape=jax.ShapeDtypeStruct((Mp, N), x.dtype),
        grid=(Mp // TM,),
        in_specs=[
            pl.BlockSpec((TM, K), lambda i: (i, 0)),   # row tile of patches
            pl.BlockSpec((K, N), lambda i: (0, 0)),    # full weight, resident
            pl.BlockSpec((1, N), lambda i: (0, 0)),    # bias row, resident
        ],
        out_specs=pl.BlockSpec((TM, N), lambda i: (i, 0)),
        compiler_params=pltpu.CompilerParams(
            dimension_semantics=("parallel",)),        # shards the M tiles on v7x
    )(xp, w.astype(MXU_DTYPE), b.reshape(1, N))
    return out if Mp == M else out[:M]


def _gru_seq_kernel(i2h_ref, whh_ref, bhh_ref, mask_ref, out_ref, hpad_ref,
                    *, Ch, Wp, Mp, guard):
    """One ConvGRU step per grid index t (full sequence in a single pallas_call).

    Hidden state lives in VMEM scratch `hpad_ref` for the whole sequence, stored
    flat in zero-padded (b, y, x) coordinates with `guard` zero rows on each end,
    so the 3x3 'same' conv on h is 9 statically-shifted (Mp, Ch)@(Ch, 3Ch) MXU
    matmuls — no spatial reshapes, no HBM round trips of h.
    """
    t = pl.program_id(0)

    @pl.when(t == 0)
    def _init():
        hpad_ref[...] = jnp.zeros_like(hpad_ref)

    h_cur = hpad_ref[guard:guard + Mp, :]                            # (Mp, Ch) f32
    h2h = jnp.zeros((Mp, 3 * Ch), jnp.float32) + bhh_ref[...].astype(jnp.float32)
    for kh in range(3):
        for kw in range(3):
            off = (kh - 1) * Wp + (kw - 1)
            tap = h_cur if off == 0 else hpad_ref[guard + off:guard + off + Mp, :]
            w_k = whh_ref[kh * 3 + kw]                               # (Ch, 3Ch)
            h2h = h2h + jnp.dot(tap.astype(w_k.dtype), w_k,
                                preferred_element_type=jnp.float32)

    i2h = i2h_ref[...].astype(jnp.float32)                           # (Mp, 3Ch)
    z = jax.nn.sigmoid(i2h[:, :Ch] + h2h[:, :Ch])
    r = jax.nn.sigmoid(i2h[:, Ch:2 * Ch] + h2h[:, Ch:2 * Ch])
    n = jnp.tanh(i2h[:, 2 * Ch:] + r * h2h[:, 2 * Ch:])
    h_new = mask_ref[...] * ((1.0 - z) * n + z * h_cur)              # keep pad ring = 0
    hpad_ref[guard:guard + Mp, :] = h_new
    out_ref[...] = h_new.astype(out_ref.dtype)


def gru_sequence(i2h_flat, w_hh, b_hh, B, H, W, Ch):
    """Full ConvGRU recurrence as ONE pallas_call, grid over time.

    i2h_flat: (S, Mp, 3Ch) input-to-hidden pre-activations in zero-padded flat
    (b, y, x) coordinates, Mp = B*(H+2)*(W+2).  Returns (S, Mp, Ch).
    """
    S, Mp, C3 = i2h_flat.shape
    assert C3 == 3 * Ch and Mp == B * (H + 2) * (W + 2)
    Wp = W + 2
    guard = ((Wp + 1 + 7) // 8) * 8          # zero guard rows >= max |tap offset|

    # interior (non-pad) row mask in padded flat coordinates
    yy = jnp.arange(H + 2)[:, None]
    xx = jnp.arange(W + 2)[None, :]
    m2 = ((yy >= 1) & (yy <= H) & (xx >= 1) & (xx <= W)).astype(jnp.float32)
    mask = jnp.tile(m2.reshape(1, -1), (B, 1)).reshape(Mp, 1)

    whh = w_hh.reshape(9, Ch, 3 * Ch).astype(MXU_DTYPE)
    kernel = functools.partial(_gru_seq_kernel, Ch=Ch, Wp=Wp, Mp=Mp, guard=guard)
    return pl.pallas_call(
        kernel,
        out_shape=jax.ShapeDtypeStruct((S, Mp, Ch), i2h_flat.dtype),
        grid=(S,),
        in_specs=[
            pl.BlockSpec((None, Mp, 3 * Ch), lambda t: (t, 0, 0)),  # i2h[t], streamed
            pl.BlockSpec((9, Ch, 3 * Ch), lambda t: (0, 0, 0)),     # w_hh, resident
            pl.BlockSpec((1, 3 * Ch), lambda t: (0, 0)),            # b_hh, resident
            pl.BlockSpec((Mp, 1), lambda t: (0, 0)),                # pad mask, resident
        ],
        out_specs=pl.BlockSpec((None, Mp, Ch), lambda t: (t, 0, 0)),
        scratch_shapes=[pltpu.VMEM((Mp + 2 * guard, Ch), jnp.float32)],
        compiler_params=pltpu.CompilerParams(
            dimension_semantics=("arbitrary",)),     # sequential recurrence over time
    )(i2h_flat, whh, b_hh.reshape(1, 3 * Ch), mask)


# ------------------------------ conv (glue) ---------------------------------

def conv2d(x_nhwc, w_hwio, b, stride, padding, act=None, alpha=0.2):
    """NHWC conv2d = im2col (XLA glue) + one Pallas MXU matmul (hot path)."""
    Nb, H, W, Cin = x_nhwc.shape
    KH, KW, _, Cout = w_hwio.shape
    Ho = (H + 2 * padding - KH) // stride + 1
    Wo = (W + 2 * padding - KW) // stride + 1
    xp = jnp.pad(x_nhwc, ((0, 0), (padding, padding), (padding, padding), (0, 0)))
    # TODO(synk): for large H/W, fold im2col into the Pallas kernel to avoid the
    # KH*KW x HBM blow-up of the patch tensor.
    cols = [xp[:, kh:kh + stride * Ho:stride, kw:kw + stride * Wo:stride, :]
            for kh in range(KH) for kw in range(KW)]
    patches = jnp.concatenate(cols, axis=-1)                 # (Nb, Ho, Wo, KH*KW*Cin)
    xm = patches.reshape(Nb * Ho * Wo, KH * KW * Cin)
    wm = w_hwio.reshape(KH * KW * Cin, Cout)                 # (kh, kw, cin) row order
    out = matmul_bias_act(xm, wm, b, act=act, alpha=alpha)
    return out.reshape(Nb, Ho, Wo, Cout)


# ------------------------------- Encoder ------------------------------------

# TODO(synk): exact make_layers OrderedDict / core module configs were not given;
# this is a representative 2-stage Conv2d+LeakyReLU subnet / ConvGRU core setup.
ENCODER_CFG = (
    dict(cin=4, cout=8, k=3, stride=2, pad=1, hidden=8, core_k=3, core_pad=1),
    dict(cin=8, cout=16, k=3, stride=2, pad=1, hidden=16, core_k=3, core_pad=1),
)


def init_encoder_params(key, cfg=ENCODER_CFG):
    params = []
    for c in cfg:
        key, k1, k2, k3 = jax.random.split(key, 4)
        params.append(dict(
            conv_w=0.1 * jax.random.normal(
                k1, (c["k"], c["k"], c["cin"], c["cout"]), jnp.float32),
            conv_b=jnp.zeros((c["cout"],), jnp.float32),
            w_ih=0.1 * jax.random.normal(
                k2, (c["core_k"], c["core_k"], c["cout"], 3 * c["hidden"]), jnp.float32),
            b_ih=jnp.zeros((3 * c["hidden"],), jnp.float32),
            w_hh=0.1 * jax.random.normal(
                k3, (c["core_k"], c["core_k"], c["hidden"], 3 * c["hidden"]), jnp.float32),
            b_hh=jnp.zeros((3 * c["hidden"],), jnp.float32),
        ))
    return params


def encoder_forward(params, x_sbchw, cfg=ENCODER_CFG, output_state=True):
    """Mirrors Encoder.forward: input (S, B, C, H, W) -> tuple of stage states."""
    x = jnp.transpose(x_sbchw, (0, 1, 3, 4, 2))          # (S, B, H, W, C) internally
    hidden_states = []
    for c, p in zip(cfg, params):
        assert c["core_k"] == 3 and c["core_pad"] == 1, "ConvGRU core assumes 3x3/pad=1"
        S, B = x.shape[0], x.shape[1]
        Ch = c["hidden"]
        # subnet over merged (S*B) axis, as torch.reshape(-1, C, H, W) does
        xm = x.reshape((S * B,) + x.shape[2:])
        y = conv2d(xm, p["conv_w"], p["conv_b"], c["stride"], c["pad"],
                   act="leaky", alpha=0.2)                # (S*B, H', W', cout)
        _, H, W, _ = y.shape
        # i2h hoisted out of the recurrence: one matmul over all S timesteps
        i2h = conv2d(y, p["w_ih"], p["b_ih"], 1, c["core_pad"])      # (S*B, H, W, 3Ch)
        i2h = i2h.reshape(S, B, H, W, 3 * Ch)
        i2h = jnp.pad(i2h, ((0, 0), (0, 0), (1, 1), (1, 1), (0, 0)))  # padded coords
        Mp = B * (H + 2) * (W + 2)
        outs_flat = gru_sequence(i2h.reshape(S, Mp, 3 * Ch),
                                 p["w_hh"], p["b_hh"], B, H, W, Ch)   # (S, Mp, Ch)
        outs = outs_flat.reshape(S, B, H + 2, W + 2, Ch)[:, :, 1:H + 1, 1:W + 1, :]
        if output_state:
            hidden_states.append(jnp.transpose(outs[S - 1], (0, 3, 1, 2)))   # (B,Ch,H,W)
        else:
            hidden_states.append(jnp.transpose(outs, (0, 1, 4, 2, 3)))       # (S,B,Ch,H,W)
        x = outs
    return tuple(hidden_states)


if __name__ == "__main__":
    key = jax.random.PRNGKey(0)
    kp, kx = jax.random.split(key)
    params = init_encoder_params(kp)
    # (seq=4, batch=2, C=4, H=16, W=16), matching the PyTorch NCHW convention.
    x = jax.random.normal(kx, (4, 2, 4, 16, 16), jnp.float32)
    fwd = jax.jit(functools.partial(encoder_forward, cfg=ENCODER_CFG, output_state=True))
    out = jax.block_until_ready(fwd(params, x))
    assert out[0].shape == (2, 8, 8, 8) and out[0].dtype == jnp.float32
    assert out[1].shape == (2, 16, 4, 4) and out[1].dtype == jnp.float32
    assert all(bool(jnp.all(jnp.isfinite(o))) for o in out)
    print("KERNEL_OK")
</pallas_src>

<mosaic_0001>
module attributes {stable_mosaic.version = 11 : i64} {
  func.func @_mm_bias_act_kernel(%arg0: i32, %arg1: memref<128x36xf32, #tpu.memory_space<vmem>>, %arg2: memref<36x8xbf16, #tpu.memory_space<vmem>>, %arg3: memref<1x8xf32, #tpu.memory_space<vmem>>, %arg4: memref<128x8xf32, #tpu.memory_space<vmem>>) attributes {dimension_semantics = [#tpu.dimension_semantics<parallel>], iteration_bounds = array<i64: 4>, scalar_prefetch = 0 : i64, scratch_operands = 0 : i64, tpu.core_type = #tpu.core_type<tc>, window_params = [{transform_indices = @transform_0, window_bounds = array<i64: 128, 36>}, {pipeline_mode = #tpu.pipeline_mode<synchronous>, transform_indices = @transform_1, window_bounds = array<i64: 36, 8>}, {pipeline_mode = #tpu.pipeline_mode<synchronous>, transform_indices = @transform_2, window_bounds = array<i64: 1, 8>}, {transform_indices = @transform_3, window_bounds = array<i64: 128, 8>}]} {
    %c0 = arith.constant 0 : index
    %c0_0 = arith.constant 0 : index
    %0 = vector.load %arg1[%c0, %c0_0] : memref<128x36xf32, #tpu.memory_space<vmem>>, vector<128x36xf32>
    %1 = arith.truncf %0 : vector<128x36xf32> to vector<128x36xbf16>
    %c0_1 = arith.constant 0 : index
    %c0_2 = arith.constant 0 : index
    %2 = vector.load %arg2[%c0_1, %c0_2] : memref<36x8xbf16, #tpu.memory_space<vmem>>, vector<36x8xbf16>
    %cst = arith.constant dense<0.000000e+00> : vector<128x8xf32>
    %3 = tpu.matmul %1, %2, %cst {dimension_numbers = #tpu.dot_dimension_numbers<[1], [0], [0], [1], [0, 0, 1, 1], [], []>} : vector<128x36xbf16>, vector<36x8xbf16>, vector<128x8xf32> -> vector<128x8xf32>
    %c0_3 = arith.constant 0 : index
    %c0_4 = arith.constant 0 : index
    %4 = vector.load %arg3[%c0_3, %c0_4] : memref<1x8xf32, #tpu.memory_space<vmem>>, vector<1x8xf32>
    %5 = vector.broadcast %4 : vector<1x8xf32> to vector<128x8xf32>
    %6 = arith.addf %3, %5 : vector<128x8xf32>
    %cst_5 = arith.constant 0.000000e+00 : f32
    %7 = vector.broadcast %cst_5 : f32 to vector<128x8xf32>
    %8 = arith.cmpf oge, %6, %7 : vector<128x8xf32>
    %cst_6 = arith.constant 2.000000e-01 : f32
    %9 = vector.broadcast %cst_6 : f32 to vector<128x8xf32>
    %10 = arith.mulf %9, %6 : vector<128x8xf32>
    %11 = arith.select %8, %6, %10 : vector<128x8xi1>, vector<128x8xf32>
    %c0_7 = arith.constant 0 : index
    %c0_8 = arith.constant 0 : index
    %12 = vector.load %arg4[%c0_7, %c0_8] : memref<128x8xf32, #tpu.memory_space<vmem>>, vector<128x8xf32>
    tpu.vector_store %arg4[%c0_7, %c0_8], %11 {strides = array<i32>} : memref<128x8xf32, #tpu.memory_space<vmem>>, vector<128x8xf32>,
    return
  }
  func.func @transform_0(%arg0: i32) -> (i32, i32) {
    %c0_i32 = arith.constant 0 : i32
    %c0_i32_0 = arith.constant 0 : i32
    return %arg0, %c0_i32 : i32, i32
  }
  func.func @transform_1(%arg0: i32) -> (i32, i32) {
    %c0_i32 = arith.constant 0 : i32
    %c0_i32_0 = arith.constant 0 : i32
    %c0_i32_1 = arith.constant 0 : i32
    return %c0_i32, %c0_i32_0 : i32, i32
  }
  func.func @transform_2(%arg0: i32) -> (i32, i32) {
    %c0_i32 = arith.constant 0 : i32
    %c0_i32_0 = arith.constant 0 : i32
    %c0_i32_1 = arith.constant 0 : i32
    return %c0_i32, %c0_i32_0 : i32, i32
  }
  func.func @transform_3(%arg0: i32) -> (i32, i32) {
    %c0_i32 = arith.constant 0 : i32
    %c0_i32_0 = arith.constant 0 : i32
    return %arg0, %c0_i32 : i32, i32
  }
}

module attributes {stable_mosaic.version = 11 : i64} {
  func.func @_mm_bias_act_kernel(%arg0: i32, %arg1: memref<128x72xf32, #tpu.memory_space<vmem>>, %arg2: memref<72x24xbf16, #tpu.memory_space<vmem>>, %arg3: memref<1x24xf32, #tpu.memory_space<vmem>>, %arg4: memref<128x24xf32, #tpu.memory_space<vmem>>) attributes {dimension_semantics = [#tpu.dimension_semantics<parallel>], iteration_bounds = array<i64: 4>, scalar_prefetch = 0 : i64, scratch_operands = 0 : i64, tpu.core_type = #tpu.core_type<tc>, window_params = [{transform_indices = @transform_0, window_bounds = array<i64: 128, 72>}, {pipeline_mode = #tpu.pipeline_mode<synchronous>, transform_indices = @transform_1, window_bounds = array<i64: 72, 24>}, {pipeline_mode = #tpu.pipeline_mode<synchronous>, transform_indices = @transform_2, window_bounds = array<i64: 1, 24>}, {transform_indices = @transform_3, window_bounds = array<i64: 128, 24>}]} {
    %c0 = arith.constant 0 : index
    %c0_0 = arith.constant 0 : index
    %0 = vector.load %arg1[%c0, %c0_0] : memref<128x72xf32, #tpu.memory_space<vmem>>, vector<128x72xf32>
    %1 = arith.truncf %0 : vector<128x72xf32> to vector<128x72xbf16>
    %c0_1 = arith.constant 0 : index
    %c0_2 = arith.constant 0 : index
    %2 = vector.load %arg2[%c0_1, %c0_2] : memref<72x24xbf16, #tpu.memory_space<vmem>>, vector<72x24xbf16>
    %cst = arith.constant dense<0.000000e+00> : vector<128x24xf32>
    %3 = tpu.matmul %1, %2, %cst {dimension_numbers = #tpu.dot_dimension_numbers<[1], [0], [0], [1], [0, 0, 1, 1], [], []>} : vector<128x72xbf16>, vector<72x24xbf16>, vector<128x24xf32> -> vector<128x24xf32>
    %c0_3 = arith.constant 0 : index
    %c0_4 = arith.constant 0 : index
    %4 = vector.load %arg3[%c0_3, %c0_4] : memref<1x24xf32, #tpu.memory_space<vmem>>, vector<1x24xf32>
    %5 = vector.broadcast %4 : vector<1x24xf32> to vector<128x24xf32>
    %6 = arith.addf %3, %5 : vector<128x24xf32>
    %c0_5 = arith.constant 0 : index
    %c0_6 = arith.constant 0 : index
    %7 = vector.load %arg4[%c0_5, %c0_6] : memref<128x24xf32, #tpu.memory_space<vmem>>, vector<128x24xf32>
    tpu.vector_store %arg4[%c0_5, %c0_6], %6 {strides = array<i32>} : memref<128x24xf32, #tpu.memory_space<vmem>>, vector<128x24xf32>,
    return
  }
  func.func @transform_0(%arg0: i32) -> (i32, i32) {
    %c0_i32 = arith.constant 0 : i32
    %c0_i32_0 = arith.constant 0 : i32
    return %arg0, %c0_i32 : i32, i32
  }
  func.func @transform_1(%arg0: i32) -> (i32, i32) {
    %c0_i32 = arith.constant 0 : i32
    %c0_i32_0 = arith.constant 0 : i32
    %c0_i32_1 = arith.constant 0 : i32
    return %c0_i32, %c0_i32_0 : i32, i32
  }
  func.func @transform_2(%arg0: i32) -> (i32, i32) {
    %c0_i32 = arith.constant 0 : i32
    %c0_i32_0 = arith.constant 0 : i32
    %c0_i32_1 = arith.constant 0 : i32
    return %c0_i32, %c0_i32_0 : i32, i32
  }
  func.func @transform_3(%arg0: i32) -> (i32, i32) {
    %c0_i32 = arith.constant 0 : i32
    %c0_i32_0 = arith.constant 0 : i32
    return %arg0, %c0_i32 : i32, i32
  }
}

module attributes {stable_mosaic.version = 11 : i64} {
  func.func @_gru_seq_kernel(%arg0: i32, %arg1: memref<1x200x24xf32, #tpu.memory_space<vmem>>, %arg2: memref<9x8x24xbf16, #tpu.memory_space<vmem>>, %arg3: memref<1x24xf32, #tpu.memory_space<vmem>>, %arg4: memref<200x1xf32, #tpu.memory_space<vmem>>, %arg5: memref<1x200x8xf32, #tpu.memory_space<vmem>>, %arg6: memref<232x8xf32, #tpu.memory_space<vmem>>) attributes {dimension_semantics = [#tpu.dimension_semantics<arbitrary>], iteration_bounds = array<i64: 4>, scalar_prefetch = 0 : i64, scratch_operands = 1 : i64, tpu.core_type = #tpu.core_type<tc>, window_params = [{transform_indices = @transform_0, window_bounds = array<i64: 1, 200, 24>}, {pipeline_mode = #tpu.pipeline_mode<synchronous>, transform_indices = @transform_1, window_bounds = array<i64: 9, 8, 24>}, {pipeline_mode = #tpu.pipeline_mode<synchronous>, transform_indices = @transform_2, window_bounds = array<i64: 1, 24>}, {pipeline_mode = #tpu.pipeline_mode<synchronous>, transform_indices = @transform_3, window_bounds = array<i64: 200, 1>}, {transform_indices = @transform_4, window_bounds = array<i64: 1, 200, 8>}]} {
    %c0_i32 = arith.constant 0 : i32
    %0 = arith.cmpi eq, %arg0, %c0_i32 : i32
    %1 = arith.extui %0 : i1 to i32
    %c0_i32_0 = arith.constant 0 : i32
    %2 = arith.cmpi ne, %1, %c0_i32_0 : i32
    scf.if %2 {
      %cst_55 = arith.constant 0.000000e+00 : f32
      %96 = vector.broadcast %cst_55 : f32 to vector<232x8xf32>
      %c0_56 = arith.constant 0 : index
      %c0_57 = arith.constant 0 : index
      %97 = vector.load %arg6[%c0_56, %c0_57] : memref<232x8xf32, #tpu.memory_space<vmem>>, vector<232x8xf32>
      tpu.vector_store %arg6[%c0_56, %c0_57], %96 {strides = array<i32>} : memref<232x8xf32, #tpu.memory_space<vmem>>, vector<232x8xf32>,
    } else {
    }
    %c16 = arith.constant 16 : index
    %c0 = arith.constant 0 : index
    %3 = vector.load %arg6[%c16, %c0] : memref<232x8xf32, #tpu.memory_space<vmem>>, vector<200x8xf32>
    %cst = arith.constant 0.000000e+00 : f32
    %4 = vector.broadcast %cst : f32 to vector<200x24xf32>
    %c0_1 = arith.constant 0 : index
    %c0_2 = arith.constant 0 : index
    %5 = vector.load %arg3[%c0_1, %c0_2] : memref<1x24xf32, #tpu.memory_space<vmem>>, vector<1x24xf32>
    %6 = vector.broadcast %5 : vector<1x24xf32> to vector<200x24xf32>
    %7 = arith.addf %4, %6 : vector<200x24xf32>
    %c5 = arith.constant 5 : index
    %c0_3 = arith.constant 0 : index
    %8 = vector.load %arg6[%c5, %c0_3] : memref<232x8xf32, #tpu.memory_space<vmem>>, vector<200x8xf32>
    %c0_4 = arith.constant 0 : index
    %c0_5 = arith.constant 0 : index
    %c0_6 = arith.constant 0 : index
    %9 = vector.load %arg2[%c0_4, %c0_5, %c0_6] : memref<9x8x24xbf16, #tpu.memory_space<vmem>>, vector<1x8x24xbf16>
    %10 = vector.shape_cast %9 : vector<1x8x24xbf16> to vector<8x24xbf16>
    %11 = arith.truncf %8 : vector<200x8xf32> to vector<200x8xbf16>
    %cst_7 = arith.constant dense<0.000000e+00> : vector<200x24xf32>
    %12 = tpu.matmul %11, %10, %cst_7 {dimension_numbers = #tpu.dot_dimension_numbers<[1], [0], [0], [1], [0, 0, 1, 1], [], []>} : vector<200x8xbf16>, vector<8x24xbf16>, vector<200x24xf32> -> vector<200x24xf32>
    %13 = arith.addf %7, %12 : vector<200x24xf32>
    %c6 = arith.constant 6 : index
    %c0_8 = arith.constant 0 : index
    %14 = vector.load %arg6[%c6, %c0_8] : memref<232x8xf32, #tpu.memory_space<vmem>>, vector<200x8xf32>
    %c1 = arith.constant 1 : index
    %c0_9 = arith.constant 0 : index
    %c0_10 = arith.constant 0 : index
    %15 = vector.load %arg2[%c1, %c0_9, %c0_10] : memref<9x8x24xbf16, #tpu.memory_space<vmem>>, vector<1x8x24xbf16>
    %16 = vector.shape_cast %15 : vector<1x8x24xbf16> to vector<8x24xbf16>
    %17 = arith.truncf %14 : vector<200x8xf32> to vector<200x8xbf16>
    %cst_11 = arith.constant dense<0.000000e+00> : vector<200x24xf32>
    %18 = tpu.matmul %17, %16, %cst_11 {dimension_numbers = #tpu.dot_dimension_numbers<[1], [0], [0], [1], [0, 0, 1, 1], [], []>} : vector<200x8xbf16>, vector<8x24xbf16>, vector<200x24xf32> -> vector<200x24xf32>
    %19 = arith.addf %13, %18 : vector<200x24xf32>
    %c7 = arith.constant 7 : index
    %c0_12 = arith.constant 0 : index
    %20 = vector.load %arg6[%c7, %c0_12] : memref<232x8xf32, #tpu.memory_space<vmem>>, vector<200x8xf32>
    %c2 = arith.constant 2 : index
    %c0_13 = arith.constant 0 : index
    %c0_14 = arith.constant 0 : index
    %21 = vector.load %arg2[%c2, %c0_13, %c0_14] : memref<9x8x24xbf16, #tpu.memory_space<vmem>>, vector<1x8x24xbf16>
    %22 = vector.shape_cast %21 : vector<1x8x24xbf16> to vector<8x24xbf16>
    %23 = arith.truncf %20 : vector<200x8xf32> to vector<200x8xbf16>
    %cst_15 = arith.constant dense<0.000000e+00> : vector<200x24xf32>
    %24 = tpu.matmul %23, %22, %cst_15 {dimension_numbers = #tpu.dot_dimension_numbers<[1], [0], [0], [1], [0, 0, 1, 1], [], []>} : vector<200x8xbf16>, vector<8x24xbf16>, vector<200x24xf32> -> vector<200x24xf32>
    %25 = arith.addf %19, %24 : vector<200x24xf32>
    %c15 = arith.constant 15 : index
    %c0_16 = arith.constant 0 : index
    %26 = vector.load %arg6[%c15, %c0_16] : memref<232x8xf32, #tpu.memory_space<vmem>>, vector<200x8xf32>
    %c3 = arith.constant 3 : index
    %c0_17 = arith.constant 0 : index
    %c0_18 = arith.constant 0 : index
    %27 = vector.load %arg2[%c3, %c0_17, %c0_18] : memref<9x8x24xbf16, #tpu.memory_space<vmem>>, vector<1x8x24xbf16>
    %28 = vector.shape_cast %27 : vector<1x8x24xbf16> to vector<8x24xbf16>
    %29 = arith.truncf %26 : vector<200x8xf32> to vector<200x8xbf16>
    %cst_19 = arith.constant dense<0.000000e+00> : vector<200x24xf32>
    %30 = tpu.matmul %29, %28, %cst_19 {dimension_numbers = #tpu.dot_dimension_numbers<[1], [0], [0], [1], [0, 0, 1, 1], [], []>} : vector<200x8xbf16>, vector<8x24xbf16>, vector<200x24xf32> -> vector<200x24xf32>
    %31 = arith.addf %25, %30 : vector<200x24xf32>
    %c4 = arith.constant 4 : index
    %c0_20 = arith.constant 0 : index
    %c0_21 = arith.constant 0 : index
    %32 = vector.load %arg2[%c4, %c0_20, %c0_21] : memref<9x8x24xbf16, #tpu.memory_space<vmem>>, vector<1x8x24xbf16>
    %33 = vector.shape_cast %32 : vector<1x8x24xbf16> to vector<8x24xbf16>
    %34 = arith.truncf %3 : vector<200x8xf32> to vector<200x8xbf16>
    %cst_22 = arith.constant dense<0.000000e+00> : vector<200x24xf32>
    %35 = tpu.matmul %34, %33, %cst_22 {dimension_numbers = #tpu.dot_dimension_numbers<[1], [0], [0], [1], [0, 0, 1, 1], [], []>} : vector<200x8xbf16>, vector<8x24xbf16>, vector<200x24xf32> -> vector<200x24xf32>
    %36 = arith.addf %31, %35 : vector<200x24xf32>
    %c17 = arith.constant 17 : index
    %c0_23 = arith.constant 0 : index
    %37 = vector.load %arg6[%c17, %c0_23] : memref<232x8xf32, #tpu.memory_space<vmem>>, vector<200x8xf32>
    %c5_24 = arith.constant 5 : index
    %c0_25 = arith.constant 0 : index
    %c0_26 = arith.constant 0 : index
    %38 = vector.load %arg2[%c5_24, %c0_25, %c0_26] : memref<9x8x24xbf16, #tpu.memory_space<vmem>>, vector<1x8x24xbf16>
    %39 = vector.shape_cast %38 : vector<1x8x24xbf16> to vector<8x24xbf16>
    %40 = arith.truncf %37 : vector<200x8xf32> to vector<200x8xbf16>
    %cst_27 = arith.constant dense<0.000000e+00> : vector<200x24xf32>
    %41 = tpu.matmul %40, %39, %cst_27 {dimension_numbers = #tpu.dot_dimension_numbers<[1], [0], [0], [1], [0, 0, 1, 1], [], []>} : vector<200x8xbf16>, vector<8x24xbf16>, vector<200x24xf32> -> vector<200x24xf32>
    %42 = arith.addf %36, %41 : vector<200x24xf32>
    %c25 = arith.constant 25 : index
    %c0_28 = arith.constant 0 : index
    %43 = vector.load %arg6[%c25, %c0_28] : memref<232x8xf32, #tpu.memory_space<vmem>>, vector<200x8xf32>
    %c6_29 = arith.constant 6 : index
    %c0_30 = arith.constant 0 : index
    %c0_31 = arith.constant 0 : index
    %44 = vector.load %arg2[%c6_29, %c0_30, %c0_31] : memref<9x8x24xbf16, #tpu.memory_space<vmem>>, vector<1x8x24xbf16>
    %45 = vector.shape_cast %44 : vector<1x8x24xbf16> to vector<8x24xbf16>
    %46 = arith.truncf %43 : vector<200x8xf32> to vector<200x8xbf16>
    %cst_32 = arith.constant dense<0.000000e+00> : vector<200x24xf32>
    %47 = tpu.matmul %46, %45, %cst_32 {dimension_numbers = #tpu.dot_dimension_numbers<[1], [0], [0], [1], [0, 0, 1, 1], [], []>} : vector<200x8xbf16>, vector<8x24xbf16>, vector<200x24xf32> -> vector<200x24xf32>
    %48 = arith.addf %42, %47 : vector<200x24xf32>
    %c26 = arith.constant 26 : index
    %c0_33 = arith.constant 0 : index
    %49 = vector.load %arg6[%c26, %c0_33] : memref<232x8xf32, #tpu.memory_space<vmem>>, vector<200x8xf32>
    %c7_34 = arith.constant 7 : index
    %c0_35 = arith.constant 0 : index
    %c0_36 = arith.constant 0 : index
    %50 = vector.load %arg2[%c7_34, %c0_35, %c0_36] : memref<9x8x24xbf16, #tpu.memory_space<vmem>>, vector<1x8x24xbf16>
    %51 = vector.shape_cast %50 : vector<1x8x24xbf16> to vector<8x24xbf16>
    %52 = arith.truncf %49 : vector<200x8xf32> to vector<200x8xbf16>
    %cst_37 = arith.constant dense<0.000000e+00> : vector<200x24xf32>
    %53 = tpu.matmul %52, %51, %cst_37 {dimension_numbers = #tpu.dot_dimension_numbers<[1], [0], [0], [1], [0, 0, 1, 1], [], []>} : vector<200x8xbf16>, vector<8x24xbf16>, vector<200x24xf32> -> vector<200x24xf32>
    %54 = arith.addf %48, %53 : vector<200x24xf32>
    %c27 = arith.constant 27 : index
    %c0_38 = arith.constant 0 : index
    %55 = vector.load %arg6[%c27, %c0_38] : memref<232x8xf32, #tpu.memory_space<vmem>>, vector<200x8xf32>
    %c8 = arith.constant 8 : index
    %c0_39 = arith.constant 0 : index
    %c0_40 = arith.constant 0 : index
    %56 = vector.load %arg2[%c8, %c0_39, %c0_40] : memref<9x8x24xbf16, #tpu.memory_space<vmem>>, vector<1x8x24xbf16>
    %57 = vector.shape_cast %56 : vector<1x8x24xbf16> to vector<8x24xbf16>
    %58 = arith.truncf %55 : vector<200x8xf32> to vector<200x8xbf16>
    %cst_41 = arith.constant dense<0.000000e+00> : vector<200x24xf32>
    %59 = tpu.matmul %58, %57, %cst_41 {dimension_numbers = #tpu.dot_dimension_numbers<[1], [0], [0], [1], [0, 0, 1, 1], [], []>} : vector<200x8xbf16>, vector<8x24xbf16>, vector<200x24xf32> -> vector<200x24xf32>
    %60 = arith.addf %54, %59 : vector<200x24xf32>
    %c0_42 = arith.constant 0 : index
    %c0_43 = arith.constant 0 : index
    %c0_44 = arith.constant 0 : index
    %61 = vector.load %arg1[%c0_42, %c0_43, %c0_44] : memref<1x200x24xf32, #tpu.memory_space<vmem>>, vector<1x200x24xf32>
    %62 = vector.shape_cast %61 : vector<1x200x24xf32> to vector<200x24xf32>
    %63 = vector.extract_strided_slice %62 {offsets = [0, 0], sizes = [200, 8], strides = [1, 1]} : vector<200x24xf32> to vector<200x8xf32>
    %64 = vector.extract_strided_slice %60 {offsets = [0, 0], sizes = [200, 8], strides = [1, 1]} : vector<200x24xf32> to vector<200x8xf32>
    %65 = arith.addf %63, %64 : vector<200x8xf32>
    %66 = arith.negf %65 : vector<200x8xf32>
    %67 = math.exp %66 : vector<200x8xf32>
    %cst_45 = arith.constant 1.000000e+00 : f32
    %68 = vector.broadcast %cst_45 : f32 to vector<200x8xf32>
    %69 = arith.addf %68, %67 : vector<200x8xf32>
    %70 = arith.divf %68, %69 : vector<200x8xf32>
    %71 = vector.extract_strided_slice %62 {offsets = [0, 8], sizes = [200, 8], strides = [1, 1]} : vector<200x24xf32> to vector<200x8xf32>
    %72 = vector.extract_strided_slice %60 {offsets = [0, 8], sizes = [200, 8], strides = [1, 1]} : vector<200x24xf32> to vector<200x8xf32>
    %73 = arith.addf %71, %72 : vector<200x8xf32>
    %74 = arith.negf %73 : vector<200x8xf32>
    %75 = math.exp %74 : vector<200x8xf32>
    %cst_46 = arith.constant 1.000000e+00 : f32
    %76 = vector.broadcast %cst_46 : f32 to vector<200x8xf32>
    %77 = arith.addf %76, %75 : vector<200x8xf32>
    %78 = arith.divf %76, %77 : vector<200x8xf32>
    %79 = vector.extract_strided_slice %62 {offsets = [0, 16], sizes = [200, 8], strides = [1, 1]} : vector<200x24xf32> to vector<200x8xf32>
    %80 = vector.extract_strided_slice %60 {offsets = [0, 16], sizes = [200, 8], strides = [1, 1]} : vector<200x24xf32> to vector<200x8xf32>
    %81 = arith.mulf %78, %80 : vector<200x8xf32>
    %82 = arith.addf %79, %81 : vector<200x8xf32>
    %83 = math.tanh %82 : vector<200x8xf32>
    %c0_47 = arith.constant 0 : index
    %c0_48 = arith.constant 0 : index
    %84 = vector.load %arg4[%c0_47, %c0_48] : memref<200x1xf32, #tpu.memory_space<vmem>>, vector<200x1xf32>
    %cst_49 = arith.constant 1.000000e+00 : f32
    %85 = vector.broadcast %cst_49 : f32 to vector<200x8xf32>
    %86 = arith.subf %85, %70 : vector<200x8xf32>
    %87 = arith.mulf %86, %83 : vector<200x8xf32>
    %88 = arith.mulf %70, %3 : vector<200x8xf32>
    %89 = arith.addf %87, %88 : vector<200x8xf32>
    %90 = vector.broadcast %84 : vector<200x1xf32> to vector<200x8xf32>
    %91 = arith.mulf %90, %89 : vector<200x8xf32>
    %c16_50 = arith.constant 16 : index
    %c0_51 = arith.constant 0 : index
    %92 = vector.load %arg6[%c16_50, %c0_51] : memref<232x8xf32, #tpu.memory_space<vmem>>, vector<200x8xf32>
    tpu.vector_store %arg6[%c16_50, %c0_51], %91 {strides = array<i32>} : memref<232x8xf32, #tpu.memory_space<vmem>>, vector<200x8xf32>,
    %c0_52 = arith.constant 0 : index
    %c0_53 = arith.constant 0 : index
    %c0_54 = arith.constant 0 : index
    %93 = vector.load %arg5[%c0_52, %c0_53, %c0_54] : memref<1x200x8xf32, #tpu.memory_space<vmem>>, vector<1x200x8xf32>
    %94 = vector.shape_cast %93 : vector<1x200x8xf32> to vector<200x8xf32>
    %95 = vector.shape_cast %91 : vector<200x8xf32> to vector<1x200x8xf32>
    tpu.vector_store %arg5[%c0_52, %c0_53, %c0_54], %95 {strides = array<i32>} : memref<1x200x8xf32, #tpu.memory_space<vmem>>, vector<1x200x8xf32>,
    return
  }
  func.func @transform_0(%arg0: i32) -> (i32, i32, i32) {
    %c0_i32 = arith.constant 0 : i32
    %c0_i32_0 = arith.constant 0 : i32
    %c0_i32_1 = arith.constant 0 : i32
    return %arg0, %c0_i32, %c0_i32_0 : i32, i32, i32
  }
  func.func @transform_1(%arg0: i32) -> (i32, i32, i32) {
    %c0_i32 = arith.constant 0 : i32
    %c0_i32_0 = arith.constant 0 : i32
    %c0_i32_1 = arith.constant 0 : i32
    %c0_i32_2 = arith.constant 0 : i32
    return %c0_i32, %c0_i32_0, %c0_i32_1 : i32, i32, i32
  }
  func.func @transform_2(%arg0: i32) -> (i32, i32) {
    %c0_i32 = arith.constant 0 : i32
    %c0_i32_0 = arith.constant 0 : i32
    %c0_i32_1 = arith.constant 0 : i32
    return %c0_i32, %c0_i32_0 : i32, i32
  }
  func.func @transform_3(%arg0: i32) -> (i32, i32) {
    %c0_i32 = arith.constant 0 : i32
    %c0_i32_0 = arith.constant 0 : i32
    %c0_i32_1 = arith.constant 0 : i32
    return %c0_i32, %c0_i32_0 : i32, i32
  }
  func.func @transform_4(%arg0: i32) -> (i32, i32, i32) {
    %c0_i32 = arith.constant 0 : i32
    %c0_i32_0 = arith.constant 0 : i32
    %c0_i32_1 = arith.constant 0 : i32
    return %arg0, %c0_i32, %c0_i32_0 : i32, i32, i32
  }
}

module attributes {stable_mosaic.version = 11 : i64} {
  func.func @_mm_bias_act_kernel(%arg0: i32, %arg1: memref<128x72xf32, #tpu.memory_space<vmem>>, %arg2: memref<72x16xbf16, #tpu.memory_space<vmem>>, %arg3: memref<1x16xf32, #tpu.memory_space<vmem>>, %arg4: memref<128x16xf32, #tpu.memory_space<vmem>>) attributes {dimension_semantics = [#tpu.dimension_semantics<parallel>], iteration_bounds = array<i64: 1>, scalar_prefetch = 0 : i64, scratch_operands = 0 : i64, tpu.core_type = #tpu.core_type<tc>, window_params = [{transform_indices = @transform_0, window_bounds = array<i64: 128, 72>}, {pipeline_mode = #tpu.pipeline_mode<synchronous>, transform_indices = @transform_1, window_bounds = array<i64: 72, 16>}, {pipeline_mode = #tpu.pipeline_mode<synchronous>, transform_indices = @transform_2, window_bounds = array<i64: 1, 16>}, {transform_indices = @transform_3, window_bounds = array<i64: 128, 16>}]} {
    %c0 = arith.constant 0 : index
    %c0_0 = arith.constant 0 : index
    %0 = vector.load %arg1[%c0, %c0_0] : memref<128x72xf32, #tpu.memory_space<vmem>>, vector<128x72xf32>
    %1 = arith.truncf %0 : vector<128x72xf32> to vector<128x72xbf16>
    %c0_1 = arith.constant 0 : index
    %c0_2 = arith.constant 0 : index
    %2 = vector.load %arg2[%c0_1, %c0_2] : memref<72x16xbf16, #tpu.memory_space<vmem>>, vector<72x16xbf16>
    %cst = arith.constant dense<0.000000e+00> : vector<128x16xf32>
    %3 = tpu.matmul %1, %2, %cst {dimension_numbers = #tpu.dot_dimension_numbers<[1], [0], [0], [1], [0, 0, 1, 1], [], []>} : vector<128x72xbf16>, vector<72x16xbf16>, vector<128x16xf32> -> vector<128x16xf32>
    %c0_3 = arith.constant 0 : index
    %c0_4 = arith.constant 0 : index
    %4 = vector.load %arg3[%c0_3, %c0_4] : memref<1x16xf32, #tpu.memory_space<vmem>>, vector<1x16xf32>
    %5 = vector.broadcast %4 : vector<1x16xf32> to vector<128x16xf32>
    %6 = arith.addf %3, %5 : vector<128x16xf32>
    %cst_5 = arith.constant 0.000000e+00 : f32
    %7 = vector.broadcast %cst_5 : f32 to vector<128x16xf32>
    %8 = arith.cmpf oge, %6, %7 : vector<128x16xf32>
    %cst_6 = arith.constant 2.000000e-01 : f32
    %9 = vector.broadcast %cst_6 : f32 to vector<128x16xf32>
    %10 = arith.mulf %9, %6 : vector<128x16xf32>
    %11 = arith.select %8, %6, %10 : vector<128x16xi1>, vector<128x16xf32>
    %c0_7 = arith.constant 0 : index
    %c0_8 = arith.constant 0 : index
    %12 = vector.load %arg4[%c0_7, %c0_8] : memref<128x16xf32, #tpu.memory_space<vmem>>, vector<128x16xf32>
    tpu.vector_store %arg4[%c0_7, %c0_8], %11 {strides = array<i32>} : memref<128x16xf32, #tpu.memory_space<vmem>>, vector<128x16xf32>,
    return
  }
  func.func @transform_0(%arg0: i32) -> (i32, i32) {
    %c0_i32 = arith.constant 0 : i32
    %c0_i32_0 = arith.constant 0 : i32
    return %arg0, %c0_i32 : i32, i32
  }
  func.func @transform_1(%arg0: i32) -> (i32, i32) {
    %c0_i32 = arith.constant 0 : i32
    %c0_i32_0 = arith.constant 0 : i32
    %c0_i32_1 = arith.constant 0 : i32
    return %c0_i32, %c0_i32_0 : i32, i32
  }
  func.func @transform_2(%arg0: i32) -> (i32, i32) {
    %c0_i32 = arith.constant 0 : i32
    %c0_i32_0 = arith.constant 0 : i32
    %c0_i32_1 = arith.constant 0 : i32
    return %c0_i32, %c0_i32_0 : i32, i32
  }
  func.func @transform_3(%arg0: i32) -> (i32, i32) {
    %c0_i32 = arith.constant 0 : i32
    %c0_i32_0 = arith.constant 0 : i32
    return %arg0, %c0_i32 : i32, i32
  }
}

module attributes {stable_mosaic.version = 11 : i64} {
  func.func @_mm_bias_act_kernel(%arg0: i32, %arg1: memref<128x144xf32, #tpu.memory_space<vmem>>, %arg2: memref<144x48xbf16, #tpu.memory_space<vmem>>, %arg3: memref<1x48xf32, #tpu.memory_space<vmem>>, %arg4: memref<128x48xf32, #tpu.memory_space<vmem>>) attributes {dimension_semantics = [#tpu.dimension_semantics<parallel>], iteration_bounds = array<i64: 1>, scalar_prefetch = 0 : i64, scratch_operands = 0 : i64, tpu.core_type = #tpu.core_type<tc>, window_params = [{transform_indices = @transform_0, window_bounds = array<i64: 128, 144>}, {pipeline_mode = #tpu.pipeline_mode<synchronous>, transform_indices = @transform_1, window_bounds = array<i64: 144, 48>}, {pipeline_mode = #tpu.pipeline_mode<synchronous>, transform_indices = @transform_2, window_bounds = array<i64: 1, 48>}, {transform_indices = @transform_3, window_bounds = array<i64: 128, 48>}]} {
    %c0 = arith.constant 0 : index
    %c0_0 = arith.constant 0 : index
    %0 = vector.load %arg1[%c0, %c0_0] : memref<128x144xf32, #tpu.memory_space<vmem>>, vector<128x144xf32>
    %1 = arith.truncf %0 : vector<128x144xf32> to vector<128x144xbf16>
    %c0_1 = arith.constant 0 : index
    %c0_2 = arith.constant 0 : index
    %2 = vector.load %arg2[%c0_1, %c0_2] : memref<144x48xbf16, #tpu.memory_space<vmem>>, vector<144x48xbf16>
    %cst = arith.constant dense<0.000000e+00> : vector<128x48xf32>
    %3 = tpu.matmul %1, %2, %cst {dimension_numbers = #tpu.dot_dimension_numbers<[1], [0], [0], [1], [0, 0, 1, 1], [], []>} : vector<128x144xbf16>, vector<144x48xbf16>, vector<128x48xf32> -> vector<128x48xf32>
    %c0_3 = arith.constant 0 : index
    %c0_4 = arith.constant 0 : index
    %4 = vector.load %arg3[%c0_3, %c0_4] : memref<1x48xf32, #tpu.memory_space<vmem>>, vector<1x48xf32>
    %5 = vector.broadcast %4 : vector<1x48xf32> to vector<128x48xf32>
    %6 = arith.addf %3, %5 : vector<128x48xf32>
    %c0_5 = arith.constant 0 : index
    %c0_6 = arith.constant 0 : index
    %7 = vector.load %arg4[%c0_5, %c0_6] : memref<128x48xf32, #tpu.memory_space<vmem>>, vector<128x48xf32>
    tpu.vector_store %arg4[%c0_5, %c0_6], %6 {strides = array<i32>} : memref<128x48xf32, #tpu.memory_space<vmem>>, vector<128x48xf32>,
    return
  }
  func.func @transform_0(%arg0: i32) -> (i32, i32) {
    %c0_i32 = arith.constant 0 : i32
    %c0_i32_0 = arith.constant 0 : i32
    return %arg0, %c0_i32 : i32, i32
  }
  func.func @transform_1(%arg0: i32) -> (i32, i32) {
    %c0_i32 = arith.constant 0 : i32
    %c0_i32_0 = arith.constant 0 : i32
    %c0_i32_1 = arith.constant 0 : i32
    return %c0_i32, %c0_i32_0 : i32, i32
  }
  func.func @transform_2(%arg0: i32) -> (i32, i32) {
    %c0_i32 = arith.constant 0 : i32
    %c0_i32_0 = arith.constant 0 : i32
    %c0_i32_1 = arith.constant 0 : i32
    return %c0_i32, %c0_i32_0 : i32, i32
  }
  func.func @transform_3(%arg0: i32) -> (i32, i32) {
    %c0_i32 = arith.constant 0 : i32
    %c0_i32_0 = arith.constant 0 : i32
    return %arg0, %c0_i32 : i32, i32
  }
}

module attributes {stable_mosaic.version = 11 : i64} {
  func.func @_gru_seq_kernel(%arg0: i32, %arg1: memref<1x72x48xf32, #tpu.memory_space<vmem>>, %arg2: memref<9x16x48xbf16, #tpu.memory_space<vmem>>, %arg3: memref<1x48xf32, #tpu.memory_space<vmem>>, %arg4: memref<72x1xf32, #tpu.memory_space<vmem>>, %arg5: memref<1x72x16xf32, #tpu.memory_space<vmem>>, %arg6: memref<88x16xf32, #tpu.memory_space<vmem>>) attributes {dimension_semantics = [#tpu.dimension_semantics<arbitrary>], iteration_bounds = array<i64: 4>, scalar_prefetch = 0 : i64, scratch_operands = 1 : i64, tpu.core_type = #tpu.core_type<tc>, window_params = [{transform_indices = @transform_0, window_bounds = array<i64: 1, 72, 48>}, {pipeline_mode = #tpu.pipeline_mode<synchronous>, transform_indices = @transform_1, window_bounds = array<i64: 9, 16, 48>}, {pipeline_mode = #tpu.pipeline_mode<synchronous>, transform_indices = @transform_2, window_bounds = array<i64: 1, 48>}, {pipeline_mode = #tpu.pipeline_mode<synchronous>, transform_indices = @transform_3, window_bounds = array<i64: 72, 1>}, {transform_indices = @transform_4, window_bounds = array<i64: 1, 72, 16>}]} {
    %c0_i32 = arith.constant 0 : i32
    %0 = arith.cmpi eq, %arg0, %c0_i32 : i32
    %1 = arith.extui %0 : i1 to i32
    %c0_i32_0 = arith.constant 0 : i32
    %2 = arith.cmpi ne, %1, %c0_i32_0 : i32
    scf.if %2 {
      %cst_57 = arith.constant 0.000000e+00 : f32
      %96 = vector.broadcast %cst_57 : f32 to vector<88x16xf32>
      %c0_58 = arith.constant 0 : index
      %c0_59 = arith.constant 0 : index
      %97 = vector.load %arg6[%c0_58, %c0_59] : memref<88x16xf32, #tpu.memory_space<vmem>>, vector<88x16xf32>
      tpu.vector_store %arg6[%c0_58, %c0_59], %96 {strides = array<i32>} : memref<88x16xf32, #tpu.memory_space<vmem>>, vector<88x16xf32>,
    } else {
    }
    %c8 = arith.constant 8 : index
    %c0 = arith.constant 0 : index
    %3 = vector.load %arg6[%c8, %c0] : memref<88x16xf32, #tpu.memory_space<vmem>>, vector<72x16xf32>
    %cst = arith.constant 0.000000e+00 : f32
    %4 = vector.broadcast %cst : f32 to vector<72x48xf32>
    %c0_1 = arith.constant 0 : index
    %c0_2 = arith.constant 0 : index
    %5 = vector.load %arg3[%c0_1, %c0_2] : memref<1x48xf32, #tpu.memory_space<vmem>>, vector<1x48xf32>
    %6 = vector.broadcast %5 : vector<1x48xf32> to vector<72x48xf32>
    %7 = arith.addf %4, %6 : vector<72x48xf32>
    %c1 = arith.constant 1 : index
    %c0_3 = arith.constant 0 : index
    %8 = vector.load %arg6[%c1, %c0_3] : memref<88x16xf32, #tpu.memory_space<vmem>>, vector<72x16xf32>
    %c0_4 = arith.constant 0 : index
    %c0_5 = arith.constant 0 : index
    %c0_6 = arith.constant 0 : index
    %9 = vector.load %arg2[%c0_4, %c0_5, %c0_6] : memref<9x16x48xbf16, #tpu.memory_space<vmem>>, vector<1x16x48xbf16>
    %10 = vector.shape_cast %9 : vector<1x16x48xbf16> to vector<16x48xbf16>
    %11 = arith.truncf %8 : vector<72x16xf32> to vector<72x16xbf16>
    %cst_7 = arith.constant dense<0.000000e+00> : vector<72x48xf32>
    %12 = tpu.matmul %11, %10, %cst_7 {dimension_numbers = #tpu.dot_dimension_numbers<[1], [0], [0], [1], [0, 0, 1, 1], [], []>} : vector<72x16xbf16>, vector<16x48xbf16>, vector<72x48xf32> -> vector<72x48xf32>
    %13 = arith.addf %7, %12 : vector<72x48xf32>
    %c2 = arith.constant 2 : index
    %c0_8 = arith.constant 0 : index
    %14 = vector.load %arg6[%c2, %c0_8] : memref<88x16xf32, #tpu.memory_space<vmem>>, vector<72x16xf32>
    %c1_9 = arith.constant 1 : index
    %c0_10 = arith.constant 0 : index
    %c0_11 = arith.constant 0 : index
    %15 = vector.load %arg2[%c1_9, %c0_10, %c0_11] : memref<9x16x48xbf16, #tpu.memory_space<vmem>>, vector<1x16x48xbf16>
    %16 = vector.shape_cast %15 : vector<1x16x48xbf16> to vector<16x48xbf16>
    %17 = arith.truncf %14 : vector<72x16xf32> to vector<72x16xbf16>
    %cst_12 = arith.constant dense<0.000000e+00> : vector<72x48xf32>
    %18 = tpu.matmul %17, %16, %cst_12 {dimension_numbers = #tpu.dot_dimension_numbers<[1], [0], [0], [1], [0, 0, 1, 1], [], []>} : vector<72x16xbf16>, vector<16x48xbf16>, vector<72x48xf32> -> vector<72x48xf32>
    %19 = arith.addf %13, %18 : vector<72x48xf32>
    %c3 = arith.constant 3 : index
    %c0_13 = arith.constant 0 : index
    %20 = vector.load %arg6[%c3, %c0_13] : memref<88x16xf32, #tpu.memory_space<vmem>>, vector<72x16xf32>
    %c2_14 = arith.constant 2 : index
    %c0_15 = arith.constant 0 : index
    %c0_16 = arith.constant 0 : index
    %21 = vector.load %arg2[%c2_14, %c0_15, %c0_16] : memref<9x16x48xbf16, #tpu.memory_space<vmem>>, vector<1x16x48xbf16>
    %22 = vector.shape_cast %21 : vector<1x16x48xbf16> to vector<16x48xbf16>
    %23 = arith.truncf %20 : vector<72x16xf32> to vector<72x16xbf16>
    %cst_17 = arith.constant dense<0.000000e+00> : vector<72x48xf32>
    %24 = tpu.matmul %23, %22, %cst_17 {dimension_numbers = #tpu.dot_dimension_numbers<[1], [0], [0], [1], [0, 0, 1, 1], [], []>} : vector<72x16xbf16>, vector<16x48xbf16>, vector<72x48xf32> -> vector<72x48xf32>
    %25 = arith.addf %19, %24 : vector<72x48xf32>
    %c7 = arith.constant 7 : index
    %c0_18 = arith.constant 0 : index
    %26 = vector.load %arg6[%c7, %c0_18] : memref<88x16xf32, #tpu.memory_space<vmem>>, vector<72x16xf32>
    %c3_19 = arith.constant 3 : index
    %c0_20 = arith.constant 0 : index
    %c0_21 = arith.constant 0 : index
    %27 = vector.load %arg2[%c3_19, %c0_20, %c0_21] : memref<9x16x48xbf16, #tpu.memory_space<vmem>>, vector<1x16x48xbf16>
    %28 = vector.shape_cast %27 : vector<1x16x48xbf16> to vector<16x48xbf16>
    %29 = arith.truncf %26 : vector<72x16xf32> to vector<72x16xbf16>
    %cst_22 = arith.constant dense<0.000000e+00> : vector<72x48xf32>
    %30 = tpu.matmul %29, %28, %cst_22 {dimension_numbers = #tpu.dot_dimension_numbers<[1], [0], [0], [1], [0, 0, 1, 1], [], []>} : vector<72x16xbf16>, vector<16x48xbf16>, vector<72x48xf32> -> vector<72x48xf32>
    %31 = arith.addf %25, %30 : vector<72x48xf32>
    %c4 = arith.constant 4 : index
    %c0_23 = arith.constant 0 : index
    %c0_24 = arith.constant 0 : index
    %32 = vector.load %arg2[%c4, %c0_23, %c0_24] : memref<9x16x48xbf16, #tpu.memory_space<vmem>>, vector<1x16x48xbf16>
    %33 = vector.shape_cast %32 : vector<1x16x48xbf16> to vector<16x48xbf16>
    %34 = arith.truncf %3 : vector<72x16xf32> to vector<72x16xbf16>
    %cst_25 = arith.constant dense<0.000000e+00> : vector<72x48xf32>
    %35 = tpu.matmul %34, %33, %cst_25 {dimension_numbers = #tpu.dot_dimension_numbers<[1], [0], [0], [1], [0, 0, 1, 1], [], []>} : vector<72x16xbf16>, vector<16x48xbf16>, vector<72x48xf32> -> vector<72x48xf32>
    %36 = arith.addf %31, %35 : vector<72x48xf32>
    %c9 = arith.constant 9 : index
    %c0_26 = arith.constant 0 : index
    %37 = vector.load %arg6[%c9, %c0_26] : memref<88x16xf32, #tpu.memory_space<vmem>>, vector<72x16xf32>
    %c5 = arith.constant 5 : index
    %c0_27 = arith.constant 0 : index
    %c0_28 = arith.constant 0 : index
    %38 = vector.load %arg2[%c5, %c0_27, %c0_28] : memref<9x16x48xbf16, #tpu.memory_space<vmem>>, vector<1x16x48xbf16>
    %39 = vector.shape_cast %38 : vector<1x16x48xbf16> to vector<16x48xbf16>
    %40 = arith.truncf %37 : vector<72x16xf32> to vector<72x16xbf16>
    %cst_29 = arith.constant dense<0.000000e+00> : vector<72x48xf32>
    %41 = tpu.matmul %40, %39, %cst_29 {dimension_numbers = #tpu.dot_dimension_numbers<[1], [0], [0], [1], [0, 0, 1, 1], [], []>} : vector<72x16xbf16>, vector<16x48xbf16>, vector<72x48xf32> -> vector<72x48xf32>
    %42 = arith.addf %36, %41 : vector<72x48xf32>
    %c13 = arith.constant 13 : index
    %c0_30 = arith.constant 0 : index
    %43 = vector.load %arg6[%c13, %c0_30] : memref<88x16xf32, #tpu.memory_space<vmem>>, vector<72x16xf32>
    %c6 = arith.constant 6 : index
    %c0_31 = arith.constant 0 : index
    %c0_32 = arith.constant 0 : index
    %44 = vector.load %arg2[%c6, %c0_31, %c0_32] : memref<9x16x48xbf16, #tpu.memory_space<vmem>>, vector<1x16x48xbf16>
    %45 = vector.shape_cast %44 : vector<1x16x48xbf16> to vector<16x48xbf16>
    %46 = arith.truncf %43 : vector<72x16xf32> to vector<72x16xbf16>
    %cst_33 = arith.constant dense<0.000000e+00> : vector<72x48xf32>
    %47 = tpu.matmul %46, %45, %cst_33 {dimension_numbers = #tpu.dot_dimension_numbers<[1], [0], [0], [1], [0, 0, 1, 1], [], []>} : vector<72x16xbf16>, vector<16x48xbf16>, vector<72x48xf32> -> vector<72x48xf32>
    %48 = arith.addf %42, %47 : vector<72x48xf32>
    %c14 = arith.constant 14 : index
    %c0_34 = arith.constant 0 : index
    %49 = vector.load %arg6[%c14, %c0_34] : memref<88x16xf32, #tpu.memory_space<vmem>>, vector<72x16xf32>
    %c7_35 = arith.constant 7 : index
    %c0_36 = arith.constant 0 : index
    %c0_37 = arith.constant 0 : index
    %50 = vector.load %arg2[%c7_35, %c0_36, %c0_37] : memref<9x16x48xbf16, #tpu.memory_space<vmem>>, vector<1x16x48xbf16>
    %51 = vector.shape_cast %50 : vector<1x16x48xbf16> to vector<16x48xbf16>
    %52 = arith.truncf %49 : vector<72x16xf32> to vector<72x16xbf16>
    %cst_38 = arith.constant dense<0.000000e+00> : vector<72x48xf32>
    %53 = tpu.matmul %52, %51, %cst_38 {dimension_numbers = #tpu.dot_dimension_numbers<[1], [0], [0], [1], [0, 0, 1, 1], [], []>} : vector<72x16xbf16>, vector<16x48xbf16>, vector<72x48xf32> -> vector<72x48xf32>
    %54 = arith.addf %48, %53 : vector<72x48xf32>
    %c15 = arith.constant 15 : index
    %c0_39 = arith.constant 0 : index
    %55 = vector.load %arg6[%c15, %c0_39] : memref<88x16xf32, #tpu.memory_space<vmem>>, vector<72x16xf32>
    %c8_40 = arith.constant 8 : index
    %c0_41 = arith.constant 0 : index
    %c0_42 = arith.constant 0 : index
    %56 = vector.load %arg2[%c8_40, %c0_41, %c0_42] : memref<9x16x48xbf16, #tpu.memory_space<vmem>>, vector<1x16x48xbf16>
    %57 = vector.shape_cast %56 : vector<1x16x48xbf16> to vector<16x48xbf16>
    %58 = arith.truncf %55 : vector<72x16xf32> to vector<72x16xbf16>
    %cst_43 = arith.constant dense<0.000000e+00> : vector<72x48xf32>
    %59 = tpu.matmul %58, %57, %cst_43 {dimension_numbers = #tpu.dot_dimension_numbers<[1], [0], [0], [1], [0, 0, 1, 1], [], []>} : vector<72x16xbf16>, vector<16x48xbf16>, vector<72x48xf32> -> vector<72x48xf32>
    %60 = arith.addf %54, %59 : vector<72x48xf32>
    %c0_44 = arith.constant 0 : index
    %c0_45 = arith.constant 0 : index
    %c0_46 = arith.constant 0 : index
    %61 = vector.load %arg1[%c0_44, %c0_45, %c0_46] : memref<1x72x48xf32, #tpu.memory_space<vmem>>, vector<1x72x48xf32>
    %62 = vector.shape_cast %61 : vector<1x72x48xf32> to vector<72x48xf32>
    %63 = vector.extract_strided_slice %62 {offsets = [0, 0], sizes = [72, 16], strides = [1, 1]} : vector<72x48xf32> to vector<72x16xf32>
    %64 = vector.extract_strided_slice %60 {offsets = [0, 0], sizes = [72, 16], strides = [1, 1]} : vector<72x48xf32> to vector<72x16xf32>
    %65 = arith.addf %63, %64 : vector<72x16xf32>
    %66 = arith.negf %65 : vector<72x16xf32>
    %67 = math.exp %66 : vector<72x16xf32>
    %cst_47 = arith.constant 1.000000e+00 : f32
    %68 = vector.broadcast %cst_47 : f32 to vector<72x16xf32>
    %69 = arith.addf %68, %67 : vector<72x16xf32>
    %70 = arith.divf %68, %69 : vector<72x16xf32>
    %71 = vector.extract_strided_slice %62 {offsets = [0, 16], sizes = [72, 16], strides = [1, 1]} : vector<72x48xf32> to vector<72x16xf32>
    %72 = vector.extract_strided_slice %60 {offsets = [0, 16], sizes = [72, 16], strides = [1, 1]} : vector<72x48xf32> to vector<72x16xf32>
    %73 = arith.addf %71, %72 : vector<72x16xf32>
    %74 = arith.negf %73 : vector<72x16xf32>
    %75 = math.exp %74 : vector<72x16xf32>
    %cst_48 = arith.constant 1.000000e+00 : f32
    %76 = vector.broadcast %cst_48 : f32 to vector<72x16xf32>
    %77 = arith.addf %76, %75 : vector<72x16xf32>
    %78 = arith.divf %76, %77 : vector<72x16xf32>
    %79 = vector.extract_strided_slice %62 {offsets = [0, 32], sizes = [72, 16], strides = [1, 1]} : vector<72x48xf32> to vector<72x16xf32>
    %80 = vector.extract_strided_slice %60 {offsets = [0, 32], sizes = [72, 16], strides = [1, 1]} : vector<72x48xf32> to vector<72x16xf32>
    %81 = arith.mulf %78, %80 : vector<72x16xf32>
    %82 = arith.addf %79, %81 : vector<72x16xf32>
    %83 = math.tanh %82 : vector<72x16xf32>
    %c0_49 = arith.constant 0 : index
    %c0_50 = arith.constant 0 : index
    %84 = vector.load %arg4[%c0_49, %c0_50] : memref<72x1xf32, #tpu.memory_space<vmem>>, vector<72x1xf32>
    %cst_51 = arith.constant 1.000000e+00 : f32
    %85 = vector.broadcast %cst_51 : f32 to vector<72x16xf32>
    %86 = arith.subf %85, %70 : vector<72x16xf32>
    %87 = arith.mulf %86, %83 : vector<72x16xf32>
    %88 = arith.mulf %70, %3 : vector<72x16xf32>
    %89 = arith.addf %87, %88 : vector<72x16xf32>
    %90 = vector.broadcast %84 : vector<72x1xf32> to vector<72x16xf32>
    %91 = arith.mulf %90, %89 : vector<72x16xf32>
    %c8_52 = arith.constant 8 : index
    %c0_53 = arith.constant 0 : index
    %92 = vector.load %arg6[%c8_52, %c0_53] : memref<88x16xf32, #tpu.memory_space<vmem>>, vector<72x16xf32>
    tpu.vector_store %arg6[%c8_52, %c0_53], %91 {strides = array<i32>} : memref<88x16xf32, #tpu.memory_space<vmem>>, vector<72x16xf32>,
    %c0_54 = arith.constant 0 : index
    %c0_55 = arith.constant 0 : index
    %c0_56 = arith.constant 0 : index
    %93 = vector.load %arg5[%c0_54, %c0_55, %c0_56] : memref<1x72x16xf32, #tpu.memory_space<vmem>>, vector<1x72x16xf32>
    %94 = vector.shape_cast %93 : vector<1x72x16xf32> to vector<72x16xf32>
    %95 = vector.shape_cast %91 : vector<72x16xf32> to vector<1x72x16xf32>
    tpu.vector_store %arg5[%c0_54, %c0_55, %c0_56], %95 {strides = array<i32>} : memref<1x72x16xf32, #tpu.memory_space<vmem>>, vector<1x72x16xf32>,
    return
  }
  func.func @transform_0(%arg0: i32) -> (i32, i32, i32) {
    %c0_i32 = arith.constant 0 : i32
    %c0_i32_0 = arith.constant 0 : i32
    %c0_i32_1 = arith.constant 0 : i32
    return %arg0, %c0_i32, %c0_i32_0 : i32, i32, i32
  }
  func.func @transform_1(%arg0: i32) -> (i32, i32, i32) {
    %c0_i32 = arith.constant 0 : i32
    %c0_i32_0 = arith.constant 0 : i32
    %c0_i32_1 = arith.constant 0 : i32
    %c0_i32_2 = arith.constant 0 : i32
    return %c0_i32, %c0_i32_0, %c0_i32_1 : i32, i32, i32
  }
  func.func @transform_2(%arg0: i32) -> (i32, i32) {
    %c0_i32 = arith.constant 0 : i32
    %c0_i32_0 = arith.constant 0 : i32
    %c0_i32_1 = arith.constant 0 : i32
    return %c0_i32, %c0_i32_0 : i32, i32
  }
  func.func @transform_3(%arg0: i32) -> (i32, i32) {
    %c0_i32 = arith.constant 0 : i32
    %c0_i32_0 = arith.constant 0 : i32
    %c0_i32_1 = arith.constant 0 : i32
    return %c0_i32, %c0_i32_0 : i32, i32
  }
  func.func @transform_4(%arg0: i32) -> (i32, i32, i32) {
    %c0_i32 = arith.constant 0 : i32
    %c0_i32_0 = arith.constant 0 : i32
    %c0_i32_1 = arith.constant 0 : i32
    return %arg0, %c0_i32, %c0_i32_0 : i32, i32, i32
  }
}

</mosaic_0001>

<bundles_post_ra>
// kernel: encoder_forward.6
= control target key start
LH: loop header
LB: loop body
LE: loop exit
PB: predicated region body
PF: predicated region fallthrough
CT: control target
= control target key end

     0   :  { %s576_s12 = smov 0   ;;  %s690_s0 = inlined_call_operand.vmem [shape: f32[512,36], index: 0, kind: input, shape index: {}]   ;;  %s691_s1 = inlined_call_operand.vmem [shape: bf16[36,8], index: 1, kind: input, shape index: {}]   ;;  %s692_s2 = inlined_call_operand.vmem [shape: f32[1,8], index: 2, kind: input, shape index: {}]   ;;  %s693_s3 = inlined_call_operand.vmem [shape: f32[512,8], index: 3, kind: output, shape index: {}]  }
   0x1 LB: > { %s473_s13 = sadd.s32 4294967295, %s554_s12   ;;  %p477_p0 = scmp.ge.s32.totalorder %s554_s12, 1  ;;  %s554_s12 = sphi %s576_s12, %s13_s12  }
   0x2   : > { %p138_p1 = scmp.lt.s32.totalorder %s554_s12, 5 }
   0x4   : > { %p139_p2 = pnand %p477_p0, %p138_p1 }
   0x5   : > { %v545_v0 = vld [vmem:[%s691_s1] sm:$0xff] (!%p139_p2)   ;;  %v546_v1 = vld [vmem:[%s691_s1 + $0x8] sm:$0xff] (!%p139_p2)   ;;  %s478_s18 = sshll.u32 (!%p139_p2), %s473_s13, 4  ;;  %v547_v2 = vld [vmem:[%s691_s1 + $0x10] ss:$0 sps:$4 sm:$0x33] (!%p139_p2)  }
   0x6   : > { %142 = sbr.rel (%p139_p2) target bundleno = 253 (0xfd), region = 32  ;;  %507 = vmatprep.subr.bf16.mxu0 (!%p139_p2), %v545_v0  ;;  %529 = vmatprep.subr.bf16.mxu1 (!%p139_p2), %v545_v0  ;;  %p163_p3 = scmp.lt.s32.totalorder (!%p139_p2), %s478_s18, 63  ;;  %vm251_vm0 = vcmask (!%p139_p2), 1041408   ;;  %vm226_vm1 = vcmask (!%p139_p2), 293888   ;;  %v630_v28 = vld [vmem:[%s692_s2] ss:$0 sm:$0xff] (!%p139_p2) }
   0x7   : > { %508 = vmatpush3.bf16.msra.mxu0 (!%p139_p2), %v545_v0  ;;  %532 = vmatpush3.bf16.msra.mxu1 (!%p139_p2), %v545_v0  ;;  %v253_v3 = vsel (!%p139_p2), %vm251_vm0, %v547_v2, 0  ;;  %vm400_vm2 = vcmask (!%p139_p2), 64512  }
   0x8   : > { %509 = vmatprep.subr.bf16.mxu0 (!%p139_p2), %v546_v1  ;;  %530 = vmatprep.subr.bf16.mxu1 (!%p139_p2), %v546_v1 }
   0xb   : > { %510 = vmatpush3.bf16.msra.mxu0 (!%p139_p2), %v546_v1  ;;  %533 = vmatpush3.bf16.msra.mxu1 (!%p139_p2), %v546_v1 }
   0xc   : > { %535 = vmatprep.subr.msk.bf16.mxu0 (!%p139_p2), %vm251_vm0, %v547_v2  ;;  %536 = vmatprep.subr.msk.bf16.mxu1 (!%p139_p2), %vm251_vm0, %v547_v2 }
   0xd   : > { %s695_s18 = smov (!%p163_p3, %s478_s18), 63 }
   0xe   : > { %s479_s21 = sshll.u32 %s695_s18, 3 }
   0xf   : > { %s601_s24 = scalar_lea.vmem %s690_s0, %s479_s21  ;;  %512 = vmatpush3.bf16.msra.mxu0 %v253_v3  ;;  %534 = vmatpush3.bf16.msra.mxu1 %v253_v3  ;;  %s641_s29 = scalar_lea.vmem %s693_s3, %s479_s21 }
  0x10   : > { %v175_v4 = vld [vmem:[%s601_s24] sm:$0xff]  ;;  %v176_v5 = vld [vmem:[%s601_s24 + $0x8] sm:$0xff]  ;;  %v177_v9 = vld [vmem:[%s601_s24 + $0x10] sm:$0xff] }
  0x11   : > { %v183_v6 = vld [vmem:[%s601_s24 + $0x40] sm:$0xff]  ;;  %v191_v7 = vpack.c.bf16 %v176_v5, %v175_v4  ;;  %v184_v8 = vld [vmem:[%s601_s24 + $0x48] sm:$0xff]  ;;  %v178_v10 = vld [vmem:[%s601_s24 + $0x18] sm:$0xff] }
  0x12   : > { %v195_v11 = vpack.c.bf16 %v184_v8, %v183_v6  ;;  %v192_v12 = vpack.c.bf16 %v178_v10, %v177_v9  ;;  %v185_v13 = vld [vmem:[%s601_s24 + $0x50] sm:$0xff]  ;;  %v186_v14 = vld [vmem:[%s601_s24 + $0x58] sm:$0xff]  ;;  %v179_v15 = vld [vmem:[%s601_s24 + $0x20] sm:$0xff] }
  0x13   : > { %v196_v16 = vpack.c.bf16 %v186_v14, %v185_v13  ;;  %v180_v17 = vld [vmem:[%s601_s24 + $0x28] sm:$0xff]  ;;  %v187_v18 = vld [vmem:[%s601_s24 + $0x60] sm:$0xff]  ;;  %513 = vmatprep.mubr.msk.bf16.mxu0 %vm226_vm1, %v191_v7  ;;  %v181_v22 = vld [vmem:[%s601_s24 + $0x30] sm:$0xff] }
  0x14   : > { %v188_v19 = vld [vmem:[%s601_s24 + $0x68] sm:$0xff]  ;;  %521 = vmatprep.mubr.msk.bf16.mxu1 %vm226_vm1, %v195_v11  ;;  %v193_v20 = vpack.c.bf16 %v180_v17, %v179_v15  ;;  %514 = vmatmul.mubr.msk.bf16.vlgmr.msra.gmra.mrb[0].mxu0 %vm226_vm1, %v192_v12  ;;  %v182_v23 = vld [vmem:[%s601_s24 + $0x38] sm:$0xff]  ;;  %v189_v24 = vld [vmem:[%s601_s24 + $0x70] sm:$0xff] }
  0x15   : > { %v197_v21 = vpack.c.bf16 %v188_v19, %v187_v18  ;;  %522 = vmatmul.mubr.msk.bf16.vlgmr.msra.gmra.mrb[0].mxu1 %vm226_vm1, %v196_v16  ;;  %v190_v25 = vld [vmem:[%s601_s24 + $0x78] sm:$0xff]  ;;  %v194_v26 = vpack.c.bf16 %v182_v23, %v181_v22 }
  0x16   : > { %517 = vmatprep.mubr.msk.bf16.mxu0 %vm226_vm1, %v193_v20  ;;  %v198_v27 = vpack.c.bf16 %v190_v25, %v189_v24 }
  0x17   : > { %525 = vmatprep.mubr.msk.bf16.mxu1 %vm226_vm1, %v197_v21 }
  0x1c   : > { %518 = vmatmul.mubr.msk.bf16.gmra.mrb[4].mxu0 %vm226_vm1, %v194_v26 }
  0x1d   : > { %526 = vmatmul.mubr.msk.bf16.gmra.mrb[4].mxu1 %vm226_vm1, %v198_v27 }
  0xe7   : > { %v515_v29 = vpop.f32.mrb[0].mxu0 }
  0xe8   : > { %v523_v30 = vpop.f32.mrb[0].mxu1  ;;  %v298_v31 = vadd.f32 %v515_v29, %v630_v28  ;;  %v289_v33 = vpop.f32.mrb[1].mxu0 }
  0xe9   : > { %v330_v32 = vadd.f32 %v523_v30, %v630_v28  ;;  %v321_v34 = vpop.f32.mrb[1].mxu1  ;;  %v290_v35 = vadd.f32 %v630_v28, %v289_v33  ;;  %v516_v37 = vpop.f32.mrb[2].mxu0 }
  0xea   : > { %v322_v36 = vadd.f32 %v630_v28, %v321_v34  ;;  %v524_v38 = vpop.f32.mrb[2].mxu1  ;;  %vm354_vm3 = vcmp.ge.f32.partialorder %v298_v31, 0.0  ;;  %v370_v39 = vmul.f32 0.2, %v298_v31  ;;  %v301_v45 = vadd.f32 %v516_v37, %v630_v28  ;;  %v292_v47 = vpop.f32.mrb[3].mxu0 }
  0xeb   : > { %vm362_vm4 = vcmp.ge.f32.partialorder %v330_v32, 0.0  ;;  %v378_v40 = vmul.f32 0.2, %v330_v32  ;;  %vm352_vm5 = vcmp.ge.f32.partialorder %v290_v35, 0.0  ;;  %v368_v41 = vmul.f32 0.2, %v290_v35 }
  0xec   : > { %vm360_vm6 = vcmp.ge.f32.partialorder %v322_v36, 0.0  ;;  %v376_v42 = vmul.f32 0.2, %v322_v36  ;;  %v386_v43 = vsel %vm354_vm3, %v298_v31, %v370_v39  ;;  %v333_v46 = vadd.f32 %v524_v38, %v630_v28  ;;  %v324_v48 = vpop.f32.mrb[3].mxu1 }
  0xed   : > { %v394_v44 = vsel %vm362_vm4, %v330_v32, %v378_v40  ;;  %403 = vst.msk [vmem:[%s641_s29 + $0x10] sm:$0xff] %vm400_vm2, %v386_v43  ;;  %v384_v49 = vsel %vm352_vm5, %v290_v35, %v368_v41  ;;  %v293_v51 = vadd.f32 %v630_v28, %v292_v47  ;;  %v325_v52 = vadd.f32 %v630_v28, %v324_v48 }
  0xee   : > { %411 = vst.msk [vmem:[%s641_s29 + $0x50] sm:$0xff] %vm400_vm2, %v394_v44  ;;  %v392_v50 = vsel %vm360_vm6, %v322_v36, %v376_v42  ;;  %401 = vst.msk [vmem:[%s641_s29] sm:$0xff] %vm400_vm2, %v384_v49  ;;  %vm355_vm7 = vcmp.ge.f32.partialorder %v301_v45, 0.0  ;;  %v371_v53 = vmul.f32 0.2, %v301_v45  ;;  %vm363_vm8 = vcmp.ge.f32.partialorder %v333_v46, 0.0 }
  0xef   : > { %409 = vst.msk [vmem:[%s641_s29 + $0x40] sm:$0xff] %vm400_vm2, %v392_v50  ;;  %v379_v54 = vmul.f32 0.2, %v333_v46  ;;  %vm353_vm9 = vcmp.ge.f32.partialorder %v293_v51, 0.0  ;;  %v369_v55 = vmul.f32 0.2, %v293_v51 }
  0xf0   : > { %vm361_vm10 = vcmp.ge.f32.partialorder %v325_v52, 0.0  ;;  %v377_v56 = vmul.f32 0.2, %v325_v52  ;;  %v387_v57 = vsel %vm355_vm7, %v301_v45, %v371_v53  ;;  %v519_v59 = vpop.f32.mrb[4].mxu0  ;;  %v527_v60 = vpop.f32.mrb[4].mxu1 }
  0xf1   : > { %v395_v58 = vsel %vm363_vm8, %v333_v46, %v379_v54  ;;  %404 = vst.msk [vmem:[%s641_s29 + $0x18] sm:$0xff] %vm400_vm2, %v387_v57  ;;  %v385_v61 = vsel %vm353_vm9, %v293_v51, %v369_v55  ;;  %v314_v63 = vadd.f32 %v519_v59, %v630_v28  ;;  %v346_v0 = vadd.f32 %v527_v60, %v630_v28  ;;  %v305_v1 = vpop.f32.mrb[5].mxu0  ;;  %v337_v2 = vpop.f32.mrb[5].mxu1 }
  0xf2   : > { %412 = vst.msk [vmem:[%s641_s29 + $0x58] sm:$0xff] %vm400_vm2, %v395_v58  ;;  %v393_v62 = vsel %vm361_vm10, %v325_v52, %v377_v56  ;;  %402 = vst.msk [vmem:[%s641_s29 + $0x8] sm:$0xff] %vm400_vm2, %v385_v61  ;;  %v306_v3 = vadd.f32 %v630_v28, %v305_v1  ;;  %v338_v4 = vadd.f32 %v630_v28, %v337_v2  ;;  %v520_v5 = vpop.f32.mrb[6].mxu0  ;;  %v528_v6 = vpop.f32.mrb[6].mxu1 }
  0xf3   : > { %410 = vst.msk [vmem:[%s641_s29 + $0x48] sm:$0xff] %vm400_vm2, %v393_v62  ;;  %vm358_vm11 = vcmp.ge.f32.partialorder %v314_v63, 0.0  ;;  %v374_v7 = vmul.f32 0.2, %v314_v63  ;;  %vm366_vm12 = vcmp.ge.f32.partialorder %v346_v0, 0.0  ;;  %v317_v13 = vadd.f32 %v520_v5, %v630_v28  ;;  %v308_v15 = vpop.f32.mrb[7].mxu0 }
  0xf4   : > { %v382_v8 = vmul.f32 0.2, %v346_v0  ;;  %vm356_vm13 = vcmp.ge.f32.partialorder %v306_v3, 0.0  ;;  %v372_v9 = vmul.f32 0.2, %v306_v3  ;;  %vm364_vm14 = vcmp.ge.f32.partialorder %v338_v4, 0.0 }
  0xf5   : > { %v380_v10 = vmul.f32 0.2, %v338_v4  ;;  %v390_v11 = vsel %vm358_vm11, %v314_v63, %v374_v7  ;;  %v349_v14 = vadd.f32 %v528_v6, %v630_v28  ;;  %v340_v16 = vpop.f32.mrb[7].mxu1  ;;  %v309_v19 = vadd.f32 %v630_v28, %v308_v15 }
  0xf6   : > { %v398_v12 = vsel %vm366_vm12, %v346_v0, %v382_v8  ;;  %407 = vst.msk [vmem:[%s641_s29 + $0x30] sm:$0xff] %vm400_vm2, %v390_v11  ;;  %v388_v17 = vsel %vm356_vm13, %v306_v3, %v372_v9  ;;  %v341_v20 = vadd.f32 %v630_v28, %v340_v16  ;;  %vm359_vm15 = vcmp.ge.f32.partialorder %v317_v13, 0.0 }
  0xf7   : > { %415 = vst.msk [vmem:[%s641_s29 + $0x70] sm:$0xff] %vm400_vm2, %v398_v12  ;;  %v396_v18 = vsel %vm364_vm14, %v338_v4, %v380_v10  ;;  %405 = vst.msk [vmem:[%s641_s29 + $0x20] sm:$0xff] %vm400_vm2, %v388_v17  ;;  %v375_v21 = vmul.f32 0.2, %v317_v13  ;;  %vm367_vm0 = vcmp.ge.f32.partialorder %v349_v14, 0.0  ;;  %vm357_vm1 = vcmp.ge.f32.partialorder %v309_v19, 0.0 }
  0xf8   : > { %413 = vst.msk [vmem:[%s641_s29 + $0x60] sm:$0xff] %vm400_vm2, %v396_v18  ;;  %v383_v22 = vmul.f32 0.2, %v349_v14  ;;  %v373_v23 = vmul.f32 0.2, %v309_v19  ;;  %vm365_vm3 = vcmp.ge.f32.partialorder %v341_v20, 0.0 }
  0xf9   : > { %v381_v24 = vmul.f32 0.2, %v341_v20  ;;  %v391_v25 = vsel %vm359_vm15, %v317_v13, %v375_v21 }
  0xfa   : > { %v399_v26 = vsel %vm367_vm0, %v349_v14, %v383_v22  ;;  %408 = vst.msk [vmem:[%s641_s29 + $0x38] sm:$0xff] %vm400_vm2, %v391_v25  ;;  %v389_v27 = vsel %vm357_vm1, %v309_v19, %v373_v23 }
  0xfb   : > { %416 = vst.msk [vmem:[%s641_s29 + $0x78] sm:$0xff] %vm400_vm2, %v399_v26  ;;  %v397_v28 = vsel %vm365_vm3, %v341_v20, %v381_v24  ;;  %406 = vst.msk [vmem:[%s641_s29 + $0x28] sm:$0xff] %vm400_vm2, %v389_v27 }
  0xfc   : > { %414 = vst.msk [vmem:[%s641_s29 + $0x68] sm:$0xff] %vm400_vm2, %v397_v28 }
  0xfd PF: > { %s13_s12 = sadd.s32 1, %s554_s12  }
  0xfe   : > { %p10_p4 = scmp.ge.s32.totalorder %s13_s12, 6  }
 0x100   :  { %12 = sbr.rel (!%p10_p4) target bundleno = 1 (0x1), region = 62 }

// kernel: encoder_forward.7
= control target key start
LH: loop header
LB: loop body
LE: loop exit
PB: predicated region body
PF: predicated region fallthrough
CT: control target
= control target key end

     0   :  { %s558_s12 = smov 0   ;;  %s660_s0 = inlined_call_operand.vmem [shape: f32[512,72], index: 0, kind: input, shape index: {}]   ;;  %s661_s1 = inlined_call_operand.vmem [shape: bf16[72,24], index: 1, kind: input, shape index: {}]   ;;  %s662_s2 = inlined_call_operand.vmem [shape: f32[1,24], index: 2, kind: input, shape index: {}]   ;;  %s663_s3 = inlined_call_operand.vmem [shape: f32[512,24], index: 3, kind: output, shape index: {}]  }
   0x1 LB: > { %s441_s13 = sadd.s32 4294967295, %s536_s12   ;;  %p445_p0 = scmp.ge.s32.totalorder %s536_s12, 1  ;;  %s536_s12 = sphi %s558_s12, %s13_s12  }
   0x2   : > { %p138_p1 = scmp.lt.s32.totalorder %s536_s12, 5 }
   0x4   : > { %p139_p2 = pnand %p445_p0, %p138_p1 }
   0x5   : > { %v525_v0 = vld [vmem:[%s661_s1] sm:$0xff] (!%p139_p2)   ;;  %v526_v1 = vld [vmem:[%s661_s1 + $0x8] sm:$0xff] (!%p139_p2)   ;;  %s446_s18 = sshll.u32 (!%p139_p2), %s441_s13, 4  ;;  %v527_v2 = vld [vmem:[%s661_s1 + $0x10] sm:$0xff] (!%p139_p2)   ;;  %vm242_vm0 = vcmask (!%p139_p2), 588800   ;;  %vm267_vm1 = vcmask (!%p139_p2), 1043456  }
   0x6   : > { %142 = sbr.rel (%p139_p2) target bundleno = 253 (0xfd), region = 32  ;;  %479 = vmatprep.subr.bf16.mxu0 (!%p139_p2), %v525_v0  ;;  %505 = vmatprep.subr.bf16.mxu1 (!%p139_p2), %v525_v0  ;;  %p163_p3 = scmp.lt.s32.totalorder (!%p139_p2), %s446_s18, 63  ;;  %v528_v3 = vld [vmem:[%s661_s1 + $0x18] sm:$0xff] (!%p139_p2)   ;;  %v529_v10 = vld [vmem:[%s661_s1 + $0x20] ss:$0 sps:$4 sm:$0xff] (!%p139_p2)   ;;  %vm368_vm2 = vcmask (!%p139_p2), 195584  }
   0x7   : > { %480 = vmatpush3.bf16.msra.mxu0 (!%p139_p2), %v525_v0  ;;  %510 = vmatpush3.bf16.msra.mxu1 (!%p139_p2), %v525_v0  ;;  %v269_v16 = vsel (!%p139_p2), %vm267_vm1, %v529_v10, 0  ;;  %v450_v30 = vld [vmem:[%s662_s2] ss:$0 sm:$0xff] (!%p139_p2) }
   0x8   : > { %481 = vmatprep.subr.bf16.mxu0 (!%p139_p2), %v526_v1  ;;  %506 = vmatprep.subr.bf16.mxu1 (!%p139_p2), %v526_v1 }
   0xb   : > { %482 = vmatpush3.bf16.msra.mxu0 (!%p139_p2), %v526_v1  ;;  %511 = vmatpush3.bf16.msra.mxu1 (!%p139_p2), %v526_v1 }
   0xc   : > { %483 = vmatprep.subr.bf16.mxu0 (!%p139_p2), %v527_v2  ;;  %507 = vmatprep.subr.bf16.mxu1 (!%p139_p2), %v527_v2 }
   0xd   : > { %s665_s18 = smov (!%p163_p3, %s446_s18), 63 }
   0xe   : > { %s447_s21 = sshll.u32 %s665_s18, 3 }
   0xf   : > { %s586_s26 = scalar_lea.vmem %s660_s0, %s447_s21  ;;  %484 = vmatpush3.bf16.msra.mxu0 %v527_v2  ;;  %512 = vmatpush3.bf16.msra.mxu1 %v527_v2  ;;  %s623_s6 = scalar_lea.vmem %s663_s3, %s447_s21 }
  0x10   : > { %v175_v4 = vld [vmem:[%s586_s26] sm:$0xff]  ;;  %v176_v5 = vld [vmem:[%s586_s26 + $0x8] sm:$0xff]  ;;  %485 = vmatprep.subr.bf16.mxu0 %v528_v3  ;;  %508 = vmatprep.subr.bf16.mxu1 %v528_v3  ;;  %v177_v11 = vld [vmem:[%s586_s26 + $0x10] sm:$0xff] }
  0x11   : > { %v183_v6 = vld [vmem:[%s586_s26 + $0x40] sm:$0xff]  ;;  %v191_v7 = vpack.c.bf16 %v176_v5, %v175_v4  ;;  %v184_v8 = vld [vmem:[%s586_s26 + $0x48] sm:$0xff]  ;;  %v178_v12 = vld [vmem:[%s586_s26 + $0x18] sm:$0xff] }
  0x12   : > { %v195_v9 = vpack.c.bf16 %v184_v8, %v183_v6  ;;  %v185_v13 = vld [vmem:[%s586_s26 + $0x50] sm:$0xff]  ;;  %v186_v14 = vld [vmem:[%s586_s26 + $0x58] sm:$0xff]  ;;  %v179_v15 = vld [vmem:[%s586_s26 + $0x20] sm:$0xff]  ;;  %v192_v20 = vpack.c.bf16 %v178_v12, %v177_v11 }
  0x13   : > { %489 = vmatprep.mubr.msk.bf16.mxu0 %vm242_vm0, %v191_v7  ;;  %486 = vmatpush3.bf16.msra.mxu0 %v528_v3  ;;  %v180_v17 = vld [vmem:[%s586_s26 + $0x28] sm:$0xff]  ;;  %v187_v18 = vld [vmem:[%s586_s26 + $0x60] sm:$0xff]  ;;  %v196_v21 = vpack.c.bf16 %v186_v14, %v185_v13  ;;  %v181_v24 = vld [vmem:[%s586_s26 + $0x30] sm:$0xff] }
  0x14   : > { %497 = vmatprep.mubr.msk.bf16.mxu1 %vm242_vm0, %v195_v9  ;;  %513 = vmatpush3.bf16.msra.mxu1 %v528_v3  ;;  %v188_v19 = vld [vmem:[%s586_s26 + $0x68] sm:$0xff]  ;;  %v193_v22 = vpack.c.bf16 %v180_v17, %v179_v15  ;;  %v182_v25 = vld [vmem:[%s586_s26 + $0x38] sm:$0xff]  ;;  %v189_v26 = vld [vmem:[%s586_s26 + $0x70] sm:$0xff] }
  0x15   : > { %515 = vmatprep.subr.msk.bf16.mxu0 %vm267_vm1, %v529_v10  ;;  %516 = vmatprep.subr.msk.bf16.mxu1 %vm267_vm1, %v529_v10  ;;  %v197_v23 = vpack.c.bf16 %v188_v19, %v187_v18  ;;  %v190_v27 = vld [vmem:[%s586_s26 + $0x78] sm:$0xff]  ;;  %v194_v28 = vpack.c.bf16 %v182_v25, %v181_v24 }
  0x16   : > { %v198_v29 = vpack.c.bf16 %v190_v27, %v189_v26 }
  0x17   : > { %488 = vmatpush3.bf16.msra.mxu0 %v269_v16 }
  0x18   : > { %514 = vmatpush3.bf16.msra.mxu1 %v269_v16 }
  0x1a   : > { %490 = vmatmul.mubr.msk.bf16.vlgmr.msra.gmra.mrb[0].mxu0 %vm242_vm0, %v192_v20 }
  0x1b   : > { %498 = vmatmul.mubr.msk.bf16.vlgmr.msra.gmra.mrb[0].mxu1 %vm242_vm0, %v196_v21  ;;  %493 = vmatprep.mubr.msk.bf16.mxu0 %vm242_vm0, %v193_v22 }
  0x1c   : > { %501 = vmatprep.mubr.msk.bf16.mxu1 %vm242_vm0, %v197_v23 }
  0x22   : > { %494 = vmatmul.mubr.msk.bf16.gmra.mrb[4].mxu0 %vm242_vm0, %v194_v28 }
  0x23   : > { %502 = vmatmul.mubr.msk.bf16.gmra.mrb[4].mxu1 %vm242_vm0, %v198_v29 }
  0xed   : > { %v491_v31 = vpop.f32.mrb[0].mxu0 }
  0xee   : > { %v499_v32 = vpop.f32.mrb[0].mxu1  ;;  %v314_v33 = vadd.f32 %v491_v31, %v450_v30  ;;  %v305_v35 = vpop.f32.mrb[1].mxu0 }
  0xef   : > { %v346_v34 = vadd.f32 %v499_v32, %v450_v30  ;;  %v337_v36 = vpop.f32.mrb[1].mxu1  ;;  %v306_v37 = vadd.f32 %v450_v30, %v305_v35  ;;  %v492_v39 = vpop.f32.mrb[2].mxu0 }
  0xf0   : > { %v338_v38 = vadd.f32 %v450_v30, %v337_v36  ;;  %v500_v40 = vpop.f32.mrb[2].mxu1  ;;  %371 = vst.msk [vmem:[%s623_s6 + $0x10] sm:$0xff] %vm368_vm2, %v314_v33  ;;  %v317_v41 = vadd.f32 %v492_v39, %v450_v30  ;;  %v308_v43 = vpop.f32.mrb[3].mxu0 }
  0xf1   : > { %379 = vst.msk [vmem:[%s623_s6 + $0x50] sm:$0xff] %vm368_vm2, %v346_v34  ;;  %v349_v42 = vadd.f32 %v500_v40, %v450_v30  ;;  %v340_v44 = vpop.f32.mrb[3].mxu1  ;;  %369 = vst.msk [vmem:[%s623_s6] sm:$0xff] %vm368_vm2, %v306_v37  ;;  %v309_v45 = vadd.f32 %v450_v30, %v308_v43 }
  0xf2   : > { %377 = vst.msk [vmem:[%s623_s6 + $0x40] sm:$0xff] %vm368_vm2, %v338_v38  ;;  %v341_v46 = vadd.f32 %v450_v30, %v340_v44  ;;  %372 = vst.msk [vmem:[%s623_s6 + $0x18] sm:$0xff] %vm368_vm2, %v317_v41 }
  0xf3   : > { %380 = vst.msk [vmem:[%s623_s6 + $0x58] sm:$0xff] %vm368_vm2, %v349_v42  ;;  %370 = vst.msk [vmem:[%s623_s6 + $0x8] sm:$0xff] %vm368_vm2, %v309_v45 }
  0xf4   : > { %378 = vst.msk [vmem:[%s623_s6 + $0x48] sm:$0xff] %vm368_vm2, %v341_v46 }
  0xf5   : > { %v495_v47 = vpop.f32.mrb[4].mxu0 }
  0xf6   : > { %v503_v48 = vpop.f32.mrb[4].mxu1  ;;  %v330_v49 = vadd.f32 %v495_v47, %v450_v30  ;;  %v321_v51 = vpop.f32.mrb[5].mxu0 }
  0xf7   : > { %v362_v50 = vadd.f32 %v503_v48, %v450_v30  ;;  %v353_v52 = vpop.f32.mrb[5].mxu1  ;;  %v322_v53 = vadd.f32 %v450_v30, %v321_v51  ;;  %v496_v55 = vpop.f32.mrb[6].mxu0 }
  0xf8   : > { %v354_v54 = vadd.f32 %v450_v30, %v353_v52  ;;  %v504_v56 = vpop.f32.mrb[6].mxu1  ;;  %375 = vst.msk [vmem:[%s623_s6 + $0x30] sm:$0xff] %vm368_vm2, %v330_v49  ;;  %v333_v57 = vadd.f32 %v496_v55, %v450_v30  ;;  %v324_v59 = vpop.f32.mrb[7].mxu0 }
  0xf9   : > { %383 = vst.msk [vmem:[%s623_s6 + $0x70] sm:$0xff] %vm368_vm2, %v362_v50  ;;  %v365_v58 = vadd.f32 %v504_v56, %v450_v30  ;;  %v356_v60 = vpop.f32.mrb[7].mxu1  ;;  %373 = vst.msk [vmem:[%s623_s6 + $0x20] sm:$0xff] %vm368_vm2, %v322_v53  ;;  %v325_v61 = vadd.f32 %v450_v30, %v324_v59 }
  0xfa   : > { %381 = vst.msk [vmem:[%s623_s6 + $0x60] sm:$0xff] %vm368_vm2, %v354_v54  ;;  %v357_v62 = vadd.f32 %v450_v30, %v356_v60  ;;  %376 = vst.msk [vmem:[%s623_s6 + $0x38] sm:$0xff] %vm368_vm2, %v333_v57 }
  0xfb   : > { %384 = vst.msk [vmem:[%s623_s6 + $0x78] sm:$0xff] %vm368_vm2, %v365_v58  ;;  %374 = vst.msk [vmem:[%s623_s6 + $0x28] sm:$0xff] %vm368_vm2, %v325_v61 }
  0xfc   : > { %382 = vst.msk [vmem:[%s623_s6 + $0x68] sm:$0xff] %vm368_vm2, %v357_v62 }
  0xfd PF: > { %s13_s12 = sadd.s32 1, %s536_s12  }
  0xfe   : > { %p10_p4 = scmp.ge.s32.totalorder %s13_s12, 6  }
 0x100   :  { %12 = sbr.rel (!%p10_p4) target bundleno = 1 (0x1), region = 62 }

// kernel: tile.10
= control target key start
LH: loop header
LB: loop body
LE: loop exit
PB: predicated region body
PF: predicated region fallthrough
CT: control target
= control target key end

     0   :  { %s22_s0 = inlined_call_operand.vmem [shape: f32[100], index: 0, kind: input, shape index: {}]   ;;  %s23_s1 = inlined_call_operand.vmem [shape: f32[2,1,1,100], index: 1, kind: output, shape index: {}]  }
   0x1   :  { %v4_v0 = vld [vmem:[%s22_s0] ss:$0 sm:$0xff] }
   0x2   :  { %5 = vst [vmem:[%s23_s1] sm:$0x3] %v4_v0 }

// kernel: tile.0
= control target key start
LH: loop header
LB: loop body
LE: loop exit
PB: predicated region body
PF: predicated region fallthrough
CT: control target
= control target key end

     0   :  { %s826_s8 = smov 125   ;;  %s827_s9 = smov 126   ;;  %vm7_vm0 = vcmask 7168   ;;  %s1337_s0 = inlined_call_operand.vmem [shape: f32[2,1,1,100], index: 0, kind: input, shape index: {}]   ;;  %s1338_s1 = inlined_call_operand.vmem [shape: f32[200,1], index: 1, kind: output, shape index: {}]  }
   0x1   :  { %v4_v0 = vld [vmem:[%s1337_s0] sm:$0x3]  ;;  %s825_s0 = smov 127   ;;  %s828_s10 = smov 124  }
   0x2   :  { %5 = vst [vmem:[#allocation0] sm:$0x3] %v4_v0  ;;  %s829_s11 = smov 123   ;;  %s830_s12 = smov 122  }
   0x3   :  { %s831_s13 = smov 121   ;;  %s832_s14 = smov 120  }
   0x4   :  { %s833_s15 = smov 119   ;;  %s834_s16 = smov 118  }
   0x5   :  { %s835_s17 = smov 117   ;;  %s836_s18 = smov 116  }
   0x6   :  { %s837_s19 = smov 115   ;;  %s838_s20 = smov 114  }
   0x7   :  { %s839_s21 = smov 113   ;;  %s840_s22 = smov 112  }
   0x8   :  { %s841_s23 = smov 111   ;;  %s842_s24 = smov 110  }
   0x9   :  { %v9_v1 = vld [vmem:[#allocation0] sm:$0x3]   ;;  %s843_s25 = smov 109   ;;  %s844_s26 = smov 108  }
   0xa   :  { %v21_v2 = vld [vmem:[#allocation0] sm:$0x3]   ;;  %10 = vrot.lane.b32.xlu0 %v9_v1, %s825_s0  ;;  %s845_s27 = smov 107   ;;  %s846_s28 = smov 106  }
   0xb   :  { %22 = vrot.lane.b32.xlu1 %v21_v2, %s826_s8  ;;  %v15_v3 = vld [vmem:[#allocation0] sm:$0x3]   ;;  %s847_s29 = smov 105   ;;  %s848_s30 = smov 104  }
   0xc   :  { %v27_v4 = vld [vmem:[#allocation0] sm:$0x3]   ;;  %s172_s2 = smov 3  ;;  %s849_s3 = smov 103  }
   0xd   :  { %v33_v5 = vld [vmem:[#allocation0] sm:$0x3]   ;;  %s850_s4 = smov 102   ;;  %s180_s5 = smov 3 }
   0xe   :  { %16 = vrot.lane.b32.xlu0 %v15_v3, %s827_s9  ;;  %v39_v6 = vld [vmem:[#allocation0] sm:$0x3]   ;;  %s188_s6 = smov 3  ;;  %s851_s7 = smov 101  }
   0xf   :  { %28 = vrot.lane.b32.xlu1 %v27_v4, %s828_s10  ;;  %v45_v7 = vld [vmem:[#allocation0] sm:$0x3]   ;;  %s852_s0 = smov 100   ;;  %s196_s8 = smov 3 }
  0x10   :  { %v51_v8 = vld [vmem:[#allocation0] sm:$0x3]   ;;  %s853_s9 = smov 99   ;;  %s854_s10 = smov 98  }
  0x11   :  { %v57_v9 = vld [vmem:[#allocation0] sm:$0x3]  }
  0x12   :  { %34 = vrot.lane.b32.xlu0 %v33_v5, %s829_s11  ;;  %v63_v10 = vld [vmem:[#allocation0] sm:$0x3]   ;;  %s855_s11 = smov 97  }
  0x13   :  { %40 = vrot.lane.b32.xlu1 %v39_v6, %s830_s12  ;;  %v69_v11 = vld [vmem:[#allocation0] sm:$0x3]   ;;  %s856_s12 = smov 96  }
  0x14   :  { %v75_v12 = vld [vmem:[#allocation0] sm:$0x3]  }
  0x15   :  { %v81_v13 = vld [vmem:[#allocation0] sm:$0x3]  }
  0x16   :  { %46 = vrot.lane.b32.xlu0 %v45_v7, %s831_s13  ;;  %v87_v14 = vld [vmem:[#allocation0] sm:$0x3]   ;;  %s857_s13 = smov 95  }
  0x17   :  { %52 = vrot.lane.b32.xlu1 %v51_v8, %s832_s14  ;;  %v93_v15 = vld [vmem:[#allocation0] sm:$0x3]   ;;  %s858_s14 = smov 94  }
  0x18   :  { %v99_v16 = vld [vmem:[#allocation0] sm:$0x3]  }
  0x19   :  { %v105_v17 = vld [vmem:[#allocation0] sm:$0x3]  }
  0x1a   :  { %58 = vrot.lane.b32.xlu0 %v57_v9, %s833_s15  ;;  %v111_v18 = vld [vmem:[#allocation0] sm:$0x3]   ;;  %s859_s15 = smov 93  }
  0x1b   :  { %64 = vrot.lane.b32.xlu1 %v63_v10, %s834_s16  ;;  %v117_v19 = vld [vmem:[#allocation0] sm:$0x3]   ;;  %s860_s16 = smov 92  }
  0x1c   :  { %v123_v20 = vld [vmem:[#allocation0] sm:$0x3]  }
  0x1d   :  { %v129_v21 = vld [vmem:[#allocation0] sm:$0x3]  }
  0x1e   :  { %70 = vrot.lane.b32.xlu0 %v69_v11, %s835_s17  ;;  %v135_v22 = vld [vmem:[#allocation0] sm:$0x3]   ;;  %s861_s17 = smov 91  }
  0x1f   :  { %76 = vrot.lane.b32.xlu1 %v75_v12, %s836_s18  ;;  %v141_v23 = vld [vmem:[#allocation0] sm:$0x3]   ;;  %s862_s18 = smov 90  }
  0x20   :  { %v147_v24 = vld [vmem:[#allocation0] sm:$0x3]  }
  0x21   :  { %v153_v25 = vld [vmem:[#allocation0] sm:$0x3]  }
  0x22   :  { %82 = vrot.lane.b32.xlu0 %v81_v13, %s837_s19  ;;  %v159_v26 = vld [vmem:[#allocation0] sm:$0x3]   ;;  %s863_s19 = smov 89  }
  0x23   :  { %88 = vrot.lane.b32.xlu1 %v87_v14, %s838_s20  ;;  %v165_v27 = vld [vmem:[#allocation0] sm:$0x3]   ;;  %s864_s20 = smov 88  }
  0x24   :  { %v173_v28 = vld [vmem:[#allocation0 + $0x1] ss:$-1 sm:%s172_s2]   ;;  %s875_s2 = smov 77  }
  0x25   :  { %v181_v29 = vld [vmem:[#allocation0 + $0x1] ss:$-1 sm:%s180_s5]   ;;  %s878_s5 = smov 74  }
  0x26   :  { %94 = vrot.lane.b32.xlu0 %v93_v15, %s839_s21  ;;  %v189_v30 = vld [vmem:[#allocation0 + $0x1] ss:$-1 sm:%s188_s6]   ;;  %s865_s21 = smov 87   ;;  %s879_s6 = smov 73  }
  0x27   :  { %100 = vrot.lane.b32.xlu1 %v99_v16, %s840_s22  ;;  %v197_v31 = vld [vmem:[#allocation0 + $0x1] ss:$-1 sm:%s196_s8]   ;;  %s866_s22 = smov 86   ;;  %s881_s8 = smov 71  }
  0x28   :  { %v203_v32 = vld [vmem:[#allocation0] sm:$0x3]  }
  0x29   :  { %v209_v33 = vld [vmem:[#allocation0] sm:$0x3]  }
  0x2a   :  { %106 = vrot.lane.b32.xlu0 %v105_v17, %s841_s23  ;;  %v215_v34 = vld [vmem:[#allocation0] sm:$0x3]   ;;  %s867_s23 = smov 85  }
  0x2b   :  { %112 = vrot.lane.b32.xlu1 %v111_v18, %s842_s24  ;;  %v221_v35 = vld [vmem:[#allocation0] sm:$0x3]   ;;  %s868_s24 = smov 84  }
  0x2c   :  { %v227_v36 = vld [vmem:[#allocation0] sm:$0x3]  }
  0x2d   :  { %v233_v37 = vld [vmem:[#allocation0] sm:$0x3]  }
  0x2e   :  { %118 = vrot.lane.b32.xlu0 %v117_v19, %s843_s25  ;;  %v239_v38 = vld [vmem:[#allocation0] sm:$0x3]   ;;  %s869_s25 = smov 83  }
  0x2f   :  { %124 = vrot.lane.b32.xlu1 %v123_v20, %s844_s26  ;;  %v245_v39 = vld [vmem:[#allocation0] sm:$0x3]   ;;  %s870_s26 = smov 82  }
  0x30   :  { %v251_v40 = vld [vmem:[#allocation0] sm:$0x3]  }
  0x31   :  { %v257_v41 = vld [vmem:[#allocation0] sm:$0x3]  }
  0x32   :  { %130 = vrot.lane.b32.xlu0 %v129_v21, %s845_s27  ;;  %v263_v42 = vld [vmem:[#allocation0] sm:$0x3]   ;;  %s871_s27 = smov 81  }
  0x33   :  { %136 = vrot.lane.b32.xlu1 %v135_v22, %s846_s28  ;;  %v269_v43 = vld [vmem:[#allocation0] sm:$0x3]   ;;  %s872_s28 = smov 80  }
  0x34   :  { %v275_v44 = vld [vmem:[#allocation0] sm:$0x3]  }
  0x35   :  { %v281_v45 = vld [vmem:[#allocation0] sm:$0x3]  }
  0x36   :  { %142 = vrot.lane.b32.xlu0 %v141_v23, %s847_s29  ;;  %v287_v46 = vld [vmem:[#allocation0] sm:$0x3]   ;;  %s873_s29 = smov 79  }
  0x37   :  { %148 = vrot.lane.b32.xlu1 %v147_v24, %s848_s30  ;;  %v293_v47 = vld [vmem:[#allocation0] sm:$0x3]   ;;  %s874_s30 = smov 78  }
  0x38   :  { %v299_v48 = vld [vmem:[#allocation0] sm:$0x3]  }
  0x39   :  { %v305_v49 = vld [vmem:[#allocation0] sm:$0x3]  }
  0x3a   :  { %154 = vrot.lane.b32.xlu0 %v153_v25, %s849_s3  ;;  %v311_v50 = vld [vmem:[#allocation0] sm:$0x3]   ;;  %s876_s3 = smov 76  }
  0x3b   :  { %160 = vrot.lane.b32.xlu1 %v159_v26, %s850_s4  ;;  %v317_v51 = vld [vmem:[#allocation0] sm:$0x3]   ;;  %s877_s4 = smov 75  }
  0x3c   :  { %v323_v52 = vld [vmem:[#allocation0] sm:$0x3]  }
  0x3d   :  { %v329_v53 = vld [vmem:[#allocation0] sm:$0x3]  }
  0x3e   :  { %166 = vrot.lane.b32.xlu0 %v165_v27, %s851_s7  ;;  %v335_v54 = vld [vmem:[#allocation0] sm:$0x3]   ;;  %s880_s7 = smov 72  }
  0x3f   :  { %174 = vrot.lane.b32.xlu1 %v173_v28, %s852_s0  ;;  %v341_v55 = vld [vmem:[#allocation0] sm:$0x3]   ;;  %s372_s0 = smov 3 }
  0x40   :  { %v347_v56 = vld [vmem:[#allocation0] sm:$0x3]  }
  0x41   :  { %v353_v57 = vld [vmem:[#allocation0] sm:$0x3]  }
  0x42   :  { %182 = vrot.lane.b32.xlu0 %v181_v29, %s853_s9  ;;  %v359_v58 = vld [vmem:[#allocation0] sm:$0x3]   ;;  %s882_s9 = smov 70  }
  0x43   :  { %190 = vrot.lane.b32.xlu1 %v189_v30, %s854_s10  ;;  %v365_v59 = vld [vmem:[#allocation0] sm:$0x3]   ;;  %s380_s10 = smov 3 }
  0x44   :  { %v373_v60 = vld [vmem:[#allocation0 + $0x1] ss:$-1 sm:%s372_s0]  }
  0x45   :  { %v381_v63 = vld [vmem:[#allocation0 + $0x1] ss:$-1 sm:%s380_s10]  }
  0x46   :  { %198 = vrot.lane.b32.xlu0 %v197_v31, %s855_s11  ;;  %s388_s11 = smov 3  ;;  %v403_v4 = vld [vmem:[#allocation0] sm:$0x3]  }
  0x47   :  { %204 = vrot.lane.b32.xlu1 %v203_v32, %s856_s12  ;;  %v389_v0 = vld [vmem:[#allocation0 + $0x1] ss:$-1 sm:%s388_s11]   ;;  %s891_s11 = smov 61   ;;  %s892_s12 = smov 60  }
  0x48   :  { %v409_v7 = vld [vmem:[#allocation0] sm:$0x3]  }
  0x49   :  { %v415_v8 = vld [vmem:[#allocation0] sm:$0x3]  }
  0x4a   :  { %210 = vrot.lane.b32.xlu0 %v209_v33, %s857_s13  ;;  %v421_v11 = vld [vmem:[#allocation0] sm:$0x3]   ;;  %s572_s13 = smov 3 }
  0x4b   :  { %216 = vrot.lane.b32.xlu1 %v215_v34, %s858_s14  ;;  %v427_v12 = vld [vmem:[#allocation0] sm:$0x3]  }
  0x4c   :  { %v433_v15 = vld [vmem:[#allocation0] sm:$0x3]  }
  0x4d   :  { %v439_v16 = vld [vmem:[#allocation0] sm:$0x3]  }
  0x4e   :  { %222 = vrot.lane.b32.xlu0 %v221_v35, %s859_s15  ;;  %v445_v19 = vld [vmem:[#allocation0] sm:$0x3]  }
  0x4f   :  { %228 = vrot.lane.b32.xlu1 %v227_v36, %s860_s16  ;;  %s883_s16 = smov 69   ;;  %v451_v20 = vld [vmem:[#allocation0] sm:$0x3]  }
  0x50   :  { %v457_v23 = vld [vmem:[#allocation0] sm:$0x3]  }
  0x51   :  { %v463_v24 = vld [vmem:[#allocation0] sm:$0x3]  }
  0x52   :  { %234 = vrot.lane.b32.xlu0 %v233_v37, %s861_s17  ;;  %s884_s17 = smov 68   ;;  %v469_v27 = vld [vmem:[#allocation0] sm:$0x3]  }
  0x53   :  { %240 = vrot.lane.b32.xlu1 %v239_v38, %s862_s18  ;;  %s396_s18 = smov 3  ;;  %v475_v28 = vld [vmem:[#allocation0] sm:$0x3]  }
  0x54   :  { %v397_v3 = vld [vmem:[#allocation0 + $0x1] ss:$-1 sm:%s396_s18]   ;;  %s894_s18 = smov 58  }
  0x55   :  { %v481_v31 = vld [vmem:[#allocation0] sm:$0x3]  }
  0x56   :  { %246 = vrot.lane.b32.xlu0 %v245_v39, %s863_s19  ;;  %v487_v32 = vld [vmem:[#allocation0] sm:$0x3]   ;;  %s914_s19 = smov 38  }
  0x57   :  { %252 = vrot.lane.b32.xlu1 %v251_v40, %s864_s20  ;;  %v493_v35 = vld [vmem:[#allocation0] sm:$0x3]   ;;  %s580_s20 = smov 3 }
  0x58   :  { %v499_v36 = vld [vmem:[#allocation0] sm:$0x3]  }
  0x59   :  { %v505_v39 = vld [vmem:[#allocation0] sm:$0x3]  }
  0x5a   :  { %258 = vrot.lane.b32.xlu0 %v257_v41, %s865_s21  ;;  %v511_v40 = vld [vmem:[#allocation0] sm:$0x3]   ;;  %s588_s21 = smov 3 }
  0x5b   :  { %264 = vrot.lane.b32.xlu1 %v263_v42, %s866_s22 }
  0x5e   :  { %270 = vrot.lane.b32.xlu0 %v269_v43, %s867_s23  ;;  %s885_s23 = smov 67   ;;  %v517_v43 = vld [vmem:[#allocation0] sm:$0x3]  }
  0x5f   :  { %276 = vrot.lane.b32.xlu1 %v275_v44, %s868_s24  ;;  %s886_s24 = smov 66   ;;  %v523_v44 = vld [vmem:[#allocation0] sm:$0x3]  }
  0x62   :  { %282 = vrot.lane.b32.xlu0 %v281_v45, %s869_s25 }
  0x63   :  { %288 = vrot.lane.b32.xlu1 %v287_v46, %s870_s26  ;;  %s915_s26 = smov 37  }
  0x66   :  { %294 = vrot.lane.b32.xlu0 %v293_v47, %s871_s27  ;;  %v529_v47 = vld [vmem:[#allocation0] sm:$0x3]   ;;  %s916_s27 = smov 36  }
  0x67   :  { %300 = vrot.lane.b32.xlu1 %v299_v48, %s872_s28  ;;  %v535_v48 = vld [vmem:[#allocation0] sm:$0x3]   ;;  %s596_s28 = smov 3 }
  0x6a   :  { %306 = vrot.lane.b32.xlu0 %v305_v49, %s873_s29  ;;  %s887_s29 = smov 65  }
  0x6b   :  { %312 = vrot.lane.b32.xlu1 %v311_v50, %s874_s30  ;;  %s888_s30 = smov 64  }
  0x6e   :  { %318 = vrot.lane.b32.xlu0 %v317_v51, %s875_s2  ;;  %v541_v51 = vld [vmem:[#allocation0] sm:$0x3]  }
  0x6f   :  { %324 = vrot.lane.b32.xlu1 %v323_v52, %s876_s3  ;;  %v547_v52 = vld [vmem:[#allocation0] sm:$0x3]  }
  0x72   :  { %330 = vrot.lane.b32.xlu0 %v329_v53, %s877_s4 }
  0x73   :  { %336 = vrot.lane.b32.xlu1 %v335_v54, %s878_s5 }
  0x76   :  { %342 = vrot.lane.b32.xlu0 %v341_v55, %s879_s6  ;;  %s889_s6 = smov 63   ;;  %v553_v55 = vld [vmem:[#allocation0] sm:$0x3]  }
  0x77   :  { %348 = vrot.lane.b32.xlu1 %v347_v56, %s880_s7  ;;  %s890_s7 = smov 62   ;;  %v559_v56 = vld [vmem:[#allocation0] sm:$0x3]  }
  0x7a   :  { %354 = vrot.lane.b32.xlu0 %v353_v57, %s881_s8 }
  0x7b   :  { %360 = vrot.lane.b32.xlu1 %v359_v58, %s882_s9 }
  0x7c   :  { %v11_v61 = vpop.permute.xlu0 %10  }
  0x7d   :  { %v23_v62 = vpop.permute.xlu1 %22   ;;  %627 = vst.msk [vmem:[%s1338_s1 + $0x1] ss:$100 sm:$0x3] %vm7_vm0, %v11_v61  }
  0x7e   :  { %629 = vst.msk [vmem:[%s1338_s1 + $0x3] ss:$100 sm:$0x3] %vm7_vm0, %v23_v62   ;;  %366 = vrot.lane.b32.xlu0 %v365_v59, %s883_s16  ;;  %v565_v59 = vld [vmem:[#allocation0] sm:$0x3]  }
  0x7f   :  { %374 = vrot.lane.b32.xlu1 %v373_v60, %s884_s17  ;;  %s893_s17 = smov 59   ;;  %v573_v60 = vld [vmem:[#allocation0 + $0x1] ss:$-1 sm:%s572_s13]  }
  0x80   :  { %v17_v1 = vpop.permute.xlu0 %16  }
  0x81   :  { %v29_v2 = vpop.permute.xlu1 %28   ;;  %628 = vst.msk [vmem:[%s1338_s1 + $0x2] ss:$100 sm:$0x3] %vm7_vm0, %v17_v1  }
  0x82   :  { %630 = vst.msk [vmem:[%s1338_s1 + $0x4] ss:$100 sm:$0x3] %vm7_vm0, %v29_v2   ;;  %382 = vrot.lane.b32.xlu0 %v381_v63, %s885_s23  ;;  %s895_s23 = smov 57   ;;  %v581_v63 = vld [vmem:[#allocation0 + $0x1] ss:$-1 sm:%s580_s20]  }
  0x83   :  { %390 = vrot.lane.b32.xlu1 %v389_v0, %s886_s24  ;;  %s896_s24 = smov 56   ;;  %v589_v0 = vld [vmem:[#allocation0 + $0x1] ss:$-1 sm:%s588_s21]  }
  0x84   :  { %v35_v5 = vpop.permute.xlu0 %34  }
  0x85   :  { %v41_v6 = vpop.permute.xlu1 %40   ;;  %631 = vst.msk [vmem:[%s1338_s1 + $0x5] ss:$100 sm:$0x3] %vm7_vm0, %v35_v5   ;;  %v603_v5 = vld [vmem:[#allocation0] sm:$0x3]  }
  0x86   :  { %632 = vst.msk [vmem:[%s1338_s1 + $0x6] ss:$100 sm:$0x3] %vm7_vm0, %v41_v6   ;;  %398 = vrot.lane.b32.xlu0 %v397_v3, %s887_s29  ;;  %s897_s29 = smov 55   ;;  %v6_v3 = vld [vmem:[#allocation0] sm:$0x3]  }
  0x87   :  { %404 = vrot.lane.b32.xlu1 %v403_v4, %s888_s30  ;;  %s898_s30 = smov 54   ;;  %8 = vst.msk [vmem:[%s1338_s1] ss:$100 sm:$0x3] %vm7_vm0, %v6_v3   ;;  %v597_v4 = vld [vmem:[#allocation0 + $0x1] ss:$-1 sm:%s596_s28]  }
  0x88   :  { %v47_v9 = vpop.permute.xlu0 %46  }
  0x89   :  { %v53_v10 = vpop.permute.xlu1 %52   ;;  %633 = vst.msk [vmem:[%s1338_s1 + $0x7] ss:$100 sm:$0x3] %vm7_vm0, %v47_v9   ;;  %v615_v9 = vld [vmem:[#allocation0] sm:$0x3]  }
  0x8a   :  { %634 = vst.msk [vmem:[%s1338_s1 + $0x8] ss:$100 sm:$0x3] %vm7_vm0, %v53_v10   ;;  %410 = vrot.lane.b32.xlu0 %v409_v7, %s889_s6  ;;  %s899_s6 = smov 53  }
  0x8b   :  { %416 = vrot.lane.b32.xlu1 %v415_v8, %s890_s7  ;;  %s900_s7 = smov 52   ;;  %v609_v8 = vld [vmem:[#allocation0] sm:$0x3]  }
  0x8c   :  { %v59_v13 = vpop.permute.xlu0 %58  }
  0x8d   :  { %v65_v14 = vpop.permute.xlu1 %64   ;;  %635 = vst.msk [vmem:[%s1338_s1 + $0x9] ss:$100 sm:$0x3] %vm7_vm0, %v59_v13  }
  0x8e   :  { %636 = vst.msk [vmem:[%s1338_s1 + $0xa] ss:$100 sm:$0x3] %vm7_vm0, %v65_v14   ;;  %422 = vrot.lane.b32.xlu0 %v421_v11, %s891_s11  ;;  %s901_s11 = smov 51  }
  0x8f   :  { %428 = vrot.lane.b32.xlu1 %v427_v12, %s892_s12  ;;  %s902_s12 = smov 50   ;;  %v621_v12 = vld [vmem:[#allocation0] sm:$0x3]  }
  0x90   :  { %v71_v17 = vpop.permute.xlu0 %70  }
  0x91   :  { %v77_v18 = vpop.permute.xlu1 %76   ;;  %637 = vst.msk [vmem:[%s1338_s1 + $0xb] ss:$100 sm:$0x3] %vm7_vm0, %v71_v17  }
  0x92   :  { %638 = vst.msk [vmem:[%s1338_s1 + $0xc] ss:$100 sm:$0x3] %vm7_vm0, %v77_v18   ;;  %434 = vrot.lane.b32.xlu0 %v433_v15, %s893_s17  ;;  %s903_s17 = smov 49  }
  0x93   :  { %440 = vrot.lane.b32.xlu1 %v439_v16, %s894_s18  ;;  %s904_s18 = smov 48  }
  0x94   :  { %v83_v21 = vpop.permute.xlu0 %82  }
  0x95   :  { %v89_v22 = vpop.permute.xlu1 %88   ;;  %639 = vst.msk [vmem:[%s1338_s1 + $0xd] ss:$100 sm:$0x3] %vm7_vm0, %v83_v21  }
  0x96   :  { %640 = vst.msk [vmem:[%s1338_s1 + $0xe] ss:$100 sm:$0x3] %vm7_vm0, %v89_v22   ;;  %446 = vrot.lane.b32.xlu0 %v445_v19, %s895_s23  ;;  %s905_s23 = smov 47  }
  0x97   :  { %452 = vrot.lane.b32.xlu1 %v451_v20, %s896_s24  ;;  %s906_s24 = smov 46  }
  0x98   :  { %v95_v25 = vpop.permute.xlu0 %94  }
  0x99   :  { %v101_v26 = vpop.permute.xlu1 %100   ;;  %641 = vst.msk [vmem:[%s1338_s1 + $0xf] ss:$100 sm:$0x3] %vm7_vm0, %v95_v25  }
  0x9a   :  { %642 = vst.msk [vmem:[%s1338_s1 + $0x10] ss:$100 sm:$0x3] %vm7_vm0, %v101_v26   ;;  %458 = vrot.lane.b32.xlu0 %v457_v23, %s897_s29  ;;  %s907_s29 = smov 45  }
  0x9b   :  { %464 = vrot.lane.b32.xlu1 %v463_v24, %s898_s30  ;;  %s908_s30 = smov 44  }
  0x9c   :  { %v107_v29 = vpop.permute.xlu0 %106  }
  0x9d   :  { %v113_v30 = vpop.permute.xlu1 %112   ;;  %643 = vst.msk [vmem:[%s1338_s1 + $0x11] ss:$100 sm:$0x3] %vm7_vm0, %v107_v29  }
  0x9e   :  { %644 = vst.msk [vmem:[%s1338_s1 + $0x12] ss:$100 sm:$0x3] %vm7_vm0, %v113_v30   ;;  %470 = vrot.lane.b32.xlu0 %v469_v27, %s899_s6  ;;  %s909_s6 = smov 43  }
  0x9f   :  { %476 = vrot.lane.b32.xlu1 %v475_v28, %s900_s7  ;;  %s910_s7 = smov 42  }
  0xa0   :  { %v119_v33 = vpop.permute.xlu0 %118  }
  0xa1   :  { %v125_v34 = vpop.permute.xlu1 %124   ;;  %645 = vst.msk [vmem:[%s1338_s1 + $0x13] ss:$100 sm:$0x3] %vm7_vm0, %v119_v33  }
  0xa2   :  { %646 = vst.msk [vmem:[%s1338_s1 + $0x14] ss:$100 sm:$0x3] %vm7_vm0, %v125_v34   ;;  %482 = vrot.lane.b32.xlu0 %v481_v31, %s901_s11  ;;  %s911_s11 = smov 41  }
  0xa3   :  { %488 = vrot.lane.b32.xlu1 %v487_v32, %s902_s12  ;;  %s912_s12 = smov 40  }
  0xa4   :  { %v131_v37 = vpop.permute.xlu0 %130  }
  0xa5   :  { %v137_v38 = vpop.permute.xlu1 %136   ;;  %647 = vst.msk [vmem:[%s1338_s1 + $0x15] ss:$100 sm:$0x3] %vm7_vm0, %v131_v37  }
  0xa6   :  { %648 = vst.msk [vmem:[%s1338_s1 + $0x16] ss:$100 sm:$0x3] %vm7_vm0, %v137_v38   ;;  %494 = vrot.lane.b32.xlu0 %v493_v35, %s903_s17  ;;  %s921_s17 = smov 31  }
  0xa7   :  { %500 = vrot.lane.b32.xlu1 %v499_v36, %s904_s18  ;;  %s913_s18 = smov 39  }
  0xa8   :  { %v143_v41 = vpop.permute.xlu0 %142  }
  0xa9   :  { %v149_v42 = vpop.permute.xlu1 %148   ;;  %649 = vst.msk [vmem:[%s1338_s1 + $0x17] ss:$100 sm:$0x3] %vm7_vm0, %v143_v41  }
  0xaa   :  { %650 = vst.msk [vmem:[%s1338_s1 + $0x18] ss:$100 sm:$0x3] %vm7_vm0, %v149_v42   ;;  %506 = vrot.lane.b32.xlu0 %v505_v39, %s905_s23  ;;  %s923_s23 = smov 29  }
  0xab   :  { %512 = vrot.lane.b32.xlu1 %v511_v40, %s906_s24 }
  0xac   :  { %v155_v45 = vpop.permute.xlu0 %154  }
  0xad   :  { %v161_v46 = vpop.permute.xlu1 %160   ;;  %651 = vst.msk [vmem:[%s1338_s1 + $0x19] ss:$100 sm:$0x3] %vm7_vm0, %v155_v45  }
  0xae   :  { %652 = vst.msk [vmem:[%s1338_s1 + $0x1a] ss:$100 sm:$0x3] %vm7_vm0, %v161_v46   ;;  %518 = vrot.lane.b32.xlu0 %v517_v43, %s907_s29 }
  0xaf   :  { %524 = vrot.lane.b32.xlu1 %v523_v44, %s908_s30 }
  0xb0   :  { %v167_v49 = vpop.permute.xlu0 %166  }
  0xb1   :  { %v175_v50 = vpop.permute.xlu1 %174   ;;  %653 = vst.msk [vmem:[%s1338_s1 + $0x1b] ss:$100 sm:$0x3] %vm7_vm0, %v167_v49  }
  0xb2   :  { %654 = vst.msk [vmem:[%s1338_s1 + $0x80] ss:$-100 sm:$0x3] %vm7_vm0, %v175_v50   ;;  %530 = vrot.lane.b32.xlu0 %v529_v47, %s909_s6  ;;  %s917_s6 = smov 35  }
  0xb3   :  { %536 = vrot.lane.b32.xlu1 %v535_v48, %s910_s7  ;;  %s918_s7 = smov 34  }
  0xb4   :  { %v183_v53 = vpop.permute.xlu0 %182  }
  0xb5   :  { %v191_v54 = vpop.permute.xlu1 %190   ;;  %655 = vst.msk [vmem:[%s1338_s1 + $0x81] ss:$-100 sm:$0x3] %vm7_vm0, %v183_v53  }
  0xb6   :  { %656 = vst.msk [vmem:[%s1338_s1 + $0x82] ss:$-100 sm:$0x3] %vm7_vm0, %v191_v54   ;;  %542 = vrot.lane.b32.xlu0 %v541_v51, %s911_s11  ;;  %s919_s11 = smov 33  }
  0xb7   :  { %548 = vrot.lane.b32.xlu1 %v547_v52, %s912_s12  ;;  %s920_s12 = smov 32  }
  0xb8   :  { %v199_v57 = vpop.permute.xlu0 %198  }
  0xb9   :  { %v205_v58 = vpop.permute.xlu1 %204   ;;  %657 = vst.msk [vmem:[%s1338_s1 + $0x83] ss:$-100 sm:$0x3] %vm7_vm0, %v199_v57  }
  0xba   :  { %658 = vst.msk [vmem:[%s1338_s1 + $0x20] ss:$100 sm:$0x3] %vm7_vm0, %v205_v58   ;;  %554 = vrot.lane.b32.xlu0 %v553_v55, %s913_s18  ;;  %s922_s18 = smov 30  }
  0xbb   :  { %560 = vrot.lane.b32.xlu1 %v559_v56, %s914_s19 }
  0xbc   :  { %v211_v61 = vpop.permute.xlu0 %210  }
  0xbd   :  { %v217_v62 = vpop.permute.xlu1 %216   ;;  %659 = vst.msk [vmem:[%s1338_s1 + $0x21] ss:$100 sm:$0x3] %vm7_vm0, %v211_v61  }
  0xbe   :  { %660 = vst.msk [vmem:[%s1338_s1 + $0x22] ss:$100 sm:$0x3] %vm7_vm0, %v217_v62   ;;  %566 = vrot.lane.b32.xlu0 %v565_v59, %s915_s26 }
  0xbf   :  { %574 = vrot.lane.b32.xlu1 %v573_v60, %s916_s27 }
  0xc0   :  { %v223_v1 = vpop.permute.xlu0 %222  }
  0xc1   :  { %v229_v2 = vpop.permute.xlu1 %228   ;;  %661 = vst.msk [vmem:[%s1338_s1 + $0x23] ss:$100 sm:$0x3] %vm7_vm0, %v223_v1  }
  0xc2   :  { %662 = vst.msk [vmem:[%s1338_s1 + $0x24] ss:$100 sm:$0x3] %vm7_vm0, %v229_v2   ;;  %582 = vrot.lane.b32.xlu0 %v581_v63, %s917_s6 }
  0xc3   :  { %590 = vrot.lane.b32.xlu1 %v589_v0, %s918_s7 }
  0xc4   :  { %v235_v6 = vpop.permute.xlu0 %234  }
  0xc5   :  { %v241_v7 = vpop.permute.xlu1 %240   ;;  %663 = vst.msk [vmem:[%s1338_s1 + $0x25] ss:$100 sm:$0x3] %vm7_vm0, %v235_v6  }
  0xc6   :  { %664 = vst.msk [vmem:[%s1338_s1 + $0x26] ss:$100 sm:$0x3] %vm7_vm0, %v241_v7   ;;  %598 = vrot.lane.b32.xlu0 %v597_v4, %s919_s11 }
  0xc7   :  { %604 = vrot.lane.b32.xlu1 %v603_v5, %s920_s12 }
  0xc8   :  { %v247_v10 = vpop.permute.xlu0 %246  }
  0xc9   :  { %v253_v11 = vpop.permute.xlu1 %252   ;;  %665 = vst.msk [vmem:[%s1338_s1 + $0x27] ss:$100 sm:$0x3] %vm7_vm0, %v247_v10  }
  0xca   :  { %666 = vst.msk [vmem:[%s1338_s1 + $0x28] ss:$100 sm:$0x3] %vm7_vm0, %v253_v11   ;;  %610 = vrot.lane.b32.xlu0 %v609_v8, %s921_s17 }
  0xcb   :  { %616 = vrot.lane.b32.xlu1 %v615_v9, %s922_s18 }
  0xcc   :  { %v259_v13 = vpop.permute.xlu0 %258  }
  0xcd   :  { %v265_v14 = vpop.permute.xlu1 %264   ;;  %667 = vst.msk [vmem:[%s1338_s1 + $0x29] ss:$100 sm:$0x3] %vm7_vm0, %v259_v13  }
  0xce   :  { %668 = vst.msk [vmem:[%s1338_s1 + $0x2a] ss:$100 sm:$0x3] %vm7_vm0, %v265_v14   ;;  %622 = vrot.lane.b32.xlu0 %v621_v12, %s923_s23 }
  0xd0   :  { %v271_v15 = vpop.permute.xlu0 %270  }
  0xd1   :  { %v277_v16 = vpop.permute.xlu1 %276   ;;  %669 = vst.msk [vmem:[%s1338_s1 + $0x2b] ss:$100 sm:$0x3] %vm7_vm0, %v271_v15  }
  0xd2   :  { %670 = vst.msk [vmem:[%s1338_s1 + $0x2c] ss:$100 sm:$0x3] %vm7_vm0, %v277_v16  }
  0xd4   :  { %v283_v17 = vpop.permute.xlu0 %282  }
  0xd5   :  { %v289_v18 = vpop.permute.xlu1 %288   ;;  %671 = vst.msk [vmem:[%s1338_s1 + $0x2d] ss:$100 sm:$0x3] %vm7_vm0, %v283_v17  }
  0xd6   :  { %672 = vst.msk [vmem:[%s1338_s1 + $0x2e] ss:$100 sm:$0x3] %vm7_vm0, %v289_v18  }
  0xd8   :  { %v295_v19 = vpop.permute.xlu0 %294  }
  0xd9   :  { %v301_v20 = vpop.permute.xlu1 %300   ;;  %673 = vst.msk [vmem:[%s1338_s1 + $0x2f] ss:$100 sm:$0x3] %vm7_vm0, %v295_v19  }
  0xda   :  { %674 = vst.msk [vmem:[%s1338_s1 + $0x30] ss:$100 sm:$0x3] %vm7_vm0, %v301_v20  }
  0xdc   :  { %v307_v21 = vpop.permute.xlu0 %306  }
  0xdd   :  { %v313_v22 = vpop.permute.xlu1 %312   ;;  %675 = vst.msk [vmem:[%s1338_s1 + $0x31] ss:$100 sm:$0x3] %vm7_vm0, %v307_v21  }
  0xde   :  { %676 = vst.msk [vmem:[%s1338_s1 + $0x32] ss:$100 sm:$0x3] %vm7_vm0, %v313_v22  }
  0xe0   :  { %v319_v23 = vpop.permute.xlu0 %318  }
  0xe1   :  { %v325_v24 = vpop.permute.xlu1 %324   ;;  %677 = vst.msk [vmem:[%s1338_s1 + $0x33] ss:$100 sm:$0x3] %vm7_vm0, %v319_v23  }
  0xe2   :  { %678 = vst.msk [vmem:[%s1338_s1 + $0x34] ss:$100 sm:$0x3] %vm7_vm0, %v325_v24  }
  0xe4   :  { %v331_v25 = vpop.permute.xlu0 %330  }
  0xe5   :  { %v337_v26 = vpop.permute.xlu1 %336   ;;  %679 = vst.msk [vmem:[%s1338_s1 + $0x35] ss:$100 sm:$0x3] %vm7_vm0, %v331_v25  }
  0xe6   :  { %680 = vst.msk [vmem:[%s1338_s1 + $0x36] ss:$100 sm:$0x3] %vm7_vm0, %v337_v26  }
  0xe8   :  { %v343_v27 = vpop.permute.xlu0 %342  }
  0xe9   :  { %v349_v28 = vpop.permute.xlu1 %348   ;;  %681 = vst.msk [vmem:[%s1338_s1 + $0x37] ss:$100 sm:$0x3] %vm7_vm0, %v343_v27  }
  0xea   :  { %682 = vst.msk [vmem:[%s1338_s1 + $0x38] ss:$100 sm:$0x3] %vm7_vm0, %v349_v28  }
  0xec   :  { %v355_v29 = vpop.permute.xlu0 %354  }
  0xed   :  { %v361_v30 = vpop.permute.xlu1 %360   ;;  %683 = vst.msk [vmem:[%s1338_s1 + $0x39] ss:$100 sm:$0x3] %vm7_vm0, %v355_v29  }
  0xee   :  { %684 = vst.msk [vmem:[%s1338_s1 + $0x3a] ss:$100 sm:$0x3] %vm7_vm0, %v361_v30  }
  0xf0   :  { %v367_v31 = vpop.permute.xlu0 %366  }
  0xf1   :  { %v375_v32 = vpop.permute.xlu1 %374   ;;  %685 = vst.msk [vmem:[%s1338_s1 + $0x3b] ss:$100 sm:$0x3] %vm7_vm0, %v367_v31  }
  0xf2   :  { %686 = vst.msk [vmem:[%s1338_s1 + $0xa0] ss:$-100 sm:$0x3] %vm7_vm0, %v375_v32  }
  0xf4   :  { %v383_v33 = vpop.permute.xlu0 %382  }
  0xf5   :  { %v391_v34 = vpop.permute.xlu1 %390   ;;  %687 = vst.msk [vmem:[%s1338_s1 + $0xa1] ss:$-100 sm:$0x3] %vm7_vm0, %v383_v33  }
  0xf6   :  { %688 = vst.msk [vmem:[%s1338_s1 + $0xa2] ss:$-100 sm:$0x3] %vm7_vm0, %v391_v34  }
  0xf8   :  { %v399_v35 = vpop.permute.xlu0 %398  }
  0xf9   :  { %v405_v36 = vpop.permute.xlu1 %404   ;;  %689 = vst.msk [vmem:[%s1338_s1 + $0xa3] ss:$-100 sm:$0x3] %vm7_vm0, %v399_v35  }
  0xfa   :  { %690 = vst.msk [vmem:[%s1338_s1 + $0x40] ss:$100 sm:$0x3] %vm7_vm0, %v405_v36  }
  0xfc   :  { %v411_v37 = vpop.permute.xlu0 %410  }
  0xfd   :  { %v417_v38 = vpop.permute.xlu1 %416   ;;  %691 = vst.msk [vmem:[%s1338_s1 + $0x41] ss:$100 sm:$0x3] %vm7_vm0, %v411_v37  }
  0xfe   :  { %692 = vst.msk [vmem:[%s1338_s1 + $0x42] ss:$100 sm:$0x3] %vm7_vm0, %v417_v38  }
 0x100   :  { %v423_v39 = vpop.permute.xlu0 %422  }
 0x101   :  { %v429_v40 = vpop.permute.xlu1 %428   ;;  %693 = vst.msk [vmem:[%s1338_s1 + $0x43] ss:$100 sm:$0x3] %vm7_vm0, %v423_v39  }
 0x102   :  { %694 = vst.msk [vmem:[%s1338_s1 + $0x44] ss:$100 sm:$0x3] %vm7_vm0, %v429_v40  }
 0x104   :  { %v435_v41 = vpop.permute.xlu0 %434  }
 0x105   :  { %v441_v42 = vpop.permute.xlu1 %440   ;;  %695 = vst.msk [vmem:[%s1338_s1 + $0x45] ss:$100 sm:$0x3] %vm7_vm0, %v435_v41  }
 0x106   :  { %696 = vst.msk [vmem:[%s1338_s1 + $0x46] ss:$100 sm:$0x3] %vm7_vm0, %v441_v42  }
 0x108   :  { %v447_v43 = vpop.permute.xlu0 %446  }
 0x109   :  { %v453_v44 = vpop.permute.xlu1 %452   ;;  %697 = vst.msk [vmem:[%s1338_s1 + $0x47] ss:$100 sm:$0x3] %vm7_vm0, %v447_v43  }
 0x10a   :  { %698 = vst.msk [vmem:[%s1338_s1 + $0x48] ss:$100 sm:$0x3] %vm7_vm0, %v453_v44  }
 0x10c   :  { %v459_v45 = vpop.permute.xlu0 %458  }
 0x10d   :  { %v465_v46 = vpop.permute.xlu1 %464   ;;  %699 = vst.msk [vmem:[%s1338_s1 + $0x49] ss:$100 sm:$0x3] %vm7_vm0, %v459_v45  }
 0x10e   :  { %700 = vst.msk [vmem:[%s1338_s1 + $0x4a] ss:$100 sm:$0x3] %vm7_vm0, %v465_v46  }
 0x110   :  { %v471_v47 = vpop.permute.xlu0 %470  }
 0x111   :  { %v477_v48 = vpop.permute.xlu1 %476   ;;  %701 = vst.msk [vmem:[%s1338_s1 + $0x4b] ss:$100 sm:$0x3] %vm7_vm0, %v471_v47  }
 0x112   :  { %702 = vst.msk [vmem:[%s1338_s1 + $0x4c] ss:$100 sm:$0x3] %vm7_vm0, %v477_v48  }
 0x114   :  { %v483_v49 = vpop.permute.xlu0 %482  }
 0x115   :  { %v489_v50 = vpop.permute.xlu1 %488   ;;  %703 = vst.msk [vmem:[%s1338_s1 + $0x4d] ss:$100 sm:$0x3] %vm7_vm0, %v483_v49  }
 0x116   :  { %704 = vst.msk [vmem:[%s1338_s1 + $0x4e] ss:$100 sm:$0x3] %vm7_vm0, %v489_v50  }
 0x118   :  { %v495_v51 = vpop.permute.xlu0 %494  }
 0x119   :  { %v501_v52 = vpop.permute.xlu1 %500   ;;  %705 = vst.msk [vmem:[%s1338_s1 + $0x4f] ss:$100 sm:$0x3] %vm7_vm0, %v495_v51  }
 0x11a   :  { %706 = vst.msk [vmem:[%s1338_s1 + $0x50] ss:$100 sm:$0x3] %vm7_vm0, %v501_v52  }
 0x11c   :  { %v507_v53 = vpop.permute.xlu0 %506  }
 0x11d   :  { %v513_v54 = vpop.permute.xlu1 %512   ;;  %707 = vst.msk [vmem:[%s1338_s1 + $0x51] ss:$100 sm:$0x3] %vm7_vm0, %v507_v53  }
 0x11e   :  { %708 = vst.msk [vmem:[%s1338_s1 + $0x52] ss:$100 sm:$0x3] %vm7_vm0, %v513_v54  }
 0x120   :  { %v519_v55 = vpop.permute.xlu0 %518  }
 0x121   :  { %v525_v56 = vpop.permute.xlu1 %524   ;;  %709 = vst.msk [vmem:[%s1338_s1 + $0x53] ss:$100 sm:$0x3] %vm7_vm0, %v519_v55  }
 0x122   :  { %710 = vst.msk [vmem:[%s1338_s1 + $0x54] ss:$100 sm:$0x3] %vm7_vm0, %v525_v56  }
 0x124   :  { %v531_v57 = vpop.permute.xlu0 %530  }
 0x125   :  { %v537_v58 = vpop.permute.xlu1 %536   ;;  %711 = vst.msk [vmem:[%s1338_s1 + $0x55] ss:$100 sm:$0x3] %vm7_vm0, %v531_v57  }
 0x126   :  { %712 = vst.msk [vmem:[%s1338_s1 + $0x56] ss:$100 sm:$0x3] %vm7_vm0, %v537_v58  }
 0x128   :  { %v543_v59 = vpop.permute.xlu0 %542  }
 0x129   :  { %v549_v60 = vpop.permute.xlu1 %548   ;;  %713 = vst.msk [vmem:[%s1338_s1 + $0x57] ss:$100 sm:$0x3] %vm7_vm0, %v543_v59  }
 0x12a   :  { %714 = vst.msk [vmem:[%s1338_s1 + $0x58] ss:$100 sm:$0x3] %vm7_vm0, %v549_v60  }
 0x12c   :  { %v555_v61 = vpop.permute.xlu0 %554  }
 0x12d   :  { %v561_v62 = vpop.permute.xlu1 %560   ;;  %715 = vst.msk [vmem:[%s1338_s1 + $0x59] ss:$100 sm:$0x3] %vm7_vm0, %v555_v61  }
 0x12e   :  { %716 = vst.msk [vmem:[%s1338_s1 + $0x5a] ss:$100 sm:$0x3] %vm7_vm0, %v561_v62  }
 0x130   :  { %v567_v63 = vpop.permute.xlu0 %566  }
 0x131   :  { %v575_v0 = vpop.permute.xlu1 %574   ;;  %717 = vst.msk [vmem:[%s1338_s1 + $0x5b] ss:$100 sm:$0x3] %vm7_vm0, %v567_v63  }
 0x132   :  { %718 = vst.msk [vmem:[%s1338_s1 + $0xc0] ss:$-100 sm:$0x3] %vm7_vm0, %v575_v0  }
 0x134   :  { %v583_v1 = vpop.permute.xlu0 %582  }
 0x135   :  { %v591_v2 = vpop.permute.xlu1 %590   ;;  %719 = vst.msk [vmem:[%s1338_s1 + $0xc1] ss:$-100 sm:$0x3] %vm7_vm0, %v583_v1  }
 0x136   :  { %720 = vst.msk [vmem:[%s1338_s1 + $0xc2] ss:$-100 sm:$0x3] %vm7_vm0, %v591_v2  }
 0x138   :  { %v599_v3 = vpop.permute.xlu0 %598  }
 0x139   :  { %v605_v4 = vpop.permute.xlu1 %604   ;;  %721 = vst.msk [vmem:[%s1338_s1 + $0xc3] ss:$-100 sm:$0x3] %vm7_vm0, %v599_v3  }
 0x13a   :  { %722 = vst.msk [vmem:[%s1338_s1 + $0x60] ss:$100 sm:$0x3] %vm7_vm0, %v605_v4  }
 0x13c   :  { %v611_v5 = vpop.permute.xlu0 %610  }
 0x13d   :  { %v617_v6 = vpop.permute.xlu1 %616   ;;  %723 = vst.msk [vmem:[%s1338_s1 + $0x61] ss:$100 sm:$0x3] %vm7_vm0, %v611_v5  }
 0x13e   :  { %724 = vst.msk [vmem:[%s1338_s1 + $0x62] ss:$100 sm:$0x3] %vm7_vm0, %v617_v6  }
 0x140   :  { %v623_v7 = vpop.permute.xlu0 %622  }
 0x141   :  { %725 = vst.msk [vmem:[%s1338_s1 + $0x63] ss:$100 sm:$0x3] %vm7_vm0, %v623_v7  }

// kernel: encoder_forward.9
= control target key start
LH: loop header
LB: loop body
LE: loop exit
PB: predicated region body
PF: predicated region fallthrough
CT: control target
= control target key end

     0   :  { %vm82_vm0 = vcmask 588800   ;;  %vm107_vm1 = vcmask 1043456   ;;  %vm256_vm2 = vcmask 130048   ;;  %s523_s1 = inlined_call_operand.vmem [shape: bf16[72,16], index: 1, kind: input, shape index: {}]   ;;  %s524_s0 = inlined_call_operand.vmem [shape: f32[128,72], index: 0, kind: input, shape index: {}]   ;;  %s525_s2 = inlined_call_operand.vmem [shape: f32[1,16], index: 2, kind: input, shape index: {}]   ;;  %s526_s3 = inlined_call_operand.vmem [shape: f32[128,16], index: 3, kind: output, shape index: {}]  }
   0x1   :  { %v342_v0 = vld [vmem:[%s523_s1] sm:$0xff]   ;;  %v343_v1 = vld [vmem:[%s523_s1 + $0x8] sm:$0xff]   ;;  %v344_v2 = vld [vmem:[%s523_s1 + $0x10] sm:$0xff]  }
   0x2   :  { %304 = vmatprep.subr.bf16.mxu0 %v342_v0  ;;  %330 = vmatprep.subr.bf16.mxu1 %v342_v0  ;;  %v15_v3 = vld [vmem:[%s524_s0] sm:$0xff]  ;;  %v16_v4 = vld [vmem:[%s524_s0 + $0x8] sm:$0xff]  ;;  %v345_v9 = vld [vmem:[%s523_s1 + $0x18] sm:$0xff]  }
   0x3   :  { %305 = vmatpush3.bf16.msra.mxu0 %v342_v0  ;;  %335 = vmatpush3.bf16.msra.mxu1 %v342_v0  ;;  %v23_v5 = vld [vmem:[%s524_s0 + $0x40] sm:$0xff]  ;;  %v24_v6 = vld [vmem:[%s524_s0 + $0x48] sm:$0xff]  ;;  %v31_v7 = vpack.c.bf16 %v16_v4, %v15_v3  ;;  %v17_v11 = vld [vmem:[%s524_s0 + $0x10] sm:$0xff] }
   0x4   :  { %306 = vmatprep.subr.bf16.mxu0 %v343_v1  ;;  %331 = vmatprep.subr.bf16.mxu1 %v343_v1  ;;  %v35_v8 = vpack.c.bf16 %v24_v6, %v23_v5  ;;  %v346_v10 = vld [vmem:[%s523_s1 + $0x20] ss:$0 sps:$4 sm:$0xff]   ;;  %v18_v12 = vld [vmem:[%s524_s0 + $0x18] sm:$0xff]  ;;  %v25_v13 = vld [vmem:[%s524_s0 + $0x50] sm:$0xff] }
   0x5   :  { %314 = vmatprep.mubr.msk.bf16.mxu0 %vm82_vm0, %v31_v7  ;;  %v26_v14 = vld [vmem:[%s524_s0 + $0x58] sm:$0xff]  ;;  %v19_v15 = vld [vmem:[%s524_s0 + $0x20] sm:$0xff]  ;;  %v109_v16 = vsel %vm107_vm1, %v346_v10, 0  ;;  %v20_v17 = vld [vmem:[%s524_s0 + $0x28] sm:$0xff]  ;;  %v32_v20 = vpack.c.bf16 %v18_v12, %v17_v11 }
   0x6   :  { %322 = vmatprep.mubr.msk.bf16.mxu1 %vm82_vm0, %v35_v8  ;;  %v27_v18 = vld [vmem:[%s524_s0 + $0x60] sm:$0xff]  ;;  %v28_v19 = vld [vmem:[%s524_s0 + $0x68] sm:$0xff]  ;;  %v36_v21 = vpack.c.bf16 %v26_v14, %v25_v13  ;;  %v33_v22 = vpack.c.bf16 %v20_v17, %v19_v15  ;;  %v21_v24 = vld [vmem:[%s524_s0 + $0x30] sm:$0xff] }
   0x7   :  { %307 = vmatpush3.bf16.msra.mxu0 %v343_v1  ;;  %336 = vmatpush3.bf16.msra.mxu1 %v343_v1  ;;  %v37_v23 = vpack.c.bf16 %v28_v19, %v27_v18  ;;  %v22_v25 = vld [vmem:[%s524_s0 + $0x38] sm:$0xff]  ;;  %v29_v26 = vld [vmem:[%s524_s0 + $0x70] sm:$0xff]  ;;  %v441_v30 = vld [vmem:[%s525_s2] ss:$0 sm:$0xff] }
   0x8   :  { %308 = vmatprep.subr.bf16.mxu0 %v344_v2  ;;  %332 = vmatprep.subr.bf16.mxu1 %v344_v2  ;;  %v30_v27 = vld [vmem:[%s524_s0 + $0x78] sm:$0xff]  ;;  %v34_v28 = vpack.c.bf16 %v22_v25, %v21_v24 }
   0x9   :  { %v38_v29 = vpack.c.bf16 %v30_v27, %v29_v26 }
   0xb   :  { %309 = vmatpush3.bf16.msra.mxu0 %v344_v2  ;;  %337 = vmatpush3.bf16.msra.mxu1 %v344_v2 }
   0xc   :  { %310 = vmatprep.subr.bf16.mxu0 %v345_v9  ;;  %333 = vmatprep.subr.bf16.mxu1 %v345_v9 }
   0xf   :  { %311 = vmatpush3.bf16.msra.mxu0 %v345_v9  ;;  %338 = vmatpush3.bf16.msra.mxu1 %v345_v9 }
  0x10   :  { %340 = vmatprep.subr.msk.bf16.mxu0 %vm107_vm1, %v346_v10  ;;  %341 = vmatprep.subr.msk.bf16.mxu1 %vm107_vm1, %v346_v10 }
  0x13   :  { %313 = vmatpush3.bf16.msra.mxu0 %v109_v16  ;;  %339 = vmatpush3.bf16.msra.mxu1 %v109_v16 }
  0x16   :  { %315 = vmatmul.mubr.msk.bf16.vlgmr.msra.gmra.mrb[0].mxu0 %vm82_vm0, %v32_v20  ;;  %323 = vmatmul.mubr.msk.bf16.vlgmr.msra.gmra.mrb[0].mxu1 %vm82_vm0, %v36_v21 }
  0x17   :  { %318 = vmatprep.mubr.msk.bf16.mxu0 %vm82_vm0, %v33_v22  ;;  %326 = vmatprep.mubr.msk.bf16.mxu1 %vm82_vm0, %v37_v23 }
  0x1e   :  { %319 = vmatmul.mubr.msk.bf16.gmra.mrb[4].mxu0 %vm82_vm0, %v34_v28  ;;  %327 = vmatmul.mubr.msk.bf16.gmra.mrb[4].mxu1 %vm82_vm0, %v38_v29 }
  0xe9   :  { %v316_v31 = vpop.f32.mrb[0].mxu0  ;;  %v324_v32 = vpop.f32.mrb[0].mxu1 }
  0xea   :  { %v154_v33 = vadd.f32 %v316_v31, %v441_v30  ;;  %v186_v34 = vadd.f32 %v324_v32, %v441_v30  ;;  %v145_v35 = vpop.f32.mrb[1].mxu0  ;;  %v177_v36 = vpop.f32.mrb[1].mxu1 }
  0xeb   :  { %v146_v37 = vadd.f32 %v441_v30, %v145_v35  ;;  %v178_v38 = vadd.f32 %v441_v30, %v177_v36  ;;  %v317_v39 = vpop.f32.mrb[2].mxu0  ;;  %v325_v40 = vpop.f32.mrb[2].mxu1 }
  0xec   :  { %vm210_vm3 = vcmp.ge.f32.partialorder %v154_v33, 0.0  ;;  %v226_v41 = vmul.f32 0.2, %v154_v33  ;;  %vm218_vm4 = vcmp.ge.f32.partialorder %v186_v34, 0.0  ;;  %v234_v42 = vmul.f32 0.2, %v186_v34 }
  0xed   :  { %vm208_vm5 = vcmp.ge.f32.partialorder %v146_v37, 0.0  ;;  %v224_v43 = vmul.f32 0.2, %v146_v37  ;;  %vm216_vm6 = vcmp.ge.f32.partialorder %v178_v38, 0.0  ;;  %v232_v44 = vmul.f32 0.2, %v178_v38 }
  0xee   :  { %v242_v45 = vsel %vm210_vm3, %v154_v33, %v226_v41  ;;  %v250_v46 = vsel %vm218_vm4, %v186_v34, %v234_v42  ;;  %v157_v47 = vadd.f32 %v317_v39, %v441_v30  ;;  %v189_v48 = vadd.f32 %v325_v40, %v441_v30  ;;  %v148_v49 = vpop.f32.mrb[3].mxu0  ;;  %v180_v50 = vpop.f32.mrb[3].mxu1 }
  0xef   :  { %259 = vst.msk [vmem:[%s526_s3 + $0x10] sm:$0xff] %vm256_vm2, %v242_v45  ;;  %267 = vst.msk [vmem:[%s526_s3 + $0x50] sm:$0xff] %vm256_vm2, %v250_v46  ;;  %v240_v51 = vsel %vm208_vm5, %v146_v37, %v224_v43  ;;  %v248_v52 = vsel %vm216_vm6, %v178_v38, %v232_v44  ;;  %v149_v53 = vadd.f32 %v441_v30, %v148_v49 }
  0xf0   :  { %v181_v54 = vadd.f32 %v441_v30, %v180_v50  ;;  %257 = vst.msk [vmem:[%s526_s3] sm:$0xff] %vm256_vm2, %v240_v51  ;;  %265 = vst.msk [vmem:[%s526_s3 + $0x40] sm:$0xff] %vm256_vm2, %v248_v52  ;;  %vm211_vm7 = vcmp.ge.f32.partialorder %v157_v47, 0.0  ;;  %v227_v55 = vmul.f32 0.2, %v157_v47  ;;  %vm219_vm8 = vcmp.ge.f32.partialorder %v189_v48, 0.0 }
  0xf1   :  { %v235_v56 = vmul.f32 0.2, %v189_v48  ;;  %vm209_vm9 = vcmp.ge.f32.partialorder %v149_v53, 0.0  ;;  %v225_v57 = vmul.f32 0.2, %v149_v53  ;;  %v320_v61 = vpop.f32.mrb[4].mxu0 }
  0xf2   :  { %vm217_vm10 = vcmp.ge.f32.partialorder %v181_v54, 0.0  ;;  %v233_v58 = vmul.f32 0.2, %v181_v54  ;;  %v243_v59 = vsel %vm211_vm7, %v157_v47, %v227_v55  ;;  %v328_v62 = vpop.f32.mrb[4].mxu1  ;;  %v170_v1 = vadd.f32 %v320_v61, %v441_v30  ;;  %v161_v3 = vpop.f32.mrb[5].mxu0 }
  0xf3   :  { %v251_v60 = vsel %vm219_vm8, %v189_v48, %v235_v56  ;;  %260 = vst.msk [vmem:[%s526_s3 + $0x18] sm:$0xff] %vm256_vm2, %v243_v59  ;;  %v241_v63 = vsel %vm209_vm9, %v149_v53, %v225_v57  ;;  %v202_v2 = vadd.f32 %v328_v62, %v441_v30  ;;  %v193_v4 = vpop.f32.mrb[5].mxu1  ;;  %v162_v5 = vadd.f32 %v441_v30, %v161_v3  ;;  %v321_v7 = vpop.f32.mrb[6].mxu0 }
  0xf4   :  { %268 = vst.msk [vmem:[%s526_s3 + $0x58] sm:$0xff] %vm256_vm2, %v251_v60  ;;  %v249_v0 = vsel %vm217_vm10, %v181_v54, %v233_v58  ;;  %258 = vst.msk [vmem:[%s526_s3 + $0x8] sm:$0xff] %vm256_vm2, %v241_v63  ;;  %v194_v6 = vadd.f32 %v441_v30, %v193_v4  ;;  %v329_v8 = vpop.f32.mrb[6].mxu1  ;;  %vm214_vm11 = vcmp.ge.f32.partialorder %v170_v1, 0.0  ;;  %v230_v9 = vmul.f32 0.2, %v170_v1 }
  0xf5   :  { %266 = vst.msk [vmem:[%s526_s3 + $0x48] sm:$0xff] %vm256_vm2, %v249_v0  ;;  %vm222_vm12 = vcmp.ge.f32.partialorder %v202_v2, 0.0  ;;  %v238_v10 = vmul.f32 0.2, %v202_v2  ;;  %vm212_vm13 = vcmp.ge.f32.partialorder %v162_v5, 0.0  ;;  %v173_v15 = vadd.f32 %v321_v7, %v441_v30  ;;  %v164_v17 = vpop.f32.mrb[7].mxu0 }
  0xf6   :  { %v228_v11 = vmul.f32 0.2, %v162_v5  ;;  %vm220_vm14 = vcmp.ge.f32.partialorder %v194_v6, 0.0  ;;  %v236_v12 = vmul.f32 0.2, %v194_v6  ;;  %v246_v13 = vsel %vm214_vm11, %v170_v1, %v230_v9  ;;  %v196_v18 = vpop.f32.mrb[7].mxu1 }
  0xf7   :  { %v254_v14 = vsel %vm222_vm12, %v202_v2, %v238_v10  ;;  %v205_v16 = vadd.f32 %v329_v8, %v441_v30  ;;  %263 = vst.msk [vmem:[%s526_s3 + $0x30] sm:$0xff] %vm256_vm2, %v246_v13  ;;  %v165_v21 = vadd.f32 %v441_v30, %v164_v17  ;;  %v197_v22 = vadd.f32 %v441_v30, %v196_v18 }
  0xf8   :  { %271 = vst.msk [vmem:[%s526_s3 + $0x70] sm:$0xff] %vm256_vm2, %v254_v14  ;;  %v244_v19 = vsel %vm212_vm13, %v162_v5, %v228_v11  ;;  %v252_v20 = vsel %vm220_vm14, %v194_v6, %v236_v12  ;;  %vm215_vm15 = vcmp.ge.f32.partialorder %v173_v15, 0.0  ;;  %v231_v23 = vmul.f32 0.2, %v173_v15 }
  0xf9   :  { %261 = vst.msk [vmem:[%s526_s3 + $0x20] sm:$0xff] %vm256_vm2, %v244_v19  ;;  %269 = vst.msk [vmem:[%s526_s3 + $0x60] sm:$0xff] %vm256_vm2, %v252_v20  ;;  %vm223_vm0 = vcmp.ge.f32.partialorder %v205_v16, 0.0  ;;  %v239_v24 = vmul.f32 0.2, %v205_v16  ;;  %vm213_vm1 = vcmp.ge.f32.partialorder %v165_v21, 0.0 }
  0xfa   :  { %v229_v25 = vmul.f32 0.2, %v165_v21  ;;  %vm221_vm3 = vcmp.ge.f32.partialorder %v197_v22, 0.0  ;;  %v237_v26 = vmul.f32 0.2, %v197_v22  ;;  %v247_v27 = vsel %vm215_vm15, %v173_v15, %v231_v23 }
  0xfb   :  { %v255_v28 = vsel %vm223_vm0, %v205_v16, %v239_v24  ;;  %264 = vst.msk [vmem:[%s526_s3 + $0x38] sm:$0xff] %vm256_vm2, %v247_v27 }
  0xfc   :  { %272 = vst.msk [vmem:[%s526_s3 + $0x78] sm:$0xff] %vm256_vm2, %v255_v28  ;;  %v245_v29 = vsel %vm213_vm1, %v165_v21, %v229_v25  ;;  %v253_v30 = vsel %vm221_vm3, %v197_v22, %v237_v26 }
  0xfd   :  { %262 = vst.msk [vmem:[%s526_s3 + $0x28] sm:$0xff] %vm256_vm2, %v245_v29  ;;  %270 = vst.msk [vmem:[%s526_s3 + $0x68] sm:$0xff] %vm256_vm2, %v253_v30 }

// kernel: encoder_forward.8
= control target key start
LH: loop header
LB: loop body
LE: loop exit
PB: predicated region body
PF: predicated region fallthrough
CT: control target
= control target key end

     0   :  { %s4806_s15 = smov 0   ;;  %s6131_s0 = inlined_call_operand.vmem [shape: f32[4,200,24], index: 0, kind: input, shape index: {}]   ;;  %s6132_s1 = inlined_call_operand.vmem [shape: bf16[9,8,24], index: 1, kind: input, shape index: {}]   ;;  %s6133_s2 = inlined_call_operand.vmem [shape: f32[1,24], index: 2, kind: input, shape index: {}]   ;;  %s6134_s3 = inlined_call_operand.vmem [shape: f32[200,1], index: 3, kind: input, shape index: {}]   ;;  %s6135_s4 = inlined_call_operand.vmem [shape: f32[4,200,8], index: 4, kind: output, shape index: {}]  }
   0x1 LB: > { %s3384_s16 = sadd.s32 4294967295, %s4772_s15   ;;  %p3388_p0 = scmp.ge.s32.totalorder %s4772_s15, 1  ;;  %s4772_s15 = sphi %s4806_s15, %s14_s15  }
   0x2   : > { %p162_p1 = scmp.lt.s32.totalorder %s4772_s15, 5 }
   0x4   : > { %p163_p2 = pnand %p3388_p0, %p162_p1 }
   0x6   : > { %166 = sbr.rel (%p163_p2) target bundleno = 1094 (0x446), region = 36 }
   0xd   : > { %p188_p3 = scmp.lt.s32.totalorder %s3384_s16, 3  ;;  %p3391_p4 = scmp.ne.s32.totalorder %s3384_s16, 0 }
   0xe   : > { %vm203_vm0 = vcmask (!%p3391_p4), 64512   ;;  %v4774_v0 = vmov (!%p3391_p4), 0.0  }
   0xf   : > { %s189_s17 = scalar_select %p188_p3, %s3384_s16, 3 }
  0x10   : > { %202 = sbr.rel (%p3391_p4) target bundleno = 31 (0x1f), region = 40  ;;  %204 = vst.msk [vmem:[#allocation2] sm:$0xff] (!%p3391_p4), %vm203_vm0, %v4774_v0  ;;  %205 = vst.msk [vmem:[#allocation2 + $0x8] sm:$0xff] (!%p3391_p4), %vm203_vm0, %v4774_v0 }
  0x11   : > { %s4573_s18 = smul.u32 200, %s189_s17  ;;  %206 = vst.msk [vmem:[#allocation2 + $0x10] sm:$0xff] (!%p3391_p4), %vm203_vm0, %v4774_v0  ;;  %207 = vst.msk [vmem:[#allocation2 + $0x18] sm:$0xff] (!%p3391_p4), %vm203_vm0, %v4774_v0 }
  0x12   : > { %208 = vst.msk [vmem:[#allocation2 + $0x20] sm:$0xff] (!%p3391_p4), %vm203_vm0, %v4774_v0  ;;  %209 = vst.msk [vmem:[#allocation2 + $0x28] sm:$0xff] (!%p3391_p4), %vm203_vm0, %v4774_v0 }
  0x13   : > { %s4817_s21 = scalar_lea.vmem %s6131_s0, %s4573_s18  ;;  %s4822_s24 = scalar_lea.vmem %s6135_s4, %s4573_s18  ;;  %210 = vst.msk [vmem:[#allocation2 + $0x30] sm:$0xff] (!%p3391_p4), %vm203_vm0, %v4774_v0  ;;  %211 = vst.msk [vmem:[#allocation2 + $0x38] sm:$0xff] (!%p3391_p4), %vm203_vm0, %v4774_v0 }
  0x14   : > { %212 = vst.msk [vmem:[#allocation2 + $0x40] sm:$0xff] (!%p3391_p4), %vm203_vm0, %v4774_v0  ;;  %213 = vst.msk [vmem:[#allocation2 + $0x48] sm:$0xff] (!%p3391_p4), %vm203_vm0, %v4774_v0 }
  0x15   : > { %214 = vst.msk [vmem:[#allocation2 + $0x50] sm:$0xff] (!%p3391_p4), %vm203_vm0, %v4774_v0  ;;  %215 = vst.msk [vmem:[#allocation2 + $0x58] sm:$0xff] (!%p3391_p4), %vm203_vm0, %v4774_v0 }
  0x16   : > { %216 = vst.msk [vmem:[#allocation2 + $0x60] sm:$0xff] (!%p3391_p4), %vm203_vm0, %v4774_v0  ;;  %217 = vst.msk [vmem:[#allocation2 + $0x68] sm:$0xff] (!%p3391_p4), %vm203_vm0, %v4774_v0 }
  0x17   : > { %218 = vst.msk [vmem:[#allocation2 + $0x70] sm:$0xff] %vm203_vm0, %v4774_v0  ;;  %219 = vst.msk [vmem:[#allocation2 + $0x78] sm:$0xff] %vm203_vm0, %v4774_v0 }
  0x18   : > { %220 = vst.msk [vmem:[#allocation2 + $0x80] sm:$0xff] %vm203_vm0, %v4774_v0  ;;  %221 = vst.msk [vmem:[#allocation2 + $0x88] sm:$0xff] %vm203_vm0, %v4774_v0 }
  0x19   : > { %222 = vst.msk [vmem:[#allocation2 + $0x90] sm:$0xff] %vm203_vm0, %v4774_v0  ;;  %223 = vst.msk [vmem:[#allocation2 + $0x98] sm:$0xff] %vm203_vm0, %v4774_v0 }
  0x1a   : > { %224 = vst.msk [vmem:[#allocation2 + $0xa0] sm:$0xff] %vm203_vm0, %v4774_v0  ;;  %225 = vst.msk [vmem:[#allocation2 + $0xa8] sm:$0xff] %vm203_vm0, %v4774_v0 }
  0x1b   : > { %226 = vst.msk [vmem:[#allocation2 + $0xb0] sm:$0xff] %vm203_vm0, %v4774_v0  ;;  %227 = vst.msk [vmem:[#allocation2 + $0xb8] sm:$0xff] %vm203_vm0, %v4774_v0 }
  0x1c   : > { %228 = vst.msk [vmem:[#allocation2 + $0xc0] sm:$0xff] %vm203_vm0, %v4774_v0  ;;  %229 = vst.msk [vmem:[#allocation2 + $0xc8] sm:$0xff] %vm203_vm0, %v4774_v0 }
  0x1d   : > { %230 = vst.msk [vmem:[#allocation2 + $0xd0] sm:$0xff] %vm203_vm0, %v4774_v0  ;;  %231 = vst.msk [vmem:[#allocation2 + $0xd8] sm:$0xff] %vm203_vm0, %v4774_v0 }
  0x1e   : > { %232 = vst.msk [vmem:[#allocation2 + $0xe0] sm:$0xff] %vm203_vm0, %v4774_v0 }
  0x1f PF: > { %v291_v1 = vld [vmem:[%s6132_s1] sm:$0xf]  ;;  %vm345_vm1 = vcmask 1043456   ;;  %v3448_v2 = vld [vmem:[%s6132_s1 + $0x10] sm:$0xf]  ;;  %v4775_v3 = vmov 0.0  }
  0x20   : > { %3671 = vmatprep.subr.bf16.mxu1 %v4775_v3  ;;  %3887 = vmatprep.subr.bf16.mxu0 %v4775_v3  ;;  %v347_v4 = vsel %vm345_vm1, %v291_v1, 0  ;;  %v4863_v5 = vsel %vm345_vm1, %v3448_v2, 0  ;;  %v266_v6 = vld [vmem:[#allocation2 + $0x5] sm:$0xff]  ;;  %v267_v7 = vld [vmem:[#allocation2 + $0xd] sm:$0xff]  ;;  %vm305_vm2 = vcmask 64512   ;;  %v234_v10 = vld [vmem:[#allocation2 + $0x18] sm:$0xff] }
  0x21   : > { %3672 = vmatpush3.bf16.msra.mxu1 %v347_v4  ;;  %3888 = vmatpush3.bf16.msra.mxu0 %v4863_v5  ;;  %v292_v8 = vpack.c.bf16 %v267_v7, %v266_v6  ;;  %v233_v9 = vld [vmem:[#allocation2 + $0x10] sm:$0xff]  ;;  %vm4776_vm3 = vmmov 0   ;;  %v3406_v14 = vld [vmem:[%s6132_s1 + $0x4] sm:$0xf]  ;;  %v236_v19 = vld [vmem:[#allocation2 + $0x28] sm:$0xff]  ;;  %s4778_s19 = smov 120  }
  0x22   : > { %v3462_v11 = vld [vmem:[%s6132_s1 + $0x14] sm:$0xf]  ;;  %3673 = vmatprep.mubr.msk.bf16.mxu1 %vm4776_vm3, %v4775_v3  ;;  %3889 = vmatprep.mubr.msk.bf16.mxu0 %vm4776_vm3, %v4775_v3  ;;  %v1241_v12 = vpack.c.bf16 %v234_v10, %v233_v9  ;;  %v590_v15 = vsel %vm345_vm1, %v3406_v14, 0  ;;  %v269_v17 = vld [vmem:[#allocation2 + $0x1d] sm:$0xff]  ;;  %v270_v22 = vld [vmem:[#allocation2 + $0x25] sm:$0xff]  ;;  %s4779_s30 = smov 8  }
  0x23   : > { %v1537_v13 = vsel %vm345_vm1, %v3462_v11, 0  ;;  %3941 = vmatprep.subr.bf16.mxu0 %v4775_v3  ;;  %3725 = vmatprep.subr.bf16.mxu1 %v4775_v3  ;;  %v268_v16 = vld [vmem:[#allocation2 + $0x15] sm:$0xff]  ;;  %v235_v18 = vld [vmem:[#allocation2 + $0x20] sm:$0xff]  ;;  %v271_v23 = vld [vmem:[#allocation2 + $0x2d] sm:$0xff]  ;;  %s4780_s22 = smov 112  }
  0x24   : > { %3674 = vmatmul.mubr.msk.bf16.vlgmr.msra.gmra.mrb[0].mxu1 %vm305_vm2, %v292_v8  ;;  %3890 = vmatmul.mubr.msk.bf16.vlgmr.msra.gmra.mrb[0].mxu0 %vm305_vm2, %v1241_v12  ;;  %v293_v20 = vpack.c.bf16 %v269_v17, %v268_v16  ;;  %v1242_v21 = vpack.c.bf16 %v236_v19, %v235_v18  ;;  %v237_v24 = vld [vmem:[#allocation2 + $0x30] sm:$0xff]  ;;  %v238_v25 = vld [vmem:[#allocation2 + $0x38] sm:$0xff]  ;;  %v294_v26 = vpack.c.bf16 %v271_v23, %v270_v22  ;;  %v239_v30 = vld [vmem:[#allocation2 + $0x40] sm:$0xff] }
  0x25   : > { %3942 = vmatpush3.bf16.msra.mxu0 %v1537_v13  ;;  %3677 = vmatprep.mubr.msk.bf16.mxu1 %vm4776_vm3, %v4775_v3  ;;  %v1243_v27 = vpack.c.bf16 %v238_v25, %v237_v24  ;;  %v272_v28 = vld [vmem:[#allocation2 + $0x35] sm:$0xff]  ;;  %v273_v29 = vld [vmem:[#allocation2 + $0x3d] sm:$0xff]  ;;  %v240_v31 = vld [vmem:[#allocation2 + $0x48] sm:$0xff] }
  0x26   : > { %3726 = vmatpush3.bf16.msra.mxu1 %v590_v15  ;;  %3893 = vmatprep.mubr.msk.bf16.mxu0 %vm4776_vm3, %v4775_v3  ;;  %v295_v32 = vpack.c.bf16 %v273_v29, %v272_v28  ;;  %v1244_v33 = vpack.c.bf16 %v240_v31, %v239_v30  ;;  %v274_v34 = vld [vmem:[#allocation2 + $0x45] sm:$0xff]  ;;  %v275_v35 = vld [vmem:[#allocation2 + $0x4d] sm:$0xff]  ;;  %v242_v37 = vld [vmem:[#allocation2 + $0x58] sm:$0xff] }
  0x27   : > { %3995 = vmatprep.subr.bf16.mxu0 %v4775_v3  ;;  %3779 = vmatprep.subr.bf16.mxu1 %v4775_v3  ;;  %v241_v36 = vld [vmem:[#allocation2 + $0x50] sm:$0xff]  ;;  %v296_v38 = vpack.c.bf16 %v275_v35, %v274_v34  ;;  %v277_v41 = vld [vmem:[#allocation2 + $0x5d] sm:$0xff]  ;;  %v244_v43 = vld [vmem:[#allocation2 + $0x68] sm:$0xff] }
  0x28   : > { %v1245_v39 = vpack.c.bf16 %v242_v37, %v241_v36  ;;  %v276_v40 = vld [vmem:[#allocation2 + $0x55] sm:$0xff]  ;;  %v243_v42 = vld [vmem:[#allocation2 + $0x60] sm:$0xff]  ;;  %v279_v47 = vld [vmem:[#allocation2 + $0x6d] sm:$0xff] }
  0x29   : > { %v297_v44 = vpack.c.bf16 %v277_v41, %v276_v40  ;;  %v1246_v45 = vpack.c.bf16 %v244_v43, %v243_v42  ;;  %v278_v46 = vld [vmem:[#allocation2 + $0x65] sm:$0xff]  ;;  %v245_v48 = vld [vmem:[#allocation2 + $0x70] sm:$0xff]  ;;  %v246_v49 = vld [vmem:[#allocation2 + $0x78] sm:$0xff] }
  0x2a   : > { %v298_v50 = vpack.c.bf16 %v279_v47, %v278_v46  ;;  %v1247_v51 = vpack.c.bf16 %v246_v49, %v245_v48  ;;  %v280_v52 = vld [vmem:[#allocation2 + $0x75] sm:$0xff]  ;;  %v281_v53 = vld [vmem:[#allocation2 + $0x7d] sm:$0xff]  ;;  %v282_v60 = vld [vmem:[#allocation2 + $0x85] sm:$0xff] }
  0x2b   : > { %v1457_v54 = vld [vmem:[#allocation2 + $0x11] sm:$0xff]  ;;  %v4924_v55 = vld [vmem:[#allocation2 + $0x19] sm:$0xff]  ;;  %v299_v57 = vpack.c.bf16 %v281_v53, %v280_v52  ;;  %v4935_v62 = vld [vmem:[#allocation2 + $0x21] sm:$0xff] }
  0x2c   : > { %3678 = vmatmul.mubr.msk.bf16.gmra.mrb[4].mxu1 %vm305_vm2, %v293_v20  ;;  %3894 = vmatmul.mubr.msk.bf16.gmra.mrb[4].mxu0 %vm305_vm2, %v1242_v21  ;;  %v3476_v56 = vld [vmem:[%s6132_s1 + $0x18] sm:$0xf]  ;;  %v1484_v58 = vpack.c.bf16 %v4924_v55, %v1457_v54  ;;  %v283_v61 = vld [vmem:[#allocation2 + $0x8d] sm:$0xff]  ;;  %v285_v4 = vld [vmem:[#allocation2 + $0x9d] sm:$0xff] }
  0x2d   : > { %3681 = vmatprep.mubr.msk.bf16.mxu1 %vm4776_vm3, %v4775_v3  ;;  %3897 = vmatprep.mubr.msk.bf16.mxu0 %vm4776_vm3, %v4775_v3  ;;  %v1780_v59 = vsel %vm345_vm1, %v3476_v56, 0  ;;  %v4937_v63 = vld [vmem:[#allocation2 + $0x29] sm:$0xff]  ;;  %v300_v0 = vpack.c.bf16 %v283_v61, %v282_v60  ;;  %v284_v2 = vld [vmem:[#allocation2 + $0x95] sm:$0xff]  ;;  %v4962_v12 = vld [vmem:[#allocation2 + $0x41] sm:$0xff] }
  0x2e   : > { %v1485_v1 = vpack.c.bf16 %v4937_v63, %v4935_v62  ;;  %v4950_v6 = vld [vmem:[#allocation2 + $0x31] sm:$0xff]  ;;  %v4952_v7 = vld [vmem:[#allocation2 + $0x39] sm:$0xff]  ;;  %v301_v8 = vpack.c.bf16 %v285_v4, %v284_v2  ;;  %v286_v10 = vld [vmem:[#allocation2 + $0xa5] sm:$0xff] }
  0x2f   : > { %v1486_v9 = vpack.c.bf16 %v4952_v7, %v4950_v6  ;;  %v287_v11 = vld [vmem:[#allocation2 + $0xad] sm:$0xff]  ;;  %v288_v16 = vld [vmem:[#allocation2 + $0xb5] sm:$0xff]  ;;  %v289_v17 = vld [vmem:[#allocation2 + $0xbd] sm:$0xff] }
  0x30   : > { %v4964_v13 = vld [vmem:[#allocation2 + $0x49] sm:$0xff]  ;;  %v302_v14 = vpack.c.bf16 %v287_v11, %v286_v10  ;;  %v4974_v18 = vld [vmem:[#allocation2 + $0x51] sm:$0xff]  ;;  %v4976_v19 = vld [vmem:[#allocation2 + $0x59] sm:$0xff]  ;;  %v303_v20 = vpack.c.bf16 %v289_v17, %v288_v16 }
  0x31   : > { %v1487_v15 = vpack.c.bf16 %v4964_v13, %v4962_v12  ;;  %v1488_v21 = vpack.c.bf16 %v4976_v19, %v4974_v18  ;;  %v290_v22 = vld [vmem:[#allocation2 + $0xc5] sm:$0xff]  ;;  %v511_v28 = vld [vmem:[#allocation2 + $0xe] sm:$0xff]  ;;  %v5000_v30 = vld [vmem:[#allocation2 + $0x79] sm:$0xff] }
  0x32   : > { %v4986_v23 = vld [vmem:[#allocation2 + $0x61] sm:$0xff]  ;;  %v4988_v24 = vld [vmem:[#allocation2 + $0x69] sm:$0xff]  ;;  %v304_v25 = vpack.c.bf16 %v290_v22, %v290_v22  ;;  %v4998_v29 = vld [vmem:[#allocation2 + $0x71] sm:$0xff] }
  0x33   : > { %v3420_v31 = vld [vmem:[%s6132_s1 + $0x8] sm:$0xf]  ;;  %v512_v35 = vld [vmem:[#allocation2 + $0x16] sm:$0xff]  ;;  %v513_v36 = vld [vmem:[#allocation2 + $0x1e] sm:$0xff] }
  0x34   : > { %3682 = vmatmul.mubr.msk.bf16.gmra.mrb[8].mxu1 %vm305_vm2, %v294_v26  ;;  %3898 = vmatmul.mubr.msk.bf16.gmra.mrb[8].mxu0 %vm305_vm2, %v1243_v27  ;;  %v1489_v26 = vpack.c.bf16 %v4988_v24, %v4986_v23  ;;  %v510_v27 = vld [vmem:[#allocation2 + $0x6] sm:$0xff]  ;;  %v833_v34 = vsel %vm345_vm1, %v3420_v31, 0  ;;  %v515_v42 = vld [vmem:[#allocation2 + $0x2e] sm:$0xff]  ;;  %v516_v47 = vld [vmem:[#allocation2 + $0x36] sm:$0xff] }
  0x35   : > { %3685 = vmatprep.mubr.msk.bf16.mxu1 %vm4776_vm3, %v4775_v3  ;;  %3901 = vmatprep.mubr.msk.bf16.mxu0 %vm4776_vm3, %v4775_v3  ;;  %v5012_v37 = vld [vmem:[#allocation2 + $0x81] sm:$0xff]  ;;  %v5027_v43 = vld [vmem:[#allocation2 + $0x91] sm:$0xff]  ;;  %v3490_v17 = vld [vmem:[%s6132_s1 + $0x1c] sm:$0xf] }
  0x36   : > { %v514_v41 = vld [vmem:[#allocation2 + $0x26] sm:$0xff]  ;;  %v517_v48 = vld [vmem:[#allocation2 + $0x3e] sm:$0xff]  ;;  %v519_v54 = vld [vmem:[#allocation2 + $0x4e] sm:$0xff]  ;;  %v2023_v22 = vsel %vm345_vm1, %v3490_v17, 0 }
  0x37   : > { %v5039_v49 = vld [vmem:[#allocation2 + $0xa1] sm:$0xff]  ;;  %v5051_v56 = vld [vmem:[#allocation2 + $0xb1] sm:$0xff] }
  0x38   : > { %v518_v53 = vld [vmem:[#allocation2 + $0x46] sm:$0xff]  ;;  %v520_v60 = vld [vmem:[#allocation2 + $0x56] sm:$0xff]  ;;  %v521_v61 = vld [vmem:[#allocation2 + $0x5e] sm:$0xff] }
  0x39   : > { %v542_v2 = vpack.c.bf16 %v521_v61, %v520_v60  ;;  %v5075_v10 = vld [vmem:[#allocation2 + $0xd1] sm:$0xff]  ;;  %v525_v16 = vld [vmem:[#allocation2 + $0x7e] sm:$0xff]  ;;  %v5224_v60 = vld [vmem:[#allocation2 + $0x67] sm:$0xff] }
  0x3a   : > { %v5226_v61 = vld [vmem:[#allocation2 + $0x6f] sm:$0xff]  ;;  %v5248_v17 = vld [vmem:[#allocation2 + $0x87] sm:$0xff] }
  0x3c   : > { %3686 = vmatmul.mubr.msk.bf16.gmra.mrb[12].mxu1 %vm305_vm2, %v295_v32  ;;  %3902 = vmatmul.mubr.msk.bf16.gmra.mrb[12].mxu0 %vm305_vm2, %v1244_v33  ;;  %v537_v32 = vpack.c.bf16 %v511_v28, %v510_v27  ;;  %v1490_v33 = vpack.c.bf16 %v5000_v30, %v4998_v29  ;;  %v529_v28 = vld [vmem:[#allocation2 + $0x9e] sm:$0xff] }
  0x3d   : > { %3689 = vmatprep.mubr.msk.bf16.mxu1 %vm4776_vm3, %v4775_v3  ;;  %3905 = vmatprep.mubr.msk.bf16.mxu0 %vm4776_vm3, %v4775_v3 }
  0x44   : > { %3690 = vmatmul.mubr.msk.bf16.gmra.mrb[16].mxu1 %vm305_vm2, %v296_v38  ;;  %3906 = vmatmul.mubr.msk.bf16.gmra.mrb[16].mxu0 %vm305_vm2, %v1245_v39  ;;  %v5014_v38 = vld [vmem:[#allocation2 + $0x89] sm:$0xff]  ;;  %v538_v39 = vpack.c.bf16 %v513_v36, %v512_v35  ;;  %v1731_v36 = vpack.c.bf16 %v4986_v23, %v4976_v19 }
  0x45   : > { %3693 = vmatprep.mubr.msk.bf16.mxu1 %vm4776_vm3, %v4775_v3  ;;  %3909 = vmatprep.mubr.msk.bf16.mxu0 %vm4776_vm3, %v4775_v3  ;;  %v1491_v40 = vpack.c.bf16 %v5014_v38, %v5012_v37  ;;  %v753_v19 = vld [vmem:[#allocation2 + $0x7] sm:$0xff]  ;;  %v5138_v23 = vld [vmem:[#allocation2 + $0xf] sm:$0xff] }
  0x4c   : > { %3694 = vmatmul.mubr.msk.bf16.gmra.mrb[20].mxu1 %vm305_vm2, %v297_v44  ;;  %3910 = vmatmul.mubr.msk.bf16.gmra.mrb[20].mxu0 %vm305_vm2, %v1246_v45  ;;  %v5029_v44 = vld [vmem:[#allocation2 + $0x99] sm:$0xff]  ;;  %v539_v45 = vpack.c.bf16 %v515_v42, %v514_v41  ;;  %v780_v41 = vpack.c.bf16 %v5138_v23, %v753_v19 }
  0x4d   : > { %3697 = vmatprep.mubr.msk.bf16.mxu1 %vm4776_vm3, %v4775_v3  ;;  %3913 = vmatprep.mubr.msk.bf16.mxu0 %vm4776_vm3, %v4775_v3  ;;  %v1492_v46 = vpack.c.bf16 %v5029_v44, %v5027_v43  ;;  %v5151_v42 = vld [vmem:[#allocation2 + $0x17] sm:$0xff] }
  0x54   : > { %3698 = vmatmul.mubr.msk.bf16.gmra.mrb[24].mxu1 %vm305_vm2, %v298_v50  ;;  %3914 = vmatmul.mubr.msk.bf16.gmra.mrb[24].mxu0 %vm305_vm2, %v1247_v51  ;;  %v5041_v50 = vld [vmem:[#allocation2 + $0xa9] sm:$0xff]  ;;  %v540_v51 = vpack.c.bf16 %v517_v48, %v516_v47 }
  0x55   : > { %3701 = vmatprep.mubr.msk.bf16.mxu1 %vm4776_vm3, %v4775_v3  ;;  %3943 = vmatprep.mubr.msk.bf16.mxu0 %vm4776_vm3, %v4775_v3  ;;  %v1493_v52 = vpack.c.bf16 %v5041_v50, %v5039_v49  ;;  %v5170_v47 = vld [vmem:[#allocation2 + $0x2f] sm:$0xff] }
  0x5c   : > { %3702 = vmatmul.mubr.msk.bf16.gmra.mrb[28].mxu1 %vm305_vm2, %v299_v57  ;;  %3944 = vmatmul.mubr.msk.bf16.vlgmr.msra.gmra.mrb[0].mxu0 %vm305_vm2, %v1484_v58  ;;  %v5053_v57 = vld [vmem:[#allocation2 + $0xb9] sm:$0xff]  ;;  %v541_v58 = vpack.c.bf16 %v519_v54, %v518_v53  ;;  %v5198_v53 = vld [vmem:[#allocation2 + $0x4f] sm:$0xff] }
  0x5d   : > { %3996 = vmatpush3.bf16.msra.mxu0 %v1780_v59  ;;  %3705 = vmatprep.mubr.msk.bf16.mxu1 %vm4776_vm3, %v4775_v3  ;;  %v1494_v59 = vpack.c.bf16 %v5053_v57, %v5051_v56 }
  0x5e   : > { %3947 = vmatprep.mubr.msk.bf16.mxu0 %vm4776_vm3, %v4775_v3  ;;  %4049 = vmatprep.subr.bf16.mxu0 %v4775_v3 }
  0x64   : > { %3706 = vmatmul.mubr.msk.bf16.gmra.mrb[32].mxu1 %vm305_vm2, %v300_v0  ;;  %3948 = vmatmul.mubr.msk.bf16.gmra.mrb[4].mxu0 %vm305_vm2, %v1485_v1  ;;  %v5063_v0 = vld [vmem:[#allocation2 + $0xc1] sm:$0xff]  ;;  %v5065_v1 = vld [vmem:[#allocation2 + $0xc9] sm:$0xff] }
  0x65   : > { %3709 = vmatprep.mubr.msk.bf16.mxu1 %vm4776_vm3, %v4775_v3  ;;  %3951 = vmatprep.mubr.msk.bf16.mxu0 %vm4776_vm3, %v4775_v3  ;;  %v1495_v4 = vpack.c.bf16 %v5065_v1, %v5063_v0 }
  0x6c   : > { %3710 = vmatmul.mubr.msk.bf16.gmra.mrb[36].mxu1 %vm305_vm2, %v301_v8  ;;  %3952 = vmatmul.mubr.msk.bf16.gmra.mrb[8].mxu0 %vm305_vm2, %v1486_v9  ;;  %v522_v8 = vld [vmem:[#allocation2 + $0x66] sm:$0xff]  ;;  %v523_v9 = vld [vmem:[#allocation2 + $0x6e] sm:$0xff] }
  0x6d   : > { %3713 = vmatprep.mubr.msk.bf16.mxu1 %vm4776_vm3, %v4775_v3  ;;  %3955 = vmatprep.mubr.msk.bf16.mxu0 %vm4776_vm3, %v4775_v3  ;;  %v543_v11 = vpack.c.bf16 %v523_v9, %v522_v8  ;;  %v5238_v8 = vld [vmem:[#allocation2 + $0x7f] sm:$0xff] }
  0x6e   : > { %v1943_v9 = vld [vmem:[#allocation2 + $0x1a] sm:$0xff] }
  0x74   : > { %3714 = vmatmul.mubr.msk.bf16.gmra.mrb[40].mxu1 %vm305_vm2, %v302_v14  ;;  %3956 = vmatmul.mubr.msk.bf16.gmra.mrb[12].mxu0 %vm305_vm2, %v1487_v15  ;;  %v1496_v14 = vpack.c.bf16 %v5075_v10, %v5075_v10  ;;  %v524_v15 = vld [vmem:[#allocation2 + $0x76] sm:$0xff] }
  0x75   : > { %3717 = vmatprep.mubr.msk.bf16.mxu1 %vm4776_vm3, %v4775_v3  ;;  %3959 = vmatprep.mubr.msk.bf16.mxu0 %vm4776_vm3, %v4775_v3 }
  0x7c   : > { %3718 = vmatmul.mubr.msk.bf16.gmra.mrb[44].mxu1 %vm305_vm2, %v303_v20  ;;  %3960 = vmatmul.mubr.msk.bf16.gmra.mrb[16].mxu0 %vm305_vm2, %v1488_v21  ;;  %v544_v20 = vpack.c.bf16 %v525_v16, %v524_v15  ;;  %v1727_v21 = vpack.c.bf16 %v4935_v62, %v4924_v55  ;;  %v1728_v55 = vpack.c.bf16 %v4950_v6, %v4937_v63  ;;  %v528_v62 = vld [vmem:[#allocation2 + $0x96] sm:$0xff]  ;;  %v530_v63 = vld [vmem:[#allocation2 + $0xa6] sm:$0xff]  ;;  %v531_v6 = vld [vmem:[#allocation2 + $0xae] sm:$0xff] }
  0x7d   : > { %3721 = vmatprep.mubr.msk.bf16.mxu1 %vm4776_vm3, %v4775_v3  ;;  %3963 = vmatprep.mubr.msk.bf16.mxu0 %vm4776_vm3, %v4775_v3  ;;  %v546_v31 = vpack.c.bf16 %v529_v28, %v528_v62  ;;  %v1947_v62 = vld [vmem:[#allocation2 + $0x3a] sm:$0xff]  ;;  %v1948_v28 = vld [vmem:[#allocation2 + $0x42] sm:$0xff] }
  0x84   : > { %3722 = vmatmul.mubr.msk.bf16.gmra.mrb[48].mxu1 %vm305_vm2, %v304_v25  ;;  %3964 = vmatmul.mubr.msk.bf16.gmra.mrb[20].mxu0 %vm305_vm2, %v1489_v26  ;;  %v526_v25 = vld [vmem:[#allocation2 + $0x86] sm:$0xff]  ;;  %v527_v26 = vld [vmem:[#allocation2 + $0x8e] sm:$0xff] }
  0x85   : > { %3727 = vmatprep.mubr.msk.bf16.mxu1 %vm4776_vm3, %v4775_v3  ;;  %3967 = vmatprep.mubr.msk.bf16.mxu0 %vm4776_vm3, %v4775_v3  ;;  %v545_v27 = vpack.c.bf16 %v527_v26, %v526_v25 }
  0x8c   : > { %3728 = vmatmul.mubr.msk.bf16.vlgmr.msra.gmra.mrb[0].mxu1 %vm305_vm2, %v537_v32  ;;  %3968 = vmatmul.mubr.msk.bf16.gmra.mrb[24].mxu0 %vm305_vm2, %v1490_v33  ;;  %v1729_v32 = vpack.c.bf16 %v4962_v12, %v4952_v7  ;;  %v547_v33 = vpack.c.bf16 %v531_v6, %v530_v63  ;;  %v532_v7 = vld [vmem:[#allocation2 + $0xb6] sm:$0xff]  ;;  %v533_v12 = vld [vmem:[#allocation2 + $0xbe] sm:$0xff]  ;;  %v5272_v63 = vld [vmem:[#allocation2 + $0xa7] sm:$0xff] }
  0x8d   : > { %3731 = vmatprep.mubr.msk.bf16.mxu1 %vm4776_vm3, %v4775_v3  ;;  %3780 = vmatpush3.bf16.msra.mxu1 %v833_v34  ;;  %v1730_v34 = vpack.c.bf16 %v4974_v18, %v4964_v13  ;;  %v548_v35 = vpack.c.bf16 %v533_v12, %v532_v7  ;;  %v534_v13 = vld [vmem:[#allocation2 + $0xc6] sm:$0xff]  ;;  %v5278_v6 = vld [vmem:[#allocation2 + $0xaf] sm:$0xff] }
  0x8e   : > { %3971 = vmatprep.mubr.msk.bf16.mxu0 %vm4776_vm3, %v4775_v3  ;;  %3833 = vmatprep.subr.bf16.mxu1 %v4775_v3  ;;  %v549_v18 = vpack.c.bf16 %v534_v13, %v534_v13  ;;  %v790_v7 = vpack.c.bf16 %v5278_v6, %v5272_v63  ;;  %v1951_v13 = vld [vmem:[#allocation2 + $0x5a] sm:$0xff] }
  0x94   : > { %3732 = vmatmul.mubr.msk.bf16.gmra.mrb[4].mxu1 %vm305_vm2, %v538_v39  ;;  %3972 = vmatmul.mubr.msk.bf16.gmra.mrb[28].mxu0 %vm305_vm2, %v1491_v40  ;;  %v1732_v39 = vpack.c.bf16 %v4998_v29, %v4988_v24  ;;  %v3434_v40 = vld [vmem:[%s6132_s1 + $0xc] sm:$0xf]  ;;  %v1733_v24 = vpack.c.bf16 %v5012_v37, %v5000_v30  ;;  %v1734_v37 = vpack.c.bf16 %v5027_v43, %v5014_v38  ;;  %v5182_v43 = vld [vmem:[#allocation2 + $0x37] sm:$0xff] }
  0x95   : > { %3735 = vmatprep.mubr.msk.bf16.mxu1 %vm4776_vm3, %v4775_v3  ;;  %3975 = vmatprep.mubr.msk.bf16.mxu0 %vm4776_vm3, %v4775_v3  ;;  %v1076_v29 = vsel %vm345_vm1, %v3434_v40, 0  ;;  %v1735_v38 = vpack.c.bf16 %v5039_v49, %v5029_v44  ;;  %v1736_v44 = vpack.c.bf16 %v5051_v56, %v5041_v50  ;;  %v5196_v49 = vld [vmem:[#allocation2 + $0x47] sm:$0xff]  ;;  %v1737_v50 = vpack.c.bf16 %v5063_v0, %v5053_v57  ;;  %v5210_v56 = vld [vmem:[#allocation2 + $0x57] sm:$0xff] }
  0x96   : > { %v784_v54 = vpack.c.bf16 %v5198_v53, %v5196_v49  ;;  %v1738_v57 = vpack.c.bf16 %v5075_v10, %v5065_v1  ;;  %v1724_v0 = vld [vmem:[#allocation2 + $0xd9] sm:$0xff]  ;;  %v1944_v10 = vld [vmem:[#allocation2 + $0x22] sm:$0xff] }
  0x97   : > { %v5232_v1 = vld [vmem:[#allocation2 + $0x77] sm:$0xff]  ;;  %v1970_v15 = vpack.c.bf16 %v1944_v10, %v1943_v9  ;;  %v5300_v40 = vld [vmem:[#allocation2 + $0xc7] sm:$0xff] }
  0x9c   : > { %3736 = vmatmul.mubr.msk.bf16.gmra.mrb[8].mxu1 %vm305_vm2, %v539_v45  ;;  %3976 = vmatmul.mubr.msk.bf16.gmra.mrb[32].mxu0 %vm305_vm2, %v1492_v46  ;;  %v5153_v45 = vld [vmem:[#allocation2 + $0x1f] sm:$0xff]  ;;  %v5168_v46 = vld [vmem:[#allocation2 + $0x27] sm:$0xff] }
  0x9d   : > { %3739 = vmatprep.mubr.msk.bf16.mxu1 %vm4776_vm3, %v4775_v3  ;;  %3979 = vmatprep.mubr.msk.bf16.mxu0 %vm4776_vm3, %v4775_v3  ;;  %v781_v30 = vpack.c.bf16 %v5153_v45, %v5151_v42  ;;  %v782_v48 = vpack.c.bf16 %v5170_v47, %v5168_v46 }
  0xa4   : > { %3740 = vmatmul.mubr.msk.bf16.gmra.mrb[12].mxu1 %vm305_vm2, %v540_v51  ;;  %3980 = vmatmul.mubr.msk.bf16.gmra.mrb[36].mxu0 %vm305_vm2, %v1493_v52  ;;  %v5184_v51 = vld [vmem:[#allocation2 + $0x3f] sm:$0xff] }
  0xa5   : > { %3743 = vmatprep.mubr.msk.bf16.mxu1 %vm4776_vm3, %v4775_v3  ;;  %3983 = vmatprep.mubr.msk.bf16.mxu0 %vm4776_vm3, %v4775_v3  ;;  %v783_v52 = vpack.c.bf16 %v5184_v51, %v5182_v43 }
  0xac   : > { %3744 = vmatmul.mubr.msk.bf16.gmra.mrb[16].mxu1 %vm305_vm2, %v541_v58  ;;  %3984 = vmatmul.mubr.msk.bf16.gmra.mrb[40].mxu0 %vm305_vm2, %v1494_v59  ;;  %v5212_v58 = vld [vmem:[#allocation2 + $0x5f] sm:$0xff] }
  0xad   : > { %3747 = vmatprep.mubr.msk.bf16.mxu1 %vm4776_vm3, %v4775_v3  ;;  %3987 = vmatprep.mubr.msk.bf16.mxu0 %vm4776_vm3, %v4775_v3  ;;  %v785_v59 = vpack.c.bf16 %v5212_v58, %v5210_v56  ;;  %v1028_v10 = vpack.c.bf16 %v5224_v60, %v5212_v58  ;;  %v2186_v58 = vld [vmem:[#allocation2 + $0x1b] sm:$0xff] }
  0xb4   : > { %3748 = vmatmul.mubr.msk.bf16.gmra.mrb[20].mxu1 %vm305_vm2, %v542_v2  ;;  %3988 = vmatmul.mubr.msk.bf16.gmra.mrb[44].mxu0 %vm305_vm2, %v1495_v4  ;;  %v786_v2 = vpack.c.bf16 %v5226_v61, %v5224_v60  ;;  %v1739_v4 = vpack.c.bf16 %v1724_v0, %v1724_v0  ;;  %v1026_v0 = vpack.c.bf16 %v5196_v49, %v5184_v51  ;;  %v1965_v51 = vld [vmem:[#allocation2 + $0xca] sm:$0xff]  ;;  %v1966_v49 = vld [vmem:[#allocation2 + $0xd2] sm:$0xff] }
  0xb5   : > { %3751 = vmatprep.mubr.msk.bf16.mxu1 %vm4776_vm3, %v4775_v3  ;;  %3991 = vmatprep.mubr.msk.bf16.mxu0 %vm4776_vm3, %v4775_v3  ;;  %v2187_v60 = vld [vmem:[#allocation2 + $0x23] sm:$0xff] }
  0xbc   : > { %3752 = vmatmul.mubr.msk.bf16.gmra.mrb[24].mxu1 %vm305_vm2, %v543_v11  ;;  %3992 = vmatmul.mubr.msk.bf16.gmra.mrb[48].mxu0 %vm305_vm2, %v1496_v14  ;;  %v3504_v11 = vld [vmem:[%s6132_s1 + $0x20] sm:$0xf]  ;;  %v787_v14 = vpack.c.bf16 %v5238_v8, %v5232_v1 }
  0xbd   : > { %3755 = vmatprep.mubr.msk.bf16.mxu1 %vm4776_vm3, %v4775_v3  ;;  %3997 = vmatprep.mubr.msk.bf16.mxu0 %vm4776_vm3, %v4775_v3  ;;  %v2266_v16 = vsel %vm345_vm1, %v3504_v11, 0  ;;  %v1981_v11 = vpack.c.bf16 %v1966_v49, %v1965_v51  ;;  %v2914_v49 = vld [vmem:[%s6134_s3 + $0x50] sm:$0xff] }
  0xc4   : > { %3756 = vmatmul.mubr.msk.bf16.gmra.mrb[28].mxu1 %vm305_vm2, %v544_v20  ;;  %3998 = vmatmul.mubr.msk.bf16.vlgmr.msra.gmra.mrb[0].mxu0 %vm305_vm2, %v1727_v21  ;;  %v5252_v20 = vld [vmem:[#allocation2 + $0x8f] sm:$0xff] }
  0xc5   : > { %4050 = vmatpush3.bf16.msra.mxu0 %v2023_v22  ;;  %3759 = vmatprep.mubr.msk.bf16.mxu1 %vm4776_vm3, %v4775_v3  ;;  %v1945_v21 = vld [vmem:[#allocation2 + $0x2a] sm:$0xff]  ;;  %v1946_v22 = vld [vmem:[#allocation2 + $0x32] sm:$0xff]  ;;  %v788_v25 = vpack.c.bf16 %v5252_v20, %v5248_v17 }
  0xc6   : > { %4001 = vmatprep.mubr.msk.bf16.mxu0 %vm4776_vm3, %v4775_v3  ;;  %4103 = vmatprep.subr.bf16.mxu0 %v4775_v3  ;;  %v1971_v26 = vpack.c.bf16 %v1946_v22, %v1945_v21 }
  0xcc   : > { %3760 = vmatmul.mubr.msk.bf16.gmra.mrb[32].mxu1 %vm305_vm2, %v545_v27  ;;  %4002 = vmatmul.mubr.msk.bf16.gmra.mrb[4].mxu0 %vm305_vm2, %v1728_v55  ;;  %v5260_v27 = vld [vmem:[#allocation2 + $0x97] sm:$0xff]  ;;  %v5266_v55 = vld [vmem:[#allocation2 + $0x9f] sm:$0xff] }
  0xcd   : > { %3763 = vmatprep.mubr.msk.bf16.mxu1 %vm4776_vm3, %v4775_v3  ;;  %4005 = vmatprep.mubr.msk.bf16.mxu0 %vm4776_vm3, %v4775_v3  ;;  %v1031_v21 = vpack.c.bf16 %v5260_v27, %v5252_v20  ;;  %v2192_v20 = vld [vmem:[#allocation2 + $0x4b] sm:$0xff] }
  0xd4   : > { %3764 = vmatmul.mubr.msk.bf16.gmra.mrb[36].mxu1 %vm305_vm2, %v546_v31  ;;  %4006 = vmatmul.mubr.msk.bf16.gmra.mrb[8].mxu0 %vm305_vm2, %v1729_v32  ;;  %v789_v31 = vpack.c.bf16 %v5266_v55, %v5260_v27  ;;  %v1972_v32 = vpack.c.bf16 %v1948_v28, %v1947_v62  ;;  %v2193_v27 = vld [vmem:[#allocation2 + $0x53] sm:$0xff] }
  0xd5   : > { %3767 = vmatprep.mubr.msk.bf16.mxu1 %vm4776_vm3, %v4775_v3  ;;  %4009 = vmatprep.mubr.msk.bf16.mxu0 %vm4776_vm3, %v4775_v3  ;;  %v2216_v28 = vpack.c.bf16 %v2193_v27, %v2192_v20 }
  0xdc   : > { %3768 = vmatmul.mubr.msk.bf16.gmra.mrb[40].mxu1 %vm305_vm2, %v547_v33  ;;  %4010 = vmatmul.mubr.msk.bf16.gmra.mrb[12].mxu0 %vm305_vm2, %v1730_v34  ;;  %v1949_v33 = vld [vmem:[#allocation2 + $0x4a] sm:$0xff]  ;;  %v1950_v34 = vld [vmem:[#allocation2 + $0x52] sm:$0xff] }
  0xdd   : > { %3771 = vmatprep.mubr.msk.bf16.mxu1 %vm4776_vm3, %v4775_v3  ;;  %4013 = vmatprep.mubr.msk.bf16.mxu0 %vm4776_vm3, %v4775_v3  ;;  %v1973_v12 = vpack.c.bf16 %v1950_v34, %v1949_v33  ;;  %v2196_v33 = vld [vmem:[#allocation2 + $0x6b] sm:$0xff]  ;;  %v2197_v34 = vld [vmem:[#allocation2 + $0x73] sm:$0xff] }
  0xe4   : > { %3772 = vmatmul.mubr.msk.bf16.gmra.mrb[44].mxu1 %vm305_vm2, %v548_v35  ;;  %4014 = vmatmul.mubr.msk.bf16.gmra.mrb[16].mxu0 %vm305_vm2, %v1731_v36  ;;  %v5284_v35 = vld [vmem:[#allocation2 + $0xb7] sm:$0xff]  ;;  %v5290_v36 = vld [vmem:[#allocation2 + $0xbf] sm:$0xff] }
  0xe5   : > { %3775 = vmatprep.mubr.msk.bf16.mxu1 %vm4776_vm3, %v4775_v3  ;;  %4017 = vmatprep.mubr.msk.bf16.mxu0 %vm4776_vm3, %v4775_v3  ;;  %v1033_v62 = vpack.c.bf16 %v5284_v35, %v5278_v6  ;;  %v1020_v6 = vld [vmem:[#allocation2 + $0xcf] sm:$0xff] }
  0xec   : > { %3776 = vmatmul.mubr.msk.bf16.gmra.mrb[48].mxu1 %vm305_vm2, %v549_v18  ;;  %4018 = vmatmul.mubr.msk.bf16.gmra.mrb[20].mxu0 %vm305_vm2, %v1732_v39  ;;  %v1952_v18 = vld [vmem:[#allocation2 + $0x62] sm:$0xff]  ;;  %v791_v39 = vpack.c.bf16 %v5290_v36, %v5284_v35 }
  0xed   : > { %3781 = vmatprep.mubr.msk.bf16.mxu1 %vm4776_vm3, %v4775_v3  ;;  %4021 = vmatprep.mubr.msk.bf16.mxu0 %vm4776_vm3, %v4775_v3  ;;  %v1974_v19 = vpack.c.bf16 %v1952_v18, %v1951_v13  ;;  %v247_v35 = vld [vmem:[#allocation2 + $0x80] sm:$0xff] }
  0xee   : > { %v2198_v13 = vld [vmem:[#allocation2 + $0x7b] sm:$0xff]  ;;  %v2199_v18 = vld [vmem:[#allocation2 + $0x83] sm:$0xff] }
  0xf4   : > { %3782 = vmatmul.mubr.msk.bf16.vlgmr.msra.gmra.mrb[0].mxu1 %vm305_vm2, %v780_v41  ;;  %4022 = vmatmul.mubr.msk.bf16.gmra.mrb[24].mxu0 %vm305_vm2, %v1733_v24  ;;  %v1953_v41 = vld [vmem:[#allocation2 + $0x6a] sm:$0xff]  ;;  %v1954_v24 = vld [vmem:[#allocation2 + $0x72] sm:$0xff] }
  0xf5   : > { %3785 = vmatprep.mubr.msk.bf16.mxu1 %vm4776_vm3, %v4775_v3  ;;  %3834 = vmatpush3.bf16.msra.mxu1 %v1076_v29  ;;  %v792_v29 = vpack.c.bf16 %v5300_v40, %v5300_v40 }
  0xf6   : > { %4025 = vmatprep.mubr.msk.bf16.mxu0 %vm4776_vm3, %v4775_v3  ;;  %4157 = vmatprep.subr.bf16.mxu1 %v4775_v3 }
  0xfc   : > { %3786 = vmatmul.mubr.msk.bf16.gmra.mrb[4].mxu1 %vm305_vm2, %v781_v30  ;;  %4026 = vmatmul.mubr.msk.bf16.gmra.mrb[28].mxu0 %vm305_vm2, %v1734_v37  ;;  %v1975_v30 = vpack.c.bf16 %v1954_v24, %v1953_v41  ;;  %v1955_v37 = vld [vmem:[#allocation2 + $0x7a] sm:$0xff]  ;;  %v2200_v24 = vld [vmem:[#allocation2 + $0x8b] sm:$0xff] }
  0xfd   : > { %3789 = vmatprep.mubr.msk.bf16.mxu1 %vm4776_vm3, %v4775_v3  ;;  %4029 = vmatprep.mubr.msk.bf16.mxu0 %vm4776_vm3, %v4775_v3  ;;  %v250_v41 = vld [vmem:[#allocation2 + $0x98] sm:$0xff] }
 0x104   : > { %3790 = vmatmul.mubr.msk.bf16.gmra.mrb[8].mxu1 %vm305_vm2, %v782_v48  ;;  %4030 = vmatmul.mubr.msk.bf16.gmra.mrb[32].mxu0 %vm305_vm2, %v1735_v38  ;;  %v1956_v48 = vld [vmem:[#allocation2 + $0x82] sm:$0xff]  ;;  %v1023_v38 = vpack.c.bf16 %v5151_v42, %v5138_v23  ;;  %v1025_v42 = vpack.c.bf16 %v5182_v43, %v5170_v47  ;;  %v1963_v47 = vld [vmem:[#allocation2 + $0xba] sm:$0xff] }
 0x105   : > { %3793 = vmatprep.mubr.msk.bf16.mxu1 %vm4776_vm3, %v4775_v3  ;;  %4033 = vmatprep.mubr.msk.bf16.mxu0 %vm4776_vm3, %v4775_v3  ;;  %v1960_v23 = vld [vmem:[#allocation2 + $0xa2] sm:$0xff] }
 0x106   : > { %v1964_v43 = vld [vmem:[#allocation2 + $0xc2] sm:$0xff] }
 0x107   : > { %v1980_v9 = vpack.c.bf16 %v1964_v43, %v1963_v47  ;;  %v254_v47 = vld [vmem:[#allocation2 + $0xb8] sm:$0xff]  ;;  %v2204_v43 = vld [vmem:[#allocation2 + $0xab] sm:$0xff] }
 0x10c   : > { %3794 = vmatmul.mubr.msk.bf16.gmra.mrb[12].mxu1 %vm305_vm2, %v783_v52  ;;  %4034 = vmatmul.mubr.msk.bf16.gmra.mrb[36].mxu0 %vm305_vm2, %v1736_v44  ;;  %v1976_v52 = vpack.c.bf16 %v1956_v48, %v1955_v37  ;;  %v1957_v44 = vld [vmem:[#allocation2 + $0x8a] sm:$0xff]  ;;  %v4777_v48 = vmov 0  }
 0x10d   : > { %3797 = vmatprep.mubr.msk.bf16.mxu1 %vm4776_vm3, %v4775_v3  ;;  %4037 = vmatprep.mubr.msk.bf16.mxu0 %vm4776_vm3, %v4775_v3 }
 0x10e   : > { %4590 = vset.pattern.permute.xlu0 %v4777_v48  ;;  %4589 = vset.pattern.permute.xlu1 %v4777_v48 }
 0x114   : > { %3798 = vmatmul.mubr.msk.bf16.gmra.mrb[16].mxu1 %vm305_vm2, %v784_v54  ;;  %4038 = vmatmul.mubr.msk.bf16.gmra.mrb[40].mxu0 %vm305_vm2, %v1737_v50  ;;  %v1958_v54 = vld [vmem:[#allocation2 + $0x92] sm:$0xff]  ;;  %v1024_v50 = vpack.c.bf16 %v5168_v46, %v5153_v45  ;;  %v1961_v45 = vld [vmem:[#allocation2 + $0xaa] sm:$0xff] }
 0x115   : > { %3801 = vmatprep.mubr.msk.bf16.mxu1 %vm4776_vm3, %v4775_v3  ;;  %4041 = vmatprep.mubr.msk.bf16.mxu0 %vm4776_vm3, %v4775_v3  ;;  %v1962_v46 = vld [vmem:[#allocation2 + $0xb2] sm:$0xff] }
 0x11c   : > { %3802 = vmatmul.mubr.msk.bf16.gmra.mrb[20].mxu1 %vm305_vm2, %v785_v59  ;;  %4042 = vmatmul.mubr.msk.bf16.gmra.mrb[44].mxu0 %vm305_vm2, %v1738_v57  ;;  %v1977_v59 = vpack.c.bf16 %v1958_v54, %v1957_v44  ;;  %v2908_v44 = vld [vmem:[%s6134_s3 + $0x20] sm:$0xff] }
 0x11d   : > { %3805 = vmatprep.mubr.msk.bf16.mxu1 %vm4776_vm3, %v4775_v3  ;;  %4045 = vmatprep.mubr.msk.bf16.mxu0 %vm4776_vm3, %v4775_v3  ;;  %v251_v54 = vld [vmem:[#allocation2 + $0xa0] sm:$0xff] }
 0x124   : > { %3806 = vmatmul.mubr.msk.bf16.gmra.mrb[24].mxu1 %vm305_vm2, %v786_v2  ;;  %4046 = vmatmul.mubr.msk.bf16.gmra.mrb[48].mxu0 %vm305_vm2, %v1739_v4  ;;  %v1979_v2 = vpack.c.bf16 %v1962_v46, %v1961_v45  ;;  %v1027_v4 = vpack.c.bf16 %v5210_v56, %v5198_v53  ;;  %v1967_v53 = vld [vmem:[#allocation2 + $0xda] sm:$0xff]  ;;  %v1029_v56 = vpack.c.bf16 %v5232_v1, %v5226_v61  ;;  %v2188_v61 = vld [vmem:[#allocation2 + $0x2b] sm:$0xff] }
 0x125   : > { %3809 = vmatprep.mubr.msk.bf16.mxu1 %vm4776_vm3, %v4775_v3  ;;  %4051 = vmatprep.mubr.msk.bf16.mxu0 %vm4776_vm3, %v4775_v3  ;;  %v2189_v1 = vld [vmem:[#allocation2 + $0x33] sm:$0xff]  ;;  %v2912_v46 = vld [vmem:[%s6134_s3 + $0x40] sm:$0xff] }
 0x126   : > { %v2214_v22 = vpack.c.bf16 %v2189_v1, %v2188_v61  ;;  %v2906_v45 = vld [vmem:[%s6134_s3 + $0x10] sm:$0xff] }
 0x127   : > { %v257_v61 = vld [vmem:[#allocation2 + $0xd0] sm:$0xff] }
 0x128   : > { %v2208_v1 = vld [vmem:[#allocation2 + $0xcb] sm:$0xff] }
 0x12c   : > { %3810 = vmatmul.mubr.msk.bf16.gmra.mrb[28].mxu1 %vm305_vm2, %v787_v14  ;;  %4052 = vmatmul.mubr.msk.bf16.vlgmr.msra.gmra.mrb[0].mxu0 %vm305_vm2, %v1970_v15  ;;  %v1982_v14 = vpack.c.bf16 %v1967_v53, %v1967_v53  ;;  %v1030_v15 = vpack.c.bf16 %v5248_v17, %v5238_v8  ;;  %v2190_v8 = vld [vmem:[#allocation2 + $0x3b] sm:$0xff]  ;;  %v2191_v17 = vld [vmem:[#allocation2 + $0x43] sm:$0xff] }
 0x12d   : > { %4104 = vmatpush3.bf16.msra.mxu0 %v2266_v16  ;;  %3813 = vmatprep.mubr.msk.bf16.mxu1 %vm4776_vm3, %v4775_v3  ;;  %v2213_v16 = vpack.c.bf16 %v2187_v60, %v2186_v58  ;;  %v255_v53 = vld [vmem:[#allocation2 + $0xc0] sm:$0xff] }
 0x12e   : > { %4055 = vmatprep.mubr.msk.bf16.mxu0 %vm4776_vm3, %v4775_v3  ;;  %v2207_v58 = vld [vmem:[#allocation2 + $0xc3] sm:$0xff] }
 0x134   : > { %3814 = vmatmul.mubr.msk.bf16.gmra.mrb[32].mxu1 %vm305_vm2, %v788_v25  ;;  %4056 = vmatmul.mubr.msk.bf16.gmra.mrb[4].mxu0 %vm305_vm2, %v1971_v26  ;;  %v1032_v25 = vpack.c.bf16 %v5272_v63, %v5266_v55  ;;  %v2215_v26 = vpack.c.bf16 %v2191_v17, %v2190_v8  ;;  %v2194_v55 = vld [vmem:[#allocation2 + $0x5b] sm:$0xff] }
 0x135   : > { %3817 = vmatprep.mubr.msk.bf16.mxu1 %vm4776_vm3, %v4775_v3  ;;  %4059 = vmatprep.mubr.msk.bf16.mxu0 %vm4776_vm3, %v4775_v3  ;;  %v2210_v17 = vld [vmem:[#allocation2 + $0xdb] sm:$0xff] }
 0x13c   : > { %3818 = vmatmul.mubr.msk.bf16.gmra.mrb[36].mxu1 %vm305_vm2, %v789_v31  ;;  %4060 = vmatmul.mubr.msk.bf16.gmra.mrb[8].mxu0 %vm305_vm2, %v1972_v32  ;;  %v2195_v31 = vld [vmem:[#allocation2 + $0x63] sm:$0xff]  ;;  %v1034_v32 = vpack.c.bf16 %v5300_v40, %v5290_v36  ;;  %v249_v40 = vld [vmem:[#allocation2 + $0x90] sm:$0xff] }
 0x13d   : > { %3821 = vmatprep.mubr.msk.bf16.mxu1 %vm4776_vm3, %v4775_v3  ;;  %4063 = vmatprep.mubr.msk.bf16.mxu0 %vm4776_vm3, %v4775_v3  ;;  %v2217_v63 = vpack.c.bf16 %v2195_v31, %v2194_v55  ;;  %v248_v36 = vld [vmem:[#allocation2 + $0x88] sm:$0xff] }
 0x144   : > { %3822 = vmatmul.mubr.msk.bf16.gmra.mrb[40].mxu1 %vm305_vm2, %v790_v7  ;;  %4064 = vmatmul.mubr.msk.bf16.gmra.mrb[12].mxu0 %vm305_vm2, %v1973_v12  ;;  %v1035_v7 = vpack.c.bf16 %v1020_v6, %v1020_v6  ;;  %v2218_v12 = vpack.c.bf16 %v2197_v34, %v2196_v33 }
 0x145   : > { %3825 = vmatprep.mubr.msk.bf16.mxu1 %vm4776_vm3, %v4775_v3  ;;  %4067 = vmatprep.mubr.msk.bf16.mxu0 %vm4776_vm3, %v4775_v3 }
 0x14c   : > { %3826 = vmatmul.mubr.msk.bf16.gmra.mrb[44].mxu1 %vm305_vm2, %v791_v39  ;;  %4068 = vmatmul.mubr.msk.bf16.gmra.mrb[16].mxu0 %vm305_vm2, %v1974_v19  ;;  %v1248_v39 = vpack.c.bf16 %v248_v36, %v247_v35  ;;  %v2219_v19 = vpack.c.bf16 %v2199_v18, %v2198_v13 }
 0x14d   : > { %3829 = vmatprep.mubr.msk.bf16.mxu1 %vm4776_vm3, %v4775_v3  ;;  %4071 = vmatprep.mubr.msk.bf16.mxu0 %vm4776_vm3, %v4775_v3 }
 0x154   : > { %3830 = vmatmul.mubr.msk.bf16.gmra.mrb[48].mxu1 %vm305_vm2, %v792_v29  ;;  %4072 = vmatmul.mubr.msk.bf16.gmra.mrb[20].mxu0 %vm305_vm2, %v1975_v30  ;;  %v2201_v29 = vld [vmem:[#allocation2 + $0x93] sm:$0xff]  ;;  %v1249_v30 = vpack.c.bf16 %v250_v41, %v249_v40 }
 0x155   : > { %3835 = vmatprep.mubr.msk.bf16.mxu1 %vm4776_vm3, %v4775_v3  ;;  %4075 = vmatprep.mubr.msk.bf16.mxu0 %vm4776_vm3, %v4775_v3  ;;  %v2220_v37 = vpack.c.bf16 %v2201_v29, %v2200_v24 }
 0x15c   : > { %3836 = vmatmul.mubr.msk.bf16.vlgmr.msra.gmra.mrb[0].mxu1 %vm305_vm2, %v1023_v38  ;;  %4076 = vmatmul.mubr.msk.bf16.gmra.mrb[24].mxu0 %vm305_vm2, %v1976_v52  ;;  %v2905_v38 = vld [vmem:[%s6134_s3 + $0x8] sm:$0xff]  ;;  %v2904_v52 = vld [vmem:[%s6134_s3] sm:$0xff] }
 0x15d   : > { %3839 = vmatprep.mubr.msk.bf16.mxu1 %vm4776_vm3, %v4775_v3  ;;  %4158 = vmatpush3.bf16.msra.mxu1 %v4863_v5  ;;  %v1959_v5 = vld [vmem:[#allocation2 + $0x9a] sm:$0xff] }
 0x15e   : > { %4079 = vmatprep.mubr.msk.bf16.mxu0 %vm4776_vm3, %v4775_v3  ;;  %v1978_v57 = vpack.c.bf16 %v1960_v23, %v1959_v5  ;;  %3136 = vperm.xlu0 %4590, %v2905_v38   ;;  %v2203_v5 = vld [vmem:[#allocation2 + $0xa3] sm:$0xff]  ;;  %v5488_v38 = vld [vmem:[%s6133_s2] ss:$0 sm:$0xff] }
 0x15f   : > { %3131 = vperm.xlu1 %4589, %v2904_v52  }
 0x162   : > { %3151 = vperm.xlu0 %4590, %v2908_v44  }
 0x163   : > { %3141 = vperm.xlu1 %4589, %v2906_v45  }
 0x164   : > { %3840 = vmatmul.mubr.msk.bf16.gmra.mrb[4].mxu1 %vm305_vm2, %v1024_v50  ;;  %4080 = vmatmul.mubr.msk.bf16.gmra.mrb[28].mxu0 %vm305_vm2, %v1977_v59  ;;  %v252_v50 = vld [vmem:[#allocation2 + $0xa8] sm:$0xff]  ;;  %v2202_v59 = vld [vmem:[#allocation2 + $0x9b] sm:$0xff] }
 0x165   : > { %3843 = vmatprep.mubr.msk.bf16.mxu1 %vm4776_vm3, %v4775_v3  ;;  %4083 = vmatprep.mubr.msk.bf16.mxu0 %vm4776_vm3, %v4775_v3  ;;  %v1250_v23 = vpack.c.bf16 %v252_v50, %v251_v54 }
 0x16c   : > { %3844 = vmatmul.mubr.msk.bf16.gmra.mrb[8].mxu1 %vm305_vm2, %v1025_v42  ;;  %4084 = vmatmul.mubr.msk.bf16.gmra.mrb[32].mxu0 %vm305_vm2, %v1978_v57  ;;  %v2221_v42 = vpack.c.bf16 %v2203_v5, %v2202_v59  ;;  %v2910_v57 = vld [vmem:[%s6134_s3 + $0x30] sm:$0xff] }
 0x16d   : > { %3847 = vmatprep.mubr.msk.bf16.mxu1 %vm4776_vm3, %v4775_v3  ;;  %4087 = vmatprep.mubr.msk.bf16.mxu0 %vm4776_vm3, %v4775_v3 }
 0x16e   : > { %3161 = vperm.xlu0 %4590, %v2910_v57  }
 0x172   : > { %3171 = vperm.xlu0 %4590, %v2912_v46  }
 0x174   : > { %3848 = vmatmul.mubr.msk.bf16.gmra.mrb[12].mxu1 %vm305_vm2, %v1026_v0  ;;  %4088 = vmatmul.mubr.msk.bf16.gmra.mrb[36].mxu0 %vm305_vm2, %v1979_v2  ;;  %v2907_v0 = vld [vmem:[%s6134_s3 + $0x18] sm:$0xff]  ;;  %v253_v2 = vld [vmem:[#allocation2 + $0xb0] sm:$0xff] }
 0x175   : > { %3851 = vmatprep.mubr.msk.bf16.mxu1 %vm4776_vm3, %v4775_v3  ;;  %4091 = vmatprep.mubr.msk.bf16.mxu0 %vm4776_vm3, %v4775_v3 }
 0x176   : > { %3146 = vperm.xlu1 %4589, %v2907_v0   ;;  %3181 = vperm.xlu0 %4590, %v2914_v49  }
 0x17c   : > { %3852 = vmatmul.mubr.msk.bf16.gmra.mrb[16].mxu1 %vm305_vm2, %v1027_v4  ;;  %4092 = vmatmul.mubr.msk.bf16.gmra.mrb[40].mxu0 %vm305_vm2, %v1980_v9  ;;  %v2205_v4 = vld [vmem:[#allocation2 + $0xb3] sm:$0xff]  ;;  %v1251_v9 = vpack.c.bf16 %v254_v47, %v253_v2 }
 0x17d   : > { %3855 = vmatprep.mubr.msk.bf16.mxu1 %vm4776_vm3, %v4775_v3  ;;  %4095 = vmatprep.mubr.msk.bf16.mxu0 %vm4776_vm3, %v4775_v3  ;;  %v2222_v51 = vpack.c.bf16 %v2205_v4, %v2204_v43 }
 0x184   : > { %3856 = vmatmul.mubr.msk.bf16.gmra.mrb[20].mxu1 %vm305_vm2, %v1028_v10  ;;  %4096 = vmatmul.mubr.msk.bf16.gmra.mrb[44].mxu0 %vm305_vm2, %v1981_v11  ;;  %v2909_v10 = vld [vmem:[%s6134_s3 + $0x28] sm:$0xff]  ;;  %v2911_v11 = vld [vmem:[%s6134_s3 + $0x38] sm:$0xff] }
 0x185   : > { %3859 = vmatprep.mubr.msk.bf16.mxu1 %vm4776_vm3, %v4775_v3  ;;  %4099 = vmatprep.mubr.msk.bf16.mxu0 %vm4776_vm3, %v4775_v3 }
 0x186   : > { %3156 = vperm.xlu1 %4589, %v2909_v10  }
 0x18a   : > { %3166 = vperm.xlu1 %4589, %v2911_v11  }
 0x18c   : > { %3860 = vmatmul.mubr.msk.bf16.gmra.mrb[24].mxu1 %vm305_vm2, %v1029_v56  ;;  %4100 = vmatmul.mubr.msk.bf16.gmra.mrb[48].mxu0 %vm305_vm2, %v1982_v14  ;;  %v256_v56 = vld [vmem:[#allocation2 + $0xc8] sm:$0xff]  ;;  %v2206_v14 = vld [vmem:[#allocation2 + $0xbb] sm:$0xff] }
 0x18d   : > { %3863 = vmatprep.mubr.msk.bf16.mxu1 %vm4776_vm3, %v4775_v3  ;;  %4105 = vmatprep.mubr.msk.bf16.mxu0 %vm4776_vm3, %v4775_v3  ;;  %v1252_v60 = vpack.c.bf16 %v256_v56, %v255_v53 }
 0x194   : > { %3864 = vmatmul.mubr.msk.bf16.gmra.mrb[28].mxu1 %vm305_vm2, %v1030_v15  ;;  %4106 = vmatmul.mubr.msk.bf16.vlgmr.msra.gmra.mrb[0].mxu0 %vm305_vm2, %v2213_v16  ;;  %v2223_v15 = vpack.c.bf16 %v2207_v58, %v2206_v14  ;;  %v2913_v16 = vld [vmem:[%s6134_s3 + $0x48] sm:$0xff] }
 0x195   : > { %3867 = vmatprep.mubr.msk.bf16.mxu1 %vm4776_vm3, %v4775_v3  ;;  %4109 = vmatprep.mubr.msk.bf16.mxu0 %vm4776_vm3, %v4775_v3 }
 0x196   : > { %3176 = vperm.xlu1 %4589, %v2913_v16  }
 0x19c   : > { %3868 = vmatmul.mubr.msk.bf16.gmra.mrb[32].mxu1 %vm305_vm2, %v1031_v21  ;;  %4110 = vmatmul.mubr.msk.bf16.gmra.mrb[4].mxu0 %vm305_vm2, %v2214_v22  ;;  %v2209_v21 = vld [vmem:[#allocation2 + $0xd3] sm:$0xff]  ;;  %v1253_v22 = vpack.c.bf16 %v257_v61, %v257_v61 }
 0x19d   : > { %3871 = vmatprep.mubr.msk.bf16.mxu1 %vm4776_vm3, %v4775_v3  ;;  %4113 = vmatprep.mubr.msk.bf16.mxu0 %vm4776_vm3, %v4775_v3  ;;  %v2224_v8 = vpack.c.bf16 %v2209_v21, %v2208_v1 }
 0x1a4   : > { %3872 = vmatmul.mubr.msk.bf16.gmra.mrb[36].mxu1 %vm305_vm2, %v1032_v25  ;;  %4114 = vmatmul.mubr.msk.bf16.gmra.mrb[8].mxu0 %vm305_vm2, %v2215_v26  ;;  %v2225_v25 = vpack.c.bf16 %v2210_v17, %v2210_v17 }
 0x1a5   : > { %3875 = vmatprep.mubr.msk.bf16.mxu1 %vm4776_vm3, %v4775_v3  ;;  %4117 = vmatprep.mubr.msk.bf16.mxu0 %vm4776_vm3, %v4775_v3 }
 0x1ac   : > { %3876 = vmatmul.mubr.msk.bf16.gmra.mrb[40].mxu1 %vm305_vm2, %v1033_v62  ;;  %4118 = vmatmul.mubr.msk.bf16.gmra.mrb[12].mxu0 %vm305_vm2, %v2216_v28 }
 0x1ad   : > { %3879 = vmatprep.mubr.msk.bf16.mxu1 %vm4776_vm3, %v4775_v3  ;;  %4121 = vmatprep.mubr.msk.bf16.mxu0 %vm4776_vm3, %v4775_v3 }
 0x1b4   : > { %3880 = vmatmul.mubr.msk.bf16.gmra.mrb[44].mxu1 %vm305_vm2, %v1034_v32  ;;  %4122 = vmatmul.mubr.msk.bf16.gmra.mrb[16].mxu0 %vm305_vm2, %v2217_v63 }
 0x1b5   : > { %3883 = vmatprep.mubr.msk.bf16.mxu1 %vm4776_vm3, %v4775_v3  ;;  %4125 = vmatprep.mubr.msk.bf16.mxu0 %vm4776_vm3, %v4775_v3 }
 0x1bc   : > { %3884 = vmatmul.mubr.msk.bf16.gmra.mrb[48].mxu1 %vm305_vm2, %v1035_v7  ;;  %4126 = vmatmul.mubr.msk.bf16.gmra.mrb[20].mxu0 %vm305_vm2, %v2218_v12 }
 0x1bd   : > { %3917 = vmatprep.mubr.msk.bf16.mxu1 %vm4776_vm3, %v4775_v3  ;;  %4129 = vmatprep.mubr.msk.bf16.mxu0 %vm4776_vm3, %v4775_v3 }
 0x1c4   : > { %3918 = vmatmul.mubr.msk.bf16.vlgmr.msra.gmra.mrb[28].mxu1 %vm305_vm2, %v1248_v39  ;;  %4130 = vmatmul.mubr.msk.bf16.gmra.mrb[24].mxu0 %vm305_vm2, %v2219_v19 }
 0x1c5   : > { %3921 = vmatprep.mubr.msk.bf16.mxu1 %vm4776_vm3, %v4775_v3  ;;  %4133 = vmatprep.mubr.msk.bf16.mxu0 %vm4776_vm3, %v4775_v3 }
 0x1cc   : > { %3922 = vmatmul.mubr.msk.bf16.gmra.mrb[32].mxu1 %vm305_vm2, %v1249_v30  ;;  %4134 = vmatmul.mubr.msk.bf16.gmra.mrb[28].mxu0 %vm305_vm2, %v2220_v37 }
 0x1cd   : > { %3925 = vmatprep.mubr.msk.bf16.mxu1 %vm4776_vm3, %v4775_v3  ;;  %4137 = vmatprep.mubr.msk.bf16.mxu0 %vm4776_vm3, %v4775_v3 }
 0x1d4   : > { %3926 = vmatmul.mubr.msk.bf16.gmra.mrb[36].mxu1 %vm305_vm2, %v1250_v23  ;;  %4138 = vmatmul.mubr.msk.bf16.gmra.mrb[32].mxu0 %vm305_vm2, %v2221_v42 }
 0x1d5   : > { %3929 = vmatprep.mubr.msk.bf16.mxu1 %vm4776_vm3, %v4775_v3  ;;  %4141 = vmatprep.mubr.msk.bf16.mxu0 %vm4776_vm3, %v4775_v3 }
 0x1dc   : > { %3930 = vmatmul.mubr.msk.bf16.gmra.mrb[40].mxu1 %vm305_vm2, %v1251_v9  ;;  %4142 = vmatmul.mubr.msk.bf16.gmra.mrb[36].mxu0 %vm305_vm2, %v2222_v51 }
 0x1dd   : > { %3933 = vmatprep.mubr.msk.bf16.mxu1 %vm4776_vm3, %v4775_v3  ;;  %4145 = vmatprep.mubr.msk.bf16.mxu0 %vm4776_vm3, %v4775_v3 }
 0x1e4   : > { %3934 = vmatmul.mubr.msk.bf16.gmra.mrb[44].mxu1 %vm305_vm2, %v1252_v60  ;;  %4146 = vmatmul.mubr.msk.bf16.gmra.mrb[40].mxu0 %vm305_vm2, %v2223_v15 }
 0x1e5   : > { %3937 = vmatprep.mubr.msk.bf16.mxu1 %vm4776_vm3, %v4775_v3  ;;  %4149 = vmatprep.mubr.msk.bf16.mxu0 %vm4776_vm3, %v4775_v3 }
 0x1ec   : > { %3938 = vmatmul.mubr.msk.bf16.gmra.mrb[48].mxu1 %vm305_vm2, %v1253_v22  ;;  %4150 = vmatmul.mubr.msk.bf16.gmra.mrb[44].mxu0 %vm305_vm2, %v2224_v8 }
 0x1ed   : > { %4153 = vmatprep.mubr.msk.bf16.mxu0 %vm4776_vm3, %v4775_v3 }
 0x1f4   : > { %4154 = vmatmul.mubr.msk.bf16.gmra.mrb[48].mxu0 %vm305_vm2, %v2225_v25 }
 0x22f   : > { %v1112_v26 = vpop.f32.mrb[0].mxu1 }
 0x230   : > { %v3837_v20 = vpop.f32.mrb[1].mxu1  ;;  %v4159_v52 = vadd.f32 %v5488_v38, %v1112_v26 }
 0x231   : > { %v1115_v27 = vpop.f32.mrb[2].mxu1 }
 0x232   : > { %v3838_v62 = vpop.f32.mrb[3].mxu1  ;;  %v4161_v54 = vadd.f32 %v5488_v38, %v1115_v27 }
 0x237   : > { %v1120_v28 = vpop.f32.mrb[4].mxu1 }
 0x238   : > { %v3841_v55 = vpop.f32.mrb[5].mxu1  ;;  %v4163_v57 = vadd.f32 %v5488_v38, %v1120_v28 }
 0x239   : > { %v1123_v31 = vpop.f32.mrb[6].mxu1 }
 0x23a   : > { %v3842_v32 = vpop.f32.mrb[7].mxu1  ;;  %v4165_v46 = vadd.f32 %v5488_v38, %v1123_v31 }
 0x23f   : > { %v1128_v63 = vpop.f32.mrb[8].mxu1 }
 0x240   : > { %v3845_v6 = vpop.f32.mrb[9].mxu1  ;;  %v4167_v9 = vadd.f32 %v5488_v38, %v1128_v63 }
 0x241   : > { %v1131_v33 = vpop.f32.mrb[10].mxu1 }
 0x242   : > { %v3846_v34 = vpop.f32.mrb[11].mxu1  ;;  %v4169_v49 = vadd.f32 %v5488_v38, %v1131_v33 }
 0x247   : > { %v1136_v7 = vpop.f32.mrb[12].mxu1 }
 0x248   : > { %v3849_v12 = vpop.f32.mrb[13].mxu1  ;;  %v4171_v58 = vadd.f32 %v5488_v38, %v1136_v7 }
 0x249   : > { %v1139_v35 = vpop.f32.mrb[14].mxu1 }
 0x24a   : > { %v3850_v3 = vpop.f32.mrb[15].mxu1  ;;  %v4173_v15 = vadd.f32 %v5488_v38, %v1139_v35 }
 0x24f   : > { %v1144_v36 = vpop.f32.mrb[16].mxu1 }
 0x250   : > { %v3853_v13 = vpop.f32.mrb[17].mxu1  ;;  %v4175_v8 = vadd.f32 %v5488_v38, %v1144_v36 }
 0x251   : > { %v1147_v18 = vpop.f32.mrb[18].mxu1 }
 0x252   : > { %v3854_v39 = vpop.f32.mrb[19].mxu1  ;;  %v4177_v25 = vadd.f32 %v5488_v38, %v1147_v18 }
 0x257   : > { %v1152_v19 = vpop.f32.mrb[20].mxu1 }
 0x258   : > { %v3857_v40 = vpop.f32.mrb[21].mxu1  ;;  %v4179_v55 = vadd.f32 %v5488_v38, %v1152_v19 }
 0x259   : > { %v1155_v41 = vpop.f32.mrb[22].mxu1 }
 0x25a   : > { %v3858_v24 = vpop.f32.mrb[23].mxu1  ;;  %v4181_v32 = vadd.f32 %v5488_v38, %v1155_v41 }
 0x25f   : > { %v5481_v29 = vpop.f32.mrb[24].mxu1 }
 0x260   : > { %v3861_v30 = vpop.f32.mrb[25].mxu1  ;;  %v4183_v12 = vadd.f32 %v5488_v38, %v5481_v29 }
 0x261   : > { %v5483_v37 = vpop.f32.mrb[26].mxu1 }
 0x262   : > { %v3862_v48 = vpop.f32.mrb[27].mxu1  ;;  %v4185_v36 = vadd.f32 %v5488_v38, %v5483_v37 }
 0x267   : > { %v2302_v44 = vpop.f32.mrb[0].mxu0 }
 0x268   : > { %v5492_v50 = vadd.f32 %v4159_v52, %v2302_v44  ;;  %v4107_v59 = vpop.f32.mrb[1].mxu0 }
 0x269   : > { %v2305_v5 = vpop.f32.mrb[2].mxu0 }
 0x26a   : > { %v5494_v23 = vadd.f32 %v4161_v54, %v2305_v5  ;;  %2654 = vrot.lane.b32.xlu0 %v5492_v50, %s4778_s19  ;;  %v4108_v42 = vpop.f32.mrb[3].mxu0 }
 0x26e   : > { %2656 = vrot.lane.b32.xlu0 %v5494_v23, %s4778_s19 }
 0x26f   : > { %v2310_v45 = vpop.f32.mrb[4].mxu0 }
 0x270   : > { %v5502_v0 = vadd.f32 %v4163_v57, %v2310_v45  ;;  %v4111_v2 = vpop.f32.mrb[5].mxu0 }
 0x271   : > { %v2313_v47 = vpop.f32.mrb[6].mxu0 }
 0x272   : > { %v5504_v43 = vadd.f32 %v4165_v46, %v2313_v47  ;;  %2658 = vrot.lane.b32.xlu1 %v5502_v0, %s4778_s19  ;;  %v4112_v4 = vpop.f32.mrb[7].mxu0 }
 0x276   : > { %2660 = vrot.lane.b32.xlu1 %v5504_v43, %s4778_s19 }
 0x277   : > { %v2318_v51 = vpop.f32.mrb[8].mxu0 }
 0x278   : > { %v5512_v10 = vadd.f32 %v4167_v9, %v2318_v51  ;;  %v4115_v11 = vpop.f32.mrb[9].mxu0 }
 0x279   : > { %v2321_v53 = vpop.f32.mrb[10].mxu0 }
 0x27a   : > { %v5514_v56 = vadd.f32 %v4169_v49, %v2321_v53  ;;  %2662 = vrot.lane.b32.xlu0 %v5512_v10, %s4778_s19  ;;  %v4116_v14 = vpop.f32.mrb[11].mxu0 }
 0x27c   : > { %2664 = vrot.lane.b32.xlu1 %v5514_v56, %s4778_s19 }
 0x27f   : > { %v2326_v60 = vpop.f32.mrb[12].mxu0 }
 0x280   : > { %v5522_v16 = vadd.f32 %v4171_v58, %v2326_v60  ;;  %v4119_v61 = vpop.f32.mrb[13].mxu0 }
 0x281   : > { %v2329_v1 = vpop.f32.mrb[14].mxu0 }
 0x282   : > { %v5524_v21 = vadd.f32 %v4173_v15, %v2329_v1  ;;  %2666 = vrot.lane.b32.xlu0 %v5522_v16, %s4778_s19  ;;  %v4120_v22 = vpop.f32.mrb[15].mxu0 }
 0x284   : > { %2668 = vrot.lane.b32.xlu1 %v5524_v21, %s4778_s19 }
 0x287   : > { %v2334_v17 = vpop.f32.mrb[16].mxu0 }
 0x288   : > { %v5532_v26 = vadd.f32 %v4175_v8, %v2334_v17  ;;  %v4123_v20 = vpop.f32.mrb[17].mxu0 }
 0x289   : > { %v2337_v27 = vpop.f32.mrb[18].mxu0 }
 0x28a   : > { %v5534_v62 = vadd.f32 %v4177_v25, %v2337_v27  ;;  %2670 = vrot.lane.b32.xlu0 %v5532_v26, %s4778_s19  ;;  %v4124_v28 = vpop.f32.mrb[19].mxu0 }
 0x28c   : > { %2672 = vrot.lane.b32.xlu1 %v5534_v62, %s4778_s19 }
 0x28f   : > { %v2342_v31 = vpop.f32.mrb[20].mxu0 }
 0x290   : > { %v5542_v63 = vadd.f32 %v4179_v55, %v2342_v31  ;;  %v4127_v6 = vpop.f32.mrb[21].mxu0 }
 0x291   : > { %v2345_v33 = vpop.f32.mrb[22].mxu0  ;;  %v5593_v6 = vld [vmem:[%s4817_s21] sm:$0xff] }
 0x292   : > { %v5544_v34 = vadd.f32 %v4181_v32, %v2345_v33  ;;  %2674 = vrot.lane.b32.xlu0 %v5542_v63, %s4778_s19  ;;  %v4128_v7 = vpop.f32.mrb[23].mxu0 }
 0x294   : > { %2676 = vrot.lane.b32.xlu1 %v5544_v34, %s4778_s19 }
 0x297   : > { %v1386_v35 = vpop.f32.mrb[28].mxu1  ;;  %v2350_v3 = vpop.f32.mrb[24].mxu0 }
 0x298   : > { %v5554_v13 = vadd.f32 %v4183_v12, %v2350_v3  ;;  %v3919_v18 = vpop.f32.mrb[29].mxu1  ;;  %v4131_v39 = vpop.f32.mrb[25].mxu0  ;;  %v4187_v29 = vadd.f32 %v5488_v38, %v1386_v35 }
 0x299   : > { %v1389_v19 = vpop.f32.mrb[30].mxu1  ;;  %v2353_v40 = vpop.f32.mrb[26].mxu0  ;;  %v2454_v39 = vadd.f32 %v5492_v50, %v5593_v6  ;;  %v5613_v50 = vld [vmem:[%s4817_s21 + $0x10] sm:$0xff] }
 0x29a   : > { %v5556_v41 = vadd.f32 %v4185_v36, %v2353_v40  ;;  %v3920_v24 = vpop.f32.mrb[31].mxu1  ;;  %2678 = vrot.lane.b32.xlu0 %v5554_v13, %s4778_s19  ;;  %v4132_v30 = vpop.f32.mrb[27].mxu0  ;;  %v4189_v52 = vadd.f32 %v5488_v38, %v1389_v19 }
 0x29b   : > { %v5602_v24 = vld [vmem:[%s4817_s21 + $0x8] sm:$0xff] }
 0x29c   : > { %2680 = vrot.lane.b32.xlu1 %v5556_v41, %s4778_s19 }
 0x29f   : > { %v1394_v48 = vpop.f32.mrb[32].mxu1  ;;  %v2358_v37 = vpop.f32.mrb[28].mxu0 }
 0x2a0   : > { %v5564_v44 = vadd.f32 %v4187_v29, %v2358_v37  ;;  %v3923_v54 = vpop.f32.mrb[33].mxu1  ;;  %v4135_v59 = vpop.f32.mrb[29].mxu0  ;;  %v4191_v2 = vadd.f32 %v5488_v38, %v1394_v48  ;;  %v3518_v37 = vmul.f32 -1.442695, %v2454_v39 }
 0x2a1   : > { %v1397_v5 = vpop.f32.mrb[34].mxu1  ;;  %v2361_v42 = vpop.f32.mrb[30].mxu0 }
 0x2a2   : > { %v5566_v57 = vadd.f32 %v4189_v52, %v2361_v42  ;;  %v3924_v45 = vpop.f32.mrb[35].mxu1  ;;  %2682 = vrot.lane.b32.xlu0 %v5564_v44, %s4778_s19  ;;  %v4136_v46 = vpop.f32.mrb[31].mxu0  ;;  %v4193_v9 = vadd.f32 %v5488_v38, %v1397_v5  ;;  %v2455_v52 = vadd.f32 %v5494_v23, %v5602_v24  ;;  %4591 = vpow2.f32 %v3518_v37 }
 0x2a3   : > { %v5616_v59 = vpop.permute.xlu0 %3136  ;;  %v5618_v5 = vpop.permute.xlu1 %3131 }
 0x2a4   : > { %2684 = vrot.lane.b32.xlu1 %v5566_v57, %s4778_s19  ;;  %v3519_v23 = vmul.f32 -1.442695, %v2455_v52  ;;  %v5675_v52 = vld [vmem:[%s4817_s21 + $0x38] sm:$0xff] }
 0x2a6   : > { %4593 = vpow2.f32 %v3519_v23 }
 0x2a7   : > { %v1402_v47 = vpop.f32.mrb[36].mxu1  ;;  %v2366_v4 = vpop.f32.mrb[32].mxu0 }
 0x2a8   : > { %v5574_v51 = vadd.f32 %v4191_v2, %v2366_v4  ;;  %v3927_v49 = vpop.f32.mrb[37].mxu1  ;;  %v4139_v11 = vpop.f32.mrb[33].mxu0  ;;  %v4195_v61 = vadd.f32 %v5488_v38, %v1402_v47 }
 0x2a9   : > { %v1405_v53 = vpop.f32.mrb[38].mxu1  ;;  %v2369_v14 = vpop.f32.mrb[34].mxu0 }
 0x2aa   : > { %v5576_v58 = vadd.f32 %v4193_v9, %v2369_v14  ;;  %v3928_v60 = vpop.f32.mrb[39].mxu1  ;;  %2686 = vrot.lane.b32.xlu0 %v5574_v51, %s4778_s19  ;;  %v4140_v15 = vpop.f32.mrb[35].mxu0  ;;  %v4197_v8 = vadd.f32 %v5488_v38, %v1405_v53  ;;  %v2456_v9 = vadd.f32 %v5502_v0, %v5613_v50  ;;  %v5626_v53 = vld [vmem:[%s4817_s21 + $0x18] sm:$0xff] }
 0x2ab   : > { %v2457_v0 = vadd.f32 %v5504_v43, %v5626_v53 }
 0x2ac   : > { %2688 = vrot.lane.b32.xlu1 %v5576_v58, %s4778_s19 }
 0x2ad   : > { %v3521_v43 = vmul.f32 -1.442695, %v2457_v0 }
 0x2af   : > { %v1410_v1 = vpop.f32.mrb[40].mxu1  ;;  %v2374_v22 = vpop.f32.mrb[36].mxu0 }
 0x2b0   : > { %v5584_v17 = vadd.f32 %v4195_v61, %v2374_v22  ;;  %v3931_v25 = vpop.f32.mrb[41].mxu1  ;;  %v4143_v20 = vpop.f32.mrb[37].mxu0  ;;  %v4199_v33 = vadd.f32 %v5488_v38, %v1410_v1  ;;  %v3520_v1 = vmul.f32 -1.442695, %v2456_v9  ;;  %v2915_v22 = vld [vmem:[%s6134_s3 + $0x58] sm:$0xff] }
 0x2b1   : > { %v1413_v27 = vpop.f32.mrb[42].mxu1  ;;  %v2377_v28 = vpop.f32.mrb[38].mxu0 }
 0x2b2   : > { %v5586_v55 = vadd.f32 %v4197_v8, %v2377_v28  ;;  %v3932_v31 = vpop.f32.mrb[43].mxu1  ;;  %2690 = vrot.lane.b32.xlu0 %v5584_v17, %s4778_s19  ;;  %v4144_v32 = vpop.f32.mrb[39].mxu0  ;;  %v4201_v35 = vadd.f32 %v5488_v38, %v1413_v27  ;;  %v5642_v8 = vld [vmem:[%s4817_s21 + $0x20] sm:$0xff]  ;;  %v5648_v28 = vld [vmem:[%s4817_s21 + $0x28] sm:$0xff]  ;;  %4595 = vpow2.f32 %v3520_v1 }
 0x2b3   : > { %v5634_v61 = vpop.permute.xlu0 %3151  ;;  %v5645_v20 = vpop.permute.xlu1 %3141  ;;  %4597 = vpow2.f32 %v3521_v43 }
 0x2b4   : > { %2692 = vrot.lane.b32.xlu1 %v5586_v55, %s4778_s19 }
 0x2b7   : > { %v1418_v7 = vpop.f32.mrb[44].mxu1  ;;  %v2382_v12 = vpop.f32.mrb[40].mxu0 }
 0x2b8   : > { %v5597_v3 = vadd.f32 %v4199_v33, %v2382_v12  ;;  %v3935_v36 = vpop.f32.mrb[45].mxu1  ;;  %v4147_v18 = vpop.f32.mrb[41].mxu0  ;;  %v4203_v54 = vadd.f32 %v5488_v38, %v1418_v7  ;;  %v2458_v33 = vadd.f32 %v5512_v10, %v5642_v8  ;;  %v2916_v10 = vld [vmem:[%s6134_s3 + $0x60] sm:$0xff] }
 0x2b9   : > { %v1421_v19 = vpop.f32.mrb[46].mxu1  ;;  %v2385_v40 = vpop.f32.mrb[42].mxu0  ;;  %v2459_v18 = vadd.f32 %v5514_v56, %v5648_v28  ;;  %v2918_v56 = vld [vmem:[%s6134_s3 + $0x70] sm:$0xff] }
 0x2ba   : > { %v5604_v30 = vadd.f32 %v4201_v35, %v2385_v40  ;;  %v3936_v29 = vpop.f32.mrb[47].mxu1  ;;  %2694 = vrot.lane.b32.xlu0 %v5597_v3, %s4778_s19  ;;  %v4148_v48 = vpop.f32.mrb[43].mxu0  ;;  %v4205_v46 = vadd.f32 %v5488_v38, %v1421_v19  ;;  %v3522_v19 = vmul.f32 -1.442695, %v2458_v33 }
 0x2bb   : > { %v5659_v35 = vpop.permute.xlu0 %3161  ;;  %v4592_v36 = vpop.eup %4591  ;;  %v5669_v29 = vld [vmem:[%s4817_s21 + $0x30] sm:$0xff]  ;;  %v3523_v37 = vmul.f32 -1.442695, %v2459_v18 }
 0x2bc   : > { %2696 = vrot.lane.b32.xlu1 %v5604_v30, %s4778_s19  ;;  %v5666_v39 = vpop.permute.xlu1 %3146  ;;  %v2554_v40 = vadd.f32 1.0, %v4592_v36  ;;  %v4594_v48 = vpop.eup %4593  ;;  %4599 = vpow2.f32 %v3522_v19 }
 0x2be   : > { %4601 = vrcp.f32 %v2554_v40 }
 0x2bf   : > { %v1426_v42 = vpop.f32.mrb[48].mxu1  ;;  %v2390_v45 = vpop.f32.mrb[44].mxu0  ;;  %4603 = vpow2.f32 %v3523_v37 }
 0x2c0   : > { %v5621_v2 = vadd.f32 %v4203_v54, %v2390_v45  ;;  %v3939_v47 = vpop.f32.mrb[49].mxu1  ;;  %v4151_v4 = vpop.f32.mrb[45].mxu0  ;;  %v4207_v25 = vadd.f32 %v5488_v38, %v1426_v42  ;;  %v2917_v38 = vld [vmem:[%s6134_s3 + $0x68] sm:$0xff]  ;;  %v2460_v42 = vadd.f32 %v5522_v16, %v5669_v29  ;;  %v2555_v45 = vadd.f32 1.0, %v4594_v48 }
 0x2c1   : > { %v1429_v49 = vpop.f32.mrb[50].mxu1  ;;  %v2393_v11 = vpop.f32.mrb[46].mxu0  ;;  %v2461_v4 = vadd.f32 %v5524_v21, %v5675_v52  ;;  %v5691_v16 = vld [vmem:[%s4817_s21 + $0x48] sm:$0xff] }
 0x2c2   : > { %v5628_v14 = vadd.f32 %v4205_v46, %v2393_v11  ;;  %v3940_v60 = vpop.f32.mrb[51].mxu1  ;;  %2698 = vrot.lane.b32.xlu0 %v5621_v2, %s4778_s19  ;;  %v4152_v15 = vpop.f32.mrb[47].mxu0  ;;  %v3524_v23 = vmul.f32 -1.442695, %v2460_v42  ;;  %4605 = vrcp.f32 %v2555_v45  ;;  %v5686_v49 = vld [vmem:[%s4817_s21 + $0x40] sm:$0xff] }
 0x2c3   : > { %v5677_v54 = vpop.permute.xlu0 %3171  ;;  %v5681_v46 = vpop.permute.xlu1 %3156  ;;  %v3525_v15 = vmul.f32 -1.442695, %v2461_v4  ;;  %v2462_v0 = vadd.f32 %v5532_v26, %v5686_v49 }
 0x2c4   : > { %2700 = vrot.lane.b32.xlu1 %v5628_v14, %s4778_s19  ;;  %v4596_v47 = vpop.eup %4595  ;;  %4607 = vpow2.f32 %v3524_v23 }
 0x2c5   : > { %v2556_v9 = vadd.f32 1.0, %v4596_v47  ;;  %v4598_v60 = vpop.eup %4597  ;;  %v3526_v33 = vmul.f32 -1.442695, %v2462_v0 }
 0x2c6   : > { %v2557_v21 = vadd.f32 1.0, %v4598_v60 }
 0x2c7   : > { %v2398_v27 = vpop.f32.mrb[48].mxu0  ;;  %v5688_v11 = vpop.permute.xlu0 %3181  ;;  %4609 = vrcp.f32 %v2556_v9  ;;  %v5723_v9 = vld [vmem:[%s4817_s21 + $0x60] sm:$0xff] }
 0x2c8   : > { %v5650_v31 = vadd.f32 %v4207_v25, %v2398_v27  ;;  %3186 = vperm.xlu1 %4589, %v2915_v22   ;;  %v4155_v32 = vpop.f32.mrb[49].mxu0  ;;  %6158 = vst [vmem:[#allocation3_spill] sm:$0xff] %v5688_v11  ;;  %v5693_v1 = vpop.permute.xlu1 %3166  ;;  %4611 = vpow2.f32 %v3525_v15  ;;  %v2463_v25 = vadd.f32 %v5534_v62, %v5691_v16  ;;  %v5820_v11 = vld [vmem:[%s4817_s21 + $0xb8] sm:$0xff] }
 0x2c9   : > { %v2401_v7 = vpop.f32.mrb[50].mxu0  ;;  %v4600_v22 = vpop.eup %4599  ;;  %4613 = vrcp.f32 %v2557_v21 }
 0x2ca   : > { %2702 = vrot.lane.b32.xlu0 %v5650_v31, %s4778_s19  ;;  %v4156_v12 = vpop.f32.mrb[51].mxu0  ;;  %v5699_v27 = vpop.eup %4601  ;;  %v3527_v36 = vmul.f32 -1.442695, %v2463_v25  ;;  %4615 = vpow2.f32 %v3526_v33 }
 0x2cb   : > { %v4604_v43 = vpop.eup %4603  ;;  %v5703_v12 = vld [vmem:[%s4817_s21 + $0x50] sm:$0xff] }
 0x2cc   : > { %3196 = vperm.xlu1 %4589, %v2917_v38   ;;  %v2558_v38 = vadd.f32 1.0, %v4600_v22  ;;  %v5705_v26 = vpop.permute.xlu1 %3176  ;;  %v5708_v18 = vpop.eup %4605  ;;  %v2559_v62 = vadd.f32 1.0, %v4604_v43  ;;  %v2464_v40 = vadd.f32 %v5542_v63, %v5703_v12  ;;  %v2466_v22 = vadd.f32 %v5554_v13, %v5723_v9 }
 0x2ce   : > { %3191 = vperm.xlu0 %4590, %v2916_v10   ;;  %v5711_v10 = vld [vmem:[%s4817_s21 + $0x58] sm:$0xff]  ;;  %4617 = vrcp.f32 %v2558_v38  ;;  %v4608_v37 = vpop.eup %4607  ;;  %v3528_v4 = vmul.f32 -1.442695, %v2464_v40  ;;  %v5743_v40 = vld [vmem:[%s4817_s21 + $0x70] sm:$0xff] }
 0x2cf   : > { %4619 = vpow2.f32 %v3527_v36  ;;  %v2560_v63 = vadd.f32 1.0, %v4608_v37  ;;  %v3530_v36 = vmul.f32 -1.442695, %v2466_v22 }
 0x2d0   : > { %4621 = vrcp.f32 %v2559_v62 }
 0x2d1   : > { %v5719_v42 = vpop.eup %4609  ;;  %4623 = vpow2.f32 %v3528_v4 }
 0x2d2   : > { %3201 = vperm.xlu0 %4590, %v2918_v56   ;;  %v2465_v56 = vadd.f32 %v5544_v34, %v5711_v10  ;;  %v4612_v47 = vpop.eup %4611  ;;  %v5729_v34 = vld [vmem:[%s4817_s21 + $0x68] sm:$0xff]  ;;  %4625 = vrcp.f32 %v2560_v63 }
 0x2d3   : > { %v5726_v15 = vpop.eup %4613  ;;  %v2561_v0 = vadd.f32 1.0, %v4612_v47  ;;  %v2467_v43 = vadd.f32 %v5556_v41, %v5729_v34  ;;  %v2468_v47 = vadd.f32 %v5564_v44, %v5743_v40 }
 0x2d4   : > { %v3529_v60 = vmul.f32 -1.442695, %v2465_v56 }
 0x2d5   : > { %v3531_v37 = vmul.f32 -1.442695, %v2467_v43 }
 0x2d6   : > { %4627 = vpow2.f32 %v3529_v60 }
 0x2d7   : > { %4629 = vrcp.f32 %v2561_v0 }
 0x2d8   : > { %4631 = vpow2.f32 %v3530_v36  ;;  %v5766_v36 = vld [vmem:[%s4817_s21 + $0x88] sm:$0xff] }
 0x2dc   : > { %v2655_v32 = vpop.permute.xlu0 %2654 }
 0x2dd   : > { %v2729_v7 = vmul.f32 %v5699_v27, %v2655_v32  ;;  %v4616_v32 = vpop.eup %4615 }
 0x2de   : > { %v5737_v33 = vpop.eup %4617 }
 0x2df   : > { %2779 = vrot.lane.b32.xlu1 %v2729_v7, %s4779_s30  ;;  %v4620_v38 = vpop.eup %4619 }
 0x2e0   : > { %v2657_v19 = vpop.permute.xlu0 %2656  ;;  %v5740_v13 = vpop.eup %4621  ;;  %v2563_v56 = vadd.f32 1.0, %v4620_v38 }
 0x2e1   : > { %v2730_v48 = vmul.f32 %v5708_v18, %v2657_v19  ;;  %v2562_v19 = vadd.f32 1.0, %v4616_v32  ;;  %v4624_v4 = vpop.eup %4623  ;;  %v5761_v32 = vld [vmem:[%s4817_s21 + $0x80] sm:$0xff] }
 0x2e2   : > { %v5755_v63 = vpop.eup %4625  ;;  %v2564_v44 = vadd.f32 1.0, %v4624_v4 }
 0x2e3   : > { %2781 = vrot.lane.b32.xlu0 %v2730_v48, %s4779_s30  ;;  %4633 = vrcp.f32 %v2562_v19  ;;  %v4628_v0 = vpop.eup %4627 }
 0x2e4   : > { %v2659_v45 = vpop.permute.xlu1 %2658  ;;  %4635 = vpow2.f32 %v3531_v37 }
 0x2e5   : > { %v2731_v23 = vmul.f32 %v5719_v42, %v2659_v45  ;;  %v5748_v45 = vld [vmem:[%s4817_s21 + $0x78] sm:$0xff]  ;;  %4637 = vrcp.f32 %v2563_v56 }
 0x2e7   : > { %2783 = vrot.lane.b32.xlu1 %v2731_v23, %s4779_s30  ;;  %v2469_v23 = vadd.f32 %v5566_v57, %v5748_v45  ;;  %v2565_v57 = vadd.f32 1.0, %v4628_v0 }
 0x2e8   : > { %v2661_v21 = vpop.permute.xlu1 %2660 }
 0x2e9   : > { %v2732_v25 = vmul.f32 %v5726_v15, %v2661_v21  ;;  %v3532_v21 = vmul.f32 -1.442695, %v2468_v47 }
 0x2eb   : > { %2785 = vrot.lane.b32.xlu0 %v2732_v25, %s4779_s30  ;;  %v5758_v25 = vpop.eup %4629  ;;  %4639 = vpow2.f32 %v3532_v21 }
 0x2ec   : > { %v2663_v7 = vpop.permute.xlu0 %2662  ;;  %4641 = vrcp.f32 %v2564_v44  ;;  %v4632_v19 = vpop.eup %4631  ;;  %v5784_v44 = vld [vmem:[%s4817_s21 + $0x98] sm:$0xff] }
 0x2ed   : > { %v2733_v62 = vmul.f32 %v5737_v33, %v2663_v7  ;;  %v3533_v7 = vmul.f32 -1.442695, %v2469_v23  ;;  %v5773_v37 = vpop.eup %4633 }
 0x2ee   : > { %v2665_v48 = vpop.permute.xlu1 %2664  ;;  %v4636_v56 = vpop.eup %4635 }
 0x2ef   : > { %v2734_v41 = vmul.f32 %v5740_v13, %v2665_v48  ;;  %2787 = vrot.lane.b32.xlu1 %v2733_v62, %s4779_s30  ;;  %v2470_v62 = vadd.f32 %v5574_v51, %v5761_v32  ;;  %4643 = vpow2.f32 %v3533_v7  ;;  %v2471_v48 = vadd.f32 %v5576_v58, %v5766_v36  ;;  %v5776_v23 = vpop.eup %4637 }
 0x2f0   : > { %4645 = vrcp.f32 %v2565_v57  ;;  %v2566_v51 = vadd.f32 1.0, %v4632_v19  ;;  %v2567_v58 = vadd.f32 1.0, %v4636_v56 }
 0x2f1   : > { %2789 = vrot.lane.b32.xlu0 %v2734_v41, %s4779_s30  ;;  %v3534_v47 = vmul.f32 -1.442695, %v2470_v62  ;;  %v3535_v21 = vmul.f32 -1.442695, %v2471_v48 }
 0x2f3   : > { %4647 = vpow2.f32 %v3534_v47  ;;  %v5797_v47 = vld [vmem:[%s4817_s21 + $0xa0] sm:$0xff] }
 0x2f4   : > { %v2667_v60 = vpop.permute.xlu0 %2666  ;;  %4649 = vrcp.f32 %v2566_v51 }
 0x2f5   : > { %v2735_v22 = vmul.f32 %v5755_v63, %v2667_v60  ;;  %v5779_v60 = vld [vmem:[%s4817_s21 + $0x90] sm:$0xff]  ;;  %v4640_v7 = vpop.eup %4639  ;;  %4651 = vpow2.f32 %v3535_v21  ;;  %v5802_v21 = vld [vmem:[%s4817_s21 + $0xa8] sm:$0xff] }
 0x2f6   : > { %v2669_v43 = vpop.permute.xlu1 %2668  ;;  %v5791_v57 = vpop.eup %4641  ;;  %4653 = vrcp.f32 %v2567_v58 }
 0x2f7   : > { %v2736_v38 = vmul.f32 %v5758_v25, %v2669_v43  ;;  %2791 = vrot.lane.b32.xlu1 %v2735_v22, %s4779_s30  ;;  %v2472_v43 = vadd.f32 %v5584_v17, %v5779_v60  ;;  %v2568_v17 = vadd.f32 1.0, %v4640_v7 }
 0x2f9   : > { %2793 = vrot.lane.b32.xlu0 %v2736_v38, %s4779_s30  ;;  %v2473_v38 = vadd.f32 %v5586_v55, %v5784_v44  ;;  %v4644_v19 = vpop.eup %4643  ;;  %v3536_v48 = vmul.f32 -1.442695, %v2472_v43  ;;  %v2475_v43 = vadd.f32 %v5604_v30, %v5802_v21 }
 0x2fa   : > { %v5794_v56 = vpop.eup %4645  ;;  %v2569_v55 = vadd.f32 1.0, %v4644_v19 }
 0x2fb   : > { %v3537_v51 = vmul.f32 -1.442695, %v2473_v38  ;;  %4655 = vpow2.f32 %v3536_v48 }
 0x2fc   : > { %v2671_v41 = vpop.permute.xlu0 %2670  ;;  %4657 = vrcp.f32 %v2568_v17 }
 0x2fd   : > { %v2737_v4 = vmul.f32 %v5773_v37, %v2671_v41  ;;  %v4648_v58 = vpop.eup %4647  ;;  %4659 = vpow2.f32 %v3537_v51 }
 0x2fe   : > { %v2673_v0 = vpop.permute.xlu1 %2672  ;;  %v5809_v7 = vpop.eup %4649  ;;  %4661 = vrcp.f32 %v2569_v55 }
 0x2ff   : > { %v2738_v22 = vmul.f32 %v5776_v23, %v2673_v0  ;;  %2795 = vrot.lane.b32.xlu1 %v2737_v4, %s4779_s30 }
 0x301   : > { %2797 = vrot.lane.b32.xlu0 %v2738_v22, %s4779_s30  ;;  %v2474_v22 = vadd.f32 %v5597_v3, %v5797_v47  ;;  %v2570_v3 = vadd.f32 1.0, %v4648_v58  ;;  %v2477_v58 = vadd.f32 %v5628_v14, %v5820_v11 }
 0x303   : > { %v3538_v19 = vmul.f32 -1.442695, %v2474_v22 }
 0x304   : > { %v2675_v62 = vpop.permute.xlu0 %2674 }
 0x305   : > { %v2739_v41 = vmul.f32 %v5791_v57, %v2675_v62  ;;  %v4652_v62 = vpop.eup %4651  ;;  %4663 = vpow2.f32 %v3538_v19 }
 0x306   : > { %v2677_v4 = vpop.permute.xlu1 %2676  ;;  %v2571_v30 = vadd.f32 1.0, %v4652_v62  ;;  %4665 = vrcp.f32 %v2570_v3  ;;  %v3541_v3 = vmul.f32 -1.442695, %v2477_v58 }
 0x307   : > { %v2740_v0 = vmul.f32 %v5794_v56, %v2677_v4  ;;  %2799 = vrot.lane.b32.xlu1 %v2739_v41, %s4779_s30  ;;  %v5812_v41 = vpop.eup %4653  ;;  %v5815_v4 = vld [vmem:[%s4817_s21 + $0xb0] sm:$0xff] }
 0x308   : > { %6159 = vst [vmem:[#allocation4_spill] sm:$0xff] %v5812_v41  ;;  %v2476_v55 = vadd.f32 %v5621_v2, %v5815_v4  ;;  %v4656_v22 = vpop.eup %4655  ;;  %v5833_v2 = vld [vmem:[%s4817_s21 + $0xc0] sm:$0xff] }
 0x309   : > { %2801 = vrot.lane.b32.xlu0 %v2740_v0, %s4779_s30  ;;  %v3539_v0 = vmul.f32 -1.442695, %v2475_v43  ;;  %v5827_v43 = vpop.eup %4657 }
 0x30a   : > { %6160 = vst [vmem:[#allocation5_spill] sm:$0xff] %v5827_v43  ;;  %v4660_v62 = vpop.eup %4659 }
 0x30b   : > { %4667 = vpow2.f32 %v3539_v0  ;;  %v5830_v19 = vpop.eup %4661  ;;  %v2573_v14 = vadd.f32 1.0, %v4660_v62 }
 0x30c   : > { %v2679_v38 = vpop.permute.xlu0 %2678  ;;  %4669 = vrcp.f32 %v2571_v30  ;;  %6161 = vst [vmem:[#allocation6_spill] sm:$0xff] %v5830_v19  ;;  %v2478_v30 = vadd.f32 %v5650_v31, %v5833_v2 }
 0x30d   : > { %v2741_v48 = vmul.f32 %v5809_v7, %v2679_v38 }
 0x30e   : > { %v2681_v17 = vpop.permute.xlu1 %2680  ;;  %v3542_v58 = vmul.f32 -1.442695, %v2478_v30 }
 0x30f   : > { %v2742_v51 = vmul.f32 %v5812_v41, %v2681_v17  ;;  %2803 = vrot.lane.b32.xlu1 %v2741_v48, %s4779_s30  ;;  %v3540_v48 = vmul.f32 -1.442695, %v2476_v55  ;;  %v2572_v41 = vadd.f32 1.0, %v4656_v22  ;;  %v4664_v55 = vpop.eup %4663 }
 0x310   : > { %v2574_v62 = vadd.f32 1.0, %v4664_v55 }
 0x311   : > { %2805 = vrot.lane.b32.xlu0 %v2742_v51, %s4779_s30  ;;  %4671 = vpow2.f32 %v3540_v48 }
 0x312   : > { %4673 = vrcp.f32 %v2572_v41 }
 0x313   : > { %4675 = vpow2.f32 %v3541_v3 }
 0x314   : > { %v2683_v38 = vpop.permute.xlu0 %2682  ;;  %4677 = vrcp.f32 %v2573_v14 }
 0x315   : > { %v2743_v17 = vmul.f32 %v5827_v43, %v2683_v38  ;;  %v5840_v38 = vpop.eup %4665  ;;  %4679 = vpow2.f32 %v3542_v58 }
 0x316   : > { %v2685_v51 = vpop.permute.xlu1 %2684  ;;  %6162 = vst [vmem:[#allocation7_spill] sm:$0xff] %v5840_v38  ;;  %v4668_v43 = vpop.eup %4667  ;;  %4681 = vrcp.f32 %v2574_v62 }
 0x317   : > { %v2744_v0 = vmul.f32 %v5830_v19, %v2685_v51  ;;  %2807 = vrot.lane.b32.xlu1 %v2743_v17, %s4779_s30  ;;  %v5843_v19 = vpop.eup %4669  ;;  %v2575_v31 = vadd.f32 1.0, %v4668_v43 }
 0x319   : > { %2809 = vrot.lane.b32.xlu0 %v2744_v0, %s4779_s30  ;;  %4683 = vrcp.f32 %v2575_v31 }
 0x31b   : > { %v4672_v41 = vpop.eup %4671 }
 0x31c   : > { %v2687_v22 = vpop.permute.xlu0 %2686  ;;  %v5848_v3 = vpop.eup %4673  ;;  %v2576_v55 = vadd.f32 1.0, %v4672_v41 }
 0x31d   : > { %v2745_v51 = vmul.f32 %v5840_v38, %v2687_v22  ;;  %6163 = vst [vmem:[#allocation8_spill] sm:$0xff] %v5848_v3  ;;  %v4676_v14 = vpop.eup %4675 }
 0x31e   : > { %v2689_v48 = vpop.permute.xlu1 %2688  ;;  %v5851_v22 = vpop.eup %4677  ;;  %v2577_v43 = vadd.f32 1.0, %v4676_v14  ;;  %4685 = vrcp.f32 %v2576_v55 }
 0x31f   : > { %v2746_v17 = vmul.f32 %v5843_v19, %v2689_v48  ;;  %2811 = vrot.lane.b32.xlu1 %v2745_v51, %s4779_s30  ;;  %6164 = vst [vmem:[#allocation9_spill] sm:$0xff] %v5851_v22  ;;  %v4680_v58 = vpop.eup %4679 }
 0x320   : > { %v5856_v51 = vpop.eup %4681  ;;  %4687 = vrcp.f32 %v2577_v43 }
 0x321   : > { %2813 = vrot.lane.b32.xlu0 %v2746_v17, %s4779_s30  ;;  %6165 = vst [vmem:[#allocation10_spill] sm:$0xff] %v5856_v51 }
 0x323   : > { %v5859_v31 = vpop.eup %4683 }
 0x324   : > { %v2691_v0 = vpop.permute.xlu0 %2690  ;;  %6166 = vst [vmem:[#allocation11_spill] sm:$0xff] %v5859_v31 }
 0x325   : > { %v2747_v30 = vmul.f32 %v5848_v3, %v2691_v0  ;;  %v2578_v0 = vadd.f32 1.0, %v4680_v58  ;;  %v2920_v58 = vld [vmem:[%s6134_s3 + $0x80] sm:$0xff] }
 0x326   : > { %v2693_v38 = vpop.permute.xlu1 %2692 }
 0x327   : > { %v2748_v48 = vmul.f32 %v5851_v22, %v2693_v38  ;;  %2815 = vrot.lane.b32.xlu1 %v2747_v30, %s4779_s30  ;;  %4689 = vrcp.f32 %v2578_v0  ;;  %v2922_v0 = vld [vmem:[%s6134_s3 + $0x90] sm:$0xff] }
 0x328   : > { %v5864_v38 = vpop.eup %4685 }
 0x329   : > { %2817 = vrot.lane.b32.xlu0 %v2748_v48, %s4779_s30  ;;  %6167 = vst [vmem:[#allocation12_spill] sm:$0xff] %v5864_v38 }
 0x32a   : > { %v5867_v55 = vpop.eup %4687 }
 0x32b   : > { %6168 = vst [vmem:[#allocation13_spill] sm:$0xff] %v5867_v55 }
 0x32c   : > { %v2695_v62 = vpop.permute.xlu0 %2694 }
 0x32d   : > { %v2749_v17 = vmul.f32 %v5856_v51, %v2695_v62 }
 0x32e   : > { %v2697_v41 = vpop.permute.xlu1 %2696 }
 0x32f   : > { %v2750_v3 = vmul.f32 %v5859_v31, %v2697_v41  ;;  %2819 = vrot.lane.b32.xlu1 %v2749_v17, %s4779_s30  ;;  %v2919_v41 = vld [vmem:[%s6134_s3 + $0x78] sm:$0xff] }
 0x331   : > { %2821 = vrot.lane.b32.xlu0 %v2750_v3, %s4779_s30  ;;  %v5875_v3 = vpop.eup %4689 }
 0x332   : > { %6169 = vst [vmem:[#allocation14_spill] sm:$0xff] %v5875_v3 }
 0x334   : > { %v2699_v14 = vpop.permute.xlu0 %2698 }
 0x335   : > { %v2751_v30 = vmul.f32 %v5864_v38, %v2699_v14  ;;  %v2924_v14 = vld [vmem:[%s6134_s3 + $0xa0] sm:$0xff] }
 0x336   : > { %v2701_v48 = vpop.permute.xlu1 %2700 }
 0x337   : > { %v2752_v43 = vmul.f32 %v5867_v55, %v2701_v48  ;;  %2823 = vrot.lane.b32.xlu1 %v2751_v30, %s4779_s30  ;;  %v2921_v30 = vld [vmem:[%s6134_s3 + $0x88] sm:$0xff]  ;;  %v2926_v48 = vld [vmem:[%s6134_s3 + $0xb0] sm:$0xff] }
 0x339   : > { %2825 = vrot.lane.b32.xlu0 %v2752_v43, %s4779_s30 }
 0x33c   : > { %v2703_v62 = vpop.permute.xlu0 %2702 }
 0x33d   : > { %v2753_v17 = vmul.f32 %v5875_v3, %v2703_v62  ;;  %3211 = vperm.xlu0 %4590, %v2920_v58   ;;  %v2923_v58 = vld [vmem:[%s6134_s3 + $0x98] sm:$0xff]  ;;  %v2925_v62 = vld [vmem:[%s6134_s3 + $0xa8] sm:$0xff] }
 0x33f   : > { %2827 = vrot.lane.b32.xlu1 %v2753_v17, %s4779_s30 }
 0x341   : > { %3221 = vperm.xlu0 %4590, %v2922_v0  }
 0x343   : > { %3206 = vperm.xlu1 %4589, %v2919_v41  }
 0x345   : > { %3231 = vperm.xlu0 %4590, %v2924_v14  }
 0x347   : > { %v5894_v43 = vpop.permute.xlu1 %3186  ;;  %3216 = vperm.xlu1 %4589, %v2921_v30  }
 0x349   : > { %3241 = vperm.xlu0 %4590, %v2926_v48  }
 0x34b   : > { %3226 = vperm.xlu1 %4589, %v2923_v58   ;;  %v5902_v17 = vpop.permute.xlu1 %3196 }
 0x34d   : > { %v5904_v0 = vpop.permute.xlu0 %3191 }
 0x34f   : > { %3236 = vperm.xlu1 %4589, %v2925_v62  }
 0x351   : > { %v2780_v41 = vpop.permute.xlu1 %2779  ;;  %v5906_v14 = vpop.permute.xlu0 %3201 }
 0x352   : > { %v2854_v30 = vadd.f32 %v2780_v41, %v5593_v6 }
 0x354   : > { %4691 = vtanh.f32 %v2854_v30 }
 0x355   : > { %v2782_v3 = vpop.permute.xlu0 %2781 }
 0x356   : > { %v2855_v55 = vadd.f32 %v2782_v3, %v5602_v24 }
 0x358   : > { %4693 = vtanh.f32 %v2855_v55 }
 0x359   : > { %v2784_v48 = vpop.permute.xlu1 %2783 }
 0x35a   : > { %v2856_v58 = vadd.f32 %v2784_v48, %v5613_v50 }
 0x35c   : > { %4695 = vtanh.f32 %v2856_v58 }
 0x35d   : > { %v2786_v38 = vpop.permute.xlu0 %2785 }
 0x35e   : > { %v4692_v31 = vpop.eup %4691  ;;  %v2857_v51 = vadd.f32 %v2786_v38, %v5626_v53 }
 0x35f   : > { %2979 = vrot.lane.b32.xlu0 %v4692_v31, %s4780_s22 }
 0x360   : > { %4697 = vtanh.f32 %v2857_v51 }
 0x361   : > { %v2788_v62 = vpop.permute.xlu1 %2787 }
 0x362   : > { %v4694_v22 = vpop.eup %4693  ;;  %v2858_v6 = vadd.f32 %v2788_v62, %v5642_v8 }
 0x363   : > { %v2790_v41 = vpop.permute.xlu0 %2789  ;;  %2981 = vrot.lane.b32.xlu1 %v4694_v22, %s4780_s22 }
 0x364   : > { %4699 = vtanh.f32 %v2858_v6  ;;  %v2859_v24 = vadd.f32 %v2790_v41, %v5648_v28 }
 0x366   : > { %v4696_v50 = vpop.eup %4695  ;;  %4701 = vtanh.f32 %v2859_v24 }
 0x367   : > { %2983 = vrot.lane.b32.xlu0 %v4696_v50, %s4780_s22 }
 0x369   : > { %v2792_v55 = vpop.permute.xlu1 %2791 }
 0x36a   : > { %v4698_v53 = vpop.eup %4697  ;;  %v2860_v38 = vadd.f32 %v2792_v55, %v5669_v29 }
 0x36b   : > { %v2794_v31 = vpop.permute.xlu0 %2793  ;;  %2985 = vrot.lane.b32.xlu1 %v4698_v53, %s4780_s22 }
 0x36c   : > { %4703 = vtanh.f32 %v2860_v38  ;;  %v2861_v8 = vadd.f32 %v2794_v31, %v5675_v52 }
 0x36e   : > { %v4700_v51 = vpop.eup %4699  ;;  %4705 = vtanh.f32 %v2861_v8 }
 0x36f   : > { %2987 = vrot.lane.b32.xlu0 %v4700_v51, %s4780_s22 }
 0x370   : > { %v4702_v22 = vpop.eup %4701 }
 0x371   : > { %v2796_v28 = vpop.permute.xlu1 %2795  ;;  %2989 = vrot.lane.b32.xlu1 %v4702_v22, %s4780_s22 }
 0x372   : > { %v2862_v3 = vadd.f32 %v2796_v28, %v5686_v49 }
 0x373   : > { %v2798_v30 = vpop.permute.xlu0 %2797 }
 0x374   : > { %4707 = vtanh.f32 %v2862_v3  ;;  %v2863_v29 = vadd.f32 %v2798_v30, %v5691_v16 }
 0x376   : > { %v4704_v48 = vpop.eup %4703  ;;  %4709 = vtanh.f32 %v2863_v29 }
 0x377   : > { %2991 = vrot.lane.b32.xlu0 %v4704_v48, %s4780_s22 }
 0x378   : > { %v4706_v58 = vpop.eup %4705 }
 0x379   : > { %v2800_v52 = vpop.permute.xlu1 %2799  ;;  %2993 = vrot.lane.b32.xlu1 %v4706_v58, %s4780_s22 }
 0x37a   : > { %v2864_v62 = vadd.f32 %v2800_v52, %v5703_v12 }
 0x37b   : > { %v2802_v6 = vpop.permute.xlu0 %2801 }
 0x37c   : > { %4711 = vtanh.f32 %v2864_v62  ;;  %v2865_v41 = vadd.f32 %v2802_v6, %v5711_v10 }
 0x37e   : > { %v4708_v24 = vpop.eup %4707  ;;  %4713 = vtanh.f32 %v2865_v41 }
 0x37f   : > { %2995 = vrot.lane.b32.xlu0 %v4708_v24, %s4780_s22 }
 0x380   : > { %v4710_v49 = vpop.eup %4709 }
 0x381   : > { %v2804_v16 = vpop.permute.xlu1 %2803  ;;  %2997 = vrot.lane.b32.xlu1 %v4710_v49, %s4780_s22 }
 0x382   : > { %v2866_v50 = vadd.f32 %v2804_v16, %v5723_v9 }
 0x383   : > { %v2806_v55 = vpop.permute.xlu0 %2805 }
 0x384   : > { %4715 = vtanh.f32 %v2866_v50  ;;  %v2867_v53 = vadd.f32 %v2806_v55, %v5729_v34 }
 0x386   : > { %v4712_v38 = vpop.eup %4711  ;;  %4717 = vtanh.f32 %v2867_v53 }
 0x387   : > { %2999 = vrot.lane.b32.xlu0 %v4712_v38, %s4780_s22 }
 0x388   : > { %v4714_v12 = vpop.eup %4713 }
 0x389   : > { %v2808_v10 = vpop.permute.xlu1 %2807  ;;  %3001 = vrot.lane.b32.xlu1 %v4714_v12, %s4780_s22 }
 0x38a   : > { %v2868_v31 = vadd.f32 %v2808_v10, %v5743_v40 }
 0x38b   : > { %v2810_v8 = vpop.permute.xlu0 %2809 }
 0x38c   : > { %4719 = vtanh.f32 %v2868_v31  ;;  %v2869_v51 = vadd.f32 %v2810_v8, %v5748_v45 }
 0x38e   : > { %v4716_v22 = vpop.eup %4715  ;;  %4721 = vtanh.f32 %v2869_v51 }
 0x38f   : > { %3003 = vrot.lane.b32.xlu0 %v4716_v22, %s4780_s22 }
 0x390   : > { %v4718_v9 = vpop.eup %4717 }
 0x391   : > { %v2812_v34 = vpop.permute.xlu1 %2811  ;;  %3005 = vrot.lane.b32.xlu1 %v4718_v9, %s4780_s22 }
 0x392   : > { %v2870_v28 = vadd.f32 %v2812_v34, %v5761_v32 }
 0x393   : > { %v2814_v3 = vpop.permute.xlu0 %2813 }
 0x394   : > { %4723 = vtanh.f32 %v2870_v28  ;;  %v2871_v30 = vadd.f32 %v2814_v3, %v5766_v36  ;;  %v2929_v3 = vsub.f32 1.0, %v5699_v27 }
 0x396   : > { %v4720_v29 = vpop.eup %4719  ;;  %4725 = vtanh.f32 %v2871_v30 }
 0x397   : > { %3007 = vrot.lane.b32.xlu0 %v4720_v29, %s4780_s22 }
 0x398   : > { %v4722_v40 = vpop.eup %4721 }
 0x399   : > { %v2816_v45 = vpop.permute.xlu1 %2815  ;;  %3009 = vrot.lane.b32.xlu1 %v4722_v40, %s4780_s22  ;;  %v4741_v40 = vld [vmem:[#allocation2 + $0x10] sm:$0xff] }
 0x39a   : > { %v2872_v48 = vadd.f32 %v2816_v45, %v5779_v60  ;;  %v3079_v45 = vmul.f32 %v4741_v40, %v5699_v27 }
 0x39b   : > { %v2818_v58 = vpop.permute.xlu0 %2817 }
 0x39c   : > { %4727 = vtanh.f32 %v2872_v48  ;;  %v2873_v52 = vadd.f32 %v2818_v58, %v5784_v44 }
 0x39e   : > { %v4724_v62 = vpop.eup %4723  ;;  %4729 = vtanh.f32 %v2873_v52  ;;  %v2930_v52 = vsub.f32 1.0, %v5708_v18 }
 0x39f   : > { %3011 = vrot.lane.b32.xlu0 %v4724_v62, %s4780_s22 }
 0x3a0   : > { %v4726_v32 = vpop.eup %4725 }
 0x3a1   : > { %v2820_v36 = vpop.permute.xlu1 %2819  ;;  %3013 = vrot.lane.b32.xlu1 %v4726_v32, %s4780_s22 }
 0x3a2   : > { %v2874_v6 = vadd.f32 %v2820_v36, %v5797_v47  ;;  %v4742_v36 = vld [vmem:[#allocation2 + $0x18] sm:$0xff] }
 0x3a3   : > { %v2822_v41 = vpop.permute.xlu0 %2821 }
 0x3a4   : > { %4731 = vtanh.f32 %v2874_v6  ;;  %v2875_v24 = vadd.f32 %v2822_v41, %v5802_v21  ;;  %v3080_v6 = vmul.f32 %v4742_v36, %v5708_v18  ;;  %v2932_v18 = vsub.f32 1.0, %v5726_v15 }
 0x3a6   : > { %v4728_v49 = vpop.eup %4727  ;;  %4733 = vtanh.f32 %v2875_v24 }
 0x3a7   : > { %3015 = vrot.lane.b32.xlu0 %v4728_v49, %s4780_s22  ;;  %v2931_v49 = vsub.f32 1.0, %v5719_v42 }
 0x3a8   : > { %v4730_v60 = vpop.eup %4729 }
 0x3a9   : > { %v2824_v44 = vpop.permute.xlu1 %2823  ;;  %3017 = vrot.lane.b32.xlu1 %v4730_v60, %s4780_s22 }
 0x3aa   : > { %v2876_v16 = vadd.f32 %v2824_v44, %v5815_v4  ;;  %v4743_v44 = vld [vmem:[#allocation2 + $0x20] sm:$0xff] }
 0x3ab   : > { %v2826_v50 = vpop.permute.xlu0 %2825 }
 0x3ac   : > { %4735 = vtanh.f32 %v2876_v16  ;;  %v2877_v55 = vadd.f32 %v2826_v50, %v5820_v11  ;;  %v2927_v11 = vld [vmem:[%s6134_s3 + $0xb8] sm:$0xff]  ;;  %v3081_v16 = vmul.f32 %v4743_v44, %v5719_v42  ;;  %v2933_v42 = vsub.f32 1.0, %v5737_v33 }
 0x3ae   : > { %v4732_v53 = vpop.eup %4731  ;;  %4737 = vtanh.f32 %v2877_v55 }
 0x3af   : > { %3019 = vrot.lane.b32.xlu0 %v4732_v53, %s4780_s22 }
 0x3b0   : > { %v4734_v47 = vpop.eup %4733 }
 0x3b1   : > { %3021 = vrot.lane.b32.xlu1 %v4734_v47, %s4780_s22  ;;  %v2828_v21 = vpop.permute.xlu1 %2827  ;;  %v4744_v47 = vld [vmem:[#allocation2 + $0x28] sm:$0xff] }
 0x3b2   : > { %v2878_v38 = vadd.f32 %v2828_v21, %v5833_v2  ;;  %v2928_v2 = vld [vmem:[%s6134_s3 + $0xc0] sm:$0xff]  ;;  %v3082_v21 = vmul.f32 %v4744_v47, %v5726_v15 }
 0x3b4   : > { %4739 = vtanh.f32 %v2878_v38 }
 0x3b6   : > { %v4736_v12 = vpop.eup %4735 }
 0x3b7   : > { %3023 = vrot.lane.b32.xlu0 %v4736_v12, %s4780_s22 }
 0x3b8   : > { %v4738_v10 = vpop.eup %4737 }
 0x3b9   : > { %3025 = vrot.lane.b32.xlu1 %v4738_v10, %s4780_s22 }
 0x3bc   : > { %v5960_v4 = vpop.permute.xlu0 %3211 }
 0x3bd   : > { %3246 = vperm.xlu1 %4589, %v2927_v11   ;;  %v4745_v11 = vld [vmem:[#allocation2 + $0x30] sm:$0xff] }
 0x3be   : > { %v4740_v31 = vpop.eup %4739 }
 0x3bf   : > { %3027 = vrot.lane.b32.xlu0 %v4740_v31, %s4780_s22  ;;  %v3083_v31 = vmul.f32 %v4745_v11, %v5737_v33 }
 0x3c0   : > { %v5966_v8 = vpop.permute.xlu0 %3221 }
 0x3c2   : > { %v5968_v51 = vpop.permute.xlu1 %3206 }
 0x3c3   : > { %3251 = vperm.xlu0 %4590, %v2928_v2   ;;  %v2934_v2 = vsub.f32 1.0, %v5740_v13 }
 0x3c4   : > { %v5972_v9 = vpop.permute.xlu0 %3231 }
 0x3c6   : > { %v5970_v22 = vpop.permute.xlu1 %3216 }
 0x3c8   : > { %v5976_v28 = vpop.permute.xlu0 %3241 }
 0x3ca   : > { %v5974_v34 = vpop.permute.xlu1 %3226 }
 0x3ce   : > { %v5979_v30 = vpop.permute.xlu1 %3236 }
 0x3d1   : > { %v2980_v29 = vpop.permute.xlu0 %2979 }
 0x3d2   : > { %v3054_v48 = vmul.f32 %v2980_v29, %v2929_v3  ;;  %v4746_v29 = vld [vmem:[#allocation2 + $0x38] sm:$0xff] }
 0x3d3   : > { %v3084_v40 = vmul.f32 %v4746_v29, %v5740_v13 }
 0x3d4   : > { %v3104_v58 = vadd.f32 %v3079_v45, %v3054_v48 }
 0x3d5   : > { %v2982_v62 = vpop.permute.xlu1 %2981 }
 0x3d6   : > { %v3254_v32 = vmul.f32 %v5618_v5, %v3104_v58  ;;  %v3055_v41 = vmul.f32 %v2982_v62, %v2930_v52  ;;  %v2935_v58 = vsub.f32 1.0, %v5755_v63  ;;  %v4747_v62 = vld [vmem:[#allocation2 + $0x40] sm:$0xff] }
 0x3d7   : > { %v3085_v13 = vmul.f32 %v4747_v62, %v5755_v63  ;;  %v2937_v63 = vsub.f32 1.0, %v5773_v37  ;;  %v4754_v62 = vld [vmem:[#allocation2 + $0x78] sm:$0xff] }
 0x3d8   : > { %3279 = vst.msk [vmem:[#allocation2 + $0x10] sm:$0xff] %vm305_vm2, %v3254_v32  ;;  %3304 = vst.msk [vmem:[%s4822_s24] sm:$0xff] %vm305_vm2, %v3254_v32  ;;  %v3105_v24 = vadd.f32 %v3080_v6, %v3055_v41  ;;  %v2936_v32 = vsub.f32 1.0, %v5758_v25  ;;  %v4748_v41 = vld [vmem:[#allocation2 + $0x48] sm:$0xff] }
 0x3d9   : > { %v2984_v27 = vpop.permute.xlu0 %2983 }
 0x3da   : > { %v3255_v60 = vmul.f32 %v5616_v59, %v3105_v24  ;;  %v3056_v50 = vmul.f32 %v2984_v27, %v2931_v49 }
 0x3dc   : > { %3280 = vst.msk [vmem:[#allocation2 + $0x18] sm:$0xff] %vm305_vm2, %v3255_v60  ;;  %3305 = vst.msk [vmem:[%s4822_s24 + $0x8] sm:$0xff] %vm305_vm2, %v3255_v60  ;;  %v3106_v5 = vadd.f32 %v3081_v16, %v3056_v50  ;;  %v4749_v16 = vld [vmem:[#allocation2 + $0x50] sm:$0xff]  ;;  %v2938_v50 = vsub.f32 1.0, %v5776_v23 }
 0x3dd   : > { %v2986_v55 = vpop.permute.xlu1 %2985 }
 0x3de   : > { %v3256_v53 = vmul.f32 %v5645_v20, %v3106_v5  ;;  %v3057_v38 = vmul.f32 %v2986_v55, %v2932_v18  ;;  %v4750_v55 = vld [vmem:[#allocation2 + $0x58] sm:$0xff] }
 0x3e0   : > { %3281 = vst.msk [vmem:[#allocation2 + $0x20] sm:$0xff] %vm305_vm2, %v3256_v53  ;;  %3306 = vst.msk [vmem:[%s4822_s24 + $0x10] sm:$0xff] %vm305_vm2, %v3256_v53  ;;  %v3107_v59 = vadd.f32 %v3082_v21, %v3057_v38 }
 0x3e1   : > { %v2988_v12 = vpop.permute.xlu0 %2987 }
 0x3e2   : > { %v3257_v10 = vmul.f32 %v5666_v39, %v3107_v59  ;;  %v3058_v20 = vmul.f32 %v2988_v12, %v2933_v42  ;;  %v4751_v42 = vld [vmem:[#allocation2 + $0x60] sm:$0xff]  ;;  %v2940_v12 = vsub.f32 1.0, %v5794_v56 }
 0x3e3   : > { %v2990_v15 = vpop.permute.xlu1 %2989 }
 0x3e4   : > { %3282 = vst.msk [vmem:[#allocation2 + $0x28] sm:$0xff] %vm305_vm2, %v3257_v10  ;;  %3307 = vst.msk [vmem:[%s4822_s24 + $0x18] sm:$0xff] %vm305_vm2, %v3257_v10  ;;  %v3108_v3 = vadd.f32 %v3083_v31, %v3058_v20  ;;  %v3059_v45 = vmul.f32 %v2990_v15, %v2934_v2  ;;  %v4752_v31 = vld [vmem:[#allocation2 + $0x68] sm:$0xff] }
 0x3e5   : > { %v6170_v2 = vld [vmem:[#allocation3_spill] sm:$0xff] }
 0x3e6   : > { %v3258_v48 = vmul.f32 %v5634_v61, %v3108_v3  ;;  %v3109_v39 = vadd.f32 %v3084_v40, %v3059_v45  ;;  %v4753_v45 = vld [vmem:[#allocation2 + $0x70] sm:$0xff] }
 0x3e8   : > { %3283 = vst.msk [vmem:[#allocation2 + $0x30] sm:$0xff] %vm305_vm2, %v3258_v48  ;;  %3308 = vst.msk [vmem:[%s4822_s24 + $0x20] sm:$0xff] %vm305_vm2, %v3258_v48  ;;  %v3259_v33 = vmul.f32 %v5681_v46, %v3109_v39  ;;  %v3086_v46 = vmul.f32 %v4748_v41, %v5758_v25  ;;  %v3087_v25 = vmul.f32 %v4749_v16, %v5773_v37  ;;  %v2939_v37 = vsub.f32 1.0, %v5791_v57  ;;  %v6171_v39 = vld [vmem:[#allocation4_spill] sm:$0xff] }
 0x3e9   : > { %v2992_v52 = vpop.permute.xlu0 %2991 }
 0x3ea   : > { %3284 = vst.msk [vmem:[#allocation2 + $0x38] sm:$0xff] %vm305_vm2, %v3259_v33  ;;  %3309 = vst.msk [vmem:[%s4822_s24 + $0x28] sm:$0xff] %vm305_vm2, %v3259_v33  ;;  %v3060_v61 = vmul.f32 %v2992_v52, %v2935_v58  ;;  %v2942_v33 = vsub.f32 1.0, %v6171_v39 }
 0x3eb   : > { %v2994_v36 = vpop.permute.xlu1 %2993 }
 0x3ec   : > { %v3110_v6 = vadd.f32 %v3085_v13, %v3060_v61  ;;  %v3061_v24 = vmul.f32 %v2994_v36, %v2936_v32 }
 0x3ee   : > { %v3260_v49 = vmul.f32 %v5659_v35, %v3110_v6  ;;  %v3111_v27 = vadd.f32 %v3086_v46, %v3061_v24  ;;  %v4755_v46 = vld [vmem:[#allocation2 + $0x80] sm:$0xff] }
 0x3f0   : > { %3285 = vst.msk [vmem:[#allocation2 + $0x40] sm:$0xff] %vm305_vm2, %v3260_v49  ;;  %3310 = vst.msk [vmem:[%s4822_s24 + $0x30] sm:$0xff] %vm305_vm2, %v3260_v49  ;;  %v3261_v60 = vmul.f32 %v5693_v1, %v3111_v27  ;;  %v3088_v1 = vmul.f32 %v4750_v55, %v5776_v23  ;;  %v3089_v23 = vmul.f32 %v4751_v42, %v5791_v57  ;;  %v2941_v57 = vsub.f32 1.0, %v5809_v7  ;;  %v6173_v49 = vld [vmem:[#allocation6_spill] sm:$0xff] }
 0x3f1   : > { %v2996_v44 = vpop.permute.xlu0 %2995  ;;  %v2944_v27 = vsub.f32 1.0, %v6173_v49 }
 0x3f2   : > { %3286 = vst.msk [vmem:[#allocation2 + $0x48] sm:$0xff] %vm305_vm2, %v3261_v60  ;;  %3311 = vst.msk [vmem:[%s4822_s24 + $0x38] sm:$0xff] %vm305_vm2, %v3261_v60  ;;  %v3062_v35 = vmul.f32 %v2996_v44, %v2937_v63  ;;  %v4756_v44 = vld [vmem:[#allocation2 + $0x88] sm:$0xff] }
 0x3f3   : > { %v2998_v5 = vpop.permute.xlu1 %2997 }
 0x3f4   : > { %v3112_v18 = vadd.f32 %v3087_v25, %v3062_v35  ;;  %v3063_v53 = vmul.f32 %v2998_v5, %v2938_v50  ;;  %v6174_v5 = vld [vmem:[#allocation7_spill] sm:$0xff] }
 0x3f6   : > { %v3262_v47 = vmul.f32 %v5677_v54, %v3112_v18  ;;  %v3113_v21 = vadd.f32 %v3088_v1, %v3063_v53  ;;  %v2945_v18 = vsub.f32 1.0, %v6174_v5  ;;  %v4757_v1 = vld [vmem:[#allocation2 + $0x90] sm:$0xff] }
 0x3f7   : > { %v3095_v53 = vmul.f32 %v4757_v1, %v6174_v5 }
 0x3f8   : > { %3287 = vst.msk [vmem:[#allocation2 + $0x50] sm:$0xff] %vm305_vm2, %v3262_v47  ;;  %3312 = vst.msk [vmem:[%s4822_s24 + $0x40] sm:$0xff] %vm305_vm2, %v3262_v47  ;;  %v3263_v38 = vmul.f32 %v5705_v26, %v3113_v21  ;;  %v3090_v26 = vmul.f32 %v4752_v31, %v5794_v56  ;;  %v3091_v56 = vmul.f32 %v4753_v45, %v5809_v7  ;;  %v6172_v7 = vld [vmem:[#allocation5_spill] sm:$0xff]  ;;  %v2946_v47 = vsub.f32 1.0, %v5843_v19  ;;  %v4759_v31 = vld [vmem:[#allocation2 + $0xa0] sm:$0xff] }
 0x3f9   : > { %v3000_v59 = vpop.permute.xlu0 %2999  ;;  %v2943_v6 = vsub.f32 1.0, %v6172_v7  ;;  %v3093_v24 = vmul.f32 %v4755_v46, %v6172_v7 }
 0x3fa   : > { %3288 = vst.msk [vmem:[#allocation2 + $0x58] sm:$0xff] %vm305_vm2, %v3263_v38  ;;  %3313 = vst.msk [vmem:[%s4822_s24 + $0x48] sm:$0xff] %vm305_vm2, %v3263_v38  ;;  %v3064_v54 = vmul.f32 %v3000_v59, %v2939_v37  ;;  %v4758_v37 = vld [vmem:[#allocation2 + $0x98] sm:$0xff] }
 0x3fb   : > { %v3002_v10 = vpop.permute.xlu1 %3001 }
 0x3fc   : > { %v3114_v11 = vadd.f32 %v3089_v23, %v3064_v54  ;;  %v3065_v20 = vmul.f32 %v3002_v10, %v2940_v12  ;;  %v6175_v12 = vld [vmem:[#allocation8_spill] sm:$0xff] }
 0x3fd   : > { %v2947_v10 = vsub.f32 1.0, %v6175_v12 }
 0x3fe   : > { %v3264_v15 = vmul.f32 %v6170_v2, %v3114_v11  ;;  %v3115_v3 = vadd.f32 %v3090_v26, %v3065_v20  ;;  %v6176_v26 = vld [vmem:[#allocation9_spill] sm:$0xff] }
 0x3ff   : > { %v2948_v20 = vsub.f32 1.0, %v6176_v26 }
 0x400   : > { %3289 = vst.msk [vmem:[#allocation2 + $0x60] sm:$0xff] %vm305_vm2, %v3264_v15  ;;  %3314 = vst.msk [vmem:[%s4822_s24 + $0x50] sm:$0xff] %vm305_vm2, %v3264_v15  ;;  %v3265_v29 = vmul.f32 %v5894_v43, %v3115_v3  ;;  %v3092_v43 = vmul.f32 %v4754_v62, %v6171_v39  ;;  %v4760_v3 = vld [vmem:[#allocation2 + $0xa8] sm:$0xff] }
 0x401   : > { %v3004_v40 = vpop.permute.xlu0 %3003 }
 0x402   : > { %3290 = vst.msk [vmem:[#allocation2 + $0x68] sm:$0xff] %vm305_vm2, %v3265_v29  ;;  %3315 = vst.msk [vmem:[%s4822_s24 + $0x58] sm:$0xff] %vm305_vm2, %v3265_v29  ;;  %v3066_v48 = vmul.f32 %v3004_v40, %v2941_v57 }
 0x403   : > { %v3006_v58 = vpop.permute.xlu1 %3005 }
 0x404   : > { %v3116_v52 = vadd.f32 %v3091_v56, %v3066_v48  ;;  %v3067_v13 = vmul.f32 %v3006_v58, %v2942_v33  ;;  %v6177_v56 = vld [vmem:[#allocation10_spill] sm:$0xff]  ;;  %v4761_v33 = vld [vmem:[#allocation2 + $0xb0] sm:$0xff] }
 0x405   : > { %v2949_v48 = vsub.f32 1.0, %v6177_v56  ;;  %v3099_v58 = vmul.f32 %v4761_v33, %v6177_v56 }
 0x406   : > { %v3266_v61 = vmul.f32 %v5904_v0, %v3116_v52  ;;  %v3117_v32 = vadd.f32 %v3092_v43, %v3067_v13  ;;  %v6178_v52 = vld [vmem:[#allocation11_spill] sm:$0xff] }
 0x407   : > { %v2950_v62 = vsub.f32 1.0, %v6178_v52 }
 0x408   : > { %3291 = vst.msk [vmem:[#allocation2 + $0x70] sm:$0xff] %vm305_vm2, %v3266_v61  ;;  %3316 = vst.msk [vmem:[%s4822_s24 + $0x60] sm:$0xff] %vm305_vm2, %v3266_v61  ;;  %v3267_v36 = vmul.f32 %v5902_v17, %v3117_v32  ;;  %v3094_v17 = vmul.f32 %v4756_v44, %v6173_v49  ;;  %v4762_v61 = vld [vmem:[#allocation2 + $0xb8] sm:$0xff] }
 0x409   : > { %v3008_v41 = vpop.permute.xlu0 %3007 }
 0x40a   : > { %3292 = vst.msk [vmem:[#allocation2 + $0x78] sm:$0xff] %vm305_vm2, %v3267_v36  ;;  %3317 = vst.msk [vmem:[%s4822_s24 + $0x68] sm:$0xff] %vm305_vm2, %v3267_v36  ;;  %v3068_v0 = vmul.f32 %v3008_v41, %v2943_v6  ;;  %v6179_v41 = vld [vmem:[#allocation12_spill] sm:$0xff] }
 0x40b   : > { %v3010_v60 = vpop.permute.xlu1 %3009  ;;  %v2951_v46 = vsub.f32 1.0, %v6179_v41 }
 0x40c   : > { %v3118_v63 = vadd.f32 %v3093_v24, %v3068_v0  ;;  %v3069_v16 = vmul.f32 %v3010_v60, %v2944_v27  ;;  %v4763_v0 = vld [vmem:[#allocation2 + $0xc0] sm:$0xff] }
 0x40d   : > { %v3101_v49 = vmul.f32 %v4763_v0, %v6179_v41 }
 0x40e   : > { %v3268_v25 = vmul.f32 %v5906_v14, %v3118_v63  ;;  %v3119_v35 = vadd.f32 %v3094_v17, %v3069_v16  ;;  %v6180_v63 = vld [vmem:[#allocation13_spill] sm:$0xff]  ;;  %v4764_v16 = vld [vmem:[#allocation2 + $0xc8] sm:$0xff] }
 0x40f   : > { %v2952_v44 = vsub.f32 1.0, %v6180_v63 }
 0x410   : > { %3293 = vst.msk [vmem:[#allocation2 + $0x80] sm:$0xff] %vm305_vm2, %v3268_v25  ;;  %3318 = vst.msk [vmem:[%s4822_s24 + $0x70] sm:$0xff] %vm305_vm2, %v3268_v25  ;;  %v3269_v50 = vmul.f32 %v5968_v51, %v3119_v35  ;;  %v3096_v51 = vmul.f32 %v4758_v37, %v5843_v19  ;;  %v3097_v19 = vmul.f32 %v4759_v31, %v6175_v12 }
 0x411   : > { %v3012_v55 = vpop.permute.xlu0 %3011  ;;  %v3102_v25 = vmul.f32 %v4764_v16, %v6180_v63 }
 0x412   : > { %3294 = vst.msk [vmem:[#allocation2 + $0x88] sm:$0xff] %vm305_vm2, %v3269_v50  ;;  %3319 = vst.msk [vmem:[%s4822_s24 + $0x78] sm:$0xff] %vm305_vm2, %v3269_v50  ;;  %v3070_v14 = vmul.f32 %v3012_v55, %v2945_v18  ;;  %v6181_v50 = vld [vmem:[#allocation14_spill] sm:$0xff] }
 0x413   : > { %v3014_v21 = vpop.permute.xlu1 %3013  ;;  %v2953_v5 = vsub.f32 1.0, %v6181_v50 }
 0x414   : > { %v3120_v38 = vadd.f32 %v3095_v53, %v3070_v14  ;;  %v3071_v59 = vmul.f32 %v3014_v21, %v2946_v47 }
 0x416   : > { %v3270_v42 = vmul.f32 %v5960_v4, %v3120_v38  ;;  %v3121_v23 = vadd.f32 %v3096_v51, %v3071_v59 }
 0x418   : > { %3295 = vst.msk [vmem:[#allocation2 + $0x90] sm:$0xff] %vm305_vm2, %v3270_v42  ;;  %3320 = vst.msk [vmem:[%s4822_s24 + $0x80] sm:$0xff] %vm305_vm2, %v3270_v42  ;;  %v3271_v54 = vmul.f32 %v5970_v22, %v3121_v23  ;;  %v3098_v22 = vmul.f32 %v4760_v3, %v6176_v26 }
 0x419   : > { %v3016_v11 = vpop.permute.xlu0 %3015 }
 0x41a   : > { %3296 = vst.msk [vmem:[#allocation2 + $0x98] sm:$0xff] %vm305_vm2, %v3271_v54  ;;  %3321 = vst.msk [vmem:[%s4822_s24 + $0x88] sm:$0xff] %vm305_vm2, %v3271_v54  ;;  %v3072_v4 = vmul.f32 %v3016_v11, %v2947_v10 }
 0x41b   : > { %v3018_v2 = vpop.permute.xlu1 %3017 }
 0x41c   : > { %v3122_v15 = vadd.f32 %v3097_v19, %v3072_v4  ;;  %v3073_v29 = vmul.f32 %v3018_v2, %v2948_v20 }
 0x41e   : > { %v3272_v57 = vmul.f32 %v5966_v8, %v3122_v15  ;;  %v3123_v40 = vadd.f32 %v3098_v22, %v3073_v29 }
 0x420   : > { %3297 = vst.msk [vmem:[#allocation2 + $0xa0] sm:$0xff] %vm305_vm2, %v3272_v57  ;;  %3322 = vst.msk [vmem:[%s4822_s24 + $0x90] sm:$0xff] %vm305_vm2, %v3272_v57  ;;  %v3273_v45 = vmul.f32 %v5974_v34, %v3123_v40  ;;  %v3100_v34 = vmul.f32 %v4762_v61, %v6178_v52 }
 0x421   : > { %v3020_v39 = vpop.permute.xlu0 %3019 }
 0x422   : > { %3298 = vst.msk [vmem:[#allocation2 + $0xa8] sm:$0xff] %vm305_vm2, %v3273_v45  ;;  %3323 = vst.msk [vmem:[%s4822_s24 + $0x98] sm:$0xff] %vm305_vm2, %v3273_v45  ;;  %v3074_v8 = vmul.f32 %v3020_v39, %v2949_v48 }
 0x423   : > { %v3022_v43 = vpop.permute.xlu1 %3021 }
 0x424   : > { %v3124_v13 = vadd.f32 %v3099_v58, %v3074_v8  ;;  %v3075_v32 = vmul.f32 %v3022_v43, %v2950_v62 }
 0x426   : > { %v3274_v36 = vmul.f32 %v5972_v9, %v3124_v13  ;;  %v3125_v7 = vadd.f32 %v3100_v34, %v3075_v32 }
 0x428   : > { %3299 = vst.msk [vmem:[#allocation2 + $0xb0] sm:$0xff] %vm305_vm2, %v3274_v36  ;;  %3324 = vst.msk [vmem:[%s4822_s24 + $0xa0] sm:$0xff] %vm305_vm2, %v3274_v36  ;;  %v3275_v6 = vmul.f32 %v5979_v30, %v3125_v7 }
 0x429   : > { %v3024_v24 = vpop.permute.xlu0 %3023 }
 0x42a   : > { %3300 = vst.msk [vmem:[#allocation2 + $0xb8] sm:$0xff] %vm305_vm2, %v3275_v6  ;;  %3325 = vst.msk [vmem:[%s4822_s24 + $0xa8] sm:$0xff] %vm305_vm2, %v3275_v6  ;;  %v3076_v27 = vmul.f32 %v3024_v24, %v2951_v46 }
 0x42b   : > { %v3026_v30 = vpop.permute.xlu1 %3025 }
 0x42c   : > { %v3126_v60 = vadd.f32 %v3101_v49, %v3076_v27  ;;  %v3077_v17 = vmul.f32 %v3026_v30, %v2952_v44 }
 0x42e   : > { %v3276_v9 = vmul.f32 %v5976_v28, %v3126_v60  ;;  %v3127_v18 = vadd.f32 %v3102_v25, %v3077_v17  ;;  %v4765_v28 = vld [vmem:[#allocation2 + $0xd0] sm:$0xff] }
 0x42f   : > { %v3103_v14 = vmul.f32 %v4765_v28, %v6181_v50 }
 0x430   : > { %3301 = vst.msk [vmem:[#allocation2 + $0xc0] sm:$0xff] %vm305_vm2, %v3276_v9  ;;  %3326 = vst.msk [vmem:[%s4822_s24 + $0xb0] sm:$0xff] %vm305_vm2, %v3276_v9 }
 0x431   : > { %v3028_v35 = vpop.permute.xlu0 %3027 }
 0x432   : > { %v3078_v1 = vmul.f32 %v3028_v35, %v2953_v5 }
 0x434   : > { %v3128_v47 = vadd.f32 %v3103_v14, %v3078_v1 }
 0x43c   : > { %v3247_v55 = vpop.permute.xlu1 %3246 }
 0x43d   : > { %v3277_v53 = vmul.f32 %v3247_v55, %v3127_v18 }
 0x43f   : > { %3302 = vst.msk [vmem:[#allocation2 + $0xc8] sm:$0xff] %vm305_vm2, %v3277_v53  ;;  %3327 = vst.msk [vmem:[%s4822_s24 + $0xb8] sm:$0xff] %vm305_vm2, %v3277_v53 }
 0x442   : > { %v3252_v21 = vpop.permute.xlu0 %3251 }
 0x443   : > { %v3278_v38 = vmul.f32 %v3252_v21, %v3128_v47 }
 0x445   : > { %3303 = vst.msk [vmem:[#allocation2 + $0xd0] sm:$0xff] %vm305_vm2, %v3278_v38  ;;  %3328 = vst.msk [vmem:[%s4822_s24 + $0xc0] sm:$0xff] %vm305_vm2, %v3278_v38 }
 0x446 PF: > { %s14_s15 = sadd.s32 1, %s4772_s15  }
 0x447   : > { %p11_p5 = scmp.ge.s32.totalorder %s14_s15, 6  }
 0x449   :  { %13 = sbr.rel (!%p11_p5) target bundleno = 1 (0x1), region = 78 }

// kernel: encoder_forward.10
= control target key start
LH: loop header
LB: loop body
LE: loop exit
PB: predicated region body
PF: predicated region fallthrough
CT: control target
= control target key end

     0   :  { %v331_v0 = vmov 0   ;;  %vm142_vm0 = vcmask 130048   ;;  %vm264_vm1 = vcmask 392192   ;;  %s550_s1 = inlined_call_operand.vmem [shape: bf16[144,48], index: 1, kind: input, shape index: {}]   ;;  %s551_s0 = inlined_call_operand.vmem [shape: f32[128,144], index: 0, kind: input, shape index: {}]   ;;  %s552_s2 = inlined_call_operand.vmem [shape: f32[1,48], index: 2, kind: input, shape index: {}]   ;;  %s553_s3 = inlined_call_operand.vmem [shape: f32[128,48], index: 3, kind: output, shape index: {}]  }
   0x1   :  { %167 = vmatprep.subr.bf16.mxu0 %v331_v0  ;;  %303 = vmatprep.subr.bf16.mxu1 %v331_v0  ;;  %v322_v1 = vld [vmem:[%s550_s1] sm:$0xff]   ;;  %v323_v2 = vld [vmem:[%s550_s1 + $0x8] sm:$0xff]   ;;  %v324_v3 = vld [vmem:[%s550_s1 + $0x10] sm:$0xff]  }
   0x2   :  { %168 = vmatpush1.bf16.msra.mxu0 %v322_v1  ;;  %312 = vmatpush1.bf16.msra.mxu1 %v322_v1  ;;  %v16_v4 = vld [vmem:[%s551_s0 + $0x8] sm:$0xff]  ;;  %v18_v5 = vld [vmem:[%s551_s0 + $0x18] sm:$0xff]  ;;  %v326_v11 = vld [vmem:[%s550_s1 + $0x20] sm:$0xff]  }
   0x3   :  { %169 = vmatprep.subr.bf16.mxu0 %v331_v0  ;;  %304 = vmatprep.subr.bf16.mxu1 %v331_v0  ;;  %v32_v6 = vld [vmem:[%s551_s0 + $0x88] sm:$0xff]  ;;  %v325_v7 = vld [vmem:[%s550_s1 + $0x18] sm:$0xff]   ;;  %v48_v8 = vpack.c.bf16 %v18_v5, %v16_v4  ;;  %v328_v13 = vld [vmem:[%s550_s1 + $0x30] sm:$0xff]  }
   0x4   :  { %v34_v9 = vld [vmem:[%s551_s0 + $0x98] sm:$0xff]  ;;  %v327_v12 = vld [vmem:[%s550_s1 + $0x28] sm:$0xff]   ;;  %v330_v15 = vld [vmem:[%s550_s1 + $0x40] sm:$0xff]  }
   0x5   :  { %v56_v10 = vpack.c.bf16 %v34_v9, %v32_v6  ;;  %295 = vmatprep.mubr.msk.bf16.mxu0 %vm142_vm0, %v48_v8  ;;  %v329_v14 = vld [vmem:[%s550_s1 + $0x38] sm:$0xff]   ;;  %v15_v16 = vld [vmem:[%s551_s0] sm:$0xff]  ;;  %v17_v17 = vld [vmem:[%s551_s0 + $0x10] sm:$0xff] }
   0x6   :  { %170 = vmatpush1.bf16.msra.mxu0 %v323_v2  ;;  %313 = vmatpush1.bf16.msra.mxu1 %v323_v2  ;;  %v31_v18 = vld [vmem:[%s551_s0 + $0x80] sm:$0xff]  ;;  %v33_v19 = vld [vmem:[%s551_s0 + $0x90] sm:$0xff]  ;;  %v20_v20 = vld [vmem:[%s551_s0 + $0x28] sm:$0xff]  ;;  %v47_v24 = vpack.c.bf16 %v17_v17, %v15_v16 }
   0x7   :  { %171 = vmatprep.subr.bf16.mxu0 %v331_v0  ;;  %305 = vmatprep.subr.bf16.mxu1 %v331_v0  ;;  %v22_v21 = vld [vmem:[%s551_s0 + $0x38] sm:$0xff]  ;;  %v36_v22 = vld [vmem:[%s551_s0 + $0xa8] sm:$0xff]  ;;  %v55_v25 = vpack.c.bf16 %v33_v19, %v31_v18  ;;  %v19_v28 = vld [vmem:[%s551_s0 + $0x20] sm:$0xff] }
   0x8   :  { %299 = vmatprep.mubr.msk.bf16.mxu1 %vm142_vm0, %v56_v10  ;;  %v38_v23 = vld [vmem:[%s551_s0 + $0xb8] sm:$0xff]  ;;  %v50_v26 = vpack.c.bf16 %v22_v21, %v20_v20  ;;  %v21_v29 = vld [vmem:[%s551_s0 + $0x30] sm:$0xff]  ;;  %v35_v30 = vld [vmem:[%s551_s0 + $0xa0] sm:$0xff] }
   0x9   :  { %v58_v27 = vpack.c.bf16 %v38_v23, %v36_v22  ;;  %v37_v31 = vld [vmem:[%s551_s0 + $0xb0] sm:$0xff]  ;;  %v24_v32 = vld [vmem:[%s551_s0 + $0x48] sm:$0xff]  ;;  %v26_v33 = vld [vmem:[%s551_s0 + $0x58] sm:$0xff]  ;;  %v49_v36 = vpack.c.bf16 %v21_v29, %v19_v28 }
   0xa   :  { %172 = vmatpush1.bf16.msra.mxu0 %v324_v3  ;;  %314 = vmatpush1.bf16.msra.mxu1 %v324_v3  ;;  %v40_v34 = vld [vmem:[%s551_s0 + $0xc8] sm:$0xff]  ;;  %v42_v35 = vld [vmem:[%s551_s0 + $0xd8] sm:$0xff]  ;;  %v57_v37 = vpack.c.bf16 %v37_v31, %v35_v30  ;;  %v52_v38 = vpack.c.bf16 %v26_v33, %v24_v32  ;;  %v23_v40 = vld [vmem:[%s551_s0 + $0x40] sm:$0xff] }
   0xb   :  { %173 = vmatprep.subr.bf16.mxu0 %v331_v0  ;;  %306 = vmatprep.subr.bf16.mxu1 %v331_v0  ;;  %v60_v39 = vpack.c.bf16 %v42_v35, %v40_v34  ;;  %v25_v41 = vld [vmem:[%s551_s0 + $0x50] sm:$0xff]  ;;  %v39_v42 = vld [vmem:[%s551_s0 + $0xc0] sm:$0xff]  ;;  %v28_v44 = vld [vmem:[%s551_s0 + $0x68] sm:$0xff] }
   0xc   :  { %v41_v43 = vld [vmem:[%s551_s0 + $0xd0] sm:$0xff]  ;;  %v30_v45 = vld [vmem:[%s551_s0 + $0x78] sm:$0xff]  ;;  %v44_v46 = vld [vmem:[%s551_s0 + $0xe8] sm:$0xff]  ;;  %v51_v48 = vpack.c.bf16 %v25_v41, %v23_v40 }
   0xd   :  { %v46_v47 = vld [vmem:[%s551_s0 + $0xf8] sm:$0xff]  ;;  %v59_v49 = vpack.c.bf16 %v41_v43, %v39_v42  ;;  %v54_v50 = vpack.c.bf16 %v30_v45, %v28_v44  ;;  %v27_v52 = vld [vmem:[%s551_s0 + $0x60] sm:$0xff]  ;;  %v29_v53 = vld [vmem:[%s551_s0 + $0x70] sm:$0xff] }
   0xe   :  { %174 = vmatpush1.bf16.msra.mxu0 %v325_v7  ;;  %315 = vmatpush1.bf16.msra.mxu1 %v325_v7  ;;  %v62_v51 = vpack.c.bf16 %v46_v47, %v44_v46  ;;  %v43_v54 = vld [vmem:[%s551_s0 + $0xe0] sm:$0xff]  ;;  %v45_v55 = vld [vmem:[%s551_s0 + $0xf0] sm:$0xff]  ;;  %v53_v56 = vpack.c.bf16 %v29_v53, %v27_v52 }
   0xf   :  { %175 = vmatprep.subr.bf16.mxu0 %v331_v0  ;;  %307 = vmatprep.subr.bf16.mxu1 %v331_v0  ;;  %v61_v57 = vpack.c.bf16 %v45_v55, %v43_v54  ;;  %v285_v58 = vld [vmem:[%s552_s2] ss:$0 sm:$0xff] }
  0x12   :  { %176 = vmatpush1.bf16.msra.mxu0 %v326_v11  ;;  %316 = vmatpush1.bf16.msra.mxu1 %v326_v11 }
  0x13   :  { %177 = vmatprep.subr.bf16.mxu0 %v331_v0  ;;  %308 = vmatprep.subr.bf16.mxu1 %v331_v0 }
  0x16   :  { %178 = vmatpush1.bf16.msra.mxu0 %v327_v12  ;;  %317 = vmatpush1.bf16.msra.mxu1 %v327_v12 }
  0x17   :  { %179 = vmatprep.subr.bf16.mxu0 %v331_v0  ;;  %309 = vmatprep.subr.bf16.mxu1 %v331_v0 }
  0x1a   :  { %180 = vmatpush1.bf16.msra.mxu0 %v328_v13  ;;  %318 = vmatpush1.bf16.msra.mxu1 %v328_v13 }
  0x1b   :  { %181 = vmatprep.subr.bf16.mxu0 %v331_v0  ;;  %310 = vmatprep.subr.bf16.mxu1 %v331_v0 }
  0x1e   :  { %182 = vmatpush1.bf16.msra.mxu0 %v329_v14  ;;  %319 = vmatpush1.bf16.msra.mxu1 %v329_v14 }
  0x1f   :  { %183 = vmatprep.subr.bf16.mxu0 %v331_v0  ;;  %311 = vmatprep.subr.bf16.mxu1 %v331_v0 }
  0x22   :  { %184 = vmatpush1.bf16.msra.mxu0 %v330_v15  ;;  %320 = vmatpush1.bf16.msra.mxu1 %v330_v15 }
  0x25   :  { %200 = vmatmul.mubr.bf16.vlgmr.msra.gmra.mrb[0].mxu0 %v47_v24  ;;  %232 = vmatmul.mubr.bf16.vlgmr.msra.gmra.mrb[0].mxu1 %v55_v25 }
  0x26   :  { %296 = vmatprep.mubr.msk.bf16.mxu0 %vm142_vm0, %v50_v26  ;;  %300 = vmatprep.mubr.msk.bf16.mxu1 %vm142_vm0, %v58_v27 }
  0x2d   :  { %208 = vmatmul.mubr.bf16.gmra.mrb[4].mxu0 %v49_v36  ;;  %240 = vmatmul.mubr.bf16.gmra.mrb[4].mxu1 %v57_v37 }
  0x2e   :  { %297 = vmatprep.mubr.msk.bf16.mxu0 %vm142_vm0, %v52_v38  ;;  %301 = vmatprep.mubr.msk.bf16.mxu1 %vm142_vm0, %v60_v39 }
  0x35   :  { %216 = vmatmul.mubr.bf16.gmra.mrb[8].mxu0 %v51_v48  ;;  %248 = vmatmul.mubr.bf16.gmra.mrb[8].mxu1 %v59_v49 }
  0x36   :  { %298 = vmatprep.mubr.msk.bf16.mxu0 %vm142_vm0, %v54_v50  ;;  %302 = vmatprep.mubr.msk.bf16.mxu1 %vm142_vm0, %v62_v51 }
  0x3d   :  { %224 = vmatmul.mubr.bf16.gmra.mrb[12].mxu0 %v53_v56  ;;  %256 = vmatmul.mubr.bf16.gmra.mrb[12].mxu1 %v61_v57 }
  0xf8   :  { %v201_v59 = vpop.f32.mrb[0].mxu0  ;;  %v233_v60 = vpop.f32.mrb[0].mxu1 }
  0xf9   :  { %v202_v61 = vadd.f32 %v285_v58, %v201_v59  ;;  %v234_v62 = vadd.f32 %v285_v58, %v233_v60  ;;  %v203_v63 = vpop.f32.mrb[1].mxu0  ;;  %v235_v0 = vpop.f32.mrb[1].mxu1 }
  0xfa   :  { %v204_v1 = vpop.f32.mrb[2].mxu0  ;;  %v236_v2 = vpop.f32.mrb[2].mxu1 }
  0xfb   :  { %265 = vst.msk [vmem:[%s553_s3] sm:$0xff] %vm264_vm1, %v202_v61  ;;  %273 = vst.msk [vmem:[%s553_s3 + $0x40] sm:$0xff] %vm264_vm1, %v234_v62  ;;  %v205_v3 = vadd.f32 %v285_v58, %v204_v1  ;;  %v237_v4 = vadd.f32 %v285_v58, %v236_v2  ;;  %v206_v5 = vpop.f32.mrb[3].mxu0  ;;  %v238_v6 = vpop.f32.mrb[3].mxu1 }
  0xfd   :  { %266 = vst.msk [vmem:[%s553_s3 + $0x8] sm:$0xff] %vm264_vm1, %v205_v3  ;;  %274 = vst.msk [vmem:[%s553_s3 + $0x48] sm:$0xff] %vm264_vm1, %v237_v4 }
 0x100   :  { %v209_v7 = vpop.f32.mrb[4].mxu0  ;;  %v241_v8 = vpop.f32.mrb[4].mxu1 }
 0x101   :  { %v210_v9 = vadd.f32 %v285_v58, %v209_v7  ;;  %v242_v10 = vadd.f32 %v285_v58, %v241_v8  ;;  %v211_v11 = vpop.f32.mrb[5].mxu0  ;;  %v243_v12 = vpop.f32.mrb[5].mxu1 }
 0x102   :  { %v212_v13 = vpop.f32.mrb[6].mxu0  ;;  %v244_v14 = vpop.f32.mrb[6].mxu1 }
 0x103   :  { %267 = vst.msk [vmem:[%s553_s3 + $0x10] sm:$0xff] %vm264_vm1, %v210_v9  ;;  %275 = vst.msk [vmem:[%s553_s3 + $0x50] sm:$0xff] %vm264_vm1, %v242_v10  ;;  %v213_v15 = vadd.f32 %v285_v58, %v212_v13  ;;  %v245_v16 = vadd.f32 %v285_v58, %v244_v14  ;;  %v214_v17 = vpop.f32.mrb[7].mxu0  ;;  %v246_v18 = vpop.f32.mrb[7].mxu1 }
 0x105   :  { %268 = vst.msk [vmem:[%s553_s3 + $0x18] sm:$0xff] %vm264_vm1, %v213_v15  ;;  %276 = vst.msk [vmem:[%s553_s3 + $0x58] sm:$0xff] %vm264_vm1, %v245_v16 }
 0x108   :  { %v217_v19 = vpop.f32.mrb[8].mxu0  ;;  %v249_v20 = vpop.f32.mrb[8].mxu1 }
 0x109   :  { %v218_v21 = vadd.f32 %v285_v58, %v217_v19  ;;  %v250_v22 = vadd.f32 %v285_v58, %v249_v20  ;;  %v219_v23 = vpop.f32.mrb[9].mxu0  ;;  %v251_v24 = vpop.f32.mrb[9].mxu1 }
 0x10a   :  { %v220_v25 = vpop.f32.mrb[10].mxu0  ;;  %v252_v26 = vpop.f32.mrb[10].mxu1 }
 0x10b   :  { %269 = vst.msk [vmem:[%s553_s3 + $0x20] sm:$0xff] %vm264_vm1, %v218_v21  ;;  %277 = vst.msk [vmem:[%s553_s3 + $0x60] sm:$0xff] %vm264_vm1, %v250_v22  ;;  %v221_v27 = vadd.f32 %v285_v58, %v220_v25  ;;  %v253_v28 = vadd.f32 %v285_v58, %v252_v26  ;;  %v222_v29 = vpop.f32.mrb[11].mxu0  ;;  %v254_v30 = vpop.f32.mrb[11].mxu1 }
 0x10d   :  { %270 = vst.msk [vmem:[%s553_s3 + $0x28] sm:$0xff] %vm264_vm1, %v221_v27  ;;  %278 = vst.msk [vmem:[%s553_s3 + $0x68] sm:$0xff] %vm264_vm1, %v253_v28 }
 0x110   :  { %v225_v31 = vpop.f32.mrb[12].mxu0  ;;  %v257_v32 = vpop.f32.mrb[12].mxu1 }
 0x111   :  { %v226_v33 = vadd.f32 %v285_v58, %v225_v31  ;;  %v258_v34 = vadd.f32 %v285_v58, %v257_v32  ;;  %v227_v35 = vpop.f32.mrb[13].mxu0  ;;  %v259_v36 = vpop.f32.mrb[13].mxu1 }
 0x112   :  { %v228_v37 = vpop.f32.mrb[14].mxu0  ;;  %v260_v38 = vpop.f32.mrb[14].mxu1 }
 0x113   :  { %271 = vst.msk [vmem:[%s553_s3 + $0x30] sm:$0xff] %vm264_vm1, %v226_v33  ;;  %279 = vst.msk [vmem:[%s553_s3 + $0x70] sm:$0xff] %vm264_vm1, %v258_v34  ;;  %v229_v39 = vadd.f32 %v285_v58, %v228_v37  ;;  %v261_v40 = vadd.f32 %v285_v58, %v260_v38  ;;  %v230_v41 = vpop.f32.mrb[15].mxu0  ;;  %v262_v42 = vpop.f32.mrb[15].mxu1 }
 0x115   :  { %272 = vst.msk [vmem:[%s553_s3 + $0x38] sm:$0xff] %vm264_vm1, %v229_v39  ;;  %280 = vst.msk [vmem:[%s553_s3 + $0x78] sm:$0xff] %vm264_vm1, %v261_v40 }

// kernel: tile.14
= control target key start
LH: loop header
LB: loop body
LE: loop exit
PB: predicated region body
PF: predicated region fallthrough
CT: control target
= control target key end

     0   :  { %s22_s0 = inlined_call_operand.vmem [shape: f32[36], index: 0, kind: input, shape index: {}]   ;;  %s23_s1 = inlined_call_operand.vmem [shape: f32[2,1,1,36], index: 1, kind: output, shape index: {}]  }
   0x1   :  { %v4_v0 = vld [vmem:[%s22_s0] ss:$0 sm:$0xff] }
   0x2   :  { %5 = vst [vmem:[%s23_s1] sm:$0x3] %v4_v0 }

// kernel: tile.1
= control target key start
LH: loop header
LB: loop body
LE: loop exit
PB: predicated region body
PF: predicated region fallthrough
CT: control target
= control target key end

     0   :  { %s298_s8 = smov 125   ;;  %s299_s9 = smov 126   ;;  %vm7_vm0 = vcmask 7168   ;;  %s489_s0 = inlined_call_operand.vmem [shape: f32[2,1,1,36], index: 0, kind: input, shape index: {}]   ;;  %s490_s1 = inlined_call_operand.vmem [shape: f32[72,1], index: 1, kind: output, shape index: {}]  }
   0x1   :  { %v4_v0 = vld [vmem:[%s489_s0] sm:$0x3]  ;;  %s297_s0 = smov 127   ;;  %s300_s10 = smov 124  }
   0x2   :  { %5 = vst [vmem:[#allocation0] sm:$0x3] %v4_v0  ;;  %s301_s11 = smov 123   ;;  %s302_s12 = smov 122  }
   0x3   :  { %s303_s13 = smov 121   ;;  %s304_s14 = smov 120  }
   0x4   :  { %s305_s15 = smov 119   ;;  %s306_s16 = smov 118  }
   0x5   :  { %s307_s17 = smov 117   ;;  %s308_s18 = smov 116  }
   0x6   :  { %s309_s19 = smov 115   ;;  %s310_s20 = smov 114  }
   0x7   :  { %s311_s21 = smov 113   ;;  %s312_s22 = smov 112  }
   0x8   :  { %s313_s23 = smov 111   ;;  %s314_s24 = smov 110  }
   0x9   :  { %v9_v1 = vld [vmem:[#allocation0] sm:$0x3]   ;;  %s315_s25 = smov 109   ;;  %s316_s26 = smov 108  }
   0xa   :  { %v21_v2 = vld [vmem:[#allocation0] sm:$0x3]   ;;  %10 = vrot.lane.b32.xlu0 %v9_v1, %s297_s0  ;;  %s317_s27 = smov 107   ;;  %s318_s28 = smov 106  }
   0xb   :  { %22 = vrot.lane.b32.xlu1 %v21_v2, %s298_s8  ;;  %v15_v3 = vld [vmem:[#allocation0] sm:$0x3]   ;;  %s319_s29 = smov 105   ;;  %s320_s30 = smov 104  }
   0xc   :  { %v27_v4 = vld [vmem:[#allocation0] sm:$0x3]   ;;  %s172_s2 = smov 3  ;;  %s321_s3 = smov 103  }
   0xd   :  { %v33_v5 = vld [vmem:[#allocation0] sm:$0x3]   ;;  %s322_s4 = smov 102   ;;  %s180_s5 = smov 3 }
   0xe   :  { %16 = vrot.lane.b32.xlu0 %v15_v3, %s299_s9  ;;  %v39_v6 = vld [vmem:[#allocation0] sm:$0x3]   ;;  %s188_s6 = smov 3  ;;  %s323_s7 = smov 101  }
   0xf   :  { %28 = vrot.lane.b32.xlu1 %v27_v4, %s300_s10  ;;  %v45_v7 = vld [vmem:[#allocation0] sm:$0x3]   ;;  %s324_s0 = smov 100   ;;  %s196_s8 = smov 3 }
  0x10   :  { %v51_v8 = vld [vmem:[#allocation0] sm:$0x3]  }
  0x11   :  { %v57_v9 = vld [vmem:[#allocation0] sm:$0x3]  }
  0x12   :  { %34 = vrot.lane.b32.xlu0 %v33_v5, %s301_s11  ;;  %v63_v10 = vld [vmem:[#allocation0] sm:$0x3]   ;;  %s325_s11 = smov 99  }
  0x13   :  { %40 = vrot.lane.b32.xlu1 %v39_v6, %s302_s12  ;;  %v69_v11 = vld [vmem:[#allocation0] sm:$0x3]   ;;  %s326_s12 = smov 98  }
  0x14   :  { %v75_v12 = vld [vmem:[#allocation0] sm:$0x3]  }
  0x15   :  { %v81_v13 = vld [vmem:[#allocation0] sm:$0x3]  }
  0x16   :  { %46 = vrot.lane.b32.xlu0 %v45_v7, %s303_s13  ;;  %v87_v14 = vld [vmem:[#allocation0] sm:$0x3]   ;;  %s327_s13 = smov 97  }
  0x17   :  { %52 = vrot.lane.b32.xlu1 %v51_v8, %s304_s14  ;;  %v93_v15 = vld [vmem:[#allocation0] sm:$0x3]   ;;  %s328_s14 = smov 96  }
  0x18   :  { %v99_v16 = vld [vmem:[#allocation0] sm:$0x3]  }
  0x19   :  { %v105_v17 = vld [vmem:[#allocation0] sm:$0x3]  }
  0x1a   :  { %58 = vrot.lane.b32.xlu0 %v57_v9, %s305_s15  ;;  %v111_v18 = vld [vmem:[#allocation0] sm:$0x3]   ;;  %s329_s15 = smov 95  }
  0x1b   :  { %64 = vrot.lane.b32.xlu1 %v63_v10, %s306_s16  ;;  %v117_v19 = vld [vmem:[#allocation0] sm:$0x3]   ;;  %s330_s16 = smov 94  }
  0x1c   :  { %v123_v20 = vld [vmem:[#allocation0] sm:$0x3]  }
  0x1d   :  { %v129_v21 = vld [vmem:[#allocation0] sm:$0x3]  }
  0x1e   :  { %70 = vrot.lane.b32.xlu0 %v69_v11, %s307_s17  ;;  %v135_v22 = vld [vmem:[#allocation0] sm:$0x3]   ;;  %s331_s17 = smov 93  }
  0x1f   :  { %76 = vrot.lane.b32.xlu1 %v75_v12, %s308_s18  ;;  %v141_v23 = vld [vmem:[#allocation0] sm:$0x3]  }
  0x20   :  { %v147_v24 = vld [vmem:[#allocation0] sm:$0x3]  }
  0x21   :  { %v153_v25 = vld [vmem:[#allocation0] sm:$0x3]  }
  0x22   :  { %82 = vrot.lane.b32.xlu0 %v81_v13, %s309_s19  ;;  %v159_v26 = vld [vmem:[#allocation0] sm:$0x3]  }
  0x23   :  { %88 = vrot.lane.b32.xlu1 %v87_v14, %s310_s20  ;;  %v165_v27 = vld [vmem:[#allocation0] sm:$0x3]  }
  0x24   :  { %v173_v28 = vld [vmem:[#allocation0 + $0x1] ss:$-1 sm:%s172_s2]  }
  0x25   :  { %v181_v29 = vld [vmem:[#allocation0 + $0x1] ss:$-1 sm:%s180_s5]  }
  0x26   :  { %94 = vrot.lane.b32.xlu0 %v93_v15, %s311_s21  ;;  %v189_v30 = vld [vmem:[#allocation0 + $0x1] ss:$-1 sm:%s188_s6]  }
  0x27   :  { %100 = vrot.lane.b32.xlu1 %v99_v16, %s312_s22  ;;  %v6_v31 = vld [vmem:[#allocation0] sm:$0x3]  }
  0x28   :  { %8 = vst.msk [vmem:[%s490_s1] ss:$36 sm:$0x3] %vm7_vm0, %v6_v31   ;;  %v197_v32 = vld [vmem:[#allocation0 + $0x1] ss:$-1 sm:%s196_s8]  }
  0x29   :  { %v203_v33 = vld [vmem:[#allocation0] sm:$0x3]  }
  0x2a   :  { %106 = vrot.lane.b32.xlu0 %v105_v17, %s313_s23  ;;  %v209_v34 = vld [vmem:[#allocation0] sm:$0x3]  }
  0x2b   :  { %112 = vrot.lane.b32.xlu1 %v111_v18, %s314_s24  ;;  %v215_v35 = vld [vmem:[#allocation0] sm:$0x3]  }
  0x2c   :  { %v221_v36 = vld [vmem:[#allocation0] sm:$0x3]  }
  0x2e   :  { %118 = vrot.lane.b32.xlu0 %v117_v19, %s315_s25 }
  0x2f   :  { %124 = vrot.lane.b32.xlu1 %v123_v20, %s316_s26 }
  0x32   :  { %130 = vrot.lane.b32.xlu0 %v129_v21, %s317_s27 }
  0x33   :  { %136 = vrot.lane.b32.xlu1 %v135_v22, %s318_s28 }
  0x36   :  { %142 = vrot.lane.b32.xlu0 %v141_v23, %s319_s29 }
  0x37   :  { %148 = vrot.lane.b32.xlu1 %v147_v24, %s320_s30 }
  0x3a   :  { %154 = vrot.lane.b32.xlu0 %v153_v25, %s321_s3 }
  0x3b   :  { %160 = vrot.lane.b32.xlu1 %v159_v26, %s322_s4 }
  0x3e   :  { %166 = vrot.lane.b32.xlu0 %v165_v27, %s323_s7 }
  0x3f   :  { %174 = vrot.lane.b32.xlu1 %v173_v28, %s324_s0 }
  0x42   :  { %182 = vrot.lane.b32.xlu0 %v181_v29, %s325_s11 }
  0x43   :  { %190 = vrot.lane.b32.xlu1 %v189_v30, %s326_s12 }
  0x46   :  { %198 = vrot.lane.b32.xlu0 %v197_v32, %s327_s13 }
  0x47   :  { %204 = vrot.lane.b32.xlu1 %v203_v33, %s328_s14 }
  0x4a   :  { %210 = vrot.lane.b32.xlu0 %v209_v34, %s329_s15 }
  0x4b   :  { %216 = vrot.lane.b32.xlu1 %v215_v35, %s330_s16 }
  0x4e   :  { %222 = vrot.lane.b32.xlu0 %v221_v36, %s331_s17 }
  0x7c   :  { %v11_v37 = vpop.permute.xlu0 %10  }
  0x7d   :  { %v23_v38 = vpop.permute.xlu1 %22   ;;  %227 = vst.msk [vmem:[%s490_s1 + $0x1] ss:$36 sm:$0x3] %vm7_vm0, %v11_v37  }
  0x7e   :  { %229 = vst.msk [vmem:[%s490_s1 + $0x3] ss:$36 sm:$0x3] %vm7_vm0, %v23_v38  }
  0x80   :  { %v17_v39 = vpop.permute.xlu0 %16  }
  0x81   :  { %v29_v40 = vpop.permute.xlu1 %28   ;;  %228 = vst.msk [vmem:[%s490_s1 + $0x2] ss:$36 sm:$0x3] %vm7_vm0, %v17_v39  }
  0x82   :  { %230 = vst.msk [vmem:[%s490_s1 + $0x4] ss:$36 sm:$0x3] %vm7_vm0, %v29_v40  }
  0x84   :  { %v35_v41 = vpop.permute.xlu0 %34  }
  0x85   :  { %v41_v42 = vpop.permute.xlu1 %40   ;;  %231 = vst.msk [vmem:[%s490_s1 + $0x5] ss:$36 sm:$0x3] %vm7_vm0, %v35_v41  }
  0x86   :  { %232 = vst.msk [vmem:[%s490_s1 + $0x6] ss:$36 sm:$0x3] %vm7_vm0, %v41_v42  }
  0x88   :  { %v47_v43 = vpop.permute.xlu0 %46  }
  0x89   :  { %v53_v44 = vpop.permute.xlu1 %52   ;;  %233 = vst.msk [vmem:[%s490_s1 + $0x7] ss:$36 sm:$0x3] %vm7_vm0, %v47_v43  }
  0x8a   :  { %234 = vst.msk [vmem:[%s490_s1 + $0x8] ss:$36 sm:$0x3] %vm7_vm0, %v53_v44  }
  0x8c   :  { %v59_v45 = vpop.permute.xlu0 %58  }
  0x8d   :  { %v65_v46 = vpop.permute.xlu1 %64   ;;  %235 = vst.msk [vmem:[%s490_s1 + $0x9] ss:$36 sm:$0x3] %vm7_vm0, %v59_v45  }
  0x8e   :  { %236 = vst.msk [vmem:[%s490_s1 + $0xa] ss:$36 sm:$0x3] %vm7_vm0, %v65_v46  }
  0x90   :  { %v71_v47 = vpop.permute.xlu0 %70  }
  0x91   :  { %v77_v48 = vpop.permute.xlu1 %76   ;;  %237 = vst.msk [vmem:[%s490_s1 + $0xb] ss:$36 sm:$0x3] %vm7_vm0, %v71_v47  }
  0x92   :  { %238 = vst.msk [vmem:[%s490_s1 + $0xc] ss:$36 sm:$0x3] %vm7_vm0, %v77_v48  }
  0x94   :  { %v83_v49 = vpop.permute.xlu0 %82  }
  0x95   :  { %v89_v50 = vpop.permute.xlu1 %88   ;;  %239 = vst.msk [vmem:[%s490_s1 + $0xd] ss:$36 sm:$0x3] %vm7_vm0, %v83_v49  }
  0x96   :  { %240 = vst.msk [vmem:[%s490_s1 + $0xe] ss:$36 sm:$0x3] %vm7_vm0, %v89_v50  }
  0x98   :  { %v95_v51 = vpop.permute.xlu0 %94  }
  0x99   :  { %v101_v52 = vpop.permute.xlu1 %100   ;;  %241 = vst.msk [vmem:[%s490_s1 + $0xf] ss:$36 sm:$0x3] %vm7_vm0, %v95_v51  }
  0x9a   :  { %242 = vst.msk [vmem:[%s490_s1 + $0x10] ss:$36 sm:$0x3] %vm7_vm0, %v101_v52  }
  0x9c   :  { %v107_v53 = vpop.permute.xlu0 %106  }
  0x9d   :  { %v113_v54 = vpop.permute.xlu1 %112   ;;  %243 = vst.msk [vmem:[%s490_s1 + $0x11] ss:$36 sm:$0x3] %vm7_vm0, %v107_v53  }
  0x9e   :  { %244 = vst.msk [vmem:[%s490_s1 + $0x12] ss:$36 sm:$0x3] %vm7_vm0, %v113_v54  }
  0xa0   :  { %v119_v55 = vpop.permute.xlu0 %118  }
  0xa1   :  { %v125_v56 = vpop.permute.xlu1 %124   ;;  %245 = vst.msk [vmem:[%s490_s1 + $0x13] ss:$36 sm:$0x3] %vm7_vm0, %v119_v55  }
  0xa2   :  { %246 = vst.msk [vmem:[%s490_s1 + $0x14] ss:$36 sm:$0x3] %vm7_vm0, %v125_v56  }
  0xa4   :  { %v131_v57 = vpop.permute.xlu0 %130  }
  0xa5   :  { %v137_v58 = vpop.permute.xlu1 %136   ;;  %247 = vst.msk [vmem:[%s490_s1 + $0x15] ss:$36 sm:$0x3] %vm7_vm0, %v131_v57  }
  0xa6   :  { %248 = vst.msk [vmem:[%s490_s1 + $0x16] ss:$36 sm:$0x3] %vm7_vm0, %v137_v58  }
  0xa8   :  { %v143_v59 = vpop.permute.xlu0 %142  }
  0xa9   :  { %v149_v60 = vpop.permute.xlu1 %148   ;;  %249 = vst.msk [vmem:[%s490_s1 + $0x17] ss:$36 sm:$0x3] %vm7_vm0, %v143_v59  }
  0xaa   :  { %250 = vst.msk [vmem:[%s490_s1 + $0x18] ss:$36 sm:$0x3] %vm7_vm0, %v149_v60  }
  0xac   :  { %v155_v61 = vpop.permute.xlu0 %154  }
  0xad   :  { %v161_v62 = vpop.permute.xlu1 %160   ;;  %251 = vst.msk [vmem:[%s490_s1 + $0x19] ss:$36 sm:$0x3] %vm7_vm0, %v155_v61  }
  0xae   :  { %252 = vst.msk [vmem:[%s490_s1 + $0x1a] ss:$36 sm:$0x3] %vm7_vm0, %v161_v62  }
  0xb0   :  { %v167_v63 = vpop.permute.xlu0 %166  }
  0xb1   :  { %v175_v0 = vpop.permute.xlu1 %174   ;;  %253 = vst.msk [vmem:[%s490_s1 + $0x1b] ss:$36 sm:$0x3] %vm7_vm0, %v167_v63  }
  0xb2   :  { %254 = vst.msk [vmem:[%s490_s1 + $0x40] ss:$-36 sm:$0x3] %vm7_vm0, %v175_v0  }
  0xb4   :  { %v183_v1 = vpop.permute.xlu0 %182  }
  0xb5   :  { %v191_v2 = vpop.permute.xlu1 %190   ;;  %255 = vst.msk [vmem:[%s490_s1 + $0x41] ss:$-36 sm:$0x3] %vm7_vm0, %v183_v1  }
  0xb6   :  { %256 = vst.msk [vmem:[%s490_s1 + $0x42] ss:$-36 sm:$0x3] %vm7_vm0, %v191_v2  }
  0xb8   :  { %v199_v3 = vpop.permute.xlu0 %198  }
  0xb9   :  { %v205_v4 = vpop.permute.xlu1 %204   ;;  %257 = vst.msk [vmem:[%s490_s1 + $0x43] ss:$-36 sm:$0x3] %vm7_vm0, %v199_v3  }
  0xba   :  { %258 = vst.msk [vmem:[%s490_s1 + $0x20] ss:$36 sm:$0x3] %vm7_vm0, %v205_v4  }
  0xbc   :  { %v211_v5 = vpop.permute.xlu0 %210  }
  0xbd   :  { %v217_v6 = vpop.permute.xlu1 %216   ;;  %259 = vst.msk [vmem:[%s490_s1 + $0x21] ss:$36 sm:$0x3] %vm7_vm0, %v211_v5  }
  0xbe   :  { %260 = vst.msk [vmem:[%s490_s1 + $0x22] ss:$36 sm:$0x3] %vm7_vm0, %v217_v6  }
  0xc0   :  { %v223_v7 = vpop.permute.xlu0 %222  }
  0xc1   :  { %261 = vst.msk [vmem:[%s490_s1 + $0x23] ss:$36 sm:$0x3] %vm7_vm0, %v223_v7  }

// kernel: encoder_forward.11
= control target key start
LH: loop header
LB: loop body
LE: loop exit
PB: predicated region body
PF: predicated region fallthrough
CT: control target
= control target key end

     0   :  { %s2296_s15 = smov 0   ;;  %s2710_s0 = inlined_call_operand.vmem [shape: f32[4,72,48], index: 0, kind: input, shape index: {}]   ;;  %s2711_s1 = inlined_call_operand.vmem [shape: bf16[9,16,48], index: 1, kind: input, shape index: {}]   ;;  %s2712_s2 = inlined_call_operand.vmem [shape: f32[1,48], index: 2, kind: input, shape index: {}]   ;;  %s2713_s3 = inlined_call_operand.vmem [shape: f32[72,1], index: 3, kind: input, shape index: {}]   ;;  %s2714_s4 = inlined_call_operand.vmem [shape: f32[4,72,16], index: 4, kind: output, shape index: {}]  }
   0x1 LB: > { %s1673_s16 = sadd.s32 4294967295, %s2262_s15   ;;  %p1677_p0 = scmp.ge.s32.totalorder %s2262_s15, 1  ;;  %s2262_s15 = sphi %s2296_s15, %s14_s15  }
   0x2   : > { %p162_p1 = scmp.lt.s32.totalorder %s2262_s15, 5 }
   0x4   : > { %p163_p2 = pnand %p1677_p0, %p162_p1 }
   0x5   : > { %p188_p3 = scmp.lt.s32.totalorder (!%p163_p2), %s1673_s16, 3  ;;  %p1680_p4 = scmp.ne.s32.totalorder (!%p163_p2), %s1673_s16, 0 }
   0x6   : > { %166 = sbr.rel (%p163_p2) target bundleno = 784 (0x310), region = 36 }
   0xd   : > { %s189_s17 = scalar_select %p188_p3, %s1673_s16, 3 }
   0xe   : > { %202 = sbr.rel (%p1680_p4) target bundleno = 21 (0x15), region = 40  ;;  %vm203_vm0 = vcmask (!%p1680_p4), 130048   ;;  %v2264_v0 = vmov (!%p1680_p4), 0.0  }
   0xf   : > { %s2175_s18 = smul.u32 72, %s189_s17  ;;  %204 = vst.msk [vmem:[#allocation2] sm:$0xff] (!%p1680_p4), %vm203_vm0, %v2264_v0  ;;  %205 = vst.msk [vmem:[#allocation2 + $0x8] sm:$0xff] (!%p1680_p4), %vm203_vm0, %v2264_v0 }
  0x10   : > { %206 = vst.msk [vmem:[#allocation2 + $0x10] sm:$0xff] (!%p1680_p4), %vm203_vm0, %v2264_v0  ;;  %207 = vst.msk [vmem:[#allocation2 + $0x18] sm:$0xff] (!%p1680_p4), %vm203_vm0, %v2264_v0 }
  0x11   : > { %s2307_s21 = scalar_lea.vmem %s2710_s0, %s2175_s18  ;;  %s2312_s24 = scalar_lea.vmem %s2714_s4, %s2175_s18  ;;  %208 = vst.msk [vmem:[#allocation2 + $0x20] sm:$0xff] (!%p1680_p4), %vm203_vm0, %v2264_v0  ;;  %209 = vst.msk [vmem:[#allocation2 + $0x28] sm:$0xff] (!%p1680_p4), %vm203_vm0, %v2264_v0 }
  0x12   : > { %210 = vst.msk [vmem:[#allocation2 + $0x30] sm:$0xff] (!%p1680_p4), %vm203_vm0, %v2264_v0  ;;  %211 = vst.msk [vmem:[#allocation2 + $0x38] sm:$0xff] (!%p1680_p4), %vm203_vm0, %v2264_v0 }
  0x13   : > { %212 = vst.msk [vmem:[#allocation2 + $0x40] sm:$0xff] (!%p1680_p4), %vm203_vm0, %v2264_v0  ;;  %213 = vst.msk [vmem:[#allocation2 + $0x48] sm:$0xff] (!%p1680_p4), %vm203_vm0, %v2264_v0 }
  0x14   : > { %214 = vst.msk [vmem:[#allocation2 + $0x50] sm:$0xff] (!%p1680_p4), %vm203_vm0, %v2264_v0 }
  0x15 PF: > { %v2193_v1 = vld [vmem:[%s2711_s1] sm:$0xff]   ;;  %v2265_v2 = vmov 0.0   ;;  %vm2266_vm1 = vmmov 0   ;;  %vm254_vm2 = vcmask 130048   ;;  %v2195_v10 = vld [vmem:[%s2711_s1 + $0x28] sm:$0xff]   ;;  %v2197_v28 = vld [vmem:[%s2711_s1 + $0x30] sm:$0xff]  }
  0x16   : > { %1817 = vmatprep.subr.bf16.mxu1 %v2265_v2  ;;  %1905 = vmatprep.subr.bf16.mxu0 %v2265_v2  ;;  %v2322_v3 = vld [vmem:[%s2711_s1 + $0x20] sm:$0xff]   ;;  %v2326_v6 = vld [vmem:[#allocation2 + $0x8] sm:$0xff]  ;;  %v2198_v36 = vld [vmem:[%s2711_s1 + $0x10] sm:$0xff]   ;;  %s2267_s20 = smov 112   ;;  %s2270_s16 = smov 96  }
  0x17   : > { %1818 = vmatpush3.bf16.msra.mxu1 %v2193_v1  ;;  %1819 = vmatprep.mubr.msk.bf16.mxu1 %vm2266_vm1, %v2265_v2  ;;  %v232_v4 = vld [vmem:[#allocation2 + $0x1] sm:$0xff]  ;;  %v233_v5 = vld [vmem:[#allocation2 + $0x9] sm:$0xff]  ;;  %v234_v12 = vld [vmem:[#allocation2 + $0x11] sm:$0xff] }
  0x18   : > { %1906 = vmatpush3.bf16.msra.mxu0 %v2322_v3  ;;  %1907 = vmatprep.mubr.msk.bf16.mxu0 %vm2266_vm1, %v2265_v2  ;;  %v243_v7 = vpack.c.bf16 %v233_v5, %v232_v4  ;;  %v2331_v8 = vld [vmem:[#allocation2 + $0x10] sm:$0xff]  ;;  %v2196_v11 = vld [vmem:[%s2711_s1 + $0x8] sm:$0xff]   ;;  %v235_v13 = vld [vmem:[#allocation2 + $0x19] sm:$0xff]  ;;  %v830_v27 = vpack.c.bf16 %v234_v12, %v233_v5 }
  0x19   : > { %v711_v9 = vpack.c.bf16 %v2331_v8, %v2326_v6  ;;  %1927 = vmatprep.subr.bf16.mxu0 %v2265_v2  ;;  %1839 = vmatprep.subr.bf16.mxu1 %v2265_v2  ;;  %v2347_v14 = vld [vmem:[#allocation2 + $0x18] sm:$0xff]  ;;  %v2349_v15 = vld [vmem:[#allocation2 + $0x20] sm:$0xff]  ;;  %v244_v16 = vpack.c.bf16 %v235_v13, %v234_v12  ;;  %v237_v19 = vld [vmem:[#allocation2 + $0x29] sm:$0xff] }
  0x1a   : > { %1820 = vmatmul.mubr.msk.bf16.vlgmr.msra.gmra.mrb[0].mxu1 %vm254_vm2, %v243_v7  ;;  %v712_v17 = vpack.c.bf16 %v2349_v15, %v2347_v14  ;;  %v236_v18 = vld [vmem:[#allocation2 + $0x21] sm:$0xff]  ;;  %v2365_v21 = vld [vmem:[#allocation2 + $0x30] sm:$0xff]  ;;  %v239_v25 = vld [vmem:[#allocation2 + $0x39] sm:$0xff] }
  0x1b   : > { %1908 = vmatmul.mubr.msk.bf16.vlgmr.msra.gmra.mrb[0].mxu0 %vm254_vm2, %v711_v9  ;;  %1823 = vmatprep.mubr.msk.bf16.mxu1 %vm2266_vm1, %v2265_v2  ;;  %v2363_v20 = vld [vmem:[#allocation2 + $0x28] sm:$0xff]  ;;  %v245_v22 = vpack.c.bf16 %v237_v19, %v236_v18  ;;  %v238_v24 = vld [vmem:[#allocation2 + $0x31] sm:$0xff]  ;;  %v831_v31 = vpack.c.bf16 %v236_v18, %v235_v13  ;;  %v354_v38 = vld [vmem:[#allocation2 + $0x1a] sm:$0xff] }
  0x1c   : > { %1928 = vmatpush3.bf16.msra.mxu0 %v2195_v10  ;;  %1840 = vmatpush3.bf16.msra.mxu1 %v2196_v11  ;;  %v713_v23 = vpack.c.bf16 %v2365_v21, %v2363_v20  ;;  %v246_v26 = vpack.c.bf16 %v239_v25, %v238_v24  ;;  %v240_v29 = vld [vmem:[#allocation2 + $0x41] sm:$0xff]  ;;  %v352_v33 = vld [vmem:[#allocation2 + $0xa] sm:$0xff]  ;;  %v832_v35 = vpack.c.bf16 %v238_v24, %v237_v19  ;;  %v353_v37 = vld [vmem:[#allocation2 + $0x12] sm:$0xff] }
  0x1d   : > { %1911 = vmatprep.mubr.msk.bf16.mxu0 %vm2266_vm1, %v2265_v2  ;;  %1949 = vmatprep.subr.bf16.mxu0 %v2265_v2  ;;  %v247_v30 = vpack.c.bf16 %v240_v29, %v240_v29  ;;  %v351_v32 = vld [vmem:[#allocation2 + $0x2] sm:$0xff]  ;;  %v364_v39 = vpack.c.bf16 %v354_v38, %v353_v37  ;;  %v833_v40 = vpack.c.bf16 %v240_v29, %v239_v25  ;;  %v356_v42 = vld [vmem:[#allocation2 + $0x2a] sm:$0xff]  ;;  %v357_v46 = vld [vmem:[#allocation2 + $0x32] sm:$0xff] }
  0x1e   : > { %1861 = vmatprep.subr.bf16.mxu1 %v2265_v2  ;;  %v363_v34 = vpack.c.bf16 %v352_v33, %v351_v32  ;;  %v355_v41 = vld [vmem:[#allocation2 + $0x22] sm:$0xff]  ;;  %v358_v47 = vld [vmem:[#allocation2 + $0x3a] sm:$0xff]  ;;  %v937_v48 = vld [vmem:[#allocation2 + $0xd] sm:$0xff] }
  0x1f   : > { %v826_v43 = vld [vmem:[#allocation2 + $0x49] sm:$0xff]  ;;  %v365_v44 = vpack.c.bf16 %v356_v42, %v355_v41  ;;  %v938_v49 = vld [vmem:[#allocation2 + $0x15] sm:$0xff]  ;;  %v366_v50 = vpack.c.bf16 %v358_v47, %v357_v46  ;;  %v939_v54 = vld [vmem:[#allocation2 + $0x1d] sm:$0xff] }
  0x20   : > { %v834_v45 = vpack.c.bf16 %v826_v43, %v826_v43  ;;  %v949_v51 = vpack.c.bf16 %v938_v49, %v937_v48  ;;  %v2199_v52 = vld [vmem:[%s2711_s1 + $0x38] sm:$0xff]   ;;  %v359_v53 = vld [vmem:[#allocation2 + $0x42] sm:$0xff]  ;;  %v471_v59 = vld [vmem:[#allocation2 + $0xb] sm:$0xff] }
  0x21   : > { %v940_v55 = vld [vmem:[#allocation2 + $0x25] sm:$0xff]  ;;  %v367_v56 = vpack.c.bf16 %v359_v53, %v359_v53  ;;  %v941_v60 = vld [vmem:[#allocation2 + $0x2d] sm:$0xff]  ;;  %v942_v61 = vld [vmem:[#allocation2 + $0x35] sm:$0xff] }
  0x22   : > { %1824 = vmatmul.mubr.msk.bf16.gmra.mrb[4].mxu1 %vm254_vm2, %v244_v16  ;;  %v950_v57 = vpack.c.bf16 %v940_v55, %v939_v54  ;;  %v470_v58 = vld [vmem:[#allocation2 + $0x3] sm:$0xff]  ;;  %v951_v63 = vpack.c.bf16 %v942_v61, %v941_v60  ;;  %v2200_v0 = vld [vmem:[%s2711_s1 + $0x18] sm:$0xff]   ;;  %v475_v12 = vld [vmem:[#allocation2 + $0x2b] sm:$0xff] }
  0x23   : > { %1912 = vmatmul.mubr.msk.bf16.gmra.mrb[4].mxu0 %vm254_vm2, %v712_v17  ;;  %1827 = vmatprep.mubr.msk.bf16.mxu1 %vm2266_vm1, %v2265_v2  ;;  %v482_v62 = vpack.c.bf16 %v471_v59, %v470_v58  ;;  %v472_v1 = vld [vmem:[#allocation2 + $0x13] sm:$0xff]  ;;  %v473_v4 = vld [vmem:[#allocation2 + $0x1b] sm:$0xff]  ;;  %v944_v7 = vld [vmem:[#allocation2 + $0x45] sm:$0xff] }
  0x24   : > { %1915 = vmatprep.mubr.msk.bf16.mxu0 %vm2266_vm1, %v2265_v2  ;;  %v943_v5 = vld [vmem:[#allocation2 + $0x3d] sm:$0xff]  ;;  %v483_v9 = vpack.c.bf16 %v473_v4, %v472_v1  ;;  %v945_v13 = vld [vmem:[#allocation2 + $0x4d] sm:$0xff] }
  0x25   : > { %v952_v10 = vpack.c.bf16 %v944_v7, %v943_v5  ;;  %v474_v11 = vld [vmem:[#allocation2 + $0x23] sm:$0xff]  ;;  %v953_v17 = vpack.c.bf16 %v945_v13, %v945_v13  ;;  %v476_v18 = vld [vmem:[#allocation2 + $0x33] sm:$0xff]  ;;  %v477_v19 = vld [vmem:[#allocation2 + $0x3b] sm:$0xff] }
  0x26   : > { %v484_v16 = vpack.c.bf16 %v475_v12, %v474_v11  ;;  %v485_v24 = vpack.c.bf16 %v477_v19, %v476_v18  ;;  %v1059_v29 = vld [vmem:[#allocation2 + $0x26] sm:$0xff]  ;;  %v590_v33 = vld [vmem:[#allocation2 + $0xf] sm:$0xff]  ;;  %v591_v38 = vld [vmem:[#allocation2 + $0x17] sm:$0xff] }
  0x27   : > { %v589_v32 = vld [vmem:[#allocation2 + $0x7] sm:$0xff]  ;;  %v595_v48 = vld [vmem:[#allocation2 + $0x37] sm:$0xff]  ;;  %v596_v49 = vld [vmem:[#allocation2 + $0x3f] sm:$0xff] }
  0x28   : > { %v1063_v41 = vld [vmem:[#allocation2 + $0x46] sm:$0xff]  ;;  %v2495_v55 = vld [vmem:[#allocation2 + $0x38] sm:$0xff] }
  0x29   : > { %v2507_v59 = vld [vmem:[#allocation2 + $0x48] sm:$0xff] }
  0x2a   : > { %1828 = vmatmul.mubr.msk.bf16.gmra.mrb[8].mxu1 %vm254_vm2, %v245_v22  ;;  %v1056_v22 = vld [vmem:[#allocation2 + $0xe] sm:$0xff]  ;;  %v715_v60 = vpack.c.bf16 %v2507_v59, %v2507_v59 }
  0x2b   : > { %1916 = vmatmul.mubr.msk.bf16.gmra.mrb[8].mxu0 %vm254_vm2, %v713_v23  ;;  %1831 = vmatprep.mubr.msk.bf16.mxu1 %vm2266_vm1, %v2265_v2  ;;  %v1057_v23 = vld [vmem:[#allocation2 + $0x16] sm:$0xff] }
  0x2c   : > { %1929 = vmatprep.mubr.msk.bf16.mxu0 %vm2266_vm1, %v2265_v2  ;;  %v1068_v25 = vpack.c.bf16 %v1057_v23, %v1056_v22 }
  0x32   : > { %1832 = vmatmul.mubr.msk.bf16.gmra.mrb[12].mxu1 %vm254_vm2, %v246_v26  ;;  %v2201_v26 = vld [vmem:[%s2711_s1 + $0x40] sm:$0xff]  }
  0x33   : > { %1930 = vmatmul.mubr.msk.bf16.vlgmr.msra.gmra.mrb[0].mxu0 %vm254_vm2, %v830_v27  ;;  %1835 = vmatprep.mubr.msk.bf16.mxu1 %vm2266_vm1, %v2265_v2  ;;  %v478_v27 = vld [vmem:[#allocation2 + $0x43] sm:$0xff] }
  0x34   : > { %1950 = vmatpush3.bf16.msra.mxu0 %v2197_v28  ;;  %1933 = vmatprep.mubr.msk.bf16.mxu0 %vm2266_vm1, %v2265_v2  ;;  %v1058_v28 = vld [vmem:[#allocation2 + $0x1e] sm:$0xff] }
  0x35   : > { %1971 = vmatprep.subr.bf16.mxu0 %v2265_v2 }
  0x3a   : > { %1836 = vmatmul.mubr.msk.bf16.gmra.mrb[16].mxu1 %vm254_vm2, %v247_v30  ;;  %v486_v30 = vpack.c.bf16 %v478_v27, %v478_v27 }
  0x3b   : > { %1934 = vmatmul.mubr.msk.bf16.gmra.mrb[4].mxu0 %vm254_vm2, %v831_v31  ;;  %1841 = vmatprep.mubr.msk.bf16.mxu1 %vm2266_vm1, %v2265_v2  ;;  %v1069_v31 = vpack.c.bf16 %v1059_v29, %v1058_v28 }
  0x3c   : > { %1937 = vmatprep.mubr.msk.bf16.mxu0 %vm2266_vm1, %v2265_v2 }
  0x42   : > { %1842 = vmatmul.mubr.msk.bf16.vlgmr.msra.gmra.mrb[0].mxu1 %vm254_vm2, %v363_v34  ;;  %v1060_v34 = vld [vmem:[#allocation2 + $0x2e] sm:$0xff] }
  0x43   : > { %1938 = vmatmul.mubr.msk.bf16.gmra.mrb[8].mxu0 %vm254_vm2, %v832_v35  ;;  %1845 = vmatprep.mubr.msk.bf16.mxu1 %vm2266_vm1, %v2265_v2  ;;  %v1061_v35 = vld [vmem:[#allocation2 + $0x36] sm:$0xff] }
  0x44   : > { %1862 = vmatpush3.bf16.msra.mxu1 %v2198_v36  ;;  %1941 = vmatprep.mubr.msk.bf16.mxu0 %vm2266_vm1, %v2265_v2  ;;  %v601_v36 = vpack.c.bf16 %v590_v33, %v589_v32  ;;  %v1070_v37 = vpack.c.bf16 %v1061_v35, %v1060_v34 }
  0x45   : > { %1883 = vmatprep.subr.bf16.mxu1 %v2265_v2 }
  0x4a   : > { %1846 = vmatmul.mubr.msk.bf16.gmra.mrb[4].mxu1 %vm254_vm2, %v364_v39  ;;  %v592_v39 = vld [vmem:[#allocation2 + $0x1f] sm:$0xff] }
  0x4b   : > { %1942 = vmatmul.mubr.msk.bf16.gmra.mrb[12].mxu0 %vm254_vm2, %v833_v40  ;;  %1849 = vmatprep.mubr.msk.bf16.mxu1 %vm2266_vm1, %v2265_v2  ;;  %v1062_v40 = vld [vmem:[#allocation2 + $0x3e] sm:$0xff]  ;;  %v602_v42 = vpack.c.bf16 %v592_v39, %v591_v38 }
  0x4c   : > { %1945 = vmatprep.mubr.msk.bf16.mxu0 %vm2266_vm1, %v2265_v2  ;;  %v1071_v43 = vpack.c.bf16 %v1063_v41, %v1062_v40 }
  0x52   : > { %1850 = vmatmul.mubr.msk.bf16.gmra.mrb[8].mxu1 %vm254_vm2, %v365_v44  ;;  %v593_v44 = vld [vmem:[#allocation2 + $0x27] sm:$0xff] }
  0x53   : > { %1946 = vmatmul.mubr.msk.bf16.gmra.mrb[16].mxu0 %vm254_vm2, %v834_v45  ;;  %1853 = vmatprep.mubr.msk.bf16.mxu1 %vm2266_vm1, %v2265_v2  ;;  %v594_v45 = vld [vmem:[#allocation2 + $0x2f] sm:$0xff]  ;;  %v1188_v54 = vpack.c.bf16 %v593_v44, %v592_v39 }
  0x54   : > { %1951 = vmatprep.mubr.msk.bf16.mxu0 %vm2266_vm1, %v2265_v2  ;;  %v603_v46 = vpack.c.bf16 %v594_v45, %v593_v44  ;;  %v1189_v58 = vpack.c.bf16 %v595_v48, %v594_v45 }
  0x5a   : > { %1854 = vmatmul.mubr.msk.bf16.gmra.mrb[12].mxu1 %vm254_vm2, %v366_v50  ;;  %v604_v50 = vpack.c.bf16 %v596_v49, %v595_v48 }
  0x5b   : > { %1952 = vmatmul.mubr.msk.bf16.vlgmr.msra.gmra.mrb[0].mxu0 %vm254_vm2, %v949_v51  ;;  %1857 = vmatprep.mubr.msk.bf16.mxu1 %vm2266_vm1, %v2265_v2  ;;  %v1187_v51 = vpack.c.bf16 %v591_v38, %v590_v33 }
  0x5c   : > { %1972 = vmatpush3.bf16.msra.mxu0 %v2199_v52  ;;  %1955 = vmatprep.mubr.msk.bf16.mxu0 %vm2266_vm1, %v2265_v2  ;;  %v597_v52 = vld [vmem:[#allocation2 + $0x47] sm:$0xff] }
  0x5d   : > { %1993 = vmatprep.subr.bf16.mxu0 %v2265_v2  ;;  %v605_v53 = vpack.c.bf16 %v597_v52, %v597_v52  ;;  %v1190_v61 = vpack.c.bf16 %v597_v52, %v596_v49 }
  0x62   : > { %1858 = vmatmul.mubr.msk.bf16.gmra.mrb[16].mxu1 %vm254_vm2, %v367_v56  ;;  %v2497_v56 = vld [vmem:[#allocation2 + $0x40] sm:$0xff] }
  0x63   : > { %1956 = vmatmul.mubr.msk.bf16.gmra.mrb[4].mxu0 %vm254_vm2, %v950_v57  ;;  %1863 = vmatprep.mubr.msk.bf16.mxu1 %vm2266_vm1, %v2265_v2  ;;  %v714_v57 = vpack.c.bf16 %v2497_v56, %v2495_v55 }
  0x64   : > { %1959 = vmatprep.mubr.msk.bf16.mxu0 %vm2266_vm1, %v2265_v2 }
  0x6a   : > { %1864 = vmatmul.mubr.msk.bf16.vlgmr.msra.gmra.mrb[0].mxu1 %vm254_vm2, %v482_v62  ;;  %v1183_v62 = vld [vmem:[#allocation2 + $0x4f] sm:$0xff] }
  0x6b   : > { %1960 = vmatmul.mubr.msk.bf16.gmra.mrb[8].mxu0 %vm254_vm2, %v951_v63  ;;  %1867 = vmatprep.mubr.msk.bf16.mxu1 %vm2266_vm1, %v2265_v2  ;;  %v1191_v63 = vpack.c.bf16 %v1183_v62, %v1183_v62 }
  0x6c   : > { %1884 = vmatpush3.bf16.msra.mxu1 %v2200_v0  ;;  %1963 = vmatprep.mubr.msk.bf16.mxu0 %vm2266_vm1, %v2265_v2 }
  0x6d   : > { %2015 = vmatprep.subr.bf16.mxu1 %v2265_v2 }
  0x72   : > { %1868 = vmatmul.mubr.msk.bf16.gmra.mrb[4].mxu1 %vm254_vm2, %v483_v9 }
  0x73   : > { %1964 = vmatmul.mubr.msk.bf16.gmra.mrb[12].mxu0 %vm254_vm2, %v952_v10  ;;  %1871 = vmatprep.mubr.msk.bf16.mxu1 %vm2266_vm1, %v2265_v2 }
  0x74   : > { %1967 = vmatprep.mubr.msk.bf16.mxu0 %vm2266_vm1, %v2265_v2 }
  0x7a   : > { %1872 = vmatmul.mubr.msk.bf16.gmra.mrb[8].mxu1 %vm254_vm2, %v484_v16 }
  0x7b   : > { %1968 = vmatmul.mubr.msk.bf16.gmra.mrb[16].mxu0 %vm254_vm2, %v953_v17  ;;  %1875 = vmatprep.mubr.msk.bf16.mxu1 %vm2266_vm1, %v2265_v2 }
  0x7c   : > { %1973 = vmatprep.mubr.msk.bf16.mxu0 %vm2266_vm1, %v2265_v2 }
  0x82   : > { %1876 = vmatmul.mubr.msk.bf16.gmra.mrb[12].mxu1 %vm254_vm2, %v485_v24 }
  0x83   : > { %1974 = vmatmul.mubr.msk.bf16.vlgmr.msra.gmra.mrb[0].mxu0 %vm254_vm2, %v1068_v25  ;;  %1879 = vmatprep.mubr.msk.bf16.mxu1 %vm2266_vm1, %v2265_v2 }
  0x84   : > { %1994 = vmatpush3.bf16.msra.mxu0 %v2201_v26  ;;  %1977 = vmatprep.mubr.msk.bf16.mxu0 %vm2266_vm1, %v2265_v2 }
  0x8a   : > { %1880 = vmatmul.mubr.msk.bf16.gmra.mrb[16].mxu1 %vm254_vm2, %v486_v30 }
  0x8b   : > { %1978 = vmatmul.mubr.msk.bf16.gmra.mrb[4].mxu0 %vm254_vm2, %v1069_v31  ;;  %1885 = vmatprep.mubr.msk.bf16.mxu1 %vm2266_vm1, %v2265_v2 }
  0x8c   : > { %1981 = vmatprep.mubr.msk.bf16.mxu0 %vm2266_vm1, %v2265_v2 }
  0x92   : > { %1886 = vmatmul.mubr.msk.bf16.vlgmr.msra.gmra.mrb[0].mxu1 %vm254_vm2, %v601_v36 }
  0x93   : > { %1982 = vmatmul.mubr.msk.bf16.gmra.mrb[8].mxu0 %vm254_vm2, %v1070_v37  ;;  %1889 = vmatprep.mubr.msk.bf16.mxu1 %vm2266_vm1, %v2265_v2 }
  0x94   : > { %2016 = vmatpush3.bf16.msra.mxu1 %v2322_v3  ;;  %1985 = vmatprep.mubr.msk.bf16.mxu0 %vm2266_vm1, %v2265_v2  ;;  %v1064_v3 = vld [vmem:[#allocation2 + $0x4e] sm:$0xff] }
  0x95   : > { %v1072_v47 = vpack.c.bf16 %v1064_v3, %v1064_v3 }
  0x9a   : > { %1890 = vmatmul.mubr.msk.bf16.gmra.mrb[4].mxu1 %vm254_vm2, %v602_v42 }
  0x9b   : > { %1986 = vmatmul.mubr.msk.bf16.gmra.mrb[12].mxu0 %vm254_vm2, %v1071_v43  ;;  %1893 = vmatprep.mubr.msk.bf16.mxu1 %vm2266_vm1, %v2265_v2 }
  0x9c   : > { %1989 = vmatprep.mubr.msk.bf16.mxu0 %vm2266_vm1, %v2265_v2 }
  0xa2   : > { %1894 = vmatmul.mubr.msk.bf16.gmra.mrb[8].mxu1 %vm254_vm2, %v603_v46 }
  0xa3   : > { %1990 = vmatmul.mubr.msk.bf16.gmra.mrb[16].mxu0 %vm254_vm2, %v1072_v47  ;;  %1897 = vmatprep.mubr.msk.bf16.mxu1 %vm2266_vm1, %v2265_v2 }
  0xa4   : > { %1995 = vmatprep.mubr.msk.bf16.mxu0 %vm2266_vm1, %v2265_v2 }
  0xaa   : > { %1898 = vmatmul.mubr.msk.bf16.gmra.mrb[12].mxu1 %vm254_vm2, %v604_v50 }
  0xab   : > { %1996 = vmatmul.mubr.msk.bf16.vlgmr.msra.gmra.mrb[0].mxu0 %vm254_vm2, %v1187_v51  ;;  %1901 = vmatprep.mubr.msk.bf16.mxu1 %vm2266_vm1, %v2265_v2 }
  0xac   : > { %1999 = vmatprep.mubr.msk.bf16.mxu0 %vm2266_vm1, %v2265_v2 }
  0xb2   : > { %1902 = vmatmul.mubr.msk.bf16.gmra.mrb[16].mxu1 %vm254_vm2, %v605_v53 }
  0xb3   : > { %2000 = vmatmul.mubr.msk.bf16.gmra.mrb[4].mxu0 %vm254_vm2, %v1188_v54  ;;  %1919 = vmatprep.mubr.msk.bf16.mxu1 %vm2266_vm1, %v2265_v2 }
  0xb4   : > { %2003 = vmatprep.mubr.msk.bf16.mxu0 %vm2266_vm1, %v2265_v2 }
  0xba   : > { %1920 = vmatmul.mubr.msk.bf16.vlgmr.msra.gmra.mrb[12].mxu1 %vm254_vm2, %v714_v57  ;;  %v2268_v57 = vmov 0  }
  0xbb   : > { %2004 = vmatmul.mubr.msk.bf16.gmra.mrb[8].mxu0 %vm254_vm2, %v1189_v58  ;;  %1923 = vmatprep.mubr.msk.bf16.mxu1 %vm2266_vm1, %v2265_v2 }
  0xbc   : > { %2007 = vmatprep.mubr.msk.bf16.mxu0 %vm2266_vm1, %v2265_v2  ;;  %2192 = vset.pattern.permute.xlu1 %v2268_v57 }
  0xbd   : > { %2191 = vset.pattern.permute.xlu0 %v2268_v57 }
  0xc2   : > { %1924 = vmatmul.mubr.msk.bf16.gmra.mrb[16].mxu1 %vm254_vm2, %v715_v60 }
  0xc3   : > { %2008 = vmatmul.mubr.msk.bf16.gmra.mrb[12].mxu0 %vm254_vm2, %v1190_v61 }
  0xc4   : > { %2011 = vmatprep.mubr.msk.bf16.mxu0 %vm2266_vm1, %v2265_v2  ;;  %v1681_v2 = vld [vmem:[%s2712_s2] ss:$0 sm:$0xff] }
  0xcb   : > { %2012 = vmatmul.mubr.msk.bf16.gmra.mrb[16].mxu0 %vm254_vm2, %v1191_v63 }
 0x165   : > { %v661_v0 = vpop.f32.mrb[0].mxu1 }
 0x166   : > { %v1887_v1 = vpop.f32.mrb[1].mxu1  ;;  %v2017_v18 = vadd.f32 %v1681_v2, %v661_v0 }
 0x167   : > { %v664_v4 = vpop.f32.mrb[2].mxu1 }
 0x168   : > { %v1888_v5 = vpop.f32.mrb[3].mxu1  ;;  %v2019_v22 = vadd.f32 %v1681_v2, %v664_v4 }
 0x16d   : > { %v669_v7 = vpop.f32.mrb[4].mxu1 }
 0x16e   : > { %v1891_v9 = vpop.f32.mrb[5].mxu1  ;;  %v2021_v28 = vadd.f32 %v1681_v2, %v669_v7 }
 0x16f   : > { %v672_v10 = vpop.f32.mrb[6].mxu1  ;;  %v2531_v9 = vld [vmem:[%s2307_s21] sm:$0xff] }
 0x170   : > { %v1892_v11 = vpop.f32.mrb[7].mxu1  ;;  %v2023_v30 = vadd.f32 %v1681_v2, %v672_v10 }
 0x171   : > { %v2535_v11 = vld [vmem:[%s2307_s21 + $0x8] sm:$0xff] }
 0x175   : > { %v677_v12 = vpop.f32.mrb[8].mxu1 }
 0x176   : > { %v1895_v13 = vpop.f32.mrb[9].mxu1  ;;  %v2025_v36 = vadd.f32 %v1681_v2, %v677_v12 }
 0x177   : > { %v680_v16 = vpop.f32.mrb[10].mxu1 }
 0x178   : > { %v1896_v17 = vpop.f32.mrb[11].mxu1  ;;  %v2027_v40 = vadd.f32 %v1681_v2, %v680_v16  ;;  %v2539_v16 = vld [vmem:[%s2307_s21 + $0x10] sm:$0xff] }
 0x17e   : > { %v1247_v19 = vpop.f32.mrb[0].mxu0 }
 0x17f   : > { %v2018_v23 = vadd.f32 %v2017_v18, %v1247_v19  ;;  %v1997_v24 = vpop.f32.mrb[1].mxu0  ;;  %v2543_v18 = vld [vmem:[%s2307_s21 + $0x18] sm:$0xff] }
 0x180   : > { %v1250_v25 = vpop.f32.mrb[2].mxu0  ;;  %v2550_v24 = vld [vmem:[%s2307_s21 + $0x28] sm:$0xff] }
 0x181   : > { %v2020_v26 = vadd.f32 %v2019_v22, %v1250_v25  ;;  %1375 = vrot.lane.b32.xlu0 %v2018_v23, %s2267_s20  ;;  %v1998_v27 = vpop.f32.mrb[3].mxu0  ;;  %v1303_v10 = vadd.f32 %v2018_v23, %v2531_v9  ;;  %v2547_v23 = vld [vmem:[%s2307_s21 + $0x20] sm:$0xff] }
 0x183   : > { %v1752_v12 = vmul.f32 -1.442695, %v1303_v10  ;;  %v1304_v13 = vadd.f32 %v2020_v26, %v2535_v11 }
 0x185   : > { %1377 = vrot.lane.b32.xlu0 %v2020_v26, %s2267_s20  ;;  %2202 = vpow2.f32 %v1752_v12  ;;  %v1753_v17 = vmul.f32 -1.442695, %v1304_v13 }
 0x186   : > { %v1255_v29 = vpop.f32.mrb[4].mxu0 }
 0x187   : > { %v2022_v31 = vadd.f32 %v2021_v28, %v1255_v29  ;;  %v2001_v32 = vpop.f32.mrb[5].mxu0  ;;  %2204 = vpow2.f32 %v1753_v17 }
 0x188   : > { %v1258_v33 = vpop.f32.mrb[6].mxu0 }
 0x189   : > { %v2024_v34 = vadd.f32 %v2023_v30, %v1258_v33  ;;  %1379 = vrot.lane.b32.xlu1 %v2022_v31, %s2267_s20  ;;  %v2002_v35 = vpop.f32.mrb[7].mxu0 }
 0x18b   : > { %v1306_v22 = vadd.f32 %v2024_v34, %v2543_v18 }
 0x18d   : > { %1381 = vrot.lane.b32.xlu1 %v2024_v34, %s2267_s20  ;;  %v795_v37 = vpop.f32.mrb[12].mxu1  ;;  %v1755_v25 = vmul.f32 -1.442695, %v1306_v22  ;;  %v2558_v34 = vld [vmem:[%s2307_s21 + $0x38] sm:$0xff] }
 0x18e   : > { %v1263_v38 = vpop.f32.mrb[8].mxu0  ;;  %v1921_v39 = vpop.f32.mrb[13].mxu1  ;;  %v2029_v47 = vadd.f32 %v1681_v2, %v795_v37 }
 0x18f   : > { %v2026_v41 = vadd.f32 %v2025_v36, %v1263_v38  ;;  %v2005_v42 = vpop.f32.mrb[9].mxu0  ;;  %v798_v43 = vpop.f32.mrb[14].mxu1 }
 0x190   : > { %v1266_v44 = vpop.f32.mrb[10].mxu0  ;;  %v1922_v45 = vpop.f32.mrb[15].mxu1  ;;  %v2031_v51 = vadd.f32 %v1681_v2, %v798_v43 }
 0x191   : > { %v2028_v3 = vadd.f32 %v2027_v40, %v1266_v44  ;;  %1383 = vrot.lane.b32.xlu0 %v2026_v41, %s2267_s20  ;;  %v2006_v46 = vpop.f32.mrb[11].mxu0  ;;  %v1307_v26 = vadd.f32 %v2026_v41, %v2547_v23  ;;  %v2203_v27 = vpop.eup %2202  ;;  %v2563_v41 = vld [vmem:[%s2307_s21 + $0x40] sm:$0xff] }
 0x192   : > { %v1339_v30 = vadd.f32 1.0, %v2203_v27  ;;  %v2205_v32 = vpop.eup %2204 }
 0x193   : > { %1385 = vrot.lane.b32.xlu1 %v2028_v3, %s2267_s20  ;;  %v1308_v28 = vadd.f32 %v2028_v3, %v2550_v24  ;;  %v1756_v29 = vmul.f32 -1.442695, %v1307_v26  ;;  %v1340_v36 = vadd.f32 1.0, %v2205_v32 }
 0x195   : > { %v803_v48 = vpop.f32.mrb[16].mxu1  ;;  %v1757_v33 = vmul.f32 -1.442695, %v1308_v28 }
 0x196   : > { %v1271_v49 = vpop.f32.mrb[12].mxu0  ;;  %v1925_v50 = vpop.f32.mrb[17].mxu1  ;;  %v2033_v63 = vadd.f32 %v1681_v2, %v803_v48  ;;  %v1305_v2 = vadd.f32 %v2022_v31, %v2539_v16  ;;  %v2555_v31 = vld [vmem:[%s2307_s21 + $0x30] sm:$0xff]  ;;  %s2269_s21 = smov 16  }
 0x197   : > { %v2030_v52 = vadd.f32 %v2029_v47, %v1271_v49  ;;  %v2009_v53 = vpop.f32.mrb[13].mxu0  ;;  %v806_v54 = vpop.f32.mrb[18].mxu1 }
 0x198   : > { %v1274_v58 = vpop.f32.mrb[14].mxu0  ;;  %v1926_v60 = vpop.f32.mrb[19].mxu1  ;;  %v1754_v19 = vmul.f32 -1.442695, %v1305_v2 }
 0x199   : > { %v2032_v61 = vadd.f32 %v2031_v51, %v1274_v58  ;;  %1387 = vrot.lane.b32.xlu0 %v2030_v52, %s2267_s20  ;;  %v2010_v62 = vpop.f32.mrb[15].mxu0  ;;  %v1309_v35 = vadd.f32 %v2030_v52, %v2555_v31 }
 0x19a   : > { %2206 = vpow2.f32 %v1754_v19 }
 0x19b   : > { %1389 = vrot.lane.b32.xlu1 %v2032_v61, %s2267_s20  ;;  %2208 = vpow2.f32 %v1755_v25  ;;  %v1310_v38 = vadd.f32 %v2032_v61, %v2558_v34  ;;  %v1758_v39 = vmul.f32 -1.442695, %v1309_v35 }
 0x19c   : > { %2210 = vpow2.f32 %v1756_v29 }
 0x19d   : > { %2212 = vrcp.f32 %v1339_v30  ;;  %v1759_v43 = vmul.f32 -1.442695, %v1310_v38  ;;  %v1468_v38 = vld [vmem:[%s2713_s3 + $0x18] sm:$0xff] }
 0x19e   : > { %v1279_v0 = vpop.f32.mrb[16].mxu0  ;;  %2214 = vpow2.f32 %v1757_v33  ;;  %v1465_v33 = vld [vmem:[%s2713_s3] sm:$0xff] }
 0x19f   : > { %v2034_v1 = vadd.f32 %v2033_v63, %v1279_v0  ;;  %v2013_v4 = vpop.f32.mrb[17].mxu0  ;;  %2216 = vrcp.f32 %v1340_v36 }
 0x1a0   : > { %v1282_v5 = vpop.f32.mrb[18].mxu0  ;;  %2218 = vpow2.f32 %v1758_v39  ;;  %v1466_v39 = vld [vmem:[%s2713_s3 + $0x8] sm:$0xff] }
 0x1a1   : > { %1391 = vrot.lane.b32.xlu0 %v2034_v1, %s2267_s20  ;;  %v2014_v7 = vpop.f32.mrb[19].mxu0  ;;  %v1311_v44 = vadd.f32 %v2034_v1, %v2563_v41 }
 0x1a3   : > { %v1760_v49 = vmul.f32 -1.442695, %v1311_v44  ;;  %v1469_v44 = vld [vmem:[%s2713_s3 + $0x20] sm:$0xff] }
 0x1a4   : > { %v2207_v37 = vpop.eup %2206 }
 0x1a5   : > { %v1341_v40 = vadd.f32 1.0, %v2207_v37  ;;  %v2209_v42 = vpop.eup %2208 }
 0x1a6   : > { %v1342_v45 = vadd.f32 1.0, %v2209_v42  ;;  %v2211_v3 = vpop.eup %2210  ;;  %v1467_v42 = vld [vmem:[%s2713_s3 + $0x10] sm:$0xff] }
 0x1a7   : > { %2220 = vrcp.f32 %v1341_v40  ;;  %v2566_v46 = vpop.eup %2212  ;;  %v1343_v51 = vadd.f32 1.0, %v2211_v3  ;;  %v1470_v40 = vld [vmem:[%s2713_s3 + $0x28] sm:$0xff]  ;;  %v1473_v3 = vld [vmem:[%s2713_s3 + $0x40] sm:$0xff] }
 0x1a8   : > { %2222 = vpow2.f32 %v1759_v43  ;;  %v2215_v48 = vpop.eup %2214  ;;  %v1472_v43 = vld [vmem:[%s2713_s3 + $0x38] sm:$0xff] }
 0x1a9   : > { %2224 = vrcp.f32 %v1342_v45  ;;  %v2570_v52 = vpop.eup %2216  ;;  %v1344_v53 = vadd.f32 1.0, %v2215_v48  ;;  %v1471_v45 = vld [vmem:[%s2713_s3 + $0x30] sm:$0xff] }
 0x1aa   : > { %2226 = vpow2.f32 %v1760_v49  ;;  %v2219_v58 = vpop.eup %2218 }
 0x1ab   : > { %2228 = vrcp.f32 %v1343_v51  ;;  %v1345_v0 = vadd.f32 1.0, %v2219_v58 }
 0x1ac   : > { %2230 = vrcp.f32 %v1344_v53 }
 0x1ad   : > { %2232 = vrcp.f32 %v1345_v0 }
 0x1b1   : > { %v2574_v60 = vpop.eup %2220 }
 0x1b2   : > { %v2223_v62 = vpop.eup %2222 }
 0x1b3   : > { %v2578_v1 = vpop.eup %2224  ;;  %v1346_v4 = vadd.f32 1.0, %v2223_v62 }
 0x1b4   : > { %v2227_v10 = vpop.eup %2226 }
 0x1b5   : > { %v2582_v12 = vpop.eup %2228  ;;  %2234 = vrcp.f32 %v1346_v4  ;;  %v1347_v19 = vadd.f32 1.0, %v2227_v10 }
 0x1b6   : > { %v2585_v2 = vpop.eup %2230 }
 0x1b7   : > { %2236 = vrcp.f32 %v1347_v19  ;;  %v2590_v26 = vpop.eup %2232 }
 0x1bf   : > { %v2593_v29 = vpop.eup %2234 }
 0x1c1   : > { %v2601_v35 = vpop.eup %2236 }
 0x1f3   : > { %v1376_v47 = vpop.permute.xlu0 %1375 }
 0x1f4   : > { %v1402_v50 = vmul.f32 %v2566_v46, %v1376_v47 }
 0x1f6   : > { %1420 = vrot.lane.b32.xlu1 %v1402_v50, %s2269_s21 }
 0x1f7   : > { %v1378_v54 = vpop.permute.xlu0 %1377 }
 0x1f8   : > { %v1403_v57 = vmul.f32 %v2570_v52, %v1378_v54 }
 0x1fa   : > { %1422 = vrot.lane.b32.xlu0 %v1403_v57, %s2269_s21 }
 0x1fb   : > { %v1380_v61 = vpop.permute.xlu1 %1379 }
 0x1fc   : > { %v1404_v63 = vmul.f32 %v2574_v60, %v1380_v61 }
 0x1fe   : > { %1424 = vrot.lane.b32.xlu1 %v1404_v63, %s2269_s21 }
 0x1ff   : > { %v1382_v5 = vpop.permute.xlu1 %1381 }
 0x200   : > { %v1405_v7 = vmul.f32 %v2578_v1, %v1382_v5 }
 0x202   : > { %1426 = vrot.lane.b32.xlu0 %v1405_v7, %s2269_s21 }
 0x203   : > { %v1384_v13 = vpop.permute.xlu0 %1383 }
 0x204   : > { %v1406_v17 = vmul.f32 %v2582_v12, %v1384_v13 }
 0x205   : > { %v1386_v22 = vpop.permute.xlu1 %1385 }
 0x206   : > { %v1407_v25 = vmul.f32 %v2585_v2, %v1386_v22  ;;  %1428 = vrot.lane.b32.xlu1 %v1406_v17, %s2269_s21 }
 0x208   : > { %1430 = vrot.lane.b32.xlu0 %v1407_v25, %s2269_s21 }
 0x20b   : > { %v1388_v27 = vpop.permute.xlu0 %1387 }
 0x20c   : > { %v1408_v28 = vmul.f32 %v2590_v26, %v1388_v27 }
 0x20d   : > { %v1390_v30 = vpop.permute.xlu1 %1389 }
 0x20e   : > { %v1409_v32 = vmul.f32 %v2593_v29, %v1390_v30  ;;  %1432 = vrot.lane.b32.xlu1 %v1408_v28, %s2269_s21 }
 0x210   : > { %1434 = vrot.lane.b32.xlu0 %v1409_v32, %s2269_s21 }
 0x213   : > { %v1392_v36 = vpop.permute.xlu0 %1391 }
 0x214   : > { %v1410_v37 = vmul.f32 %v2601_v35, %v1392_v36  ;;  %1548 = vperm.xlu0 %2191, %v1465_v33   ;;  %v1474_v36 = vsub.f32 1.0, %v2566_v46 }
 0x216   : > { %1436 = vrot.lane.b32.xlu1 %v1410_v37, %s2269_s21 }
 0x218   : > { %1563 = vperm.xlu0 %2191, %v1468_v38   ;;  %v1528_v38 = vmul.f32 %v2566_v46, %v2326_v6 }
 0x21a   : > { %1553 = vperm.xlu1 %2192, %v1466_v39  }
 0x21c   : > { %1573 = vperm.xlu0 %2191, %v1470_v40  }
 0x21e   : > { %1558 = vperm.xlu1 %2192, %v1467_v42   ;;  %v1475_v42 = vsub.f32 1.0, %v2570_v52 }
 0x220   : > { %1583 = vperm.xlu0 %2191, %v1472_v43  }
 0x222   : > { %1568 = vperm.xlu1 %2192, %v1469_v44  }
 0x226   : > { %1578 = vperm.xlu1 %2192, %v1471_v45   ;;  %v1529_v45 = vmul.f32 %v2570_v52, %v2331_v8  ;;  %v1477_v52 = vsub.f32 1.0, %v2578_v1 }
 0x22a   : > { %1588 = vperm.xlu1 %2192, %v1473_v3  }
 0x268   : > { %v1421_v47 = vpop.permute.xlu1 %1420 }
 0x269   : > { %v1447_v48 = vadd.f32 %v1421_v47, %v2531_v9 }
 0x26b   : > { %2238 = vtanh.f32 %v1447_v48  ;;  %v1476_v48 = vsub.f32 1.0, %v2574_v60 }
 0x26c   : > { %v1423_v49 = vpop.permute.xlu0 %1422 }
 0x26d   : > { %v1448_v50 = vadd.f32 %v1423_v49, %v2535_v11  ;;  %v1530_v49 = vmul.f32 %v2574_v60, %v2347_v14  ;;  %v1478_v60 = vsub.f32 1.0, %v2582_v12 }
 0x26f   : > { %2240 = vtanh.f32 %v1448_v50 }
 0x270   : > { %v1425_v51 = vpop.permute.xlu1 %1424 }
 0x271   : > { %v1449_v53 = vadd.f32 %v1425_v51, %v2539_v16 }
 0x273   : > { %2242 = vtanh.f32 %v1449_v53 }
 0x274   : > { %v1427_v54 = vpop.permute.xlu0 %1426 }
 0x275   : > { %v2239_v57 = vpop.eup %2238  ;;  %v1450_v58 = vadd.f32 %v1427_v54, %v2543_v18  ;;  %v1531_v54 = vmul.f32 %v2578_v1, %v2349_v15  ;;  %v1533_v1 = vmul.f32 %v2585_v2, %v2365_v21  ;;  %v1534_v21 = vmul.f32 %v2590_v26, %v2495_v55 }
 0x276   : > { %1492 = vrot.lane.b32.xlu0 %v2239_v57, %s2270_s16  ;;  %v1482_v55 = vsub.f32 1.0, %v2601_v35 }
 0x277   : > { %2244 = vtanh.f32 %v1450_v58 }
 0x278   : > { %v1429_v61 = vpop.permute.xlu1 %1428 }
 0x279   : > { %v2241_v62 = vpop.eup %2240  ;;  %v1451_v9 = vadd.f32 %v1429_v61, %v2547_v23 }
 0x27a   : > { %v1431_v63 = vpop.permute.xlu0 %1430  ;;  %1494 = vrot.lane.b32.xlu1 %v2241_v62, %s2270_s16  ;;  %v1532_v62 = vmul.f32 %v2582_v12, %v2363_v20  ;;  %v1480_v12 = vsub.f32 1.0, %v2590_v26 }
 0x27b   : > { %2246 = vtanh.f32 %v1451_v9  ;;  %v1452_v11 = vadd.f32 %v1431_v63, %v2550_v24  ;;  %v1479_v63 = vsub.f32 1.0, %v2585_v2 }
 0x27d   : > { %v2243_v16 = vpop.eup %2242  ;;  %2248 = vtanh.f32 %v1452_v11 }
 0x27e   : > { %1496 = vrot.lane.b32.xlu0 %v2243_v16, %s2270_s16 }
 0x280   : > { %v1433_v0 = vpop.permute.xlu1 %1432 }
 0x281   : > { %v2245_v18 = vpop.eup %2244  ;;  %v1453_v4 = vadd.f32 %v1433_v0, %v2555_v31 }
 0x282   : > { %v1435_v5 = vpop.permute.xlu0 %1434  ;;  %1498 = vrot.lane.b32.xlu1 %v2245_v18, %s2270_s16 }
 0x283   : > { %2250 = vtanh.f32 %v1453_v4  ;;  %v1454_v23 = vadd.f32 %v1435_v5, %v2558_v34  ;;  %v1481_v5 = vsub.f32 1.0, %v2593_v29 }
 0x285   : > { %v2247_v7 = vpop.eup %2246  ;;  %2252 = vtanh.f32 %v1454_v23 }
 0x286   : > { %1500 = vrot.lane.b32.xlu0 %v2247_v7, %s2270_s16 }
 0x287   : > { %v2249_v10 = vpop.eup %2248 }
 0x288   : > { %1502 = vrot.lane.b32.xlu1 %v2249_v10, %s2270_s16  ;;  %v1437_v24 = vpop.permute.xlu1 %1436  ;;  %v1535_v10 = vmul.f32 %v2593_v29, %v2497_v56  ;;  %v1536_v56 = vmul.f32 %v2601_v35, %v2507_v59 }
 0x289   : > { %v1455_v13 = vadd.f32 %v1437_v24, %v2563_v41 }
 0x28b   : > { %2254 = vtanh.f32 %v1455_v13 }
 0x28d   : > { %v2251_v17 = vpop.eup %2250 }
 0x28e   : > { %1504 = vrot.lane.b32.xlu0 %v2251_v17, %s2270_s16 }
 0x28f   : > { %v2253_v31 = vpop.eup %2252 }
 0x290   : > { %1506 = vrot.lane.b32.xlu1 %v2253_v31, %s2270_s16 }
 0x293   : > { %v1549_v22 = vpop.permute.xlu0 %1548 }
 0x295   : > { %v2255_v19 = vpop.eup %2254 }
 0x296   : > { %1508 = vrot.lane.b32.xlu0 %v2255_v19, %s2270_s16 }
 0x297   : > { %v1564_v27 = vpop.permute.xlu0 %1563 }
 0x299   : > { %v1554_v34 = vpop.permute.xlu1 %1553 }
 0x29b   : > { %v1574_v30 = vpop.permute.xlu0 %1573 }
 0x29d   : > { %v1559_v25 = vpop.permute.xlu1 %1558 }
 0x29f   : > { %v2647_v33 = vpop.permute.xlu0 %1583 }
 0x2a1   : > { %v1569_v28 = vpop.permute.xlu1 %1568 }
 0x2a5   : > { %v1579_v32 = vpop.permute.xlu1 %1578 }
 0x2a9   : > { %v2649_v41 = vpop.permute.xlu1 %1588 }
 0x2e8   : > { %v1493_v37 = vpop.permute.xlu0 %1492 }
 0x2e9   : > { %v1519_v39 = vmul.f32 %v1493_v37, %v1474_v36 }
 0x2eb   : > { %v1537_v40 = vadd.f32 %v1528_v38, %v1519_v39 }
 0x2ec   : > { %v1495_v43 = vpop.permute.xlu1 %1494 }
 0x2ed   : > { %v1591_v44 = vmul.f32 %v1549_v22, %v1537_v40  ;;  %v1520_v3 = vmul.f32 %v1495_v43, %v1475_v42 }
 0x2ef   : > { %1600 = vst.msk [vmem:[#allocation2 + $0x8] sm:$0xff] %vm254_vm2, %v1591_v44  ;;  %1609 = vst.msk [vmem:[%s2312_s24] sm:$0xff] %vm254_vm2, %v1591_v44  ;;  %v1538_v47 = vadd.f32 %v1529_v45, %v1520_v3 }
 0x2f0   : > { %v1497_v6 = vpop.permute.xlu0 %1496 }
 0x2f1   : > { %v1592_v46 = vmul.f32 %v1554_v34, %v1538_v47  ;;  %v1521_v50 = vmul.f32 %v1497_v6, %v1476_v48 }
 0x2f3   : > { %1601 = vst.msk [vmem:[#allocation2 + $0x10] sm:$0xff] %vm254_vm2, %v1592_v46  ;;  %1610 = vst.msk [vmem:[%s2312_s24 + $0x8] sm:$0xff] %vm254_vm2, %v1592_v46  ;;  %v1539_v8 = vadd.f32 %v1530_v49, %v1521_v50 }
 0x2f4   : > { %v1499_v51 = vpop.permute.xlu1 %1498 }
 0x2f5   : > { %v1593_v53 = vmul.f32 %v1559_v25, %v1539_v8  ;;  %v1522_v57 = vmul.f32 %v1499_v51, %v1477_v52 }
 0x2f7   : > { %1602 = vst.msk [vmem:[#allocation2 + $0x18] sm:$0xff] %vm254_vm2, %v1593_v53  ;;  %1611 = vst.msk [vmem:[%s2312_s24 + $0x10] sm:$0xff] %vm254_vm2, %v1593_v53  ;;  %v1540_v14 = vadd.f32 %v1531_v54, %v1522_v57 }
 0x2f8   : > { %v1501_v58 = vpop.permute.xlu0 %1500 }
 0x2f9   : > { %v1594_v61 = vmul.f32 %v1564_v27, %v1540_v14  ;;  %v1523_v9 = vmul.f32 %v1501_v58, %v1478_v60 }
 0x2fa   : > { %v1503_v11 = vpop.permute.xlu1 %1502 }
 0x2fb   : > { %1603 = vst.msk [vmem:[#allocation2 + $0x20] sm:$0xff] %vm254_vm2, %v1594_v61  ;;  %1612 = vst.msk [vmem:[%s2312_s24 + $0x18] sm:$0xff] %vm254_vm2, %v1594_v61  ;;  %v1541_v15 = vadd.f32 %v1532_v62, %v1523_v9  ;;  %v1524_v16 = vmul.f32 %v1503_v11, %v1479_v63 }
 0x2fd   : > { %v1595_v0 = vmul.f32 %v1569_v28, %v1541_v15  ;;  %v1542_v18 = vadd.f32 %v1533_v1, %v1524_v16 }
 0x2ff   : > { %1604 = vst.msk [vmem:[#allocation2 + $0x28] sm:$0xff] %vm254_vm2, %v1595_v0  ;;  %1613 = vst.msk [vmem:[%s2312_s24 + $0x20] sm:$0xff] %vm254_vm2, %v1595_v0  ;;  %v1596_v20 = vmul.f32 %v1574_v30, %v1542_v18 }
 0x300   : > { %v1505_v4 = vpop.permute.xlu0 %1504 }
 0x301   : > { %1605 = vst.msk [vmem:[#allocation2 + $0x30] sm:$0xff] %vm254_vm2, %v1596_v20  ;;  %1614 = vst.msk [vmem:[%s2312_s24 + $0x28] sm:$0xff] %vm254_vm2, %v1596_v20  ;;  %v1525_v2 = vmul.f32 %v1505_v4, %v1480_v12 }
 0x302   : > { %v1507_v23 = vpop.permute.xlu1 %1506 }
 0x303   : > { %v1543_v7 = vadd.f32 %v1534_v21, %v1525_v2  ;;  %v1526_v24 = vmul.f32 %v1507_v23, %v1481_v5 }
 0x305   : > { %v1597_v13 = vmul.f32 %v1579_v32, %v1543_v7  ;;  %v1544_v17 = vadd.f32 %v1535_v10, %v1526_v24 }
 0x307   : > { %1606 = vst.msk [vmem:[#allocation2 + $0x38] sm:$0xff] %vm254_vm2, %v1597_v13  ;;  %1615 = vst.msk [vmem:[%s2312_s24 + $0x30] sm:$0xff] %vm254_vm2, %v1597_v13  ;;  %v1598_v31 = vmul.f32 %v2647_v33, %v1544_v17 }
 0x308   : > { %v1509_v26 = vpop.permute.xlu0 %1508 }
 0x309   : > { %1607 = vst.msk [vmem:[#allocation2 + $0x40] sm:$0xff] %vm254_vm2, %v1598_v31  ;;  %1616 = vst.msk [vmem:[%s2312_s24 + $0x38] sm:$0xff] %vm254_vm2, %v1598_v31  ;;  %v1527_v29 = vmul.f32 %v1509_v26, %v1482_v55 }
 0x30b   : > { %v1545_v19 = vadd.f32 %v1536_v56, %v1527_v29 }
 0x30d   : > { %v1599_v34 = vmul.f32 %v2649_v41, %v1545_v19 }
 0x30f   : > { %1608 = vst.msk [vmem:[#allocation2 + $0x48] sm:$0xff] %vm254_vm2, %v1599_v34  ;;  %1617 = vst.msk [vmem:[%s2312_s24 + $0x40] sm:$0xff] %vm254_vm2, %v1599_v34 }
 0x310 PF: > { %s14_s15 = sadd.s32 1, %s2262_s15  }
 0x311   : > { %p11_p5 = scmp.ge.s32.totalorder %s14_s15, 6  }
 0x313   :  { %13 = sbr.rel (!%p11_p5) target bundleno = 1 (0x1), region = 78 }

</bundles_post_ra>
